<compile_context>
chip_gen: v5e
topology: v5e:2x2
jax: 0.10.0
libtpu: 0.0.40
codegen_flags: <defaults>
</compile_context>

<pallas_src>
import functools

import jax
import jax.numpy as jnp
from jax.experimental import pallas as pl
from jax.experimental.pallas import tpu as pltpu


def _conv2d_kernel(x_ref, w_ref, b_ref, o_ref, *,
                   cin, ksize_h, ksize_w, ho, wo, co_block):
    """Direct NCHW conv for one (sample, cout-block) grid step.

    x_ref: (1, Cin, Hp, Wp)        VMEM  padded input image
    w_ref: (Cout*Cin*KH*KW,)       SMEM  flattened OIHW weights
    b_ref: (Cout,)                 SMEM  bias
    o_ref: (1, co_block, Ho, Wo)   VMEM  output channels of this block
    """
    cb = pl.program_id(1)
    kk = ksize_h * ksize_w
    ck = cin * kk
    co_base = cb * co_block                 # first global out-channel of block

    # One f32 accumulator per output channel of this block.
    accs = [jnp.zeros((ho, wo), jnp.float32) for _ in range(co_block)]

    # Extract each shifted input window once, broadcast-FMA it into every
    # output channel of the block (VPU work; weight scalars come from SMEM).
    for ci in range(cin):
        for dh in range(ksize_h):
            for dw in range(ksize_w):
                patch = x_ref[0, ci, dh:dh + ho, dw:dw + wo].astype(jnp.float32)
                w_off = ci * kk + dh * ksize_w + dw
                for co in range(co_block):
                    w_scalar = w_ref[(co_base + co) * ck + w_off]
                    accs[co] = accs[co] + patch * w_scalar

    for co in range(co_block):
        o_ref[0, co] = (accs[co] + b_ref[co_base + co]).astype(o_ref.dtype)


def conv2d(x, weight, bias=None, *, stride=1, padding=0, co_block=None):
    """nn.Conv2d forward (stride=1, dilation=1, groups=1) on NCHW tensors."""
    N, Cin, H, W = x.shape
    Cout, Cin_w, KH, KW = weight.shape
    assert Cin_w == Cin, "groups != 1 not supported"
    assert stride == 1, "only stride=1 supported"  # TODO(synk): general stride

    if bias is None:
        bias = jnp.zeros((Cout,), jnp.float32)

    if padding > 0:
        x = jnp.pad(x, ((0, 0), (0, 0), (padding, padding), (padding, padding)))
    Hp, Wp = H + 2 * padding, W + 2 * padding
    Ho, Wo = Hp - KH + 1, Wp - KW + 1
    assert Ho > 0 and Wo > 0

    if co_block is None:
        co_block = min(Cout, 16)            # cover whole Cout when small
    co_block = max(1, min(co_block, Cout))
    while Cout % co_block:
        co_block -= 1
    n_co = Cout // co_block

    w_flat = weight.reshape(-1).astype(jnp.float32)   # (Cout*Cin*KH*KW,)
    b_vec = bias.astype(jnp.float32)                  # (Cout,)

    kernel = functools.partial(
        _conv2d_kernel,
        cin=Cin, ksize_h=KH, ksize_w=KW, ho=Ho, wo=Wo, co_block=co_block)

    itemsize = x.dtype.itemsize
    x_block_bytes = Cin * Hp * Wp * itemsize
    o_block_bytes = co_block * Ho * Wo * itemsize
    acc_bytes = co_block * Ho * Wo * 4
    vmem_limit = max(4 * 1024 * 1024,
                     4 * (x_block_bytes + o_block_bytes) + 2 * acc_bytes)

    out = pl.pallas_call(
        kernel,
        out_shape=jax.ShapeDtypeStruct((N, Cout, Ho, Wo), x.dtype),
        grid=(N, n_co),
        in_specs=[
            # Full padded image of one sample; last two dims = full array dims,
            # and the block index depends only on n -> stays resident across cb.
            pl.BlockSpec((1, Cin, Hp, Wp), lambda n, cb: (n, 0, 0, 0)),
            # Flattened weights / bias live whole in SMEM (scalar reads).
            pl.BlockSpec(memory_space=pltpu.MemorySpace.SMEM),
            pl.BlockSpec(memory_space=pltpu.MemorySpace.SMEM),
        ],
        out_specs=pl.BlockSpec((1, co_block, Ho, Wo),
                               lambda n, cb: (n, cb, 0, 0)),
        compiler_params=pltpu.CompilerParams(
            dimension_semantics=("parallel", "parallel"),
            vmem_limit_bytes=int(vmem_limit)),
        cost_estimate=pl.CostEstimate(
            flops=2 * N * Cout * Ho * Wo * Cin * KH * KW,
            transcendentals=0,
            bytes_accessed=int(x.size) * itemsize
                           + int(w_flat.size) * 4 + int(b_vec.size) * 4
                           + N * Cout * Ho * Wo * itemsize),
    )(x, w_flat, b_vec)
    return out


def _reference_conv2d(x, weight, bias, *, stride=1, padding=0):
    """Pure-JAX reference (XLA conv) for checking the Pallas kernel."""
    out = jax.lax.conv_general_dilated(
        x, weight,
        window_strides=(stride, stride),
        padding=((padding, padding), (padding, padding)),
        dimension_numbers=("NCHW", "OIHW", "NCHW"))
    return out + bias[None, :, None, None]


if __name__ == "__main__":
    key = jax.random.PRNGKey(0)
    kx, kw, kb = jax.random.split(key, 3)

    N, Cin, H, W = 2, 4, 16, 16
    Cout, K = 8, 3

    x = jax.random.normal(kx, (N, Cin, H, W), dtype=jnp.float32)
    weight = jax.random.normal(kw, (Cout, Cin, K, K), dtype=jnp.float32) * 0.1
    bias = jax.random.normal(kb, (Cout,), dtype=jnp.float32) * 0.1

    # Check both the padding=0 (PyTorch default) and padding=1 ("same") cases,
    # and both the single-block and multi-block output-channel paths.
    for pad, cb in ((0, None), (1, None), (1, 4)):
        y = conv2d(x, weight, bias, stride=1, padding=pad, co_block=cb)
        y = jax.block_until_ready(y)
        y_ref = _reference_conv2d(x, weight, bias, stride=1, padding=pad)
        assert y.shape == y_ref.shape, (y.shape, y_ref.shape)
        if not jnp.allclose(y, y_ref, atol=1e-4, rtol=1e-4):
            raise AssertionError(
                f"Pallas conv2d (padding={pad}, co_block={cb}) mismatch")

    print("KERNEL_OK")
</pallas_src>

<mosaic_0001>
module attributes {stable_mosaic.version = 11 : i64} {
  func.func @_conv2d_kernel(%arg0: i32, %arg1: i32, %arg2: memref<1x4x16x16xf32, #tpu.memory_space<vmem>>, %arg3: memref<288xf32, #tpu.memory_space<smem>>, %arg4: memref<8xf32, #tpu.memory_space<smem>>, %arg5: memref<1x8x14x14xf32, #tpu.memory_space<vmem>>) attributes {dimension_semantics = [#tpu.dimension_semantics<parallel>, #tpu.dimension_semantics<parallel>], iteration_bounds = array<i64: 2, 1>, scalar_prefetch = 0 : i64, scratch_operands = 0 : i64, tpu.core_type = #tpu.core_type<tc>, window_params = [{transform_indices = @transform_0, window_bounds = array<i64: 1, 4, 16, 16>}, {transform_indices = @transform_1, window_bounds = array<i64: 288>}, {transform_indices = @transform_2, window_bounds = array<i64: 8>}, {transform_indices = @transform_3, window_bounds = array<i64: 1, 8, 14, 14>}]} {
    %c8_i32 = arith.constant 8 : i32
    %0 = arith.muli %arg1, %c8_i32 : i32
    %cst = arith.constant 0.000000e+00 : f32
    %1 = vector.broadcast %cst : f32 to vector<14x14xf32>
    %cst_0 = arith.constant 0.000000e+00 : f32
    %2 = vector.broadcast %cst_0 : f32 to vector<14x14xf32>
    %cst_1 = arith.constant 0.000000e+00 : f32
    %3 = vector.broadcast %cst_1 : f32 to vector<14x14xf32>
    %cst_2 = arith.constant 0.000000e+00 : f32
    %4 = vector.broadcast %cst_2 : f32 to vector<14x14xf32>
    %cst_3 = arith.constant 0.000000e+00 : f32
    %5 = vector.broadcast %cst_3 : f32 to vector<14x14xf32>
    %cst_4 = arith.constant 0.000000e+00 : f32
    %6 = vector.broadcast %cst_4 : f32 to vector<14x14xf32>
    %cst_5 = arith.constant 0.000000e+00 : f32
    %7 = vector.broadcast %cst_5 : f32 to vector<14x14xf32>
    %cst_6 = arith.constant 0.000000e+00 : f32
    %8 = vector.broadcast %cst_6 : f32 to vector<14x14xf32>
    %c0 = arith.constant 0 : index
    %c0_7 = arith.constant 0 : index
    %c0_8 = arith.constant 0 : index
    %c0_9 = arith.constant 0 : index
    %9 = vector.load %arg2[%c0, %c0_7, %c0_8, %c0_9] : memref<1x4x16x16xf32, #tpu.memory_space<vmem>>, vector<1x1x14x14xf32>
    %10 = vector.shape_cast %9 : vector<1x1x14x14xf32> to vector<14x14xf32>
    %c0_i32 = arith.constant 0 : i32
    %11 = arith.addi %0, %c0_i32 : i32
    %c36_i32 = arith.constant 36 : i32
    %12 = arith.muli %11, %c36_i32 : i32
    %c0_i32_10 = arith.constant 0 : i32
    %13 = arith.addi %12, %c0_i32_10 : i32
    %14 = arith.index_cast %13 : i32 to index
    %15 = memref.load %arg3[%14] : memref<288xf32, #tpu.memory_space<smem>>
    %16 = vector.broadcast %15 : f32 to vector<14x14xf32>
    %17 = arith.mulf %10, %16 : vector<14x14xf32>
    %18 = arith.addf %1, %17 : vector<14x14xf32>
    %c1_i32 = arith.constant 1 : i32
    %19 = arith.addi %0, %c1_i32 : i32
    %c36_i32_11 = arith.constant 36 : i32
    %20 = arith.muli %19, %c36_i32_11 : i32
    %c0_i32_12 = arith.constant 0 : i32
    %21 = arith.addi %20, %c0_i32_12 : i32
    %22 = arith.index_cast %21 : i32 to index
    %23 = memref.load %arg3[%22] : memref<288xf32, #tpu.memory_space<smem>>
    %24 = vector.broadcast %23 : f32 to vector<14x14xf32>
    %25 = arith.mulf %10, %24 : vector<14x14xf32>
    %26 = arith.addf %2, %25 : vector<14x14xf32>
    %c2_i32 = arith.constant 2 : i32
    %27 = arith.addi %0, %c2_i32 : i32
    %c36_i32_13 = arith.constant 36 : i32
    %28 = arith.muli %27, %c36_i32_13 : i32
    %c0_i32_14 = arith.constant 0 : i32
    %29 = arith.addi %28, %c0_i32_14 : i32
    %30 = arith.index_cast %29 : i32 to index
    %31 = memref.load %arg3[%30] : memref<288xf32, #tpu.memory_space<smem>>
    %32 = vector.broadcast %31 : f32 to vector<14x14xf32>
    %33 = arith.mulf %10, %32 : vector<14x14xf32>
    %34 = arith.addf %3, %33 : vector<14x14xf32>
    %c3_i32 = arith.constant 3 : i32
    %35 = arith.addi %0, %c3_i32 : i32
    %c36_i32_15 = arith.constant 36 : i32
    %36 = arith.muli %35, %c36_i32_15 : i32
    %c0_i32_16 = arith.constant 0 : i32
    %37 = arith.addi %36, %c0_i32_16 : i32
    %38 = arith.index_cast %37 : i32 to index
    %39 = memref.load %arg3[%38] : memref<288xf32, #tpu.memory_space<smem>>
    %40 = vector.broadcast %39 : f32 to vector<14x14xf32>
    %41 = arith.mulf %10, %40 : vector<14x14xf32>
    %42 = arith.addf %4, %41 : vector<14x14xf32>
    %c4_i32 = arith.constant 4 : i32
    %43 = arith.addi %0, %c4_i32 : i32
    %c36_i32_17 = arith.constant 36 : i32
    %44 = arith.muli %43, %c36_i32_17 : i32
    %c0_i32_18 = arith.constant 0 : i32
    %45 = arith.addi %44, %c0_i32_18 : i32
    %46 = arith.index_cast %45 : i32 to index
    %47 = memref.load %arg3[%46] : memref<288xf32, #tpu.memory_space<smem>>
    %48 = vector.broadcast %47 : f32 to vector<14x14xf32>
    %49 = arith.mulf %10, %48 : vector<14x14xf32>
    %50 = arith.addf %5, %49 : vector<14x14xf32>
    %c5_i32 = arith.constant 5 : i32
    %51 = arith.addi %0, %c5_i32 : i32
    %c36_i32_19 = arith.constant 36 : i32
    %52 = arith.muli %51, %c36_i32_19 : i32
    %c0_i32_20 = arith.constant 0 : i32
    %53 = arith.addi %52, %c0_i32_20 : i32
    %54 = arith.index_cast %53 : i32 to index
    %55 = memref.load %arg3[%54] : memref<288xf32, #tpu.memory_space<smem>>
    %56 = vector.broadcast %55 : f32 to vector<14x14xf32>
    %57 = arith.mulf %10, %56 : vector<14x14xf32>
    %58 = arith.addf %6, %57 : vector<14x14xf32>
    %c6_i32 = arith.constant 6 : i32
    %59 = arith.addi %0, %c6_i32 : i32
    %c36_i32_21 = arith.constant 36 : i32
    %60 = arith.muli %59, %c36_i32_21 : i32
    %c0_i32_22 = arith.constant 0 : i32
    %61 = arith.addi %60, %c0_i32_22 : i32
    %62 = arith.index_cast %61 : i32 to index
    %63 = memref.load %arg3[%62] : memref<288xf32, #tpu.memory_space<smem>>
    %64 = vector.broadcast %63 : f32 to vector<14x14xf32>
    %65 = arith.mulf %10, %64 : vector<14x14xf32>
    %66 = arith.addf %7, %65 : vector<14x14xf32>
    %c7_i32 = arith.constant 7 : i32
    %67 = arith.addi %0, %c7_i32 : i32
    %c36_i32_23 = arith.constant 36 : i32
    %68 = arith.muli %67, %c36_i32_23 : i32
    %c0_i32_24 = arith.constant 0 : i32
    %69 = arith.addi %68, %c0_i32_24 : i32
    %70 = arith.index_cast %69 : i32 to index
    %71 = memref.load %arg3[%70] : memref<288xf32, #tpu.memory_space<smem>>
    %72 = vector.broadcast %71 : f32 to vector<14x14xf32>
    %73 = arith.mulf %10, %72 : vector<14x14xf32>
    %74 = arith.addf %8, %73 : vector<14x14xf32>
    %c0_25 = arith.constant 0 : index
    %c0_26 = arith.constant 0 : index
    %c0_27 = arith.constant 0 : index
    %c1 = arith.constant 1 : index
    %75 = vector.load %arg2[%c0_25, %c0_26, %c0_27, %c1] : memref<1x4x16x16xf32, #tpu.memory_space<vmem>>, vector<1x1x14x14xf32>
    %76 = vector.shape_cast %75 : vector<1x1x14x14xf32> to vector<14x14xf32>
    %c0_i32_28 = arith.constant 0 : i32
    %77 = arith.addi %0, %c0_i32_28 : i32
    %c36_i32_29 = arith.constant 36 : i32
    %78 = arith.muli %77, %c36_i32_29 : i32
    %c1_i32_30 = arith.constant 1 : i32
    %79 = arith.addi %78, %c1_i32_30 : i32
    %80 = arith.index_cast %79 : i32 to index
    %81 = memref.load %arg3[%80] : memref<288xf32, #tpu.memory_space<smem>>
    %82 = vector.broadcast %81 : f32 to vector<14x14xf32>
    %83 = arith.mulf %76, %82 : vector<14x14xf32>
    %84 = arith.addf %18, %83 : vector<14x14xf32>
    %c1_i32_31 = arith.constant 1 : i32
    %85 = arith.addi %0, %c1_i32_31 : i32
    %c36_i32_32 = arith.constant 36 : i32
    %86 = arith.muli %85, %c36_i32_32 : i32
    %c1_i32_33 = arith.constant 1 : i32
    %87 = arith.addi %86, %c1_i32_33 : i32
    %88 = arith.index_cast %87 : i32 to index
    %89 = memref.load %arg3[%88] : memref<288xf32, #tpu.memory_space<smem>>
    %90 = vector.broadcast %89 : f32 to vector<14x14xf32>
    %91 = arith.mulf %76, %90 : vector<14x14xf32>
    %92 = arith.addf %26, %91 : vector<14x14xf32>
    %c2_i32_34 = arith.constant 2 : i32
    %93 = arith.addi %0, %c2_i32_34 : i32
    %c36_i32_35 = arith.constant 36 : i32
    %94 = arith.muli %93, %c36_i32_35 : i32
    %c1_i32_36 = arith.constant 1 : i32
    %95 = arith.addi %94, %c1_i32_36 : i32
    %96 = arith.index_cast %95 : i32 to index
    %97 = memref.load %arg3[%96] : memref<288xf32, #tpu.memory_space<smem>>
    %98 = vector.broadcast %97 : f32 to vector<14x14xf32>
    %99 = arith.mulf %76, %98 : vector<14x14xf32>
    %100 = arith.addf %34, %99 : vector<14x14xf32>
    %c3_i32_37 = arith.constant 3 : i32
    %101 = arith.addi %0, %c3_i32_37 : i32
    %c36_i32_38 = arith.constant 36 : i32
    %102 = arith.muli %101, %c36_i32_38 : i32
    %c1_i32_39 = arith.constant 1 : i32
    %103 = arith.addi %102, %c1_i32_39 : i32
    %104 = arith.index_cast %103 : i32 to index
    %105 = memref.load %arg3[%104] : memref<288xf32, #tpu.memory_space<smem>>
    %106 = vector.broadcast %105 : f32 to vector<14x14xf32>
    %107 = arith.mulf %76, %106 : vector<14x14xf32>
    %108 = arith.addf %42, %107 : vector<14x14xf32>
    %c4_i32_40 = arith.constant 4 : i32
    %109 = arith.addi %0, %c4_i32_40 : i32
    %c36_i32_41 = arith.constant 36 : i32
    %110 = arith.muli %109, %c36_i32_41 : i32
    %c1_i32_42 = arith.constant 1 : i32
    %111 = arith.addi %110, %c1_i32_42 : i32
    %112 = arith.index_cast %111 : i32 to index
    %113 = memref.load %arg3[%112] : memref<288xf32, #tpu.memory_space<smem>>
    %114 = vector.broadcast %113 : f32 to vector<14x14xf32>
    %115 = arith.mulf %76, %114 : vector<14x14xf32>
    %116 = arith.addf %50, %115 : vector<14x14xf32>
    %c5_i32_43 = arith.constant 5 : i32
    %117 = arith.addi %0, %c5_i32_43 : i32
    %c36_i32_44 = arith.constant 36 : i32
    %118 = arith.muli %117, %c36_i32_44 : i32
    %c1_i32_45 = arith.constant 1 : i32
    %119 = arith.addi %118, %c1_i32_45 : i32
    %120 = arith.index_cast %119 : i32 to index
    %121 = memref.load %arg3[%120] : memref<288xf32, #tpu.memory_space<smem>>
    %122 = vector.broadcast %121 : f32 to vector<14x14xf32>
    %123 = arith.mulf %76, %122 : vector<14x14xf32>
    %124 = arith.addf %58, %123 : vector<14x14xf32>
    %c6_i32_46 = arith.constant 6 : i32
    %125 = arith.addi %0, %c6_i32_46 : i32
    %c36_i32_47 = arith.constant 36 : i32
    %126 = arith.muli %125, %c36_i32_47 : i32
    %c1_i32_48 = arith.constant 1 : i32
    %127 = arith.addi %126, %c1_i32_48 : i32
    %128 = arith.index_cast %127 : i32 to index
    %129 = memref.load %arg3[%128] : memref<288xf32, #tpu.memory_space<smem>>
    %130 = vector.broadcast %129 : f32 to vector<14x14xf32>
    %131 = arith.mulf %76, %130 : vector<14x14xf32>
    %132 = arith.addf %66, %131 : vector<14x14xf32>
    %c7_i32_49 = arith.constant 7 : i32
    %133 = arith.addi %0, %c7_i32_49 : i32
    %c36_i32_50 = arith.constant 36 : i32
    %134 = arith.muli %133, %c36_i32_50 : i32
    %c1_i32_51 = arith.constant 1 : i32
    %135 = arith.addi %134, %c1_i32_51 : i32
    %136 = arith.index_cast %135 : i32 to index
    %137 = memref.load %arg3[%136] : memref<288xf32, #tpu.memory_space<smem>>
    %138 = vector.broadcast %137 : f32 to vector<14x14xf32>
    %139 = arith.mulf %76, %138 : vector<14x14xf32>
    %140 = arith.addf %74, %139 : vector<14x14xf32>
    %c0_52 = arith.constant 0 : index
    %c0_53 = arith.constant 0 : index
    %c0_54 = arith.constant 0 : index
    %c2 = arith.constant 2 : index
    %141 = vector.load %arg2[%c0_52, %c0_53, %c0_54, %c2] : memref<1x4x16x16xf32, #tpu.memory_space<vmem>>, vector<1x1x14x14xf32>
    %142 = vector.shape_cast %141 : vector<1x1x14x14xf32> to vector<14x14xf32>
    %c0_i32_55 = arith.constant 0 : i32
    %143 = arith.addi %0, %c0_i32_55 : i32
    %c36_i32_56 = arith.constant 36 : i32
    %144 = arith.muli %143, %c36_i32_56 : i32
    %c2_i32_57 = arith.constant 2 : i32
    %145 = arith.addi %144, %c2_i32_57 : i32
    %146 = arith.index_cast %145 : i32 to index
    %147 = memref.load %arg3[%146] : memref<288xf32, #tpu.memory_space<smem>>
    %148 = vector.broadcast %147 : f32 to vector<14x14xf32>
    %149 = arith.mulf %142, %148 : vector<14x14xf32>
    %150 = arith.addf %84, %149 : vector<14x14xf32>
    %c1_i32_58 = arith.constant 1 : i32
    %151 = arith.addi %0, %c1_i32_58 : i32
    %c36_i32_59 = arith.constant 36 : i32
    %152 = arith.muli %151, %c36_i32_59 : i32
    %c2_i32_60 = arith.constant 2 : i32
    %153 = arith.addi %152, %c2_i32_60 : i32
    %154 = arith.index_cast %153 : i32 to index
    %155 = memref.load %arg3[%154] : memref<288xf32, #tpu.memory_space<smem>>
    %156 = vector.broadcast %155 : f32 to vector<14x14xf32>
    %157 = arith.mulf %142, %156 : vector<14x14xf32>
    %158 = arith.addf %92, %157 : vector<14x14xf32>
    %c2_i32_61 = arith.constant 2 : i32
    %159 = arith.addi %0, %c2_i32_61 : i32
    %c36_i32_62 = arith.constant 36 : i32
    %160 = arith.muli %159, %c36_i32_62 : i32
    %c2_i32_63 = arith.constant 2 : i32
    %161 = arith.addi %160, %c2_i32_63 : i32
    %162 = arith.index_cast %161 : i32 to index
    %163 = memref.load %arg3[%162] : memref<288xf32, #tpu.memory_space<smem>>
    %164 = vector.broadcast %163 : f32 to vector<14x14xf32>
    %165 = arith.mulf %142, %164 : vector<14x14xf32>
    %166 = arith.addf %100, %165 : vector<14x14xf32>
    %c3_i32_64 = arith.constant 3 : i32
    %167 = arith.addi %0, %c3_i32_64 : i32
    %c36_i32_65 = arith.constant 36 : i32
    %168 = arith.muli %167, %c36_i32_65 : i32
    %c2_i32_66 = arith.constant 2 : i32
    %169 = arith.addi %168, %c2_i32_66 : i32
    %170 = arith.index_cast %169 : i32 to index
    %171 = memref.load %arg3[%170] : memref<288xf32, #tpu.memory_space<smem>>
    %172 = vector.broadcast %171 : f32 to vector<14x14xf32>
    %173 = arith.mulf %142, %172 : vector<14x14xf32>
    %174 = arith.addf %108, %173 : vector<14x14xf32>
    %c4_i32_67 = arith.constant 4 : i32
    %175 = arith.addi %0, %c4_i32_67 : i32
    %c36_i32_68 = arith.constant 36 : i32
    %176 = arith.muli %175, %c36_i32_68 : i32
    %c2_i32_69 = arith.constant 2 : i32
    %177 = arith.addi %176, %c2_i32_69 : i32
    %178 = arith.index_cast %177 : i32 to index
    %179 = memref.load %arg3[%178] : memref<288xf32, #tpu.memory_space<smem>>
    %180 = vector.broadcast %179 : f32 to vector<14x14xf32>
    %181 = arith.mulf %142, %180 : vector<14x14xf32>
    %182 = arith.addf %116, %181 : vector<14x14xf32>
    %c5_i32_70 = arith.constant 5 : i32
    %183 = arith.addi %0, %c5_i32_70 : i32
    %c36_i32_71 = arith.constant 36 : i32
    %184 = arith.muli %183, %c36_i32_71 : i32
    %c2_i32_72 = arith.constant 2 : i32
    %185 = arith.addi %184, %c2_i32_72 : i32
    %186 = arith.index_cast %185 : i32 to index
    %187 = memref.load %arg3[%186] : memref<288xf32, #tpu.memory_space<smem>>
    %188 = vector.broadcast %187 : f32 to vector<14x14xf32>
    %189 = arith.mulf %142, %188 : vector<14x14xf32>
    %190 = arith.addf %124, %189 : vector<14x14xf32>
    %c6_i32_73 = arith.constant 6 : i32
    %191 = arith.addi %0, %c6_i32_73 : i32
    %c36_i32_74 = arith.constant 36 : i32
    %192 = arith.muli %191, %c36_i32_74 : i32
    %c2_i32_75 = arith.constant 2 : i32
    %193 = arith.addi %192, %c2_i32_75 : i32
    %194 = arith.index_cast %193 : i32 to index
    %195 = memref.load %arg3[%194] : memref<288xf32, #tpu.memory_space<smem>>
    %196 = vector.broadcast %195 : f32 to vector<14x14xf32>
    %197 = arith.mulf %142, %196 : vector<14x14xf32>
    %198 = arith.addf %132, %197 : vector<14x14xf32>
    %c7_i32_76 = arith.constant 7 : i32
    %199 = arith.addi %0, %c7_i32_76 : i32
    %c36_i32_77 = arith.constant 36 : i32
    %200 = arith.muli %199, %c36_i32_77 : i32
    %c2_i32_78 = arith.constant 2 : i32
    %201 = arith.addi %200, %c2_i32_78 : i32
    %202 = arith.index_cast %201 : i32 to index
    %203 = memref.load %arg3[%202] : memref<288xf32, #tpu.memory_space<smem>>
    %204 = vector.broadcast %203 : f32 to vector<14x14xf32>
    %205 = arith.mulf %142, %204 : vector<14x14xf32>
    %206 = arith.addf %140, %205 : vector<14x14xf32>
    %c0_79 = arith.constant 0 : index
    %c0_80 = arith.constant 0 : index
    %c1_81 = arith.constant 1 : index
    %c0_82 = arith.constant 0 : index
    %207 = vector.load %arg2[%c0_79, %c0_80, %c1_81, %c0_82] : memref<1x4x16x16xf32, #tpu.memory_space<vmem>>, vector<1x1x14x14xf32>
    %208 = vector.shape_cast %207 : vector<1x1x14x14xf32> to vector<14x14xf32>
    %c0_i32_83 = arith.constant 0 : i32
    %209 = arith.addi %0, %c0_i32_83 : i32
    %c36_i32_84 = arith.constant 36 : i32
    %210 = arith.muli %209, %c36_i32_84 : i32
    %c3_i32_85 = arith.constant 3 : i32
    %211 = arith.addi %210, %c3_i32_85 : i32
    %212 = arith.index_cast %211 : i32 to index
    %213 = memref.load %arg3[%212] : memref<288xf32, #tpu.memory_space<smem>>
    %214 = vector.broadcast %213 : f32 to vector<14x14xf32>
    %215 = arith.mulf %208, %214 : vector<14x14xf32>
    %216 = arith.addf %150, %215 : vector<14x14xf32>
    %c1_i32_86 = arith.constant 1 : i32
    %217 = arith.addi %0, %c1_i32_86 : i32
    %c36_i32_87 = arith.constant 36 : i32
    %218 = arith.muli %217, %c36_i32_87 : i32
    %c3_i32_88 = arith.constant 3 : i32
    %219 = arith.addi %218, %c3_i32_88 : i32
    %220 = arith.index_cast %219 : i32 to index
    %221 = memref.load %arg3[%220] : memref<288xf32, #tpu.memory_space<smem>>
    %222 = vector.broadcast %221 : f32 to vector<14x14xf32>
    %223 = arith.mulf %208, %222 : vector<14x14xf32>
    %224 = arith.addf %158, %223 : vector<14x14xf32>
    %c2_i32_89 = arith.constant 2 : i32
    %225 = arith.addi %0, %c2_i32_89 : i32
    %c36_i32_90 = arith.constant 36 : i32
    %226 = arith.muli %225, %c36_i32_90 : i32
    %c3_i32_91 = arith.constant 3 : i32
    %227 = arith.addi %226, %c3_i32_91 : i32
    %228 = arith.index_cast %227 : i32 to index
    %229 = memref.load %arg3[%228] : memref<288xf32, #tpu.memory_space<smem>>
    %230 = vector.broadcast %229 : f32 to vector<14x14xf32>
    %231 = arith.mulf %208, %230 : vector<14x14xf32>
    %232 = arith.addf %166, %231 : vector<14x14xf32>
    %c3_i32_92 = arith.constant 3 : i32
    %233 = arith.addi %0, %c3_i32_92 : i32
    %c36_i32_93 = arith.constant 36 : i32
    %234 = arith.muli %233, %c36_i32_93 : i32
    %c3_i32_94 = arith.constant 3 : i32
    %235 = arith.addi %234, %c3_i32_94 : i32
    %236 = arith.index_cast %235 : i32 to index
    %237 = memref.load %arg3[%236] : memref<288xf32, #tpu.memory_space<smem>>
    %238 = vector.broadcast %237 : f32 to vector<14x14xf32>
    %239 = arith.mulf %208, %238 : vector<14x14xf32>
    %240 = arith.addf %174, %239 : vector<14x14xf32>
    %c4_i32_95 = arith.constant 4 : i32
    %241 = arith.addi %0, %c4_i32_95 : i32
    %c36_i32_96 = arith.constant 36 : i32
    %242 = arith.muli %241, %c36_i32_96 : i32
    %c3_i32_97 = arith.constant 3 : i32
    %243 = arith.addi %242, %c3_i32_97 : i32
    %244 = arith.index_cast %243 : i32 to index
    %245 = memref.load %arg3[%244] : memref<288xf32, #tpu.memory_space<smem>>
    %246 = vector.broadcast %245 : f32 to vector<14x14xf32>
    %247 = arith.mulf %208, %246 : vector<14x14xf32>
    %248 = arith.addf %182, %247 : vector<14x14xf32>
    %c5_i32_98 = arith.constant 5 : i32
    %249 = arith.addi %0, %c5_i32_98 : i32
    %c36_i32_99 = arith.constant 36 : i32
    %250 = arith.muli %249, %c36_i32_99 : i32
    %c3_i32_100 = arith.constant 3 : i32
    %251 = arith.addi %250, %c3_i32_100 : i32
    %252 = arith.index_cast %251 : i32 to index
    %253 = memref.load %arg3[%252] : memref<288xf32, #tpu.memory_space<smem>>
    %254 = vector.broadcast %253 : f32 to vector<14x14xf32>
    %255 = arith.mulf %208, %254 : vector<14x14xf32>
    %256 = arith.addf %190, %255 : vector<14x14xf32>
    %c6_i32_101 = arith.constant 6 : i32
    %257 = arith.addi %0, %c6_i32_101 : i32
    %c36_i32_102 = arith.constant 36 : i32
    %258 = arith.muli %257, %c36_i32_102 : i32
    %c3_i32_103 = arith.constant 3 : i32
    %259 = arith.addi %258, %c3_i32_103 : i32
    %260 = arith.index_cast %259 : i32 to index
    %261 = memref.load %arg3[%260] : memref<288xf32, #tpu.memory_space<smem>>
    %262 = vector.broadcast %261 : f32 to vector<14x14xf32>
    %263 = arith.mulf %208, %262 : vector<14x14xf32>
    %264 = arith.addf %198, %263 : vector<14x14xf32>
    %c7_i32_104 = arith.constant 7 : i32
    %265 = arith.addi %0, %c7_i32_104 : i32
    %c36_i32_105 = arith.constant 36 : i32
    %266 = arith.muli %265, %c36_i32_105 : i32
    %c3_i32_106 = arith.constant 3 : i32
    %267 = arith.addi %266, %c3_i32_106 : i32
    %268 = arith.index_cast %267 : i32 to index
    %269 = memref.load %arg3[%268] : memref<288xf32, #tpu.memory_space<smem>>
    %270 = vector.broadcast %269 : f32 to vector<14x14xf32>
    %271 = arith.mulf %208, %270 : vector<14x14xf32>
    %272 = arith.addf %206, %271 : vector<14x14xf32>
    %c0_107 = arith.constant 0 : index
    %c0_108 = arith.constant 0 : index
    %c1_109 = arith.constant 1 : index
    %c1_110 = arith.constant 1 : index
    %273 = vector.load %arg2[%c0_107, %c0_108, %c1_109, %c1_110] : memref<1x4x16x16xf32, #tpu.memory_space<vmem>>, vector<1x1x14x14xf32>
    %274 = vector.shape_cast %273 : vector<1x1x14x14xf32> to vector<14x14xf32>
    %c0_i32_111 = arith.constant 0 : i32
    %275 = arith.addi %0, %c0_i32_111 : i32
    %c36_i32_112 = arith.constant 36 : i32
    %276 = arith.muli %275, %c36_i32_112 : i32
    %c4_i32_113 = arith.constant 4 : i32
    %277 = arith.addi %276, %c4_i32_113 : i32
    %278 = arith.index_cast %277 : i32 to index
    %279 = memref.load %arg3[%278] : memref<288xf32, #tpu.memory_space<smem>>
    %280 = vector.broadcast %279 : f32 to vector<14x14xf32>
    %281 = arith.mulf %274, %280 : vector<14x14xf32>
    %282 = arith.addf %216, %281 : vector<14x14xf32>
    %c1_i32_114 = arith.constant 1 : i32
    %283 = arith.addi %0, %c1_i32_114 : i32
    %c36_i32_115 = arith.constant 36 : i32
    %284 = arith.muli %283, %c36_i32_115 : i32
    %c4_i32_116 = arith.constant 4 : i32
    %285 = arith.addi %284, %c4_i32_116 : i32
    %286 = arith.index_cast %285 : i32 to index
    %287 = memref.load %arg3[%286] : memref<288xf32, #tpu.memory_space<smem>>
    %288 = vector.broadcast %287 : f32 to vector<14x14xf32>
    %289 = arith.mulf %274, %288 : vector<14x14xf32>
    %290 = arith.addf %224, %289 : vector<14x14xf32>
    %c2_i32_117 = arith.constant 2 : i32
    %291 = arith.addi %0, %c2_i32_117 : i32
    %c36_i32_118 = arith.constant 36 : i32
    %292 = arith.muli %291, %c36_i32_118 : i32
    %c4_i32_119 = arith.constant 4 : i32
    %293 = arith.addi %292, %c4_i32_119 : i32
    %294 = arith.index_cast %293 : i32 to index
    %295 = memref.load %arg3[%294] : memref<288xf32, #tpu.memory_space<smem>>
    %296 = vector.broadcast %295 : f32 to vector<14x14xf32>
    %297 = arith.mulf %274, %296 : vector<14x14xf32>
    %298 = arith.addf %232, %297 : vector<14x14xf32>
    %c3_i32_120 = arith.constant 3 : i32
    %299 = arith.addi %0, %c3_i32_120 : i32
    %c36_i32_121 = arith.constant 36 : i32
    %300 = arith.muli %299, %c36_i32_121 : i32
    %c4_i32_122 = arith.constant 4 : i32
    %301 = arith.addi %300, %c4_i32_122 : i32
    %302 = arith.index_cast %301 : i32 to index
    %303 = memref.load %arg3[%302] : memref<288xf32, #tpu.memory_space<smem>>
    %304 = vector.broadcast %303 : f32 to vector<14x14xf32>
    %305 = arith.mulf %274, %304 : vector<14x14xf32>
    %306 = arith.addf %240, %305 : vector<14x14xf32>
    %c4_i32_123 = arith.constant 4 : i32
    %307 = arith.addi %0, %c4_i32_123 : i32
    %c36_i32_124 = arith.constant 36 : i32
    %308 = arith.muli %307, %c36_i32_124 : i32
    %c4_i32_125 = arith.constant 4 : i32
    %309 = arith.addi %308, %c4_i32_125 : i32
    %310 = arith.index_cast %309 : i32 to index
    %311 = memref.load %arg3[%310] : memref<288xf32, #tpu.memory_space<smem>>
    %312 = vector.broadcast %311 : f32 to vector<14x14xf32>
    %313 = arith.mulf %274, %312 : vector<14x14xf32>
    %314 = arith.addf %248, %313 : vector<14x14xf32>
    %c5_i32_126 = arith.constant 5 : i32
    %315 = arith.addi %0, %c5_i32_126 : i32
    %c36_i32_127 = arith.constant 36 : i32
    %316 = arith.muli %315, %c36_i32_127 : i32
    %c4_i32_128 = arith.constant 4 : i32
    %317 = arith.addi %316, %c4_i32_128 : i32
    %318 = arith.index_cast %317 : i32 to index
    %319 = memref.load %arg3[%318] : memref<288xf32, #tpu.memory_space<smem>>
    %320 = vector.broadcast %319 : f32 to vector<14x14xf32>
    %321 = arith.mulf %274, %320 : vector<14x14xf32>
    %322 = arith.addf %256, %321 : vector<14x14xf32>
    %c6_i32_129 = arith.constant 6 : i32
    %323 = arith.addi %0, %c6_i32_129 : i32
    %c36_i32_130 = arith.constant 36 : i32
    %324 = arith.muli %323, %c36_i32_130 : i32
    %c4_i32_131 = arith.constant 4 : i32
    %325 = arith.addi %324, %c4_i32_131 : i32
    %326 = arith.index_cast %325 : i32 to index
    %327 = memref.load %arg3[%326] : memref<288xf32, #tpu.memory_space<smem>>
    %328 = vector.broadcast %327 : f32 to vector<14x14xf32>
    %329 = arith.mulf %274, %328 : vector<14x14xf32>
    %330 = arith.addf %264, %329 : vector<14x14xf32>
    %c7_i32_132 = arith.constant 7 : i32
    %331 = arith.addi %0, %c7_i32_132 : i32
    %c36_i32_133 = arith.constant 36 : i32
    %332 = arith.muli %331, %c36_i32_133 : i32
    %c4_i32_134 = arith.constant 4 : i32
    %333 = arith.addi %332, %c4_i32_134 : i32
    %334 = arith.index_cast %333 : i32 to index
    %335 = memref.load %arg3[%334] : memref<288xf32, #tpu.memory_space<smem>>
    %336 = vector.broadcast %335 : f32 to vector<14x14xf32>
    %337 = arith.mulf %274, %336 : vector<14x14xf32>
    %338 = arith.addf %272, %337 : vector<14x14xf32>
    %c0_135 = arith.constant 0 : index
    %c0_136 = arith.constant 0 : index
    %c1_137 = arith.constant 1 : index
    %c2_138 = arith.constant 2 : index
    %339 = vector.load %arg2[%c0_135, %c0_136, %c1_137, %c2_138] : memref<1x4x16x16xf32, #tpu.memory_space<vmem>>, vector<1x1x14x14xf32>
    %340 = vector.shape_cast %339 : vector<1x1x14x14xf32> to vector<14x14xf32>
    %c0_i32_139 = arith.constant 0 : i32
    %341 = arith.addi %0, %c0_i32_139 : i32
    %c36_i32_140 = arith.constant 36 : i32
    %342 = arith.muli %341, %c36_i32_140 : i32
    %c5_i32_141 = arith.constant 5 : i32
    %343 = arith.addi %342, %c5_i32_141 : i32
    %344 = arith.index_cast %343 : i32 to index
    %345 = memref.load %arg3[%344] : memref<288xf32, #tpu.memory_space<smem>>
    %346 = vector.broadcast %345 : f32 to vector<14x14xf32>
    %347 = arith.mulf %340, %346 : vector<14x14xf32>
    %348 = arith.addf %282, %347 : vector<14x14xf32>
    %c1_i32_142 = arith.constant 1 : i32
    %349 = arith.addi %0, %c1_i32_142 : i32
    %c36_i32_143 = arith.constant 36 : i32
    %350 = arith.muli %349, %c36_i32_143 : i32
    %c5_i32_144 = arith.constant 5 : i32
    %351 = arith.addi %350, %c5_i32_144 : i32
    %352 = arith.index_cast %351 : i32 to index
    %353 = memref.load %arg3[%352] : memref<288xf32, #tpu.memory_space<smem>>
    %354 = vector.broadcast %353 : f32 to vector<14x14xf32>
    %355 = arith.mulf %340, %354 : vector<14x14xf32>
    %356 = arith.addf %290, %355 : vector<14x14xf32>
    %c2_i32_145 = arith.constant 2 : i32
    %357 = arith.addi %0, %c2_i32_145 : i32
    %c36_i32_146 = arith.constant 36 : i32
    %358 = arith.muli %357, %c36_i32_146 : i32
    %c5_i32_147 = arith.constant 5 : i32
    %359 = arith.addi %358, %c5_i32_147 : i32
    %360 = arith.index_cast %359 : i32 to index
    %361 = memref.load %arg3[%360] : memref<288xf32, #tpu.memory_space<smem>>
    %362 = vector.broadcast %361 : f32 to vector<14x14xf32>
    %363 = arith.mulf %340, %362 : vector<14x14xf32>
    %364 = arith.addf %298, %363 : vector<14x14xf32>
    %c3_i32_148 = arith.constant 3 : i32
    %365 = arith.addi %0, %c3_i32_148 : i32
    %c36_i32_149 = arith.constant 36 : i32
    %366 = arith.muli %365, %c36_i32_149 : i32
    %c5_i32_150 = arith.constant 5 : i32
    %367 = arith.addi %366, %c5_i32_150 : i32
    %368 = arith.index_cast %367 : i32 to index
    %369 = memref.load %arg3[%368] : memref<288xf32, #tpu.memory_space<smem>>
    %370 = vector.broadcast %369 : f32 to vector<14x14xf32>
    %371 = arith.mulf %340, %370 : vector<14x14xf32>
    %372 = arith.addf %306, %371 : vector<14x14xf32>
    %c4_i32_151 = arith.constant 4 : i32
    %373 = arith.addi %0, %c4_i32_151 : i32
    %c36_i32_152 = arith.constant 36 : i32
    %374 = arith.muli %373, %c36_i32_152 : i32
    %c5_i32_153 = arith.constant 5 : i32
    %375 = arith.addi %374, %c5_i32_153 : i32
    %376 = arith.index_cast %375 : i32 to index
    %377 = memref.load %arg3[%376] : memref<288xf32, #tpu.memory_space<smem>>
    %378 = vector.broadcast %377 : f32 to vector<14x14xf32>
    %379 = arith.mulf %340, %378 : vector<14x14xf32>
    %380 = arith.addf %314, %379 : vector<14x14xf32>
    %c5_i32_154 = arith.constant 5 : i32
    %381 = arith.addi %0, %c5_i32_154 : i32
    %c36_i32_155 = arith.constant 36 : i32
    %382 = arith.muli %381, %c36_i32_155 : i32
    %c5_i32_156 = arith.constant 5 : i32
    %383 = arith.addi %382, %c5_i32_156 : i32
    %384 = arith.index_cast %383 : i32 to index
    %385 = memref.load %arg3[%384] : memref<288xf32, #tpu.memory_space<smem>>
    %386 = vector.broadcast %385 : f32 to vector<14x14xf32>
    %387 = arith.mulf %340, %386 : vector<14x14xf32>
    %388 = arith.addf %322, %387 : vector<14x14xf32>
    %c6_i32_157 = arith.constant 6 : i32
    %389 = arith.addi %0, %c6_i32_157 : i32
    %c36_i32_158 = arith.constant 36 : i32
    %390 = arith.muli %389, %c36_i32_158 : i32
    %c5_i32_159 = arith.constant 5 : i32
    %391 = arith.addi %390, %c5_i32_159 : i32
    %392 = arith.index_cast %391 : i32 to index
    %393 = memref.load %arg3[%392] : memref<288xf32, #tpu.memory_space<smem>>
    %394 = vector.broadcast %393 : f32 to vector<14x14xf32>
    %395 = arith.mulf %340, %394 : vector<14x14xf32>
    %396 = arith.addf %330, %395 : vector<14x14xf32>
    %c7_i32_160 = arith.constant 7 : i32
    %397 = arith.addi %0, %c7_i32_160 : i32
    %c36_i32_161 = arith.constant 36 : i32
    %398 = arith.muli %397, %c36_i32_161 : i32
    %c5_i32_162 = arith.constant 5 : i32
    %399 = arith.addi %398, %c5_i32_162 : i32
    %400 = arith.index_cast %399 : i32 to index
    %401 = memref.load %arg3[%400] : memref<288xf32, #tpu.memory_space<smem>>
    %402 = vector.broadcast %401 : f32 to vector<14x14xf32>
    %403 = arith.mulf %340, %402 : vector<14x14xf32>
    %404 = arith.addf %338, %403 : vector<14x14xf32>
    %c0_163 = arith.constant 0 : index
    %c0_164 = arith.constant 0 : index
    %c2_165 = arith.constant 2 : index
    %c0_166 = arith.constant 0 : index
    %405 = vector.load %arg2[%c0_163, %c0_164, %c2_165, %c0_166] : memref<1x4x16x16xf32, #tpu.memory_space<vmem>>, vector<1x1x14x14xf32>
    %406 = vector.shape_cast %405 : vector<1x1x14x14xf32> to vector<14x14xf32>
    %c0_i32_167 = arith.constant 0 : i32
    %407 = arith.addi %0, %c0_i32_167 : i32
    %c36_i32_168 = arith.constant 36 : i32
    %408 = arith.muli %407, %c36_i32_168 : i32
    %c6_i32_169 = arith.constant 6 : i32
    %409 = arith.addi %408, %c6_i32_169 : i32
    %410 = arith.index_cast %409 : i32 to index
    %411 = memref.load %arg3[%410] : memref<288xf32, #tpu.memory_space<smem>>
    %412 = vector.broadcast %411 : f32 to vector<14x14xf32>
    %413 = arith.mulf %406, %412 : vector<14x14xf32>
    %414 = arith.addf %348, %413 : vector<14x14xf32>
    %c1_i32_170 = arith.constant 1 : i32
    %415 = arith.addi %0, %c1_i32_170 : i32
    %c36_i32_171 = arith.constant 36 : i32
    %416 = arith.muli %415, %c36_i32_171 : i32
    %c6_i32_172 = arith.constant 6 : i32
    %417 = arith.addi %416, %c6_i32_172 : i32
    %418 = arith.index_cast %417 : i32 to index
    %419 = memref.load %arg3[%418] : memref<288xf32, #tpu.memory_space<smem>>
    %420 = vector.broadcast %419 : f32 to vector<14x14xf32>
    %421 = arith.mulf %406, %420 : vector<14x14xf32>
    %422 = arith.addf %356, %421 : vector<14x14xf32>
    %c2_i32_173 = arith.constant 2 : i32
    %423 = arith.addi %0, %c2_i32_173 : i32
    %c36_i32_174 = arith.constant 36 : i32
    %424 = arith.muli %423, %c36_i32_174 : i32
    %c6_i32_175 = arith.constant 6 : i32
    %425 = arith.addi %424, %c6_i32_175 : i32
    %426 = arith.index_cast %425 : i32 to index
    %427 = memref.load %arg3[%426] : memref<288xf32, #tpu.memory_space<smem>>
    %428 = vector.broadcast %427 : f32 to vector<14x14xf32>
    %429 = arith.mulf %406, %428 : vector<14x14xf32>
    %430 = arith.addf %364, %429 : vector<14x14xf32>
    %c3_i32_176 = arith.constant 3 : i32
    %431 = arith.addi %0, %c3_i32_176 : i32
    %c36_i32_177 = arith.constant 36 : i32
    %432 = arith.muli %431, %c36_i32_177 : i32
    %c6_i32_178 = arith.constant 6 : i32
    %433 = arith.addi %432, %c6_i32_178 : i32
    %434 = arith.index_cast %433 : i32 to index
    %435 = memref.load %arg3[%434] : memref<288xf32, #tpu.memory_space<smem>>
    %436 = vector.broadcast %435 : f32 to vector<14x14xf32>
    %437 = arith.mulf %406, %436 : vector<14x14xf32>
    %438 = arith.addf %372, %437 : vector<14x14xf32>
    %c4_i32_179 = arith.constant 4 : i32
    %439 = arith.addi %0, %c4_i32_179 : i32
    %c36_i32_180 = arith.constant 36 : i32
    %440 = arith.muli %439, %c36_i32_180 : i32
    %c6_i32_181 = arith.constant 6 : i32
    %441 = arith.addi %440, %c6_i32_181 : i32
    %442 = arith.index_cast %441 : i32 to index
    %443 = memref.load %arg3[%442] : memref<288xf32, #tpu.memory_space<smem>>
    %444 = vector.broadcast %443 : f32 to vector<14x14xf32>
    %445 = arith.mulf %406, %444 : vector<14x14xf32>
    %446 = arith.addf %380, %445 : vector<14x14xf32>
    %c5_i32_182 = arith.constant 5 : i32
    %447 = arith.addi %0, %c5_i32_182 : i32
    %c36_i32_183 = arith.constant 36 : i32
    %448 = arith.muli %447, %c36_i32_183 : i32
    %c6_i32_184 = arith.constant 6 : i32
    %449 = arith.addi %448, %c6_i32_184 : i32
    %450 = arith.index_cast %449 : i32 to index
    %451 = memref.load %arg3[%450] : memref<288xf32, #tpu.memory_space<smem>>
    %452 = vector.broadcast %451 : f32 to vector<14x14xf32>
    %453 = arith.mulf %406, %452 : vector<14x14xf32>
    %454 = arith.addf %388, %453 : vector<14x14xf32>
    %c6_i32_185 = arith.constant 6 : i32
    %455 = arith.addi %0, %c6_i32_185 : i32
    %c36_i32_186 = arith.constant 36 : i32
    %456 = arith.muli %455, %c36_i32_186 : i32
    %c6_i32_187 = arith.constant 6 : i32
    %457 = arith.addi %456, %c6_i32_187 : i32
    %458 = arith.index_cast %457 : i32 to index
    %459 = memref.load %arg3[%458] : memref<288xf32, #tpu.memory_space<smem>>
    %460 = vector.broadcast %459 : f32 to vector<14x14xf32>
    %461 = arith.mulf %406, %460 : vector<14x14xf32>
    %462 = arith.addf %396, %461 : vector<14x14xf32>
    %c7_i32_188 = arith.constant 7 : i32
    %463 = arith.addi %0, %c7_i32_188 : i32
    %c36_i32_189 = arith.constant 36 : i32
    %464 = arith.muli %463, %c36_i32_189 : i32
    %c6_i32_190 = arith.constant 6 : i32
    %465 = arith.addi %464, %c6_i32_190 : i32
    %466 = arith.index_cast %465 : i32 to index
    %467 = memref.load %arg3[%466] : memref<288xf32, #tpu.memory_space<smem>>
    %468 = vector.broadcast %467 : f32 to vector<14x14xf32>
    %469 = arith.mulf %406, %468 : vector<14x14xf32>
    %470 = arith.addf %404, %469 : vector<14x14xf32>
    %c0_191 = arith.constant 0 : index
    %c0_192 = arith.constant 0 : index
    %c2_193 = arith.constant 2 : index
    %c1_194 = arith.constant 1 : index
    %471 = vector.load %arg2[%c0_191, %c0_192, %c2_193, %c1_194] : memref<1x4x16x16xf32, #tpu.memory_space<vmem>>, vector<1x1x14x14xf32>
    %472 = vector.shape_cast %471 : vector<1x1x14x14xf32> to vector<14x14xf32>
    %c0_i32_195 = arith.constant 0 : i32
    %473 = arith.addi %0, %c0_i32_195 : i32
    %c36_i32_196 = arith.constant 36 : i32
    %474 = arith.muli %473, %c36_i32_196 : i32
    %c7_i32_197 = arith.constant 7 : i32
    %475 = arith.addi %474, %c7_i32_197 : i32
    %476 = arith.index_cast %475 : i32 to index
    %477 = memref.load %arg3[%476] : memref<288xf32, #tpu.memory_space<smem>>
    %478 = vector.broadcast %477 : f32 to vector<14x14xf32>
    %479 = arith.mulf %472, %478 : vector<14x14xf32>
    %480 = arith.addf %414, %479 : vector<14x14xf32>
    %c1_i32_198 = arith.constant 1 : i32
    %481 = arith.addi %0, %c1_i32_198 : i32
    %c36_i32_199 = arith.constant 36 : i32
    %482 = arith.muli %481, %c36_i32_199 : i32
    %c7_i32_200 = arith.constant 7 : i32
    %483 = arith.addi %482, %c7_i32_200 : i32
    %484 = arith.index_cast %483 : i32 to index
    %485 = memref.load %arg3[%484] : memref<288xf32, #tpu.memory_space<smem>>
    %486 = vector.broadcast %485 : f32 to vector<14x14xf32>
    %487 = arith.mulf %472, %486 : vector<14x14xf32>
    %488 = arith.addf %422, %487 : vector<14x14xf32>
    %c2_i32_201 = arith.constant 2 : i32
    %489 = arith.addi %0, %c2_i32_201 : i32
    %c36_i32_202 = arith.constant 36 : i32
    %490 = arith.muli %489, %c36_i32_202 : i32
    %c7_i32_203 = arith.constant 7 : i32
    %491 = arith.addi %490, %c7_i32_203 : i32
    %492 = arith.index_cast %491 : i32 to index
    %493 = memref.load %arg3[%492] : memref<288xf32, #tpu.memory_space<smem>>
    %494 = vector.broadcast %493 : f32 to vector<14x14xf32>
    %495 = arith.mulf %472, %494 : vector<14x14xf32>
    %496 = arith.addf %430, %495 : vector<14x14xf32>
    %c3_i32_204 = arith.constant 3 : i32
    %497 = arith.addi %0, %c3_i32_204 : i32
    %c36_i32_205 = arith.constant 36 : i32
    %498 = arith.muli %497, %c36_i32_205 : i32
    %c7_i32_206 = arith.constant 7 : i32
    %499 = arith.addi %498, %c7_i32_206 : i32
    %500 = arith.index_cast %499 : i32 to index
    %501 = memref.load %arg3[%500] : memref<288xf32, #tpu.memory_space<smem>>
    %502 = vector.broadcast %501 : f32 to vector<14x14xf32>
    %503 = arith.mulf %472, %502 : vector<14x14xf32>
    %504 = arith.addf %438, %503 : vector<14x14xf32>
    %c4_i32_207 = arith.constant 4 : i32
    %505 = arith.addi %0, %c4_i32_207 : i32
    %c36_i32_208 = arith.constant 36 : i32
    %506 = arith.muli %505, %c36_i32_208 : i32
    %c7_i32_209 = arith.constant 7 : i32
    %507 = arith.addi %506, %c7_i32_209 : i32
    %508 = arith.index_cast %507 : i32 to index
    %509 = memref.load %arg3[%508] : memref<288xf32, #tpu.memory_space<smem>>
    %510 = vector.broadcast %509 : f32 to vector<14x14xf32>
    %511 = arith.mulf %472, %510 : vector<14x14xf32>
    %512 = arith.addf %446, %511 : vector<14x14xf32>
    %c5_i32_210 = arith.constant 5 : i32
    %513 = arith.addi %0, %c5_i32_210 : i32
    %c36_i32_211 = arith.constant 36 : i32
    %514 = arith.muli %513, %c36_i32_211 : i32
    %c7_i32_212 = arith.constant 7 : i32
    %515 = arith.addi %514, %c7_i32_212 : i32
    %516 = arith.index_cast %515 : i32 to index
    %517 = memref.load %arg3[%516] : memref<288xf32, #tpu.memory_space<smem>>
    %518 = vector.broadcast %517 : f32 to vector<14x14xf32>
    %519 = arith.mulf %472, %518 : vector<14x14xf32>
    %520 = arith.addf %454, %519 : vector<14x14xf32>
    %c6_i32_213 = arith.constant 6 : i32
    %521 = arith.addi %0, %c6_i32_213 : i32
    %c36_i32_214 = arith.constant 36 : i32
    %522 = arith.muli %521, %c36_i32_214 : i32
    %c7_i32_215 = arith.constant 7 : i32
    %523 = arith.addi %522, %c7_i32_215 : i32
    %524 = arith.index_cast %523 : i32 to index
    %525 = memref.load %arg3[%524] : memref<288xf32, #tpu.memory_space<smem>>
    %526 = vector.broadcast %525 : f32 to vector<14x14xf32>
    %527 = arith.mulf %472, %526 : vector<14x14xf32>
    %528 = arith.addf %462, %527 : vector<14x14xf32>
    %c7_i32_216 = arith.constant 7 : i32
    %529 = arith.addi %0, %c7_i32_216 : i32
    %c36_i32_217 = arith.constant 36 : i32
    %530 = arith.muli %529, %c36_i32_217 : i32
    %c7_i32_218 = arith.constant 7 : i32
    %531 = arith.addi %530, %c7_i32_218 : i32
    %532 = arith.index_cast %531 : i32 to index
    %533 = memref.load %arg3[%532] : memref<288xf32, #tpu.memory_space<smem>>
    %534 = vector.broadcast %533 : f32 to vector<14x14xf32>
    %535 = arith.mulf %472, %534 : vector<14x14xf32>
    %536 = arith.addf %470, %535 : vector<14x14xf32>
    %c0_219 = arith.constant 0 : index
    %c0_220 = arith.constant 0 : index
    %c2_221 = arith.constant 2 : index
    %c2_222 = arith.constant 2 : index
    %537 = vector.load %arg2[%c0_219, %c0_220, %c2_221, %c2_222] : memref<1x4x16x16xf32, #tpu.memory_space<vmem>>, vector<1x1x14x14xf32>
    %538 = vector.shape_cast %537 : vector<1x1x14x14xf32> to vector<14x14xf32>
    %c0_i32_223 = arith.constant 0 : i32
    %539 = arith.addi %0, %c0_i32_223 : i32
    %c36_i32_224 = arith.constant 36 : i32
    %540 = arith.muli %539, %c36_i32_224 : i32
    %c8_i32_225 = arith.constant 8 : i32
    %541 = arith.addi %540, %c8_i32_225 : i32
    %542 = arith.index_cast %541 : i32 to index
    %543 = memref.load %arg3[%542] : memref<288xf32, #tpu.memory_space<smem>>
    %544 = vector.broadcast %543 : f32 to vector<14x14xf32>
    %545 = arith.mulf %538, %544 : vector<14x14xf32>
    %546 = arith.addf %480, %545 : vector<14x14xf32>
    %c1_i32_226 = arith.constant 1 : i32
    %547 = arith.addi %0, %c1_i32_226 : i32
    %c36_i32_227 = arith.constant 36 : i32
    %548 = arith.muli %547, %c36_i32_227 : i32
    %c8_i32_228 = arith.constant 8 : i32
    %549 = arith.addi %548, %c8_i32_228 : i32
    %550 = arith.index_cast %549 : i32 to index
    %551 = memref.load %arg3[%550] : memref<288xf32, #tpu.memory_space<smem>>
    %552 = vector.broadcast %551 : f32 to vector<14x14xf32>
    %553 = arith.mulf %538, %552 : vector<14x14xf32>
    %554 = arith.addf %488, %553 : vector<14x14xf32>
    %c2_i32_229 = arith.constant 2 : i32
    %555 = arith.addi %0, %c2_i32_229 : i32
    %c36_i32_230 = arith.constant 36 : i32
    %556 = arith.muli %555, %c36_i32_230 : i32
    %c8_i32_231 = arith.constant 8 : i32
    %557 = arith.addi %556, %c8_i32_231 : i32
    %558 = arith.index_cast %557 : i32 to index
    %559 = memref.load %arg3[%558] : memref<288xf32, #tpu.memory_space<smem>>
    %560 = vector.broadcast %559 : f32 to vector<14x14xf32>
    %561 = arith.mulf %538, %560 : vector<14x14xf32>
    %562 = arith.addf %496, %561 : vector<14x14xf32>
    %c3_i32_232 = arith.constant 3 : i32
    %563 = arith.addi %0, %c3_i32_232 : i32
    %c36_i32_233 = arith.constant 36 : i32
    %564 = arith.muli %563, %c36_i32_233 : i32
    %c8_i32_234 = arith.constant 8 : i32
    %565 = arith.addi %564, %c8_i32_234 : i32
    %566 = arith.index_cast %565 : i32 to index
    %567 = memref.load %arg3[%566] : memref<288xf32, #tpu.memory_space<smem>>
    %568 = vector.broadcast %567 : f32 to vector<14x14xf32>
    %569 = arith.mulf %538, %568 : vector<14x14xf32>
    %570 = arith.addf %504, %569 : vector<14x14xf32>
    %c4_i32_235 = arith.constant 4 : i32
    %571 = arith.addi %0, %c4_i32_235 : i32
    %c36_i32_236 = arith.constant 36 : i32
    %572 = arith.muli %571, %c36_i32_236 : i32
    %c8_i32_237 = arith.constant 8 : i32
    %573 = arith.addi %572, %c8_i32_237 : i32
    %574 = arith.index_cast %573 : i32 to index
    %575 = memref.load %arg3[%574] : memref<288xf32, #tpu.memory_space<smem>>
    %576 = vector.broadcast %575 : f32 to vector<14x14xf32>
    %577 = arith.mulf %538, %576 : vector<14x14xf32>
    %578 = arith.addf %512, %577 : vector<14x14xf32>
    %c5_i32_238 = arith.constant 5 : i32
    %579 = arith.addi %0, %c5_i32_238 : i32
    %c36_i32_239 = arith.constant 36 : i32
    %580 = arith.muli %579, %c36_i32_239 : i32
    %c8_i32_240 = arith.constant 8 : i32
    %581 = arith.addi %580, %c8_i32_240 : i32
    %582 = arith.index_cast %581 : i32 to index
    %583 = memref.load %arg3[%582] : memref<288xf32, #tpu.memory_space<smem>>
    %584 = vector.broadcast %583 : f32 to vector<14x14xf32>
    %585 = arith.mulf %538, %584 : vector<14x14xf32>
    %586 = arith.addf %520, %585 : vector<14x14xf32>
    %c6_i32_241 = arith.constant 6 : i32
    %587 = arith.addi %0, %c6_i32_241 : i32
    %c36_i32_242 = arith.constant 36 : i32
    %588 = arith.muli %587, %c36_i32_242 : i32
    %c8_i32_243 = arith.constant 8 : i32
    %589 = arith.addi %588, %c8_i32_243 : i32
    %590 = arith.index_cast %589 : i32 to index
    %591 = memref.load %arg3[%590] : memref<288xf32, #tpu.memory_space<smem>>
    %592 = vector.broadcast %591 : f32 to vector<14x14xf32>
    %593 = arith.mulf %538, %592 : vector<14x14xf32>
    %594 = arith.addf %528, %593 : vector<14x14xf32>
    %c7_i32_244 = arith.constant 7 : i32
    %595 = arith.addi %0, %c7_i32_244 : i32
    %c36_i32_245 = arith.constant 36 : i32
    %596 = arith.muli %595, %c36_i32_245 : i32
    %c8_i32_246 = arith.constant 8 : i32
    %597 = arith.addi %596, %c8_i32_246 : i32
    %598 = arith.index_cast %597 : i32 to index
    %599 = memref.load %arg3[%598] : memref<288xf32, #tpu.memory_space<smem>>
    %600 = vector.broadcast %599 : f32 to vector<14x14xf32>
    %601 = arith.mulf %538, %600 : vector<14x14xf32>
    %602 = arith.addf %536, %601 : vector<14x14xf32>
    %c0_247 = arith.constant 0 : index
    %c1_248 = arith.constant 1 : index
    %c0_249 = arith.constant 0 : index
    %c0_250 = arith.constant 0 : index
    %603 = vector.load %arg2[%c0_247, %c1_248, %c0_249, %c0_250] : memref<1x4x16x16xf32, #tpu.memory_space<vmem>>, vector<1x1x14x14xf32>
    %604 = vector.shape_cast %603 : vector<1x1x14x14xf32> to vector<14x14xf32>
    %c0_i32_251 = arith.constant 0 : i32
    %605 = arith.addi %0, %c0_i32_251 : i32
    %c36_i32_252 = arith.constant 36 : i32
    %606 = arith.muli %605, %c36_i32_252 : i32
    %c9_i32 = arith.constant 9 : i32
    %607 = arith.addi %606, %c9_i32 : i32
    %608 = arith.index_cast %607 : i32 to index
    %609 = memref.load %arg3[%608] : memref<288xf32, #tpu.memory_space<smem>>
    %610 = vector.broadcast %609 : f32 to vector<14x14xf32>
    %611 = arith.mulf %604, %610 : vector<14x14xf32>
    %612 = arith.addf %546, %611 : vector<14x14xf32>
    %c1_i32_253 = arith.constant 1 : i32
    %613 = arith.addi %0, %c1_i32_253 : i32
    %c36_i32_254 = arith.constant 36 : i32
    %614 = arith.muli %613, %c36_i32_254 : i32
    %c9_i32_255 = arith.constant 9 : i32
    %615 = arith.addi %614, %c9_i32_255 : i32
    %616 = arith.index_cast %615 : i32 to index
    %617 = memref.load %arg3[%616] : memref<288xf32, #tpu.memory_space<smem>>
    %618 = vector.broadcast %617 : f32 to vector<14x14xf32>
    %619 = arith.mulf %604, %618 : vector<14x14xf32>
    %620 = arith.addf %554, %619 : vector<14x14xf32>
    %c2_i32_256 = arith.constant 2 : i32
    %621 = arith.addi %0, %c2_i32_256 : i32
    %c36_i32_257 = arith.constant 36 : i32
    %622 = arith.muli %621, %c36_i32_257 : i32
    %c9_i32_258 = arith.constant 9 : i32
    %623 = arith.addi %622, %c9_i32_258 : i32
    %624 = arith.index_cast %623 : i32 to index
    %625 = memref.load %arg3[%624] : memref<288xf32, #tpu.memory_space<smem>>
    %626 = vector.broadcast %625 : f32 to vector<14x14xf32>
    %627 = arith.mulf %604, %626 : vector<14x14xf32>
    %628 = arith.addf %562, %627 : vector<14x14xf32>
    %c3_i32_259 = arith.constant 3 : i32
    %629 = arith.addi %0, %c3_i32_259 : i32
    %c36_i32_260 = arith.constant 36 : i32
    %630 = arith.muli %629, %c36_i32_260 : i32
    %c9_i32_261 = arith.constant 9 : i32
    %631 = arith.addi %630, %c9_i32_261 : i32
    %632 = arith.index_cast %631 : i32 to index
    %633 = memref.load %arg3[%632] : memref<288xf32, #tpu.memory_space<smem>>
    %634 = vector.broadcast %633 : f32 to vector<14x14xf32>
    %635 = arith.mulf %604, %634 : vector<14x14xf32>
    %636 = arith.addf %570, %635 : vector<14x14xf32>
    %c4_i32_262 = arith.constant 4 : i32
    %637 = arith.addi %0, %c4_i32_262 : i32
    %c36_i32_263 = arith.constant 36 : i32
    %638 = arith.muli %637, %c36_i32_263 : i32
    %c9_i32_264 = arith.constant 9 : i32
    %639 = arith.addi %638, %c9_i32_264 : i32
    %640 = arith.index_cast %639 : i32 to index
    %641 = memref.load %arg3[%640] : memref<288xf32, #tpu.memory_space<smem>>
    %642 = vector.broadcast %641 : f32 to vector<14x14xf32>
    %643 = arith.mulf %604, %642 : vector<14x14xf32>
    %644 = arith.addf %578, %643 : vector<14x14xf32>
    %c5_i32_265 = arith.constant 5 : i32
    %645 = arith.addi %0, %c5_i32_265 : i32
    %c36_i32_266 = arith.constant 36 : i32
    %646 = arith.muli %645, %c36_i32_266 : i32
    %c9_i32_267 = arith.constant 9 : i32
    %647 = arith.addi %646, %c9_i32_267 : i32
    %648 = arith.index_cast %647 : i32 to index
    %649 = memref.load %arg3[%648] : memref<288xf32, #tpu.memory_space<smem>>
    %650 = vector.broadcast %649 : f32 to vector<14x14xf32>
    %651 = arith.mulf %604, %650 : vector<14x14xf32>
    %652 = arith.addf %586, %651 : vector<14x14xf32>
    %c6_i32_268 = arith.constant 6 : i32
    %653 = arith.addi %0, %c6_i32_268 : i32
    %c36_i32_269 = arith.constant 36 : i32
    %654 = arith.muli %653, %c36_i32_269 : i32
    %c9_i32_270 = arith.constant 9 : i32
    %655 = arith.addi %654, %c9_i32_270 : i32
    %656 = arith.index_cast %655 : i32 to index
    %657 = memref.load %arg3[%656] : memref<288xf32, #tpu.memory_space<smem>>
    %658 = vector.broadcast %657 : f32 to vector<14x14xf32>
    %659 = arith.mulf %604, %658 : vector<14x14xf32>
    %660 = arith.addf %594, %659 : vector<14x14xf32>
    %c7_i32_271 = arith.constant 7 : i32
    %661 = arith.addi %0, %c7_i32_271 : i32
    %c36_i32_272 = arith.constant 36 : i32
    %662 = arith.muli %661, %c36_i32_272 : i32
    %c9_i32_273 = arith.constant 9 : i32
    %663 = arith.addi %662, %c9_i32_273 : i32
    %664 = arith.index_cast %663 : i32 to index
    %665 = memref.load %arg3[%664] : memref<288xf32, #tpu.memory_space<smem>>
    %666 = vector.broadcast %665 : f32 to vector<14x14xf32>
    %667 = arith.mulf %604, %666 : vector<14x14xf32>
    %668 = arith.addf %602, %667 : vector<14x14xf32>
    %c0_274 = arith.constant 0 : index
    %c1_275 = arith.constant 1 : index
    %c0_276 = arith.constant 0 : index
    %c1_277 = arith.constant 1 : index
    %669 = vector.load %arg2[%c0_274, %c1_275, %c0_276, %c1_277] : memref<1x4x16x16xf32, #tpu.memory_space<vmem>>, vector<1x1x14x14xf32>
    %670 = vector.shape_cast %669 : vector<1x1x14x14xf32> to vector<14x14xf32>
    %c0_i32_278 = arith.constant 0 : i32
    %671 = arith.addi %0, %c0_i32_278 : i32
    %c36_i32_279 = arith.constant 36 : i32
    %672 = arith.muli %671, %c36_i32_279 : i32
    %c10_i32 = arith.constant 10 : i32
    %673 = arith.addi %672, %c10_i32 : i32
    %674 = arith.index_cast %673 : i32 to index
    %675 = memref.load %arg3[%674] : memref<288xf32, #tpu.memory_space<smem>>
    %676 = vector.broadcast %675 : f32 to vector<14x14xf32>
    %677 = arith.mulf %670, %676 : vector<14x14xf32>
    %678 = arith.addf %612, %677 : vector<14x14xf32>
    %c1_i32_280 = arith.constant 1 : i32
    %679 = arith.addi %0, %c1_i32_280 : i32
    %c36_i32_281 = arith.constant 36 : i32
    %680 = arith.muli %679, %c36_i32_281 : i32
    %c10_i32_282 = arith.constant 10 : i32
    %681 = arith.addi %680, %c10_i32_282 : i32
    %682 = arith.index_cast %681 : i32 to index
    %683 = memref.load %arg3[%682] : memref<288xf32, #tpu.memory_space<smem>>
    %684 = vector.broadcast %683 : f32 to vector<14x14xf32>
    %685 = arith.mulf %670, %684 : vector<14x14xf32>
    %686 = arith.addf %620, %685 : vector<14x14xf32>
    %c2_i32_283 = arith.constant 2 : i32
    %687 = arith.addi %0, %c2_i32_283 : i32
    %c36_i32_284 = arith.constant 36 : i32
    %688 = arith.muli %687, %c36_i32_284 : i32
    %c10_i32_285 = arith.constant 10 : i32
    %689 = arith.addi %688, %c10_i32_285 : i32
    %690 = arith.index_cast %689 : i32 to index
    %691 = memref.load %arg3[%690] : memref<288xf32, #tpu.memory_space<smem>>
    %692 = vector.broadcast %691 : f32 to vector<14x14xf32>
    %693 = arith.mulf %670, %692 : vector<14x14xf32>
    %694 = arith.addf %628, %693 : vector<14x14xf32>
    %c3_i32_286 = arith.constant 3 : i32
    %695 = arith.addi %0, %c3_i32_286 : i32
    %c36_i32_287 = arith.constant 36 : i32
    %696 = arith.muli %695, %c36_i32_287 : i32
    %c10_i32_288 = arith.constant 10 : i32
    %697 = arith.addi %696, %c10_i32_288 : i32
    %698 = arith.index_cast %697 : i32 to index
    %699 = memref.load %arg3[%698] : memref<288xf32, #tpu.memory_space<smem>>
    %700 = vector.broadcast %699 : f32 to vector<14x14xf32>
    %701 = arith.mulf %670, %700 : vector<14x14xf32>
    %702 = arith.addf %636, %701 : vector<14x14xf32>
    %c4_i32_289 = arith.constant 4 : i32
    %703 = arith.addi %0, %c4_i32_289 : i32
    %c36_i32_290 = arith.constant 36 : i32
    %704 = arith.muli %703, %c36_i32_290 : i32
    %c10_i32_291 = arith.constant 10 : i32
    %705 = arith.addi %704, %c10_i32_291 : i32
    %706 = arith.index_cast %705 : i32 to index
    %707 = memref.load %arg3[%706] : memref<288xf32, #tpu.memory_space<smem>>
    %708 = vector.broadcast %707 : f32 to vector<14x14xf32>
    %709 = arith.mulf %670, %708 : vector<14x14xf32>
    %710 = arith.addf %644, %709 : vector<14x14xf32>
    %c5_i32_292 = arith.constant 5 : i32
    %711 = arith.addi %0, %c5_i32_292 : i32
    %c36_i32_293 = arith.constant 36 : i32
    %712 = arith.muli %711, %c36_i32_293 : i32
    %c10_i32_294 = arith.constant 10 : i32
    %713 = arith.addi %712, %c10_i32_294 : i32
    %714 = arith.index_cast %713 : i32 to index
    %715 = memref.load %arg3[%714] : memref<288xf32, #tpu.memory_space<smem>>
    %716 = vector.broadcast %715 : f32 to vector<14x14xf32>
    %717 = arith.mulf %670, %716 : vector<14x14xf32>
    %718 = arith.addf %652, %717 : vector<14x14xf32>
    %c6_i32_295 = arith.constant 6 : i32
    %719 = arith.addi %0, %c6_i32_295 : i32
    %c36_i32_296 = arith.constant 36 : i32
    %720 = arith.muli %719, %c36_i32_296 : i32
    %c10_i32_297 = arith.constant 10 : i32
    %721 = arith.addi %720, %c10_i32_297 : i32
    %722 = arith.index_cast %721 : i32 to index
    %723 = memref.load %arg3[%722] : memref<288xf32, #tpu.memory_space<smem>>
    %724 = vector.broadcast %723 : f32 to vector<14x14xf32>
    %725 = arith.mulf %670, %724 : vector<14x14xf32>
    %726 = arith.addf %660, %725 : vector<14x14xf32>
    %c7_i32_298 = arith.constant 7 : i32
    %727 = arith.addi %0, %c7_i32_298 : i32
    %c36_i32_299 = arith.constant 36 : i32
    %728 = arith.muli %727, %c36_i32_299 : i32
    %c10_i32_300 = arith.constant 10 : i32
    %729 = arith.addi %728, %c10_i32_300 : i32
    %730 = arith.index_cast %729 : i32 to index
    %731 = memref.load %arg3[%730] : memref<288xf32, #tpu.memory_space<smem>>
    %732 = vector.broadcast %731 : f32 to vector<14x14xf32>
    %733 = arith.mulf %670, %732 : vector<14x14xf32>
    %734 = arith.addf %668, %733 : vector<14x14xf32>
    %c0_301 = arith.constant 0 : index
    %c1_302 = arith.constant 1 : index
    %c0_303 = arith.constant 0 : index
    %c2_304 = arith.constant 2 : index
    %735 = vector.load %arg2[%c0_301, %c1_302, %c0_303, %c2_304] : memref<1x4x16x16xf32, #tpu.memory_space<vmem>>, vector<1x1x14x14xf32>
    %736 = vector.shape_cast %735 : vector<1x1x14x14xf32> to vector<14x14xf32>
    %c0_i32_305 = arith.constant 0 : i32
    %737 = arith.addi %0, %c0_i32_305 : i32
    %c36_i32_306 = arith.constant 36 : i32
    %738 = arith.muli %737, %c36_i32_306 : i32
    %c11_i32 = arith.constant 11 : i32
    %739 = arith.addi %738, %c11_i32 : i32
    %740 = arith.index_cast %739 : i32 to index
    %741 = memref.load %arg3[%740] : memref<288xf32, #tpu.memory_space<smem>>
    %742 = vector.broadcast %741 : f32 to vector<14x14xf32>
    %743 = arith.mulf %736, %742 : vector<14x14xf32>
    %744 = arith.addf %678, %743 : vector<14x14xf32>
    %c1_i32_307 = arith.constant 1 : i32
    %745 = arith.addi %0, %c1_i32_307 : i32
    %c36_i32_308 = arith.constant 36 : i32
    %746 = arith.muli %745, %c36_i32_308 : i32
    %c11_i32_309 = arith.constant 11 : i32
    %747 = arith.addi %746, %c11_i32_309 : i32
    %748 = arith.index_cast %747 : i32 to index
    %749 = memref.load %arg3[%748] : memref<288xf32, #tpu.memory_space<smem>>
    %750 = vector.broadcast %749 : f32 to vector<14x14xf32>
    %751 = arith.mulf %736, %750 : vector<14x14xf32>
    %752 = arith.addf %686, %751 : vector<14x14xf32>
    %c2_i32_310 = arith.constant 2 : i32
    %753 = arith.addi %0, %c2_i32_310 : i32
    %c36_i32_311 = arith.constant 36 : i32
    %754 = arith.muli %753, %c36_i32_311 : i32
    %c11_i32_312 = arith.constant 11 : i32
    %755 = arith.addi %754, %c11_i32_312 : i32
    %756 = arith.index_cast %755 : i32 to index
    %757 = memref.load %arg3[%756] : memref<288xf32, #tpu.memory_space<smem>>
    %758 = vector.broadcast %757 : f32 to vector<14x14xf32>
    %759 = arith.mulf %736, %758 : vector<14x14xf32>
    %760 = arith.addf %694, %759 : vector<14x14xf32>
    %c3_i32_313 = arith.constant 3 : i32
    %761 = arith.addi %0, %c3_i32_313 : i32
    %c36_i32_314 = arith.constant 36 : i32
    %762 = arith.muli %761, %c36_i32_314 : i32
    %c11_i32_315 = arith.constant 11 : i32
    %763 = arith.addi %762, %c11_i32_315 : i32
    %764 = arith.index_cast %763 : i32 to index
    %765 = memref.load %arg3[%764] : memref<288xf32, #tpu.memory_space<smem>>
    %766 = vector.broadcast %765 : f32 to vector<14x14xf32>
    %767 = arith.mulf %736, %766 : vector<14x14xf32>
    %768 = arith.addf %702, %767 : vector<14x14xf32>
    %c4_i32_316 = arith.constant 4 : i32
    %769 = arith.addi %0, %c4_i32_316 : i32
    %c36_i32_317 = arith.constant 36 : i32
    %770 = arith.muli %769, %c36_i32_317 : i32
    %c11_i32_318 = arith.constant 11 : i32
    %771 = arith.addi %770, %c11_i32_318 : i32
    %772 = arith.index_cast %771 : i32 to index
    %773 = memref.load %arg3[%772] : memref<288xf32, #tpu.memory_space<smem>>
    %774 = vector.broadcast %773 : f32 to vector<14x14xf32>
    %775 = arith.mulf %736, %774 : vector<14x14xf32>
    %776 = arith.addf %710, %775 : vector<14x14xf32>
    %c5_i32_319 = arith.constant 5 : i32
    %777 = arith.addi %0, %c5_i32_319 : i32
    %c36_i32_320 = arith.constant 36 : i32
    %778 = arith.muli %777, %c36_i32_320 : i32
    %c11_i32_321 = arith.constant 11 : i32
    %779 = arith.addi %778, %c11_i32_321 : i32
    %780 = arith.index_cast %779 : i32 to index
    %781 = memref.load %arg3[%780] : memref<288xf32, #tpu.memory_space<smem>>
    %782 = vector.broadcast %781 : f32 to vector<14x14xf32>
    %783 = arith.mulf %736, %782 : vector<14x14xf32>
    %784 = arith.addf %718, %783 : vector<14x14xf32>
    %c6_i32_322 = arith.constant 6 : i32
    %785 = arith.addi %0, %c6_i32_322 : i32
    %c36_i32_323 = arith.constant 36 : i32
    %786 = arith.muli %785, %c36_i32_323 : i32
    %c11_i32_324 = arith.constant 11 : i32
    %787 = arith.addi %786, %c11_i32_324 : i32
    %788 = arith.index_cast %787 : i32 to index
    %789 = memref.load %arg3[%788] : memref<288xf32, #tpu.memory_space<smem>>
    %790 = vector.broadcast %789 : f32 to vector<14x14xf32>
    %791 = arith.mulf %736, %790 : vector<14x14xf32>
    %792 = arith.addf %726, %791 : vector<14x14xf32>
    %c7_i32_325 = arith.constant 7 : i32
    %793 = arith.addi %0, %c7_i32_325 : i32
    %c36_i32_326 = arith.constant 36 : i32
    %794 = arith.muli %793, %c36_i32_326 : i32
    %c11_i32_327 = arith.constant 11 : i32
    %795 = arith.addi %794, %c11_i32_327 : i32
    %796 = arith.index_cast %795 : i32 to index
    %797 = memref.load %arg3[%796] : memref<288xf32, #tpu.memory_space<smem>>
    %798 = vector.broadcast %797 : f32 to vector<14x14xf32>
    %799 = arith.mulf %736, %798 : vector<14x14xf32>
    %800 = arith.addf %734, %799 : vector<14x14xf32>
    %c0_328 = arith.constant 0 : index
    %c1_329 = arith.constant 1 : index
    %c1_330 = arith.constant 1 : index
    %c0_331 = arith.constant 0 : index
    %801 = vector.load %arg2[%c0_328, %c1_329, %c1_330, %c0_331] : memref<1x4x16x16xf32, #tpu.memory_space<vmem>>, vector<1x1x14x14xf32>
    %802 = vector.shape_cast %801 : vector<1x1x14x14xf32> to vector<14x14xf32>
    %c0_i32_332 = arith.constant 0 : i32
    %803 = arith.addi %0, %c0_i32_332 : i32
    %c36_i32_333 = arith.constant 36 : i32
    %804 = arith.muli %803, %c36_i32_333 : i32
    %c12_i32 = arith.constant 12 : i32
    %805 = arith.addi %804, %c12_i32 : i32
    %806 = arith.index_cast %805 : i32 to index
    %807 = memref.load %arg3[%806] : memref<288xf32, #tpu.memory_space<smem>>
    %808 = vector.broadcast %807 : f32 to vector<14x14xf32>
    %809 = arith.mulf %802, %808 : vector<14x14xf32>
    %810 = arith.addf %744, %809 : vector<14x14xf32>
    %c1_i32_334 = arith.constant 1 : i32
    %811 = arith.addi %0, %c1_i32_334 : i32
    %c36_i32_335 = arith.constant 36 : i32
    %812 = arith.muli %811, %c36_i32_335 : i32
    %c12_i32_336 = arith.constant 12 : i32
    %813 = arith.addi %812, %c12_i32_336 : i32
    %814 = arith.index_cast %813 : i32 to index
    %815 = memref.load %arg3[%814] : memref<288xf32, #tpu.memory_space<smem>>
    %816 = vector.broadcast %815 : f32 to vector<14x14xf32>
    %817 = arith.mulf %802, %816 : vector<14x14xf32>
    %818 = arith.addf %752, %817 : vector<14x14xf32>
    %c2_i32_337 = arith.constant 2 : i32
    %819 = arith.addi %0, %c2_i32_337 : i32
    %c36_i32_338 = arith.constant 36 : i32
    %820 = arith.muli %819, %c36_i32_338 : i32
    %c12_i32_339 = arith.constant 12 : i32
    %821 = arith.addi %820, %c12_i32_339 : i32
    %822 = arith.index_cast %821 : i32 to index
    %823 = memref.load %arg3[%822] : memref<288xf32, #tpu.memory_space<smem>>
    %824 = vector.broadcast %823 : f32 to vector<14x14xf32>
    %825 = arith.mulf %802, %824 : vector<14x14xf32>
    %826 = arith.addf %760, %825 : vector<14x14xf32>
    %c3_i32_340 = arith.constant 3 : i32
    %827 = arith.addi %0, %c3_i32_340 : i32
    %c36_i32_341 = arith.constant 36 : i32
    %828 = arith.muli %827, %c36_i32_341 : i32
    %c12_i32_342 = arith.constant 12 : i32
    %829 = arith.addi %828, %c12_i32_342 : i32
    %830 = arith.index_cast %829 : i32 to index
    %831 = memref.load %arg3[%830] : memref<288xf32, #tpu.memory_space<smem>>
    %832 = vector.broadcast %831 : f32 to vector<14x14xf32>
    %833 = arith.mulf %802, %832 : vector<14x14xf32>
    %834 = arith.addf %768, %833 : vector<14x14xf32>
    %c4_i32_343 = arith.constant 4 : i32
    %835 = arith.addi %0, %c4_i32_343 : i32
    %c36_i32_344 = arith.constant 36 : i32
    %836 = arith.muli %835, %c36_i32_344 : i32
    %c12_i32_345 = arith.constant 12 : i32
    %837 = arith.addi %836, %c12_i32_345 : i32
    %838 = arith.index_cast %837 : i32 to index
    %839 = memref.load %arg3[%838] : memref<288xf32, #tpu.memory_space<smem>>
    %840 = vector.broadcast %839 : f32 to vector<14x14xf32>
    %841 = arith.mulf %802, %840 : vector<14x14xf32>
    %842 = arith.addf %776, %841 : vector<14x14xf32>
    %c5_i32_346 = arith.constant 5 : i32
    %843 = arith.addi %0, %c5_i32_346 : i32
    %c36_i32_347 = arith.constant 36 : i32
    %844 = arith.muli %843, %c36_i32_347 : i32
    %c12_i32_348 = arith.constant 12 : i32
    %845 = arith.addi %844, %c12_i32_348 : i32
    %846 = arith.index_cast %845 : i32 to index
    %847 = memref.load %arg3[%846] : memref<288xf32, #tpu.memory_space<smem>>
    %848 = vector.broadcast %847 : f32 to vector<14x14xf32>
    %849 = arith.mulf %802, %848 : vector<14x14xf32>
    %850 = arith.addf %784, %849 : vector<14x14xf32>
    %c6_i32_349 = arith.constant 6 : i32
    %851 = arith.addi %0, %c6_i32_349 : i32
    %c36_i32_350 = arith.constant 36 : i32
    %852 = arith.muli %851, %c36_i32_350 : i32
    %c12_i32_351 = arith.constant 12 : i32
    %853 = arith.addi %852, %c12_i32_351 : i32
    %854 = arith.index_cast %853 : i32 to index
    %855 = memref.load %arg3[%854] : memref<288xf32, #tpu.memory_space<smem>>
    %856 = vector.broadcast %855 : f32 to vector<14x14xf32>
    %857 = arith.mulf %802, %856 : vector<14x14xf32>
    %858 = arith.addf %792, %857 : vector<14x14xf32>
    %c7_i32_352 = arith.constant 7 : i32
    %859 = arith.addi %0, %c7_i32_352 : i32
    %c36_i32_353 = arith.constant 36 : i32
    %860 = arith.muli %859, %c36_i32_353 : i32
    %c12_i32_354 = arith.constant 12 : i32
    %861 = arith.addi %860, %c12_i32_354 : i32
    %862 = arith.index_cast %861 : i32 to index
    %863 = memref.load %arg3[%862] : memref<288xf32, #tpu.memory_space<smem>>
    %864 = vector.broadcast %863 : f32 to vector<14x14xf32>
    %865 = arith.mulf %802, %864 : vector<14x14xf32>
    %866 = arith.addf %800, %865 : vector<14x14xf32>
    %c0_355 = arith.constant 0 : index
    %c1_356 = arith.constant 1 : index
    %c1_357 = arith.constant 1 : index
    %c1_358 = arith.constant 1 : index
    %867 = vector.load %arg2[%c0_355, %c1_356, %c1_357, %c1_358] : memref<1x4x16x16xf32, #tpu.memory_space<vmem>>, vector<1x1x14x14xf32>
    %868 = vector.shape_cast %867 : vector<1x1x14x14xf32> to vector<14x14xf32>
    %c0_i32_359 = arith.constant 0 : i32
    %869 = arith.addi %0, %c0_i32_359 : i32
    %c36_i32_360 = arith.constant 36 : i32
    %870 = arith.muli %869, %c36_i32_360 : i32
    %c13_i32 = arith.constant 13 : i32
    %871 = arith.addi %870, %c13_i32 : i32
    %872 = arith.index_cast %871 : i32 to index
    %873 = memref.load %arg3[%872] : memref<288xf32, #tpu.memory_space<smem>>
    %874 = vector.broadcast %873 : f32 to vector<14x14xf32>
    %875 = arith.mulf %868, %874 : vector<14x14xf32>
    %876 = arith.addf %810, %875 : vector<14x14xf32>
    %c1_i32_361 = arith.constant 1 : i32
    %877 = arith.addi %0, %c1_i32_361 : i32
    %c36_i32_362 = arith.constant 36 : i32
    %878 = arith.muli %877, %c36_i32_362 : i32
    %c13_i32_363 = arith.constant 13 : i32
    %879 = arith.addi %878, %c13_i32_363 : i32
    %880 = arith.index_cast %879 : i32 to index
    %881 = memref.load %arg3[%880] : memref<288xf32, #tpu.memory_space<smem>>
    %882 = vector.broadcast %881 : f32 to vector<14x14xf32>
    %883 = arith.mulf %868, %882 : vector<14x14xf32>
    %884 = arith.addf %818, %883 : vector<14x14xf32>
    %c2_i32_364 = arith.constant 2 : i32
    %885 = arith.addi %0, %c2_i32_364 : i32
    %c36_i32_365 = arith.constant 36 : i32
    %886 = arith.muli %885, %c36_i32_365 : i32
    %c13_i32_366 = arith.constant 13 : i32
    %887 = arith.addi %886, %c13_i32_366 : i32
    %888 = arith.index_cast %887 : i32 to index
    %889 = memref.load %arg3[%888] : memref<288xf32, #tpu.memory_space<smem>>
    %890 = vector.broadcast %889 : f32 to vector<14x14xf32>
    %891 = arith.mulf %868, %890 : vector<14x14xf32>
    %892 = arith.addf %826, %891 : vector<14x14xf32>
    %c3_i32_367 = arith.constant 3 : i32
    %893 = arith.addi %0, %c3_i32_367 : i32
    %c36_i32_368 = arith.constant 36 : i32
    %894 = arith.muli %893, %c36_i32_368 : i32
    %c13_i32_369 = arith.constant 13 : i32
    %895 = arith.addi %894, %c13_i32_369 : i32
    %896 = arith.index_cast %895 : i32 to index
    %897 = memref.load %arg3[%896] : memref<288xf32, #tpu.memory_space<smem>>
    %898 = vector.broadcast %897 : f32 to vector<14x14xf32>
    %899 = arith.mulf %868, %898 : vector<14x14xf32>
    %900 = arith.addf %834, %899 : vector<14x14xf32>
    %c4_i32_370 = arith.constant 4 : i32
    %901 = arith.addi %0, %c4_i32_370 : i32
    %c36_i32_371 = arith.constant 36 : i32
    %902 = arith.muli %901, %c36_i32_371 : i32
    %c13_i32_372 = arith.constant 13 : i32
    %903 = arith.addi %902, %c13_i32_372 : i32
    %904 = arith.index_cast %903 : i32 to index
    %905 = memref.load %arg3[%904] : memref<288xf32, #tpu.memory_space<smem>>
    %906 = vector.broadcast %905 : f32 to vector<14x14xf32>
    %907 = arith.mulf %868, %906 : vector<14x14xf32>
    %908 = arith.addf %842, %907 : vector<14x14xf32>
    %c5_i32_373 = arith.constant 5 : i32
    %909 = arith.addi %0, %c5_i32_373 : i32
    %c36_i32_374 = arith.constant 36 : i32
    %910 = arith.muli %909, %c36_i32_374 : i32
    %c13_i32_375 = arith.constant 13 : i32
    %911 = arith.addi %910, %c13_i32_375 : i32
    %912 = arith.index_cast %911 : i32 to index
    %913 = memref.load %arg3[%912] : memref<288xf32, #tpu.memory_space<smem>>
    %914 = vector.broadcast %913 : f32 to vector<14x14xf32>
    %915 = arith.mulf %868, %914 : vector<14x14xf32>
    %916 = arith.addf %850, %915 : vector<14x14xf32>
    %c6_i32_376 = arith.constant 6 : i32
    %917 = arith.addi %0, %c6_i32_376 : i32
    %c36_i32_377 = arith.constant 36 : i32
    %918 = arith.muli %917, %c36_i32_377 : i32
    %c13_i32_378 = arith.constant 13 : i32
    %919 = arith.addi %918, %c13_i32_378 : i32
    %920 = arith.index_cast %919 : i32 to index
    %921 = memref.load %arg3[%920] : memref<288xf32, #tpu.memory_space<smem>>
    %922 = vector.broadcast %921 : f32 to vector<14x14xf32>
    %923 = arith.mulf %868, %922 : vector<14x14xf32>
    %924 = arith.addf %858, %923 : vector<14x14xf32>
    %c7_i32_379 = arith.constant 7 : i32
    %925 = arith.addi %0, %c7_i32_379 : i32
    %c36_i32_380 = arith.constant 36 : i32
    %926 = arith.muli %925, %c36_i32_380 : i32
    %c13_i32_381 = arith.constant 13 : i32
    %927 = arith.addi %926, %c13_i32_381 : i32
    %928 = arith.index_cast %927 : i32 to index
    %929 = memref.load %arg3[%928] : memref<288xf32, #tpu.memory_space<smem>>
    %930 = vector.broadcast %929 : f32 to vector<14x14xf32>
    %931 = arith.mulf %868, %930 : vector<14x14xf32>
    %932 = arith.addf %866, %931 : vector<14x14xf32>
    %c0_382 = arith.constant 0 : index
    %c1_383 = arith.constant 1 : index
    %c1_384 = arith.constant 1 : index
    %c2_385 = arith.constant 2 : index
    %933 = vector.load %arg2[%c0_382, %c1_383, %c1_384, %c2_385] : memref<1x4x16x16xf32, #tpu.memory_space<vmem>>, vector<1x1x14x14xf32>
    %934 = vector.shape_cast %933 : vector<1x1x14x14xf32> to vector<14x14xf32>
    %c0_i32_386 = arith.constant 0 : i32
    %935 = arith.addi %0, %c0_i32_386 : i32
    %c36_i32_387 = arith.constant 36 : i32
    %936 = arith.muli %935, %c36_i32_387 : i32
    %c14_i32 = arith.constant 14 : i32
    %937 = arith.addi %936, %c14_i32 : i32
    %938 = arith.index_cast %937 : i32 to index
    %939 = memref.load %arg3[%938] : memref<288xf32, #tpu.memory_space<smem>>
    %940 = vector.broadcast %939 : f32 to vector<14x14xf32>
    %941 = arith.mulf %934, %940 : vector<14x14xf32>
    %942 = arith.addf %876, %941 : vector<14x14xf32>
    %c1_i32_388 = arith.constant 1 : i32
    %943 = arith.addi %0, %c1_i32_388 : i32
    %c36_i32_389 = arith.constant 36 : i32
    %944 = arith.muli %943, %c36_i32_389 : i32
    %c14_i32_390 = arith.constant 14 : i32
    %945 = arith.addi %944, %c14_i32_390 : i32
    %946 = arith.index_cast %945 : i32 to index
    %947 = memref.load %arg3[%946] : memref<288xf32, #tpu.memory_space<smem>>
    %948 = vector.broadcast %947 : f32 to vector<14x14xf32>
    %949 = arith.mulf %934, %948 : vector<14x14xf32>
    %950 = arith.addf %884, %949 : vector<14x14xf32>
    %c2_i32_391 = arith.constant 2 : i32
    %951 = arith.addi %0, %c2_i32_391 : i32
    %c36_i32_392 = arith.constant 36 : i32
    %952 = arith.muli %951, %c36_i32_392 : i32
    %c14_i32_393 = arith.constant 14 : i32
    %953 = arith.addi %952, %c14_i32_393 : i32
    %954 = arith.index_cast %953 : i32 to index
    %955 = memref.load %arg3[%954] : memref<288xf32, #tpu.memory_space<smem>>
    %956 = vector.broadcast %955 : f32 to vector<14x14xf32>
    %957 = arith.mulf %934, %956 : vector<14x14xf32>
    %958 = arith.addf %892, %957 : vector<14x14xf32>
    %c3_i32_394 = arith.constant 3 : i32
    %959 = arith.addi %0, %c3_i32_394 : i32
    %c36_i32_395 = arith.constant 36 : i32
    %960 = arith.muli %959, %c36_i32_395 : i32
    %c14_i32_396 = arith.constant 14 : i32
    %961 = arith.addi %960, %c14_i32_396 : i32
    %962 = arith.index_cast %961 : i32 to index
    %963 = memref.load %arg3[%962] : memref<288xf32, #tpu.memory_space<smem>>
    %964 = vector.broadcast %963 : f32 to vector<14x14xf32>
    %965 = arith.mulf %934, %964 : vector<14x14xf32>
    %966 = arith.addf %900, %965 : vector<14x14xf32>
    %c4_i32_397 = arith.constant 4 : i32
    %967 = arith.addi %0, %c4_i32_397 : i32
    %c36_i32_398 = arith.constant 36 : i32
    %968 = arith.muli %967, %c36_i32_398 : i32
    %c14_i32_399 = arith.constant 14 : i32
    %969 = arith.addi %968, %c14_i32_399 : i32
    %970 = arith.index_cast %969 : i32 to index
    %971 = memref.load %arg3[%970] : memref<288xf32, #tpu.memory_space<smem>>
    %972 = vector.broadcast %971 : f32 to vector<14x14xf32>
    %973 = arith.mulf %934, %972 : vector<14x14xf32>
    %974 = arith.addf %908, %973 : vector<14x14xf32>
    %c5_i32_400 = arith.constant 5 : i32
    %975 = arith.addi %0, %c5_i32_400 : i32
    %c36_i32_401 = arith.constant 36 : i32
    %976 = arith.muli %975, %c36_i32_401 : i32
    %c14_i32_402 = arith.constant 14 : i32
    %977 = arith.addi %976, %c14_i32_402 : i32
    %978 = arith.index_cast %977 : i32 to index
    %979 = memref.load %arg3[%978] : memref<288xf32, #tpu.memory_space<smem>>
    %980 = vector.broadcast %979 : f32 to vector<14x14xf32>
    %981 = arith.mulf %934, %980 : vector<14x14xf32>
    %982 = arith.addf %916, %981 : vector<14x14xf32>
    %c6_i32_403 = arith.constant 6 : i32
    %983 = arith.addi %0, %c6_i32_403 : i32
    %c36_i32_404 = arith.constant 36 : i32
    %984 = arith.muli %983, %c36_i32_404 : i32
    %c14_i32_405 = arith.constant 14 : i32
    %985 = arith.addi %984, %c14_i32_405 : i32
    %986 = arith.index_cast %985 : i32 to index
    %987 = memref.load %arg3[%986] : memref<288xf32, #tpu.memory_space<smem>>
    %988 = vector.broadcast %987 : f32 to vector<14x14xf32>
    %989 = arith.mulf %934, %988 : vector<14x14xf32>
    %990 = arith.addf %924, %989 : vector<14x14xf32>
    %c7_i32_406 = arith.constant 7 : i32
    %991 = arith.addi %0, %c7_i32_406 : i32
    %c36_i32_407 = arith.constant 36 : i32
    %992 = arith.muli %991, %c36_i32_407 : i32
    %c14_i32_408 = arith.constant 14 : i32
    %993 = arith.addi %992, %c14_i32_408 : i32
    %994 = arith.index_cast %993 : i32 to index
    %995 = memref.load %arg3[%994] : memref<288xf32, #tpu.memory_space<smem>>
    %996 = vector.broadcast %995 : f32 to vector<14x14xf32>
    %997 = arith.mulf %934, %996 : vector<14x14xf32>
    %998 = arith.addf %932, %997 : vector<14x14xf32>
    %c0_409 = arith.constant 0 : index
    %c1_410 = arith.constant 1 : index
    %c2_411 = arith.constant 2 : index
    %c0_412 = arith.constant 0 : index
    %999 = vector.load %arg2[%c0_409, %c1_410, %c2_411, %c0_412] : memref<1x4x16x16xf32, #tpu.memory_space<vmem>>, vector<1x1x14x14xf32>
    %1000 = vector.shape_cast %999 : vector<1x1x14x14xf32> to vector<14x14xf32>
    %c0_i32_413 = arith.constant 0 : i32
    %1001 = arith.addi %0, %c0_i32_413 : i32
    %c36_i32_414 = arith.constant 36 : i32
    %1002 = arith.muli %1001, %c36_i32_414 : i32
    %c15_i32 = arith.constant 15 : i32
    %1003 = arith.addi %1002, %c15_i32 : i32
    %1004 = arith.index_cast %1003 : i32 to index
    %1005 = memref.load %arg3[%1004] : memref<288xf32, #tpu.memory_space<smem>>
    %1006 = vector.broadcast %1005 : f32 to vector<14x14xf32>
    %1007 = arith.mulf %1000, %1006 : vector<14x14xf32>
    %1008 = arith.addf %942, %1007 : vector<14x14xf32>
    %c1_i32_415 = arith.constant 1 : i32
    %1009 = arith.addi %0, %c1_i32_415 : i32
    %c36_i32_416 = arith.constant 36 : i32
    %1010 = arith.muli %1009, %c36_i32_416 : i32
    %c15_i32_417 = arith.constant 15 : i32
    %1011 = arith.addi %1010, %c15_i32_417 : i32
    %1012 = arith.index_cast %1011 : i32 to index
    %1013 = memref.load %arg3[%1012] : memref<288xf32, #tpu.memory_space<smem>>
    %1014 = vector.broadcast %1013 : f32 to vector<14x14xf32>
    %1015 = arith.mulf %1000, %1014 : vector<14x14xf32>
    %1016 = arith.addf %950, %1015 : vector<14x14xf32>
    %c2_i32_418 = arith.constant 2 : i32
    %1017 = arith.addi %0, %c2_i32_418 : i32
    %c36_i32_419 = arith.constant 36 : i32
    %1018 = arith.muli %1017, %c36_i32_419 : i32
    %c15_i32_420 = arith.constant 15 : i32
    %1019 = arith.addi %1018, %c15_i32_420 : i32
    %1020 = arith.index_cast %1019 : i32 to index
    %1021 = memref.load %arg3[%1020] : memref<288xf32, #tpu.memory_space<smem>>
    %1022 = vector.broadcast %1021 : f32 to vector<14x14xf32>
    %1023 = arith.mulf %1000, %1022 : vector<14x14xf32>
    %1024 = arith.addf %958, %1023 : vector<14x14xf32>
    %c3_i32_421 = arith.constant 3 : i32
    %1025 = arith.addi %0, %c3_i32_421 : i32
    %c36_i32_422 = arith.constant 36 : i32
    %1026 = arith.muli %1025, %c36_i32_422 : i32
    %c15_i32_423 = arith.constant 15 : i32
    %1027 = arith.addi %1026, %c15_i32_423 : i32
    %1028 = arith.index_cast %1027 : i32 to index
    %1029 = memref.load %arg3[%1028] : memref<288xf32, #tpu.memory_space<smem>>
    %1030 = vector.broadcast %1029 : f32 to vector<14x14xf32>
    %1031 = arith.mulf %1000, %1030 : vector<14x14xf32>
    %1032 = arith.addf %966, %1031 : vector<14x14xf32>
    %c4_i32_424 = arith.constant 4 : i32
    %1033 = arith.addi %0, %c4_i32_424 : i32
    %c36_i32_425 = arith.constant 36 : i32
    %1034 = arith.muli %1033, %c36_i32_425 : i32
    %c15_i32_426 = arith.constant 15 : i32
    %1035 = arith.addi %1034, %c15_i32_426 : i32
    %1036 = arith.index_cast %1035 : i32 to index
    %1037 = memref.load %arg3[%1036] : memref<288xf32, #tpu.memory_space<smem>>
    %1038 = vector.broadcast %1037 : f32 to vector<14x14xf32>
    %1039 = arith.mulf %1000, %1038 : vector<14x14xf32>
    %1040 = arith.addf %974, %1039 : vector<14x14xf32>
    %c5_i32_427 = arith.constant 5 : i32
    %1041 = arith.addi %0, %c5_i32_427 : i32
    %c36_i32_428 = arith.constant 36 : i32
    %1042 = arith.muli %1041, %c36_i32_428 : i32
    %c15_i32_429 = arith.constant 15 : i32
    %1043 = arith.addi %1042, %c15_i32_429 : i32
    %1044 = arith.index_cast %1043 : i32 to index
    %1045 = memref.load %arg3[%1044] : memref<288xf32, #tpu.memory_space<smem>>
    %1046 = vector.broadcast %1045 : f32 to vector<14x14xf32>
    %1047 = arith.mulf %1000, %1046 : vector<14x14xf32>
    %1048 = arith.addf %982, %1047 : vector<14x14xf32>
    %c6_i32_430 = arith.constant 6 : i32
    %1049 = arith.addi %0, %c6_i32_430 : i32
    %c36_i32_431 = arith.constant 36 : i32
    %1050 = arith.muli %1049, %c36_i32_431 : i32
    %c15_i32_432 = arith.constant 15 : i32
    %1051 = arith.addi %1050, %c15_i32_432 : i32
    %1052 = arith.index_cast %1051 : i32 to index
    %1053 = memref.load %arg3[%1052] : memref<288xf32, #tpu.memory_space<smem>>
    %1054 = vector.broadcast %1053 : f32 to vector<14x14xf32>
    %1055 = arith.mulf %1000, %1054 : vector<14x14xf32>
    %1056 = arith.addf %990, %1055 : vector<14x14xf32>
    %c7_i32_433 = arith.constant 7 : i32
    %1057 = arith.addi %0, %c7_i32_433 : i32
    %c36_i32_434 = arith.constant 36 : i32
    %1058 = arith.muli %1057, %c36_i32_434 : i32
    %c15_i32_435 = arith.constant 15 : i32
    %1059 = arith.addi %1058, %c15_i32_435 : i32
    %1060 = arith.index_cast %1059 : i32 to index
    %1061 = memref.load %arg3[%1060] : memref<288xf32, #tpu.memory_space<smem>>
    %1062 = vector.broadcast %1061 : f32 to vector<14x14xf32>
    %1063 = arith.mulf %1000, %1062 : vector<14x14xf32>
    %1064 = arith.addf %998, %1063 : vector<14x14xf32>
    %c0_436 = arith.constant 0 : index
    %c1_437 = arith.constant 1 : index
    %c2_438 = arith.constant 2 : index
    %c1_439 = arith.constant 1 : index
    %1065 = vector.load %arg2[%c0_436, %c1_437, %c2_438, %c1_439] : memref<1x4x16x16xf32, #tpu.memory_space<vmem>>, vector<1x1x14x14xf32>
    %1066 = vector.shape_cast %1065 : vector<1x1x14x14xf32> to vector<14x14xf32>
    %c0_i32_440 = arith.constant 0 : i32
    %1067 = arith.addi %0, %c0_i32_440 : i32
    %c36_i32_441 = arith.constant 36 : i32
    %1068 = arith.muli %1067, %c36_i32_441 : i32
    %c16_i32 = arith.constant 16 : i32
    %1069 = arith.addi %1068, %c16_i32 : i32
    %1070 = arith.index_cast %1069 : i32 to index
    %1071 = memref.load %arg3[%1070] : memref<288xf32, #tpu.memory_space<smem>>
    %1072 = vector.broadcast %1071 : f32 to vector<14x14xf32>
    %1073 = arith.mulf %1066, %1072 : vector<14x14xf32>
    %1074 = arith.addf %1008, %1073 : vector<14x14xf32>
    %c1_i32_442 = arith.constant 1 : i32
    %1075 = arith.addi %0, %c1_i32_442 : i32
    %c36_i32_443 = arith.constant 36 : i32
    %1076 = arith.muli %1075, %c36_i32_443 : i32
    %c16_i32_444 = arith.constant 16 : i32
    %1077 = arith.addi %1076, %c16_i32_444 : i32
    %1078 = arith.index_cast %1077 : i32 to index
    %1079 = memref.load %arg3[%1078] : memref<288xf32, #tpu.memory_space<smem>>
    %1080 = vector.broadcast %1079 : f32 to vector<14x14xf32>
    %1081 = arith.mulf %1066, %1080 : vector<14x14xf32>
    %1082 = arith.addf %1016, %1081 : vector<14x14xf32>
    %c2_i32_445 = arith.constant 2 : i32
    %1083 = arith.addi %0, %c2_i32_445 : i32
    %c36_i32_446 = arith.constant 36 : i32
    %1084 = arith.muli %1083, %c36_i32_446 : i32
    %c16_i32_447 = arith.constant 16 : i32
    %1085 = arith.addi %1084, %c16_i32_447 : i32
    %1086 = arith.index_cast %1085 : i32 to index
    %1087 = memref.load %arg3[%1086] : memref<288xf32, #tpu.memory_space<smem>>
    %1088 = vector.broadcast %1087 : f32 to vector<14x14xf32>
    %1089 = arith.mulf %1066, %1088 : vector<14x14xf32>
    %1090 = arith.addf %1024, %1089 : vector<14x14xf32>
    %c3_i32_448 = arith.constant 3 : i32
    %1091 = arith.addi %0, %c3_i32_448 : i32
    %c36_i32_449 = arith.constant 36 : i32
    %1092 = arith.muli %1091, %c36_i32_449 : i32
    %c16_i32_450 = arith.constant 16 : i32
    %1093 = arith.addi %1092, %c16_i32_450 : i32
    %1094 = arith.index_cast %1093 : i32 to index
    %1095 = memref.load %arg3[%1094] : memref<288xf32, #tpu.memory_space<smem>>
    %1096 = vector.broadcast %1095 : f32 to vector<14x14xf32>
    %1097 = arith.mulf %1066, %1096 : vector<14x14xf32>
    %1098 = arith.addf %1032, %1097 : vector<14x14xf32>
    %c4_i32_451 = arith.constant 4 : i32
    %1099 = arith.addi %0, %c4_i32_451 : i32
    %c36_i32_452 = arith.constant 36 : i32
    %1100 = arith.muli %1099, %c36_i32_452 : i32
    %c16_i32_453 = arith.constant 16 : i32
    %1101 = arith.addi %1100, %c16_i32_453 : i32
    %1102 = arith.index_cast %1101 : i32 to index
    %1103 = memref.load %arg3[%1102] : memref<288xf32, #tpu.memory_space<smem>>
    %1104 = vector.broadcast %1103 : f32 to vector<14x14xf32>
    %1105 = arith.mulf %1066, %1104 : vector<14x14xf32>
    %1106 = arith.addf %1040, %1105 : vector<14x14xf32>
    %c5_i32_454 = arith.constant 5 : i32
    %1107 = arith.addi %0, %c5_i32_454 : i32
    %c36_i32_455 = arith.constant 36 : i32
    %1108 = arith.muli %1107, %c36_i32_455 : i32
    %c16_i32_456 = arith.constant 16 : i32
    %1109 = arith.addi %1108, %c16_i32_456 : i32
    %1110 = arith.index_cast %1109 : i32 to index
    %1111 = memref.load %arg3[%1110] : memref<288xf32, #tpu.memory_space<smem>>
    %1112 = vector.broadcast %1111 : f32 to vector<14x14xf32>
    %1113 = arith.mulf %1066, %1112 : vector<14x14xf32>
    %1114 = arith.addf %1048, %1113 : vector<14x14xf32>
    %c6_i32_457 = arith.constant 6 : i32
    %1115 = arith.addi %0, %c6_i32_457 : i32
    %c36_i32_458 = arith.constant 36 : i32
    %1116 = arith.muli %1115, %c36_i32_458 : i32
    %c16_i32_459 = arith.constant 16 : i32
    %1117 = arith.addi %1116, %c16_i32_459 : i32
    %1118 = arith.index_cast %1117 : i32 to index
    %1119 = memref.load %arg3[%1118] : memref<288xf32, #tpu.memory_space<smem>>
    %1120 = vector.broadcast %1119 : f32 to vector<14x14xf32>
    %1121 = arith.mulf %1066, %1120 : vector<14x14xf32>
    %1122 = arith.addf %1056, %1121 : vector<14x14xf32>
    %c7_i32_460 = arith.constant 7 : i32
    %1123 = arith.addi %0, %c7_i32_460 : i32
    %c36_i32_461 = arith.constant 36 : i32
    %1124 = arith.muli %1123, %c36_i32_461 : i32
    %c16_i32_462 = arith.constant 16 : i32
    %1125 = arith.addi %1124, %c16_i32_462 : i32
    %1126 = arith.index_cast %1125 : i32 to index
    %1127 = memref.load %arg3[%1126] : memref<288xf32, #tpu.memory_space<smem>>
    %1128 = vector.broadcast %1127 : f32 to vector<14x14xf32>
    %1129 = arith.mulf %1066, %1128 : vector<14x14xf32>
    %1130 = arith.addf %1064, %1129 : vector<14x14xf32>
    %c0_463 = arith.constant 0 : index
    %c1_464 = arith.constant 1 : index
    %c2_465 = arith.constant 2 : index
    %c2_466 = arith.constant 2 : index
    %1131 = vector.load %arg2[%c0_463, %c1_464, %c2_465, %c2_466] : memref<1x4x16x16xf32, #tpu.memory_space<vmem>>, vector<1x1x14x14xf32>
    %1132 = vector.shape_cast %1131 : vector<1x1x14x14xf32> to vector<14x14xf32>
    %c0_i32_467 = arith.constant 0 : i32
    %1133 = arith.addi %0, %c0_i32_467 : i32
    %c36_i32_468 = arith.constant 36 : i32
    %1134 = arith.muli %1133, %c36_i32_468 : i32
    %c17_i32 = arith.constant 17 : i32
    %1135 = arith.addi %1134, %c17_i32 : i32
    %1136 = arith.index_cast %1135 : i32 to index
    %1137 = memref.load %arg3[%1136] : memref<288xf32, #tpu.memory_space<smem>>
    %1138 = vector.broadcast %1137 : f32 to vector<14x14xf32>
    %1139 = arith.mulf %1132, %1138 : vector<14x14xf32>
    %1140 = arith.addf %1074, %1139 : vector<14x14xf32>
    %c1_i32_469 = arith.constant 1 : i32
    %1141 = arith.addi %0, %c1_i32_469 : i32
    %c36_i32_470 = arith.constant 36 : i32
    %1142 = arith.muli %1141, %c36_i32_470 : i32
    %c17_i32_471 = arith.constant 17 : i32
    %1143 = arith.addi %1142, %c17_i32_471 : i32
    %1144 = arith.index_cast %1143 : i32 to index
    %1145 = memref.load %arg3[%1144] : memref<288xf32, #tpu.memory_space<smem>>
    %1146 = vector.broadcast %1145 : f32 to vector<14x14xf32>
    %1147 = arith.mulf %1132, %1146 : vector<14x14xf32>
    %1148 = arith.addf %1082, %1147 : vector<14x14xf32>
    %c2_i32_472 = arith.constant 2 : i32
    %1149 = arith.addi %0, %c2_i32_472 : i32
    %c36_i32_473 = arith.constant 36 : i32
    %1150 = arith.muli %1149, %c36_i32_473 : i32
    %c17_i32_474 = arith.constant 17 : i32
    %1151 = arith.addi %1150, %c17_i32_474 : i32
    %1152 = arith.index_cast %1151 : i32 to index
    %1153 = memref.load %arg3[%1152] : memref<288xf32, #tpu.memory_space<smem>>
    %1154 = vector.broadcast %1153 : f32 to vector<14x14xf32>
    %1155 = arith.mulf %1132, %1154 : vector<14x14xf32>
    %1156 = arith.addf %1090, %1155 : vector<14x14xf32>
    %c3_i32_475 = arith.constant 3 : i32
    %1157 = arith.addi %0, %c3_i32_475 : i32
    %c36_i32_476 = arith.constant 36 : i32
    %1158 = arith.muli %1157, %c36_i32_476 : i32
    %c17_i32_477 = arith.constant 17 : i32
    %1159 = arith.addi %1158, %c17_i32_477 : i32
    %1160 = arith.index_cast %1159 : i32 to index
    %1161 = memref.load %arg3[%1160] : memref<288xf32, #tpu.memory_space<smem>>
    %1162 = vector.broadcast %1161 : f32 to vector<14x14xf32>
    %1163 = arith.mulf %1132, %1162 : vector<14x14xf32>
    %1164 = arith.addf %1098, %1163 : vector<14x14xf32>
    %c4_i32_478 = arith.constant 4 : i32
    %1165 = arith.addi %0, %c4_i32_478 : i32
    %c36_i32_479 = arith.constant 36 : i32
    %1166 = arith.muli %1165, %c36_i32_479 : i32
    %c17_i32_480 = arith.constant 17 : i32
    %1167 = arith.addi %1166, %c17_i32_480 : i32
    %1168 = arith.index_cast %1167 : i32 to index
    %1169 = memref.load %arg3[%1168] : memref<288xf32, #tpu.memory_space<smem>>
    %1170 = vector.broadcast %1169 : f32 to vector<14x14xf32>
    %1171 = arith.mulf %1132, %1170 : vector<14x14xf32>
    %1172 = arith.addf %1106, %1171 : vector<14x14xf32>
    %c5_i32_481 = arith.constant 5 : i32
    %1173 = arith.addi %0, %c5_i32_481 : i32
    %c36_i32_482 = arith.constant 36 : i32
    %1174 = arith.muli %1173, %c36_i32_482 : i32
    %c17_i32_483 = arith.constant 17 : i32
    %1175 = arith.addi %1174, %c17_i32_483 : i32
    %1176 = arith.index_cast %1175 : i32 to index
    %1177 = memref.load %arg3[%1176] : memref<288xf32, #tpu.memory_space<smem>>
    %1178 = vector.broadcast %1177 : f32 to vector<14x14xf32>
    %1179 = arith.mulf %1132, %1178 : vector<14x14xf32>
    %1180 = arith.addf %1114, %1179 : vector<14x14xf32>
    %c6_i32_484 = arith.constant 6 : i32
    %1181 = arith.addi %0, %c6_i32_484 : i32
    %c36_i32_485 = arith.constant 36 : i32
    %1182 = arith.muli %1181, %c36_i32_485 : i32
    %c17_i32_486 = arith.constant 17 : i32
    %1183 = arith.addi %1182, %c17_i32_486 : i32
    %1184 = arith.index_cast %1183 : i32 to index
    %1185 = memref.load %arg3[%1184] : memref<288xf32, #tpu.memory_space<smem>>
    %1186 = vector.broadcast %1185 : f32 to vector<14x14xf32>
    %1187 = arith.mulf %1132, %1186 : vector<14x14xf32>
    %1188 = arith.addf %1122, %1187 : vector<14x14xf32>
    %c7_i32_487 = arith.constant 7 : i32
    %1189 = arith.addi %0, %c7_i32_487 : i32
    %c36_i32_488 = arith.constant 36 : i32
    %1190 = arith.muli %1189, %c36_i32_488 : i32
    %c17_i32_489 = arith.constant 17 : i32
    %1191 = arith.addi %1190, %c17_i32_489 : i32
    %1192 = arith.index_cast %1191 : i32 to index
    %1193 = memref.load %arg3[%1192] : memref<288xf32, #tpu.memory_space<smem>>
    %1194 = vector.broadcast %1193 : f32 to vector<14x14xf32>
    %1195 = arith.mulf %1132, %1194 : vector<14x14xf32>
    %1196 = arith.addf %1130, %1195 : vector<14x14xf32>
    %c0_490 = arith.constant 0 : index
    %c2_491 = arith.constant 2 : index
    %c0_492 = arith.constant 0 : index
    %c0_493 = arith.constant 0 : index
    %1197 = vector.load %arg2[%c0_490, %c2_491, %c0_492, %c0_493] : memref<1x4x16x16xf32, #tpu.memory_space<vmem>>, vector<1x1x14x14xf32>
    %1198 = vector.shape_cast %1197 : vector<1x1x14x14xf32> to vector<14x14xf32>
    %c0_i32_494 = arith.constant 0 : i32
    %1199 = arith.addi %0, %c0_i32_494 : i32
    %c36_i32_495 = arith.constant 36 : i32
    %1200 = arith.muli %1199, %c36_i32_495 : i32
    %c18_i32 = arith.constant 18 : i32
    %1201 = arith.addi %1200, %c18_i32 : i32
    %1202 = arith.index_cast %1201 : i32 to index
    %1203 = memref.load %arg3[%1202] : memref<288xf32, #tpu.memory_space<smem>>
    %1204 = vector.broadcast %1203 : f32 to vector<14x14xf32>
    %1205 = arith.mulf %1198, %1204 : vector<14x14xf32>
    %1206 = arith.addf %1140, %1205 : vector<14x14xf32>
    %c1_i32_496 = arith.constant 1 : i32
    %1207 = arith.addi %0, %c1_i32_496 : i32
    %c36_i32_497 = arith.constant 36 : i32
    %1208 = arith.muli %1207, %c36_i32_497 : i32
    %c18_i32_498 = arith.constant 18 : i32
    %1209 = arith.addi %1208, %c18_i32_498 : i32
    %1210 = arith.index_cast %1209 : i32 to index
    %1211 = memref.load %arg3[%1210] : memref<288xf32, #tpu.memory_space<smem>>
    %1212 = vector.broadcast %1211 : f32 to vector<14x14xf32>
    %1213 = arith.mulf %1198, %1212 : vector<14x14xf32>
    %1214 = arith.addf %1148, %1213 : vector<14x14xf32>
    %c2_i32_499 = arith.constant 2 : i32
    %1215 = arith.addi %0, %c2_i32_499 : i32
    %c36_i32_500 = arith.constant 36 : i32
    %1216 = arith.muli %1215, %c36_i32_500 : i32
    %c18_i32_501 = arith.constant 18 : i32
    %1217 = arith.addi %1216, %c18_i32_501 : i32
    %1218 = arith.index_cast %1217 : i32 to index
    %1219 = memref.load %arg3[%1218] : memref<288xf32, #tpu.memory_space<smem>>
    %1220 = vector.broadcast %1219 : f32 to vector<14x14xf32>
    %1221 = arith.mulf %1198, %1220 : vector<14x14xf32>
    %1222 = arith.addf %1156, %1221 : vector<14x14xf32>
    %c3_i32_502 = arith.constant 3 : i32
    %1223 = arith.addi %0, %c3_i32_502 : i32
    %c36_i32_503 = arith.constant 36 : i32
    %1224 = arith.muli %1223, %c36_i32_503 : i32
    %c18_i32_504 = arith.constant 18 : i32
    %1225 = arith.addi %1224, %c18_i32_504 : i32
    %1226 = arith.index_cast %1225 : i32 to index
    %1227 = memref.load %arg3[%1226] : memref<288xf32, #tpu.memory_space<smem>>
    %1228 = vector.broadcast %1227 : f32 to vector<14x14xf32>
    %1229 = arith.mulf %1198, %1228 : vector<14x14xf32>
    %1230 = arith.addf %1164, %1229 : vector<14x14xf32>
    %c4_i32_505 = arith.constant 4 : i32
    %1231 = arith.addi %0, %c4_i32_505 : i32
    %c36_i32_506 = arith.constant 36 : i32
    %1232 = arith.muli %1231, %c36_i32_506 : i32
    %c18_i32_507 = arith.constant 18 : i32
    %1233 = arith.addi %1232, %c18_i32_507 : i32
    %1234 = arith.index_cast %1233 : i32 to index
    %1235 = memref.load %arg3[%1234] : memref<288xf32, #tpu.memory_space<smem>>
    %1236 = vector.broadcast %1235 : f32 to vector<14x14xf32>
    %1237 = arith.mulf %1198, %1236 : vector<14x14xf32>
    %1238 = arith.addf %1172, %1237 : vector<14x14xf32>
    %c5_i32_508 = arith.constant 5 : i32
    %1239 = arith.addi %0, %c5_i32_508 : i32
    %c36_i32_509 = arith.constant 36 : i32
    %1240 = arith.muli %1239, %c36_i32_509 : i32
    %c18_i32_510 = arith.constant 18 : i32
    %1241 = arith.addi %1240, %c18_i32_510 : i32
    %1242 = arith.index_cast %1241 : i32 to index
    %1243 = memref.load %arg3[%1242] : memref<288xf32, #tpu.memory_space<smem>>
    %1244 = vector.broadcast %1243 : f32 to vector<14x14xf32>
    %1245 = arith.mulf %1198, %1244 : vector<14x14xf32>
    %1246 = arith.addf %1180, %1245 : vector<14x14xf32>
    %c6_i32_511 = arith.constant 6 : i32
    %1247 = arith.addi %0, %c6_i32_511 : i32
    %c36_i32_512 = arith.constant 36 : i32
    %1248 = arith.muli %1247, %c36_i32_512 : i32
    %c18_i32_513 = arith.constant 18 : i32
    %1249 = arith.addi %1248, %c18_i32_513 : i32
    %1250 = arith.index_cast %1249 : i32 to index
    %1251 = memref.load %arg3[%1250] : memref<288xf32, #tpu.memory_space<smem>>
    %1252 = vector.broadcast %1251 : f32 to vector<14x14xf32>
    %1253 = arith.mulf %1198, %1252 : vector<14x14xf32>
    %1254 = arith.addf %1188, %1253 : vector<14x14xf32>
    %c7_i32_514 = arith.constant 7 : i32
    %1255 = arith.addi %0, %c7_i32_514 : i32
    %c36_i32_515 = arith.constant 36 : i32
    %1256 = arith.muli %1255, %c36_i32_515 : i32
    %c18_i32_516 = arith.constant 18 : i32
    %1257 = arith.addi %1256, %c18_i32_516 : i32
    %1258 = arith.index_cast %1257 : i32 to index
    %1259 = memref.load %arg3[%1258] : memref<288xf32, #tpu.memory_space<smem>>
    %1260 = vector.broadcast %1259 : f32 to vector<14x14xf32>
    %1261 = arith.mulf %1198, %1260 : vector<14x14xf32>
    %1262 = arith.addf %1196, %1261 : vector<14x14xf32>
    %c0_517 = arith.constant 0 : index
    %c2_518 = arith.constant 2 : index
    %c0_519 = arith.constant 0 : index
    %c1_520 = arith.constant 1 : index
    %1263 = vector.load %arg2[%c0_517, %c2_518, %c0_519, %c1_520] : memref<1x4x16x16xf32, #tpu.memory_space<vmem>>, vector<1x1x14x14xf32>
    %1264 = vector.shape_cast %1263 : vector<1x1x14x14xf32> to vector<14x14xf32>
    %c0_i32_521 = arith.constant 0 : i32
    %1265 = arith.addi %0, %c0_i32_521 : i32
    %c36_i32_522 = arith.constant 36 : i32
    %1266 = arith.muli %1265, %c36_i32_522 : i32
    %c19_i32 = arith.constant 19 : i32
    %1267 = arith.addi %1266, %c19_i32 : i32
    %1268 = arith.index_cast %1267 : i32 to index
    %1269 = memref.load %arg3[%1268] : memref<288xf32, #tpu.memory_space<smem>>
    %1270 = vector.broadcast %1269 : f32 to vector<14x14xf32>
    %1271 = arith.mulf %1264, %1270 : vector<14x14xf32>
    %1272 = arith.addf %1206, %1271 : vector<14x14xf32>
    %c1_i32_523 = arith.constant 1 : i32
    %1273 = arith.addi %0, %c1_i32_523 : i32
    %c36_i32_524 = arith.constant 36 : i32
    %1274 = arith.muli %1273, %c36_i32_524 : i32
    %c19_i32_525 = arith.constant 19 : i32
    %1275 = arith.addi %1274, %c19_i32_525 : i32
    %1276 = arith.index_cast %1275 : i32 to index
    %1277 = memref.load %arg3[%1276] : memref<288xf32, #tpu.memory_space<smem>>
    %1278 = vector.broadcast %1277 : f32 to vector<14x14xf32>
    %1279 = arith.mulf %1264, %1278 : vector<14x14xf32>
    %1280 = arith.addf %1214, %1279 : vector<14x14xf32>
    %c2_i32_526 = arith.constant 2 : i32
    %1281 = arith.addi %0, %c2_i32_526 : i32
    %c36_i32_527 = arith.constant 36 : i32
    %1282 = arith.muli %1281, %c36_i32_527 : i32
    %c19_i32_528 = arith.constant 19 : i32
    %1283 = arith.addi %1282, %c19_i32_528 : i32
    %1284 = arith.index_cast %1283 : i32 to index
    %1285 = memref.load %arg3[%1284] : memref<288xf32, #tpu.memory_space<smem>>
    %1286 = vector.broadcast %1285 : f32 to vector<14x14xf32>
    %1287 = arith.mulf %1264, %1286 : vector<14x14xf32>
    %1288 = arith.addf %1222, %1287 : vector<14x14xf32>
    %c3_i32_529 = arith.constant 3 : i32
    %1289 = arith.addi %0, %c3_i32_529 : i32
    %c36_i32_530 = arith.constant 36 : i32
    %1290 = arith.muli %1289, %c36_i32_530 : i32
    %c19_i32_531 = arith.constant 19 : i32
    %1291 = arith.addi %1290, %c19_i32_531 : i32
    %1292 = arith.index_cast %1291 : i32 to index
    %1293 = memref.load %arg3[%1292] : memref<288xf32, #tpu.memory_space<smem>>
    %1294 = vector.broadcast %1293 : f32 to vector<14x14xf32>
    %1295 = arith.mulf %1264, %1294 : vector<14x14xf32>
    %1296 = arith.addf %1230, %1295 : vector<14x14xf32>
    %c4_i32_532 = arith.constant 4 : i32
    %1297 = arith.addi %0, %c4_i32_532 : i32
    %c36_i32_533 = arith.constant 36 : i32
    %1298 = arith.muli %1297, %c36_i32_533 : i32
    %c19_i32_534 = arith.constant 19 : i32
    %1299 = arith.addi %1298, %c19_i32_534 : i32
    %1300 = arith.index_cast %1299 : i32 to index
    %1301 = memref.load %arg3[%1300] : memref<288xf32, #tpu.memory_space<smem>>
    %1302 = vector.broadcast %1301 : f32 to vector<14x14xf32>
    %1303 = arith.mulf %1264, %1302 : vector<14x14xf32>
    %1304 = arith.addf %1238, %1303 : vector<14x14xf32>
    %c5_i32_535 = arith.constant 5 : i32
    %1305 = arith.addi %0, %c5_i32_535 : i32
    %c36_i32_536 = arith.constant 36 : i32
    %1306 = arith.muli %1305, %c36_i32_536 : i32
    %c19_i32_537 = arith.constant 19 : i32
    %1307 = arith.addi %1306, %c19_i32_537 : i32
    %1308 = arith.index_cast %1307 : i32 to index
    %1309 = memref.load %arg3[%1308] : memref<288xf32, #tpu.memory_space<smem>>
    %1310 = vector.broadcast %1309 : f32 to vector<14x14xf32>
    %1311 = arith.mulf %1264, %1310 : vector<14x14xf32>
    %1312 = arith.addf %1246, %1311 : vector<14x14xf32>
    %c6_i32_538 = arith.constant 6 : i32
    %1313 = arith.addi %0, %c6_i32_538 : i32
    %c36_i32_539 = arith.constant 36 : i32
    %1314 = arith.muli %1313, %c36_i32_539 : i32
    %c19_i32_540 = arith.constant 19 : i32
    %1315 = arith.addi %1314, %c19_i32_540 : i32
    %1316 = arith.index_cast %1315 : i32 to index
    %1317 = memref.load %arg3[%1316] : memref<288xf32, #tpu.memory_space<smem>>
    %1318 = vector.broadcast %1317 : f32 to vector<14x14xf32>
    %1319 = arith.mulf %1264, %1318 : vector<14x14xf32>
    %1320 = arith.addf %1254, %1319 : vector<14x14xf32>
    %c7_i32_541 = arith.constant 7 : i32
    %1321 = arith.addi %0, %c7_i32_541 : i32
    %c36_i32_542 = arith.constant 36 : i32
    %1322 = arith.muli %1321, %c36_i32_542 : i32
    %c19_i32_543 = arith.constant 19 : i32
    %1323 = arith.addi %1322, %c19_i32_543 : i32
    %1324 = arith.index_cast %1323 : i32 to index
    %1325 = memref.load %arg3[%1324] : memref<288xf32, #tpu.memory_space<smem>>
    %1326 = vector.broadcast %1325 : f32 to vector<14x14xf32>
    %1327 = arith.mulf %1264, %1326 : vector<14x14xf32>
    %1328 = arith.addf %1262, %1327 : vector<14x14xf32>
    %c0_544 = arith.constant 0 : index
    %c2_545 = arith.constant 2 : index
    %c0_546 = arith.constant 0 : index
    %c2_547 = arith.constant 2 : index
    %1329 = vector.load %arg2[%c0_544, %c2_545, %c0_546, %c2_547] : memref<1x4x16x16xf32, #tpu.memory_space<vmem>>, vector<1x1x14x14xf32>
    %1330 = vector.shape_cast %1329 : vector<1x1x14x14xf32> to vector<14x14xf32>
    %c0_i32_548 = arith.constant 0 : i32
    %1331 = arith.addi %0, %c0_i32_548 : i32
    %c36_i32_549 = arith.constant 36 : i32
    %1332 = arith.muli %1331, %c36_i32_549 : i32
    %c20_i32 = arith.constant 20 : i32
    %1333 = arith.addi %1332, %c20_i32 : i32
    %1334 = arith.index_cast %1333 : i32 to index
    %1335 = memref.load %arg3[%1334] : memref<288xf32, #tpu.memory_space<smem>>
    %1336 = vector.broadcast %1335 : f32 to vector<14x14xf32>
    %1337 = arith.mulf %1330, %1336 : vector<14x14xf32>
    %1338 = arith.addf %1272, %1337 : vector<14x14xf32>
    %c1_i32_550 = arith.constant 1 : i32
    %1339 = arith.addi %0, %c1_i32_550 : i32
    %c36_i32_551 = arith.constant 36 : i32
    %1340 = arith.muli %1339, %c36_i32_551 : i32
    %c20_i32_552 = arith.constant 20 : i32
    %1341 = arith.addi %1340, %c20_i32_552 : i32
    %1342 = arith.index_cast %1341 : i32 to index
    %1343 = memref.load %arg3[%1342] : memref<288xf32, #tpu.memory_space<smem>>
    %1344 = vector.broadcast %1343 : f32 to vector<14x14xf32>
    %1345 = arith.mulf %1330, %1344 : vector<14x14xf32>
    %1346 = arith.addf %1280, %1345 : vector<14x14xf32>
    %c2_i32_553 = arith.constant 2 : i32
    %1347 = arith.addi %0, %c2_i32_553 : i32
    %c36_i32_554 = arith.constant 36 : i32
    %1348 = arith.muli %1347, %c36_i32_554 : i32
    %c20_i32_555 = arith.constant 20 : i32
    %1349 = arith.addi %1348, %c20_i32_555 : i32
    %1350 = arith.index_cast %1349 : i32 to index
    %1351 = memref.load %arg3[%1350] : memref<288xf32, #tpu.memory_space<smem>>
    %1352 = vector.broadcast %1351 : f32 to vector<14x14xf32>
    %1353 = arith.mulf %1330, %1352 : vector<14x14xf32>
    %1354 = arith.addf %1288, %1353 : vector<14x14xf32>
    %c3_i32_556 = arith.constant 3 : i32
    %1355 = arith.addi %0, %c3_i32_556 : i32
    %c36_i32_557 = arith.constant 36 : i32
    %1356 = arith.muli %1355, %c36_i32_557 : i32
    %c20_i32_558 = arith.constant 20 : i32
    %1357 = arith.addi %1356, %c20_i32_558 : i32
    %1358 = arith.index_cast %1357 : i32 to index
    %1359 = memref.load %arg3[%1358] : memref<288xf32, #tpu.memory_space<smem>>
    %1360 = vector.broadcast %1359 : f32 to vector<14x14xf32>
    %1361 = arith.mulf %1330, %1360 : vector<14x14xf32>
    %1362 = arith.addf %1296, %1361 : vector<14x14xf32>
    %c4_i32_559 = arith.constant 4 : i32
    %1363 = arith.addi %0, %c4_i32_559 : i32
    %c36_i32_560 = arith.constant 36 : i32
    %1364 = arith.muli %1363, %c36_i32_560 : i32
    %c20_i32_561 = arith.constant 20 : i32
    %1365 = arith.addi %1364, %c20_i32_561 : i32
    %1366 = arith.index_cast %1365 : i32 to index
    %1367 = memref.load %arg3[%1366] : memref<288xf32, #tpu.memory_space<smem>>
    %1368 = vector.broadcast %1367 : f32 to vector<14x14xf32>
    %1369 = arith.mulf %1330, %1368 : vector<14x14xf32>
    %1370 = arith.addf %1304, %1369 : vector<14x14xf32>
    %c5_i32_562 = arith.constant 5 : i32
    %1371 = arith.addi %0, %c5_i32_562 : i32
    %c36_i32_563 = arith.constant 36 : i32
    %1372 = arith.muli %1371, %c36_i32_563 : i32
    %c20_i32_564 = arith.constant 20 : i32
    %1373 = arith.addi %1372, %c20_i32_564 : i32
    %1374 = arith.index_cast %1373 : i32 to index
    %1375 = memref.load %arg3[%1374] : memref<288xf32, #tpu.memory_space<smem>>
    %1376 = vector.broadcast %1375 : f32 to vector<14x14xf32>
    %1377 = arith.mulf %1330, %1376 : vector<14x14xf32>
    %1378 = arith.addf %1312, %1377 : vector<14x14xf32>
    %c6_i32_565 = arith.constant 6 : i32
    %1379 = arith.addi %0, %c6_i32_565 : i32
    %c36_i32_566 = arith.constant 36 : i32
    %1380 = arith.muli %1379, %c36_i32_566 : i32
    %c20_i32_567 = arith.constant 20 : i32
    %1381 = arith.addi %1380, %c20_i32_567 : i32
    %1382 = arith.index_cast %1381 : i32 to index
    %1383 = memref.load %arg3[%1382] : memref<288xf32, #tpu.memory_space<smem>>
    %1384 = vector.broadcast %1383 : f32 to vector<14x14xf32>
    %1385 = arith.mulf %1330, %1384 : vector<14x14xf32>
    %1386 = arith.addf %1320, %1385 : vector<14x14xf32>
    %c7_i32_568 = arith.constant 7 : i32
    %1387 = arith.addi %0, %c7_i32_568 : i32
    %c36_i32_569 = arith.constant 36 : i32
    %1388 = arith.muli %1387, %c36_i32_569 : i32
    %c20_i32_570 = arith.constant 20 : i32
    %1389 = arith.addi %1388, %c20_i32_570 : i32
    %1390 = arith.index_cast %1389 : i32 to index
    %1391 = memref.load %arg3[%1390] : memref<288xf32, #tpu.memory_space<smem>>
    %1392 = vector.broadcast %1391 : f32 to vector<14x14xf32>
    %1393 = arith.mulf %1330, %1392 : vector<14x14xf32>
    %1394 = arith.addf %1328, %1393 : vector<14x14xf32>
    %c0_571 = arith.constant 0 : index
    %c2_572 = arith.constant 2 : index
    %c1_573 = arith.constant 1 : index
    %c0_574 = arith.constant 0 : index
    %1395 = vector.load %arg2[%c0_571, %c2_572, %c1_573, %c0_574] : memref<1x4x16x16xf32, #tpu.memory_space<vmem>>, vector<1x1x14x14xf32>
    %1396 = vector.shape_cast %1395 : vector<1x1x14x14xf32> to vector<14x14xf32>
    %c0_i32_575 = arith.constant 0 : i32
    %1397 = arith.addi %0, %c0_i32_575 : i32
    %c36_i32_576 = arith.constant 36 : i32
    %1398 = arith.muli %1397, %c36_i32_576 : i32
    %c21_i32 = arith.constant 21 : i32
    %1399 = arith.addi %1398, %c21_i32 : i32
    %1400 = arith.index_cast %1399 : i32 to index
    %1401 = memref.load %arg3[%1400] : memref<288xf32, #tpu.memory_space<smem>>
    %1402 = vector.broadcast %1401 : f32 to vector<14x14xf32>
    %1403 = arith.mulf %1396, %1402 : vector<14x14xf32>
    %1404 = arith.addf %1338, %1403 : vector<14x14xf32>
    %c1_i32_577 = arith.constant 1 : i32
    %1405 = arith.addi %0, %c1_i32_577 : i32
    %c36_i32_578 = arith.constant 36 : i32
    %1406 = arith.muli %1405, %c36_i32_578 : i32
    %c21_i32_579 = arith.constant 21 : i32
    %1407 = arith.addi %1406, %c21_i32_579 : i32
    %1408 = arith.index_cast %1407 : i32 to index
    %1409 = memref.load %arg3[%1408] : memref<288xf32, #tpu.memory_space<smem>>
    %1410 = vector.broadcast %1409 : f32 to vector<14x14xf32>
    %1411 = arith.mulf %1396, %1410 : vector<14x14xf32>
    %1412 = arith.addf %1346, %1411 : vector<14x14xf32>
    %c2_i32_580 = arith.constant 2 : i32
    %1413 = arith.addi %0, %c2_i32_580 : i32
    %c36_i32_581 = arith.constant 36 : i32
    %1414 = arith.muli %1413, %c36_i32_581 : i32
    %c21_i32_582 = arith.constant 21 : i32
    %1415 = arith.addi %1414, %c21_i32_582 : i32
    %1416 = arith.index_cast %1415 : i32 to index
    %1417 = memref.load %arg3[%1416] : memref<288xf32, #tpu.memory_space<smem>>
    %1418 = vector.broadcast %1417 : f32 to vector<14x14xf32>
    %1419 = arith.mulf %1396, %1418 : vector<14x14xf32>
    %1420 = arith.addf %1354, %1419 : vector<14x14xf32>
    %c3_i32_583 = arith.constant 3 : i32
    %1421 = arith.addi %0, %c3_i32_583 : i32
    %c36_i32_584 = arith.constant 36 : i32
    %1422 = arith.muli %1421, %c36_i32_584 : i32
    %c21_i32_585 = arith.constant 21 : i32
    %1423 = arith.addi %1422, %c21_i32_585 : i32
    %1424 = arith.index_cast %1423 : i32 to index
    %1425 = memref.load %arg3[%1424] : memref<288xf32, #tpu.memory_space<smem>>
    %1426 = vector.broadcast %1425 : f32 to vector<14x14xf32>
    %1427 = arith.mulf %1396, %1426 : vector<14x14xf32>
    %1428 = arith.addf %1362, %1427 : vector<14x14xf32>
    %c4_i32_586 = arith.constant 4 : i32
    %1429 = arith.addi %0, %c4_i32_586 : i32
    %c36_i32_587 = arith.constant 36 : i32
    %1430 = arith.muli %1429, %c36_i32_587 : i32
    %c21_i32_588 = arith.constant 21 : i32
    %1431 = arith.addi %1430, %c21_i32_588 : i32
    %1432 = arith.index_cast %1431 : i32 to index
    %1433 = memref.load %arg3[%1432] : memref<288xf32, #tpu.memory_space<smem>>
    %1434 = vector.broadcast %1433 : f32 to vector<14x14xf32>
    %1435 = arith.mulf %1396, %1434 : vector<14x14xf32>
    %1436 = arith.addf %1370, %1435 : vector<14x14xf32>
    %c5_i32_589 = arith.constant 5 : i32
    %1437 = arith.addi %0, %c5_i32_589 : i32
    %c36_i32_590 = arith.constant 36 : i32
    %1438 = arith.muli %1437, %c36_i32_590 : i32
    %c21_i32_591 = arith.constant 21 : i32
    %1439 = arith.addi %1438, %c21_i32_591 : i32
    %1440 = arith.index_cast %1439 : i32 to index
    %1441 = memref.load %arg3[%1440] : memref<288xf32, #tpu.memory_space<smem>>
    %1442 = vector.broadcast %1441 : f32 to vector<14x14xf32>
    %1443 = arith.mulf %1396, %1442 : vector<14x14xf32>
    %1444 = arith.addf %1378, %1443 : vector<14x14xf32>
    %c6_i32_592 = arith.constant 6 : i32
    %1445 = arith.addi %0, %c6_i32_592 : i32
    %c36_i32_593 = arith.constant 36 : i32
    %1446 = arith.muli %1445, %c36_i32_593 : i32
    %c21_i32_594 = arith.constant 21 : i32
    %1447 = arith.addi %1446, %c21_i32_594 : i32
    %1448 = arith.index_cast %1447 : i32 to index
    %1449 = memref.load %arg3[%1448] : memref<288xf32, #tpu.memory_space<smem>>
    %1450 = vector.broadcast %1449 : f32 to vector<14x14xf32>
    %1451 = arith.mulf %1396, %1450 : vector<14x14xf32>
    %1452 = arith.addf %1386, %1451 : vector<14x14xf32>
    %c7_i32_595 = arith.constant 7 : i32
    %1453 = arith.addi %0, %c7_i32_595 : i32
    %c36_i32_596 = arith.constant 36 : i32
    %1454 = arith.muli %1453, %c36_i32_596 : i32
    %c21_i32_597 = arith.constant 21 : i32
    %1455 = arith.addi %1454, %c21_i32_597 : i32
    %1456 = arith.index_cast %1455 : i32 to index
    %1457 = memref.load %arg3[%1456] : memref<288xf32, #tpu.memory_space<smem>>
    %1458 = vector.broadcast %1457 : f32 to vector<14x14xf32>
    %1459 = arith.mulf %1396, %1458 : vector<14x14xf32>
    %1460 = arith.addf %1394, %1459 : vector<14x14xf32>
    %c0_598 = arith.constant 0 : index
    %c2_599 = arith.constant 2 : index
    %c1_600 = arith.constant 1 : index
    %c1_601 = arith.constant 1 : index
    %1461 = vector.load %arg2[%c0_598, %c2_599, %c1_600, %c1_601] : memref<1x4x16x16xf32, #tpu.memory_space<vmem>>, vector<1x1x14x14xf32>
    %1462 = vector.shape_cast %1461 : vector<1x1x14x14xf32> to vector<14x14xf32>
    %c0_i32_602 = arith.constant 0 : i32
    %1463 = arith.addi %0, %c0_i32_602 : i32
    %c36_i32_603 = arith.constant 36 : i32
    %1464 = arith.muli %1463, %c36_i32_603 : i32
    %c22_i32 = arith.constant 22 : i32
    %1465 = arith.addi %1464, %c22_i32 : i32
    %1466 = arith.index_cast %1465 : i32 to index
    %1467 = memref.load %arg3[%1466] : memref<288xf32, #tpu.memory_space<smem>>
    %1468 = vector.broadcast %1467 : f32 to vector<14x14xf32>
    %1469 = arith.mulf %1462, %1468 : vector<14x14xf32>
    %1470 = arith.addf %1404, %1469 : vector<14x14xf32>
    %c1_i32_604 = arith.constant 1 : i32
    %1471 = arith.addi %0, %c1_i32_604 : i32
    %c36_i32_605 = arith.constant 36 : i32
    %1472 = arith.muli %1471, %c36_i32_605 : i32
    %c22_i32_606 = arith.constant 22 : i32
    %1473 = arith.addi %1472, %c22_i32_606 : i32
    %1474 = arith.index_cast %1473 : i32 to index
    %1475 = memref.load %arg3[%1474] : memref<288xf32, #tpu.memory_space<smem>>
    %1476 = vector.broadcast %1475 : f32 to vector<14x14xf32>
    %1477 = arith.mulf %1462, %1476 : vector<14x14xf32>
    %1478 = arith.addf %1412, %1477 : vector<14x14xf32>
    %c2_i32_607 = arith.constant 2 : i32
    %1479 = arith.addi %0, %c2_i32_607 : i32
    %c36_i32_608 = arith.constant 36 : i32
    %1480 = arith.muli %1479, %c36_i32_608 : i32
    %c22_i32_609 = arith.constant 22 : i32
    %1481 = arith.addi %1480, %c22_i32_609 : i32
    %1482 = arith.index_cast %1481 : i32 to index
    %1483 = memref.load %arg3[%1482] : memref<288xf32, #tpu.memory_space<smem>>
    %1484 = vector.broadcast %1483 : f32 to vector<14x14xf32>
    %1485 = arith.mulf %1462, %1484 : vector<14x14xf32>
    %1486 = arith.addf %1420, %1485 : vector<14x14xf32>
    %c3_i32_610 = arith.constant 3 : i32
    %1487 = arith.addi %0, %c3_i32_610 : i32
    %c36_i32_611 = arith.constant 36 : i32
    %1488 = arith.muli %1487, %c36_i32_611 : i32
    %c22_i32_612 = arith.constant 22 : i32
    %1489 = arith.addi %1488, %c22_i32_612 : i32
    %1490 = arith.index_cast %1489 : i32 to index
    %1491 = memref.load %arg3[%1490] : memref<288xf32, #tpu.memory_space<smem>>
    %1492 = vector.broadcast %1491 : f32 to vector<14x14xf32>
    %1493 = arith.mulf %1462, %1492 : vector<14x14xf32>
    %1494 = arith.addf %1428, %1493 : vector<14x14xf32>
    %c4_i32_613 = arith.constant 4 : i32
    %1495 = arith.addi %0, %c4_i32_613 : i32
    %c36_i32_614 = arith.constant 36 : i32
    %1496 = arith.muli %1495, %c36_i32_614 : i32
    %c22_i32_615 = arith.constant 22 : i32
    %1497 = arith.addi %1496, %c22_i32_615 : i32
    %1498 = arith.index_cast %1497 : i32 to index
    %1499 = memref.load %arg3[%1498] : memref<288xf32, #tpu.memory_space<smem>>
    %1500 = vector.broadcast %1499 : f32 to vector<14x14xf32>
    %1501 = arith.mulf %1462, %1500 : vector<14x14xf32>
    %1502 = arith.addf %1436, %1501 : vector<14x14xf32>
    %c5_i32_616 = arith.constant 5 : i32
    %1503 = arith.addi %0, %c5_i32_616 : i32
    %c36_i32_617 = arith.constant 36 : i32
    %1504 = arith.muli %1503, %c36_i32_617 : i32
    %c22_i32_618 = arith.constant 22 : i32
    %1505 = arith.addi %1504, %c22_i32_618 : i32
    %1506 = arith.index_cast %1505 : i32 to index
    %1507 = memref.load %arg3[%1506] : memref<288xf32, #tpu.memory_space<smem>>
    %1508 = vector.broadcast %1507 : f32 to vector<14x14xf32>
    %1509 = arith.mulf %1462, %1508 : vector<14x14xf32>
    %1510 = arith.addf %1444, %1509 : vector<14x14xf32>
    %c6_i32_619 = arith.constant 6 : i32
    %1511 = arith.addi %0, %c6_i32_619 : i32
    %c36_i32_620 = arith.constant 36 : i32
    %1512 = arith.muli %1511, %c36_i32_620 : i32
    %c22_i32_621 = arith.constant 22 : i32
    %1513 = arith.addi %1512, %c22_i32_621 : i32
    %1514 = arith.index_cast %1513 : i32 to index
    %1515 = memref.load %arg3[%1514] : memref<288xf32, #tpu.memory_space<smem>>
    %1516 = vector.broadcast %1515 : f32 to vector<14x14xf32>
    %1517 = arith.mulf %1462, %1516 : vector<14x14xf32>
    %1518 = arith.addf %1452, %1517 : vector<14x14xf32>
    %c7_i32_622 = arith.constant 7 : i32
    %1519 = arith.addi %0, %c7_i32_622 : i32
    %c36_i32_623 = arith.constant 36 : i32
    %1520 = arith.muli %1519, %c36_i32_623 : i32
    %c22_i32_624 = arith.constant 22 : i32
    %1521 = arith.addi %1520, %c22_i32_624 : i32
    %1522 = arith.index_cast %1521 : i32 to index
    %1523 = memref.load %arg3[%1522] : memref<288xf32, #tpu.memory_space<smem>>
    %1524 = vector.broadcast %1523 : f32 to vector<14x14xf32>
    %1525 = arith.mulf %1462, %1524 : vector<14x14xf32>
    %1526 = arith.addf %1460, %1525 : vector<14x14xf32>
    %c0_625 = arith.constant 0 : index
    %c2_626 = arith.constant 2 : index
    %c1_627 = arith.constant 1 : index
    %c2_628 = arith.constant 2 : index
    %1527 = vector.load %arg2[%c0_625, %c2_626, %c1_627, %c2_628] : memref<1x4x16x16xf32, #tpu.memory_space<vmem>>, vector<1x1x14x14xf32>
    %1528 = vector.shape_cast %1527 : vector<1x1x14x14xf32> to vector<14x14xf32>
    %c0_i32_629 = arith.constant 0 : i32
    %1529 = arith.addi %0, %c0_i32_629 : i32
    %c36_i32_630 = arith.constant 36 : i32
    %1530 = arith.muli %1529, %c36_i32_630 : i32
    %c23_i32 = arith.constant 23 : i32
    %1531 = arith.addi %1530, %c23_i32 : i32
    %1532 = arith.index_cast %1531 : i32 to index
    %1533 = memref.load %arg3[%1532] : memref<288xf32, #tpu.memory_space<smem>>
    %1534 = vector.broadcast %1533 : f32 to vector<14x14xf32>
    %1535 = arith.mulf %1528, %1534 : vector<14x14xf32>
    %1536 = arith.addf %1470, %1535 : vector<14x14xf32>
    %c1_i32_631 = arith.constant 1 : i32
    %1537 = arith.addi %0, %c1_i32_631 : i32
    %c36_i32_632 = arith.constant 36 : i32
    %1538 = arith.muli %1537, %c36_i32_632 : i32
    %c23_i32_633 = arith.constant 23 : i32
    %1539 = arith.addi %1538, %c23_i32_633 : i32
    %1540 = arith.index_cast %1539 : i32 to index
    %1541 = memref.load %arg3[%1540] : memref<288xf32, #tpu.memory_space<smem>>
    %1542 = vector.broadcast %1541 : f32 to vector<14x14xf32>
    %1543 = arith.mulf %1528, %1542 : vector<14x14xf32>
    %1544 = arith.addf %1478, %1543 : vector<14x14xf32>
    %c2_i32_634 = arith.constant 2 : i32
    %1545 = arith.addi %0, %c2_i32_634 : i32
    %c36_i32_635 = arith.constant 36 : i32
    %1546 = arith.muli %1545, %c36_i32_635 : i32
    %c23_i32_636 = arith.constant 23 : i32
    %1547 = arith.addi %1546, %c23_i32_636 : i32
    %1548 = arith.index_cast %1547 : i32 to index
    %1549 = memref.load %arg3[%1548] : memref<288xf32, #tpu.memory_space<smem>>
    %1550 = vector.broadcast %1549 : f32 to vector<14x14xf32>
    %1551 = arith.mulf %1528, %1550 : vector<14x14xf32>
    %1552 = arith.addf %1486, %1551 : vector<14x14xf32>
    %c3_i32_637 = arith.constant 3 : i32
    %1553 = arith.addi %0, %c3_i32_637 : i32
    %c36_i32_638 = arith.constant 36 : i32
    %1554 = arith.muli %1553, %c36_i32_638 : i32
    %c23_i32_639 = arith.constant 23 : i32
    %1555 = arith.addi %1554, %c23_i32_639 : i32
    %1556 = arith.index_cast %1555 : i32 to index
    %1557 = memref.load %arg3[%1556] : memref<288xf32, #tpu.memory_space<smem>>
    %1558 = vector.broadcast %1557 : f32 to vector<14x14xf32>
    %1559 = arith.mulf %1528, %1558 : vector<14x14xf32>
    %1560 = arith.addf %1494, %1559 : vector<14x14xf32>
    %c4_i32_640 = arith.constant 4 : i32
    %1561 = arith.addi %0, %c4_i32_640 : i32
    %c36_i32_641 = arith.constant 36 : i32
    %1562 = arith.muli %1561, %c36_i32_641 : i32
    %c23_i32_642 = arith.constant 23 : i32
    %1563 = arith.addi %1562, %c23_i32_642 : i32
    %1564 = arith.index_cast %1563 : i32 to index
    %1565 = memref.load %arg3[%1564] : memref<288xf32, #tpu.memory_space<smem>>
    %1566 = vector.broadcast %1565 : f32 to vector<14x14xf32>
    %1567 = arith.mulf %1528, %1566 : vector<14x14xf32>
    %1568 = arith.addf %1502, %1567 : vector<14x14xf32>
    %c5_i32_643 = arith.constant 5 : i32
    %1569 = arith.addi %0, %c5_i32_643 : i32
    %c36_i32_644 = arith.constant 36 : i32
    %1570 = arith.muli %1569, %c36_i32_644 : i32
    %c23_i32_645 = arith.constant 23 : i32
    %1571 = arith.addi %1570, %c23_i32_645 : i32
    %1572 = arith.index_cast %1571 : i32 to index
    %1573 = memref.load %arg3[%1572] : memref<288xf32, #tpu.memory_space<smem>>
    %1574 = vector.broadcast %1573 : f32 to vector<14x14xf32>
    %1575 = arith.mulf %1528, %1574 : vector<14x14xf32>
    %1576 = arith.addf %1510, %1575 : vector<14x14xf32>
    %c6_i32_646 = arith.constant 6 : i32
    %1577 = arith.addi %0, %c6_i32_646 : i32
    %c36_i32_647 = arith.constant 36 : i32
    %1578 = arith.muli %1577, %c36_i32_647 : i32
    %c23_i32_648 = arith.constant 23 : i32
    %1579 = arith.addi %1578, %c23_i32_648 : i32
    %1580 = arith.index_cast %1579 : i32 to index
    %1581 = memref.load %arg3[%1580] : memref<288xf32, #tpu.memory_space<smem>>
    %1582 = vector.broadcast %1581 : f32 to vector<14x14xf32>
    %1583 = arith.mulf %1528, %1582 : vector<14x14xf32>
    %1584 = arith.addf %1518, %1583 : vector<14x14xf32>
    %c7_i32_649 = arith.constant 7 : i32
    %1585 = arith.addi %0, %c7_i32_649 : i32
    %c36_i32_650 = arith.constant 36 : i32
    %1586 = arith.muli %1585, %c36_i32_650 : i32
    %c23_i32_651 = arith.constant 23 : i32
    %1587 = arith.addi %1586, %c23_i32_651 : i32
    %1588 = arith.index_cast %1587 : i32 to index
    %1589 = memref.load %arg3[%1588] : memref<288xf32, #tpu.memory_space<smem>>
    %1590 = vector.broadcast %1589 : f32 to vector<14x14xf32>
    %1591 = arith.mulf %1528, %1590 : vector<14x14xf32>
    %1592 = arith.addf %1526, %1591 : vector<14x14xf32>
    %c0_652 = arith.constant 0 : index
    %c2_653 = arith.constant 2 : index
    %c2_654 = arith.constant 2 : index
    %c0_655 = arith.constant 0 : index
    %1593 = vector.load %arg2[%c0_652, %c2_653, %c2_654, %c0_655] : memref<1x4x16x16xf32, #tpu.memory_space<vmem>>, vector<1x1x14x14xf32>
    %1594 = vector.shape_cast %1593 : vector<1x1x14x14xf32> to vector<14x14xf32>
    %c0_i32_656 = arith.constant 0 : i32
    %1595 = arith.addi %0, %c0_i32_656 : i32
    %c36_i32_657 = arith.constant 36 : i32
    %1596 = arith.muli %1595, %c36_i32_657 : i32
    %c24_i32 = arith.constant 24 : i32
    %1597 = arith.addi %1596, %c24_i32 : i32
    %1598 = arith.index_cast %1597 : i32 to index
    %1599 = memref.load %arg3[%1598] : memref<288xf32, #tpu.memory_space<smem>>
    %1600 = vector.broadcast %1599 : f32 to vector<14x14xf32>
    %1601 = arith.mulf %1594, %1600 : vector<14x14xf32>
    %1602 = arith.addf %1536, %1601 : vector<14x14xf32>
    %c1_i32_658 = arith.constant 1 : i32
    %1603 = arith.addi %0, %c1_i32_658 : i32
    %c36_i32_659 = arith.constant 36 : i32
    %1604 = arith.muli %1603, %c36_i32_659 : i32
    %c24_i32_660 = arith.constant 24 : i32
    %1605 = arith.addi %1604, %c24_i32_660 : i32
    %1606 = arith.index_cast %1605 : i32 to index
    %1607 = memref.load %arg3[%1606] : memref<288xf32, #tpu.memory_space<smem>>
    %1608 = vector.broadcast %1607 : f32 to vector<14x14xf32>
    %1609 = arith.mulf %1594, %1608 : vector<14x14xf32>
    %1610 = arith.addf %1544, %1609 : vector<14x14xf32>
    %c2_i32_661 = arith.constant 2 : i32
    %1611 = arith.addi %0, %c2_i32_661 : i32
    %c36_i32_662 = arith.constant 36 : i32
    %1612 = arith.muli %1611, %c36_i32_662 : i32
    %c24_i32_663 = arith.constant 24 : i32
    %1613 = arith.addi %1612, %c24_i32_663 : i32
    %1614 = arith.index_cast %1613 : i32 to index
    %1615 = memref.load %arg3[%1614] : memref<288xf32, #tpu.memory_space<smem>>
    %1616 = vector.broadcast %1615 : f32 to vector<14x14xf32>
    %1617 = arith.mulf %1594, %1616 : vector<14x14xf32>
    %1618 = arith.addf %1552, %1617 : vector<14x14xf32>
    %c3_i32_664 = arith.constant 3 : i32
    %1619 = arith.addi %0, %c3_i32_664 : i32
    %c36_i32_665 = arith.constant 36 : i32
    %1620 = arith.muli %1619, %c36_i32_665 : i32
    %c24_i32_666 = arith.constant 24 : i32
    %1621 = arith.addi %1620, %c24_i32_666 : i32
    %1622 = arith.index_cast %1621 : i32 to index
    %1623 = memref.load %arg3[%1622] : memref<288xf32, #tpu.memory_space<smem>>
    %1624 = vector.broadcast %1623 : f32 to vector<14x14xf32>
    %1625 = arith.mulf %1594, %1624 : vector<14x14xf32>
    %1626 = arith.addf %1560, %1625 : vector<14x14xf32>
    %c4_i32_667 = arith.constant 4 : i32
    %1627 = arith.addi %0, %c4_i32_667 : i32
    %c36_i32_668 = arith.constant 36 : i32
    %1628 = arith.muli %1627, %c36_i32_668 : i32
    %c24_i32_669 = arith.constant 24 : i32
    %1629 = arith.addi %1628, %c24_i32_669 : i32
    %1630 = arith.index_cast %1629 : i32 to index
    %1631 = memref.load %arg3[%1630] : memref<288xf32, #tpu.memory_space<smem>>
    %1632 = vector.broadcast %1631 : f32 to vector<14x14xf32>
    %1633 = arith.mulf %1594, %1632 : vector<14x14xf32>
    %1634 = arith.addf %1568, %1633 : vector<14x14xf32>
    %c5_i32_670 = arith.constant 5 : i32
    %1635 = arith.addi %0, %c5_i32_670 : i32
    %c36_i32_671 = arith.constant 36 : i32
    %1636 = arith.muli %1635, %c36_i32_671 : i32
    %c24_i32_672 = arith.constant 24 : i32
    %1637 = arith.addi %1636, %c24_i32_672 : i32
    %1638 = arith.index_cast %1637 : i32 to index
    %1639 = memref.load %arg3[%1638] : memref<288xf32, #tpu.memory_space<smem>>
    %1640 = vector.broadcast %1639 : f32 to vector<14x14xf32>
    %1641 = arith.mulf %1594, %1640 : vector<14x14xf32>
    %1642 = arith.addf %1576, %1641 : vector<14x14xf32>
    %c6_i32_673 = arith.constant 6 : i32
    %1643 = arith.addi %0, %c6_i32_673 : i32
    %c36_i32_674 = arith.constant 36 : i32
    %1644 = arith.muli %1643, %c36_i32_674 : i32
    %c24_i32_675 = arith.constant 24 : i32
    %1645 = arith.addi %1644, %c24_i32_675 : i32
    %1646 = arith.index_cast %1645 : i32 to index
    %1647 = memref.load %arg3[%1646] : memref<288xf32, #tpu.memory_space<smem>>
    %1648 = vector.broadcast %1647 : f32 to vector<14x14xf32>
    %1649 = arith.mulf %1594, %1648 : vector<14x14xf32>
    %1650 = arith.addf %1584, %1649 : vector<14x14xf32>
    %c7_i32_676 = arith.constant 7 : i32
    %1651 = arith.addi %0, %c7_i32_676 : i32
    %c36_i32_677 = arith.constant 36 : i32
    %1652 = arith.muli %1651, %c36_i32_677 : i32
    %c24_i32_678 = arith.constant 24 : i32
    %1653 = arith.addi %1652, %c24_i32_678 : i32
    %1654 = arith.index_cast %1653 : i32 to index
    %1655 = memref.load %arg3[%1654] : memref<288xf32, #tpu.memory_space<smem>>
    %1656 = vector.broadcast %1655 : f32 to vector<14x14xf32>
    %1657 = arith.mulf %1594, %1656 : vector<14x14xf32>
    %1658 = arith.addf %1592, %1657 : vector<14x14xf32>
    %c0_679 = arith.constant 0 : index
    %c2_680 = arith.constant 2 : index
    %c2_681 = arith.constant 2 : index
    %c1_682 = arith.constant 1 : index
    %1659 = vector.load %arg2[%c0_679, %c2_680, %c2_681, %c1_682] : memref<1x4x16x16xf32, #tpu.memory_space<vmem>>, vector<1x1x14x14xf32>
    %1660 = vector.shape_cast %1659 : vector<1x1x14x14xf32> to vector<14x14xf32>
    %c0_i32_683 = arith.constant 0 : i32
    %1661 = arith.addi %0, %c0_i32_683 : i32
    %c36_i32_684 = arith.constant 36 : i32
    %1662 = arith.muli %1661, %c36_i32_684 : i32
    %c25_i32 = arith.constant 25 : i32
    %1663 = arith.addi %1662, %c25_i32 : i32
    %1664 = arith.index_cast %1663 : i32 to index
    %1665 = memref.load %arg3[%1664] : memref<288xf32, #tpu.memory_space<smem>>
    %1666 = vector.broadcast %1665 : f32 to vector<14x14xf32>
    %1667 = arith.mulf %1660, %1666 : vector<14x14xf32>
    %1668 = arith.addf %1602, %1667 : vector<14x14xf32>
    %c1_i32_685 = arith.constant 1 : i32
    %1669 = arith.addi %0, %c1_i32_685 : i32
    %c36_i32_686 = arith.constant 36 : i32
    %1670 = arith.muli %1669, %c36_i32_686 : i32
    %c25_i32_687 = arith.constant 25 : i32
    %1671 = arith.addi %1670, %c25_i32_687 : i32
    %1672 = arith.index_cast %1671 : i32 to index
    %1673 = memref.load %arg3[%1672] : memref<288xf32, #tpu.memory_space<smem>>
    %1674 = vector.broadcast %1673 : f32 to vector<14x14xf32>
    %1675 = arith.mulf %1660, %1674 : vector<14x14xf32>
    %1676 = arith.addf %1610, %1675 : vector<14x14xf32>
    %c2_i32_688 = arith.constant 2 : i32
    %1677 = arith.addi %0, %c2_i32_688 : i32
    %c36_i32_689 = arith.constant 36 : i32
    %1678 = arith.muli %1677, %c36_i32_689 : i32
    %c25_i32_690 = arith.constant 25 : i32
    %1679 = arith.addi %1678, %c25_i32_690 : i32
    %1680 = arith.index_cast %1679 : i32 to index
    %1681 = memref.load %arg3[%1680] : memref<288xf32, #tpu.memory_space<smem>>
    %1682 = vector.broadcast %1681 : f32 to vector<14x14xf32>
    %1683 = arith.mulf %1660, %1682 : vector<14x14xf32>
    %1684 = arith.addf %1618, %1683 : vector<14x14xf32>
    %c3_i32_691 = arith.constant 3 : i32
    %1685 = arith.addi %0, %c3_i32_691 : i32
    %c36_i32_692 = arith.constant 36 : i32
    %1686 = arith.muli %1685, %c36_i32_692 : i32
    %c25_i32_693 = arith.constant 25 : i32
    %1687 = arith.addi %1686, %c25_i32_693 : i32
    %1688 = arith.index_cast %1687 : i32 to index
    %1689 = memref.load %arg3[%1688] : memref<288xf32, #tpu.memory_space<smem>>
    %1690 = vector.broadcast %1689 : f32 to vector<14x14xf32>
    %1691 = arith.mulf %1660, %1690 : vector<14x14xf32>
    %1692 = arith.addf %1626, %1691 : vector<14x14xf32>
    %c4_i32_694 = arith.constant 4 : i32
    %1693 = arith.addi %0, %c4_i32_694 : i32
    %c36_i32_695 = arith.constant 36 : i32
    %1694 = arith.muli %1693, %c36_i32_695 : i32
    %c25_i32_696 = arith.constant 25 : i32
    %1695 = arith.addi %1694, %c25_i32_696 : i32
    %1696 = arith.index_cast %1695 : i32 to index
    %1697 = memref.load %arg3[%1696] : memref<288xf32, #tpu.memory_space<smem>>
    %1698 = vector.broadcast %1697 : f32 to vector<14x14xf32>
    %1699 = arith.mulf %1660, %1698 : vector<14x14xf32>
    %1700 = arith.addf %1634, %1699 : vector<14x14xf32>
    %c5_i32_697 = arith.constant 5 : i32
    %1701 = arith.addi %0, %c5_i32_697 : i32
    %c36_i32_698 = arith.constant 36 : i32
    %1702 = arith.muli %1701, %c36_i32_698 : i32
    %c25_i32_699 = arith.constant 25 : i32
    %1703 = arith.addi %1702, %c25_i32_699 : i32
    %1704 = arith.index_cast %1703 : i32 to index
    %1705 = memref.load %arg3[%1704] : memref<288xf32, #tpu.memory_space<smem>>
    %1706 = vector.broadcast %1705 : f32 to vector<14x14xf32>
    %1707 = arith.mulf %1660, %1706 : vector<14x14xf32>
    %1708 = arith.addf %1642, %1707 : vector<14x14xf32>
    %c6_i32_700 = arith.constant 6 : i32
    %1709 = arith.addi %0, %c6_i32_700 : i32
    %c36_i32_701 = arith.constant 36 : i32
    %1710 = arith.muli %1709, %c36_i32_701 : i32
    %c25_i32_702 = arith.constant 25 : i32
    %1711 = arith.addi %1710, %c25_i32_702 : i32
    %1712 = arith.index_cast %1711 : i32 to index
    %1713 = memref.load %arg3[%1712] : memref<288xf32, #tpu.memory_space<smem>>
    %1714 = vector.broadcast %1713 : f32 to vector<14x14xf32>
    %1715 = arith.mulf %1660, %1714 : vector<14x14xf32>
    %1716 = arith.addf %1650, %1715 : vector<14x14xf32>
    %c7_i32_703 = arith.constant 7 : i32
    %1717 = arith.addi %0, %c7_i32_703 : i32
    %c36_i32_704 = arith.constant 36 : i32
    %1718 = arith.muli %1717, %c36_i32_704 : i32
    %c25_i32_705 = arith.constant 25 : i32
    %1719 = arith.addi %1718, %c25_i32_705 : i32
    %1720 = arith.index_cast %1719 : i32 to index
    %1721 = memref.load %arg3[%1720] : memref<288xf32, #tpu.memory_space<smem>>
    %1722 = vector.broadcast %1721 : f32 to vector<14x14xf32>
    %1723 = arith.mulf %1660, %1722 : vector<14x14xf32>
    %1724 = arith.addf %1658, %1723 : vector<14x14xf32>
    %c0_706 = arith.constant 0 : index
    %c2_707 = arith.constant 2 : index
    %c2_708 = arith.constant 2 : index
    %c2_709 = arith.constant 2 : index
    %1725 = vector.load %arg2[%c0_706, %c2_707, %c2_708, %c2_709] : memref<1x4x16x16xf32, #tpu.memory_space<vmem>>, vector<1x1x14x14xf32>
    %1726 = vector.shape_cast %1725 : vector<1x1x14x14xf32> to vector<14x14xf32>
    %c0_i32_710 = arith.constant 0 : i32
    %1727 = arith.addi %0, %c0_i32_710 : i32
    %c36_i32_711 = arith.constant 36 : i32
    %1728 = arith.muli %1727, %c36_i32_711 : i32
    %c26_i32 = arith.constant 26 : i32
    %1729 = arith.addi %1728, %c26_i32 : i32
    %1730 = arith.index_cast %1729 : i32 to index
    %1731 = memref.load %arg3[%1730] : memref<288xf32, #tpu.memory_space<smem>>
    %1732 = vector.broadcast %1731 : f32 to vector<14x14xf32>
    %1733 = arith.mulf %1726, %1732 : vector<14x14xf32>
    %1734 = arith.addf %1668, %1733 : vector<14x14xf32>
    %c1_i32_712 = arith.constant 1 : i32
    %1735 = arith.addi %0, %c1_i32_712 : i32
    %c36_i32_713 = arith.constant 36 : i32
    %1736 = arith.muli %1735, %c36_i32_713 : i32
    %c26_i32_714 = arith.constant 26 : i32
    %1737 = arith.addi %1736, %c26_i32_714 : i32
    %1738 = arith.index_cast %1737 : i32 to index
    %1739 = memref.load %arg3[%1738] : memref<288xf32, #tpu.memory_space<smem>>
    %1740 = vector.broadcast %1739 : f32 to vector<14x14xf32>
    %1741 = arith.mulf %1726, %1740 : vector<14x14xf32>
    %1742 = arith.addf %1676, %1741 : vector<14x14xf32>
    %c2_i32_715 = arith.constant 2 : i32
    %1743 = arith.addi %0, %c2_i32_715 : i32
    %c36_i32_716 = arith.constant 36 : i32
    %1744 = arith.muli %1743, %c36_i32_716 : i32
    %c26_i32_717 = arith.constant 26 : i32
    %1745 = arith.addi %1744, %c26_i32_717 : i32
    %1746 = arith.index_cast %1745 : i32 to index
    %1747 = memref.load %arg3[%1746] : memref<288xf32, #tpu.memory_space<smem>>
    %1748 = vector.broadcast %1747 : f32 to vector<14x14xf32>
    %1749 = arith.mulf %1726, %1748 : vector<14x14xf32>
    %1750 = arith.addf %1684, %1749 : vector<14x14xf32>
    %c3_i32_718 = arith.constant 3 : i32
    %1751 = arith.addi %0, %c3_i32_718 : i32
    %c36_i32_719 = arith.constant 36 : i32
    %1752 = arith.muli %1751, %c36_i32_719 : i32
    %c26_i32_720 = arith.constant 26 : i32
    %1753 = arith.addi %1752, %c26_i32_720 : i32
    %1754 = arith.index_cast %1753 : i32 to index
    %1755 = memref.load %arg3[%1754] : memref<288xf32, #tpu.memory_space<smem>>
    %1756 = vector.broadcast %1755 : f32 to vector<14x14xf32>
    %1757 = arith.mulf %1726, %1756 : vector<14x14xf32>
    %1758 = arith.addf %1692, %1757 : vector<14x14xf32>
    %c4_i32_721 = arith.constant 4 : i32
    %1759 = arith.addi %0, %c4_i32_721 : i32
    %c36_i32_722 = arith.constant 36 : i32
    %1760 = arith.muli %1759, %c36_i32_722 : i32
    %c26_i32_723 = arith.constant 26 : i32
    %1761 = arith.addi %1760, %c26_i32_723 : i32
    %1762 = arith.index_cast %1761 : i32 to index
    %1763 = memref.load %arg3[%1762] : memref<288xf32, #tpu.memory_space<smem>>
    %1764 = vector.broadcast %1763 : f32 to vector<14x14xf32>
    %1765 = arith.mulf %1726, %1764 : vector<14x14xf32>
    %1766 = arith.addf %1700, %1765 : vector<14x14xf32>
    %c5_i32_724 = arith.constant 5 : i32
    %1767 = arith.addi %0, %c5_i32_724 : i32
    %c36_i32_725 = arith.constant 36 : i32
    %1768 = arith.muli %1767, %c36_i32_725 : i32
    %c26_i32_726 = arith.constant 26 : i32
    %1769 = arith.addi %1768, %c26_i32_726 : i32
    %1770 = arith.index_cast %1769 : i32 to index
    %1771 = memref.load %arg3[%1770] : memref<288xf32, #tpu.memory_space<smem>>
    %1772 = vector.broadcast %1771 : f32 to vector<14x14xf32>
    %1773 = arith.mulf %1726, %1772 : vector<14x14xf32>
    %1774 = arith.addf %1708, %1773 : vector<14x14xf32>
    %c6_i32_727 = arith.constant 6 : i32
    %1775 = arith.addi %0, %c6_i32_727 : i32
    %c36_i32_728 = arith.constant 36 : i32
    %1776 = arith.muli %1775, %c36_i32_728 : i32
    %c26_i32_729 = arith.constant 26 : i32
    %1777 = arith.addi %1776, %c26_i32_729 : i32
    %1778 = arith.index_cast %1777 : i32 to index
    %1779 = memref.load %arg3[%1778] : memref<288xf32, #tpu.memory_space<smem>>
    %1780 = vector.broadcast %1779 : f32 to vector<14x14xf32>
    %1781 = arith.mulf %1726, %1780 : vector<14x14xf32>
    %1782 = arith.addf %1716, %1781 : vector<14x14xf32>
    %c7_i32_730 = arith.constant 7 : i32
    %1783 = arith.addi %0, %c7_i32_730 : i32
    %c36_i32_731 = arith.constant 36 : i32
    %1784 = arith.muli %1783, %c36_i32_731 : i32
    %c26_i32_732 = arith.constant 26 : i32
    %1785 = arith.addi %1784, %c26_i32_732 : i32
    %1786 = arith.index_cast %1785 : i32 to index
    %1787 = memref.load %arg3[%1786] : memref<288xf32, #tpu.memory_space<smem>>
    %1788 = vector.broadcast %1787 : f32 to vector<14x14xf32>
    %1789 = arith.mulf %1726, %1788 : vector<14x14xf32>
    %1790 = arith.addf %1724, %1789 : vector<14x14xf32>
    %c0_733 = arith.constant 0 : index
    %c3 = arith.constant 3 : index
    %c0_734 = arith.constant 0 : index
    %c0_735 = arith.constant 0 : index
    %1791 = vector.load %arg2[%c0_733, %c3, %c0_734, %c0_735] : memref<1x4x16x16xf32, #tpu.memory_space<vmem>>, vector<1x1x14x14xf32>
    %1792 = vector.shape_cast %1791 : vector<1x1x14x14xf32> to vector<14x14xf32>
    %c0_i32_736 = arith.constant 0 : i32
    %1793 = arith.addi %0, %c0_i32_736 : i32
    %c36_i32_737 = arith.constant 36 : i32
    %1794 = arith.muli %1793, %c36_i32_737 : i32
    %c27_i32 = arith.constant 27 : i32
    %1795 = arith.addi %1794, %c27_i32 : i32
    %1796 = arith.index_cast %1795 : i32 to index
    %1797 = memref.load %arg3[%1796] : memref<288xf32, #tpu.memory_space<smem>>
    %1798 = vector.broadcast %1797 : f32 to vector<14x14xf32>
    %1799 = arith.mulf %1792, %1798 : vector<14x14xf32>
    %1800 = arith.addf %1734, %1799 : vector<14x14xf32>
    %c1_i32_738 = arith.constant 1 : i32
    %1801 = arith.addi %0, %c1_i32_738 : i32
    %c36_i32_739 = arith.constant 36 : i32
    %1802 = arith.muli %1801, %c36_i32_739 : i32
    %c27_i32_740 = arith.constant 27 : i32
    %1803 = arith.addi %1802, %c27_i32_740 : i32
    %1804 = arith.index_cast %1803 : i32 to index
    %1805 = memref.load %arg3[%1804] : memref<288xf32, #tpu.memory_space<smem>>
    %1806 = vector.broadcast %1805 : f32 to vector<14x14xf32>
    %1807 = arith.mulf %1792, %1806 : vector<14x14xf32>
    %1808 = arith.addf %1742, %1807 : vector<14x14xf32>
    %c2_i32_741 = arith.constant 2 : i32
    %1809 = arith.addi %0, %c2_i32_741 : i32
    %c36_i32_742 = arith.constant 36 : i32
    %1810 = arith.muli %1809, %c36_i32_742 : i32
    %c27_i32_743 = arith.constant 27 : i32
    %1811 = arith.addi %1810, %c27_i32_743 : i32
    %1812 = arith.index_cast %1811 : i32 to index
    %1813 = memref.load %arg3[%1812] : memref<288xf32, #tpu.memory_space<smem>>
    %1814 = vector.broadcast %1813 : f32 to vector<14x14xf32>
    %1815 = arith.mulf %1792, %1814 : vector<14x14xf32>
    %1816 = arith.addf %1750, %1815 : vector<14x14xf32>
    %c3_i32_744 = arith.constant 3 : i32
    %1817 = arith.addi %0, %c3_i32_744 : i32
    %c36_i32_745 = arith.constant 36 : i32
    %1818 = arith.muli %1817, %c36_i32_745 : i32
    %c27_i32_746 = arith.constant 27 : i32
    %1819 = arith.addi %1818, %c27_i32_746 : i32
    %1820 = arith.index_cast %1819 : i32 to index
    %1821 = memref.load %arg3[%1820] : memref<288xf32, #tpu.memory_space<smem>>
    %1822 = vector.broadcast %1821 : f32 to vector<14x14xf32>
    %1823 = arith.mulf %1792, %1822 : vector<14x14xf32>
    %1824 = arith.addf %1758, %1823 : vector<14x14xf32>
    %c4_i32_747 = arith.constant 4 : i32
    %1825 = arith.addi %0, %c4_i32_747 : i32
    %c36_i32_748 = arith.constant 36 : i32
    %1826 = arith.muli %1825, %c36_i32_748 : i32
    %c27_i32_749 = arith.constant 27 : i32
    %1827 = arith.addi %1826, %c27_i32_749 : i32
    %1828 = arith.index_cast %1827 : i32 to index
    %1829 = memref.load %arg3[%1828] : memref<288xf32, #tpu.memory_space<smem>>
    %1830 = vector.broadcast %1829 : f32 to vector<14x14xf32>
    %1831 = arith.mulf %1792, %1830 : vector<14x14xf32>
    %1832 = arith.addf %1766, %1831 : vector<14x14xf32>
    %c5_i32_750 = arith.constant 5 : i32
    %1833 = arith.addi %0, %c5_i32_750 : i32
    %c36_i32_751 = arith.constant 36 : i32
    %1834 = arith.muli %1833, %c36_i32_751 : i32
    %c27_i32_752 = arith.constant 27 : i32
    %1835 = arith.addi %1834, %c27_i32_752 : i32
    %1836 = arith.index_cast %1835 : i32 to index
    %1837 = memref.load %arg3[%1836] : memref<288xf32, #tpu.memory_space<smem>>
    %1838 = vector.broadcast %1837 : f32 to vector<14x14xf32>
    %1839 = arith.mulf %1792, %1838 : vector<14x14xf32>
    %1840 = arith.addf %1774, %1839 : vector<14x14xf32>
    %c6_i32_753 = arith.constant 6 : i32
    %1841 = arith.addi %0, %c6_i32_753 : i32
    %c36_i32_754 = arith.constant 36 : i32
    %1842 = arith.muli %1841, %c36_i32_754 : i32
    %c27_i32_755 = arith.constant 27 : i32
    %1843 = arith.addi %1842, %c27_i32_755 : i32
    %1844 = arith.index_cast %1843 : i32 to index
    %1845 = memref.load %arg3[%1844] : memref<288xf32, #tpu.memory_space<smem>>
    %1846 = vector.broadcast %1845 : f32 to vector<14x14xf32>
    %1847 = arith.mulf %1792, %1846 : vector<14x14xf32>
    %1848 = arith.addf %1782, %1847 : vector<14x14xf32>
    %c7_i32_756 = arith.constant 7 : i32
    %1849 = arith.addi %0, %c7_i32_756 : i32
    %c36_i32_757 = arith.constant 36 : i32
    %1850 = arith.muli %1849, %c36_i32_757 : i32
    %c27_i32_758 = arith.constant 27 : i32
    %1851 = arith.addi %1850, %c27_i32_758 : i32
    %1852 = arith.index_cast %1851 : i32 to index
    %1853 = memref.load %arg3[%1852] : memref<288xf32, #tpu.memory_space<smem>>
    %1854 = vector.broadcast %1853 : f32 to vector<14x14xf32>
    %1855 = arith.mulf %1792, %1854 : vector<14x14xf32>
    %1856 = arith.addf %1790, %1855 : vector<14x14xf32>
    %c0_759 = arith.constant 0 : index
    %c3_760 = arith.constant 3 : index
    %c0_761 = arith.constant 0 : index
    %c1_762 = arith.constant 1 : index
    %1857 = vector.load %arg2[%c0_759, %c3_760, %c0_761, %c1_762] : memref<1x4x16x16xf32, #tpu.memory_space<vmem>>, vector<1x1x14x14xf32>
    %1858 = vector.shape_cast %1857 : vector<1x1x14x14xf32> to vector<14x14xf32>
    %c0_i32_763 = arith.constant 0 : i32
    %1859 = arith.addi %0, %c0_i32_763 : i32
    %c36_i32_764 = arith.constant 36 : i32
    %1860 = arith.muli %1859, %c36_i32_764 : i32
    %c28_i32 = arith.constant 28 : i32
    %1861 = arith.addi %1860, %c28_i32 : i32
    %1862 = arith.index_cast %1861 : i32 to index
    %1863 = memref.load %arg3[%1862] : memref<288xf32, #tpu.memory_space<smem>>
    %1864 = vector.broadcast %1863 : f32 to vector<14x14xf32>
    %1865 = arith.mulf %1858, %1864 : vector<14x14xf32>
    %1866 = arith.addf %1800, %1865 : vector<14x14xf32>
    %c1_i32_765 = arith.constant 1 : i32
    %1867 = arith.addi %0, %c1_i32_765 : i32
    %c36_i32_766 = arith.constant 36 : i32
    %1868 = arith.muli %1867, %c36_i32_766 : i32
    %c28_i32_767 = arith.constant 28 : i32
    %1869 = arith.addi %1868, %c28_i32_767 : i32
    %1870 = arith.index_cast %1869 : i32 to index
    %1871 = memref.load %arg3[%1870] : memref<288xf32, #tpu.memory_space<smem>>
    %1872 = vector.broadcast %1871 : f32 to vector<14x14xf32>
    %1873 = arith.mulf %1858, %1872 : vector<14x14xf32>
    %1874 = arith.addf %1808, %1873 : vector<14x14xf32>
    %c2_i32_768 = arith.constant 2 : i32
    %1875 = arith.addi %0, %c2_i32_768 : i32
    %c36_i32_769 = arith.constant 36 : i32
    %1876 = arith.muli %1875, %c36_i32_769 : i32
    %c28_i32_770 = arith.constant 28 : i32
    %1877 = arith.addi %1876, %c28_i32_770 : i32
    %1878 = arith.index_cast %1877 : i32 to index
    %1879 = memref.load %arg3[%1878] : memref<288xf32, #tpu.memory_space<smem>>
    %1880 = vector.broadcast %1879 : f32 to vector<14x14xf32>
    %1881 = arith.mulf %1858, %1880 : vector<14x14xf32>
    %1882 = arith.addf %1816, %1881 : vector<14x14xf32>
    %c3_i32_771 = arith.constant 3 : i32
    %1883 = arith.addi %0, %c3_i32_771 : i32
    %c36_i32_772 = arith.constant 36 : i32
    %1884 = arith.muli %1883, %c36_i32_772 : i32
    %c28_i32_773 = arith.constant 28 : i32
    %1885 = arith.addi %1884, %c28_i32_773 : i32
    %1886 = arith.index_cast %1885 : i32 to index
    %1887 = memref.load %arg3[%1886] : memref<288xf32, #tpu.memory_space<smem>>
    %1888 = vector.broadcast %1887 : f32 to vector<14x14xf32>
    %1889 = arith.mulf %1858, %1888 : vector<14x14xf32>
    %1890 = arith.addf %1824, %1889 : vector<14x14xf32>
    %c4_i32_774 = arith.constant 4 : i32
    %1891 = arith.addi %0, %c4_i32_774 : i32
    %c36_i32_775 = arith.constant 36 : i32
    %1892 = arith.muli %1891, %c36_i32_775 : i32
    %c28_i32_776 = arith.constant 28 : i32
    %1893 = arith.addi %1892, %c28_i32_776 : i32
    %1894 = arith.index_cast %1893 : i32 to index
    %1895 = memref.load %arg3[%1894] : memref<288xf32, #tpu.memory_space<smem>>
    %1896 = vector.broadcast %1895 : f32 to vector<14x14xf32>
    %1897 = arith.mulf %1858, %1896 : vector<14x14xf32>
    %1898 = arith.addf %1832, %1897 : vector<14x14xf32>
    %c5_i32_777 = arith.constant 5 : i32
    %1899 = arith.addi %0, %c5_i32_777 : i32
    %c36_i32_778 = arith.constant 36 : i32
    %1900 = arith.muli %1899, %c36_i32_778 : i32
    %c28_i32_779 = arith.constant 28 : i32
    %1901 = arith.addi %1900, %c28_i32_779 : i32
    %1902 = arith.index_cast %1901 : i32 to index
    %1903 = memref.load %arg3[%1902] : memref<288xf32, #tpu.memory_space<smem>>
    %1904 = vector.broadcast %1903 : f32 to vector<14x14xf32>
    %1905 = arith.mulf %1858, %1904 : vector<14x14xf32>
    %1906 = arith.addf %1840, %1905 : vector<14x14xf32>
    %c6_i32_780 = arith.constant 6 : i32
    %1907 = arith.addi %0, %c6_i32_780 : i32
    %c36_i32_781 = arith.constant 36 : i32
    %1908 = arith.muli %1907, %c36_i32_781 : i32
    %c28_i32_782 = arith.constant 28 : i32
    %1909 = arith.addi %1908, %c28_i32_782 : i32
    %1910 = arith.index_cast %1909 : i32 to index
    %1911 = memref.load %arg3[%1910] : memref<288xf32, #tpu.memory_space<smem>>
    %1912 = vector.broadcast %1911 : f32 to vector<14x14xf32>
    %1913 = arith.mulf %1858, %1912 : vector<14x14xf32>
    %1914 = arith.addf %1848, %1913 : vector<14x14xf32>
    %c7_i32_783 = arith.constant 7 : i32
    %1915 = arith.addi %0, %c7_i32_783 : i32
    %c36_i32_784 = arith.constant 36 : i32
    %1916 = arith.muli %1915, %c36_i32_784 : i32
    %c28_i32_785 = arith.constant 28 : i32
    %1917 = arith.addi %1916, %c28_i32_785 : i32
    %1918 = arith.index_cast %1917 : i32 to index
    %1919 = memref.load %arg3[%1918] : memref<288xf32, #tpu.memory_space<smem>>
    %1920 = vector.broadcast %1919 : f32 to vector<14x14xf32>
    %1921 = arith.mulf %1858, %1920 : vector<14x14xf32>
    %1922 = arith.addf %1856, %1921 : vector<14x14xf32>
    %c0_786 = arith.constant 0 : index
    %c3_787 = arith.constant 3 : index
    %c0_788 = arith.constant 0 : index
    %c2_789 = arith.constant 2 : index
    %1923 = vector.load %arg2[%c0_786, %c3_787, %c0_788, %c2_789] : memref<1x4x16x16xf32, #tpu.memory_space<vmem>>, vector<1x1x14x14xf32>
    %1924 = vector.shape_cast %1923 : vector<1x1x14x14xf32> to vector<14x14xf32>
    %c0_i32_790 = arith.constant 0 : i32
    %1925 = arith.addi %0, %c0_i32_790 : i32
    %c36_i32_791 = arith.constant 36 : i32
    %1926 = arith.muli %1925, %c36_i32_791 : i32
    %c29_i32 = arith.constant 29 : i32
    %1927 = arith.addi %1926, %c29_i32 : i32
    %1928 = arith.index_cast %1927 : i32 to index
    %1929 = memref.load %arg3[%1928] : memref<288xf32, #tpu.memory_space<smem>>
    %1930 = vector.broadcast %1929 : f32 to vector<14x14xf32>
    %1931 = arith.mulf %1924, %1930 : vector<14x14xf32>
    %1932 = arith.addf %1866, %1931 : vector<14x14xf32>
    %c1_i32_792 = arith.constant 1 : i32
    %1933 = arith.addi %0, %c1_i32_792 : i32
    %c36_i32_793 = arith.constant 36 : i32
    %1934 = arith.muli %1933, %c36_i32_793 : i32
    %c29_i32_794 = arith.constant 29 : i32
    %1935 = arith.addi %1934, %c29_i32_794 : i32
    %1936 = arith.index_cast %1935 : i32 to index
    %1937 = memref.load %arg3[%1936] : memref<288xf32, #tpu.memory_space<smem>>
    %1938 = vector.broadcast %1937 : f32 to vector<14x14xf32>
    %1939 = arith.mulf %1924, %1938 : vector<14x14xf32>
    %1940 = arith.addf %1874, %1939 : vector<14x14xf32>
    %c2_i32_795 = arith.constant 2 : i32
    %1941 = arith.addi %0, %c2_i32_795 : i32
    %c36_i32_796 = arith.constant 36 : i32
    %1942 = arith.muli %1941, %c36_i32_796 : i32
    %c29_i32_797 = arith.constant 29 : i32
    %1943 = arith.addi %1942, %c29_i32_797 : i32
    %1944 = arith.index_cast %1943 : i32 to index
    %1945 = memref.load %arg3[%1944] : memref<288xf32, #tpu.memory_space<smem>>
    %1946 = vector.broadcast %1945 : f32 to vector<14x14xf32>
    %1947 = arith.mulf %1924, %1946 : vector<14x14xf32>
    %1948 = arith.addf %1882, %1947 : vector<14x14xf32>
    %c3_i32_798 = arith.constant 3 : i32
    %1949 = arith.addi %0, %c3_i32_798 : i32
    %c36_i32_799 = arith.constant 36 : i32
    %1950 = arith.muli %1949, %c36_i32_799 : i32
    %c29_i32_800 = arith.constant 29 : i32
    %1951 = arith.addi %1950, %c29_i32_800 : i32
    %1952 = arith.index_cast %1951 : i32 to index
    %1953 = memref.load %arg3[%1952] : memref<288xf32, #tpu.memory_space<smem>>
    %1954 = vector.broadcast %1953 : f32 to vector<14x14xf32>
    %1955 = arith.mulf %1924, %1954 : vector<14x14xf32>
    %1956 = arith.addf %1890, %1955 : vector<14x14xf32>
    %c4_i32_801 = arith.constant 4 : i32
    %1957 = arith.addi %0, %c4_i32_801 : i32
    %c36_i32_802 = arith.constant 36 : i32
    %1958 = arith.muli %1957, %c36_i32_802 : i32
    %c29_i32_803 = arith.constant 29 : i32
    %1959 = arith.addi %1958, %c29_i32_803 : i32
    %1960 = arith.index_cast %1959 : i32 to index
    %1961 = memref.load %arg3[%1960] : memref<288xf32, #tpu.memory_space<smem>>
    %1962 = vector.broadcast %1961 : f32 to vector<14x14xf32>
    %1963 = arith.mulf %1924, %1962 : vector<14x14xf32>
    %1964 = arith.addf %1898, %1963 : vector<14x14xf32>
    %c5_i32_804 = arith.constant 5 : i32
    %1965 = arith.addi %0, %c5_i32_804 : i32
    %c36_i32_805 = arith.constant 36 : i32
    %1966 = arith.muli %1965, %c36_i32_805 : i32
    %c29_i32_806 = arith.constant 29 : i32
    %1967 = arith.addi %1966, %c29_i32_806 : i32
    %1968 = arith.index_cast %1967 : i32 to index
    %1969 = memref.load %arg3[%1968] : memref<288xf32, #tpu.memory_space<smem>>
    %1970 = vector.broadcast %1969 : f32 to vector<14x14xf32>
    %1971 = arith.mulf %1924, %1970 : vector<14x14xf32>
    %1972 = arith.addf %1906, %1971 : vector<14x14xf32>
    %c6_i32_807 = arith.constant 6 : i32
    %1973 = arith.addi %0, %c6_i32_807 : i32
    %c36_i32_808 = arith.constant 36 : i32
    %1974 = arith.muli %1973, %c36_i32_808 : i32
    %c29_i32_809 = arith.constant 29 : i32
    %1975 = arith.addi %1974, %c29_i32_809 : i32
    %1976 = arith.index_cast %1975 : i32 to index
    %1977 = memref.load %arg3[%1976] : memref<288xf32, #tpu.memory_space<smem>>
    %1978 = vector.broadcast %1977 : f32 to vector<14x14xf32>
    %1979 = arith.mulf %1924, %1978 : vector<14x14xf32>
    %1980 = arith.addf %1914, %1979 : vector<14x14xf32>
    %c7_i32_810 = arith.constant 7 : i32
    %1981 = arith.addi %0, %c7_i32_810 : i32
    %c36_i32_811 = arith.constant 36 : i32
    %1982 = arith.muli %1981, %c36_i32_811 : i32
    %c29_i32_812 = arith.constant 29 : i32
    %1983 = arith.addi %1982, %c29_i32_812 : i32
    %1984 = arith.index_cast %1983 : i32 to index
    %1985 = memref.load %arg3[%1984] : memref<288xf32, #tpu.memory_space<smem>>
    %1986 = vector.broadcast %1985 : f32 to vector<14x14xf32>
    %1987 = arith.mulf %1924, %1986 : vector<14x14xf32>
    %1988 = arith.addf %1922, %1987 : vector<14x14xf32>
    %c0_813 = arith.constant 0 : index
    %c3_814 = arith.constant 3 : index
    %c1_815 = arith.constant 1 : index
    %c0_816 = arith.constant 0 : index
    %1989 = vector.load %arg2[%c0_813, %c3_814, %c1_815, %c0_816] : memref<1x4x16x16xf32, #tpu.memory_space<vmem>>, vector<1x1x14x14xf32>
    %1990 = vector.shape_cast %1989 : vector<1x1x14x14xf32> to vector<14x14xf32>
    %c0_i32_817 = arith.constant 0 : i32
    %1991 = arith.addi %0, %c0_i32_817 : i32
    %c36_i32_818 = arith.constant 36 : i32
    %1992 = arith.muli %1991, %c36_i32_818 : i32
    %c30_i32 = arith.constant 30 : i32
    %1993 = arith.addi %1992, %c30_i32 : i32
    %1994 = arith.index_cast %1993 : i32 to index
    %1995 = memref.load %arg3[%1994] : memref<288xf32, #tpu.memory_space<smem>>
    %1996 = vector.broadcast %1995 : f32 to vector<14x14xf32>
    %1997 = arith.mulf %1990, %1996 : vector<14x14xf32>
    %1998 = arith.addf %1932, %1997 : vector<14x14xf32>
    %c1_i32_819 = arith.constant 1 : i32
    %1999 = arith.addi %0, %c1_i32_819 : i32
    %c36_i32_820 = arith.constant 36 : i32
    %2000 = arith.muli %1999, %c36_i32_820 : i32
    %c30_i32_821 = arith.constant 30 : i32
    %2001 = arith.addi %2000, %c30_i32_821 : i32
    %2002 = arith.index_cast %2001 : i32 to index
    %2003 = memref.load %arg3[%2002] : memref<288xf32, #tpu.memory_space<smem>>
    %2004 = vector.broadcast %2003 : f32 to vector<14x14xf32>
    %2005 = arith.mulf %1990, %2004 : vector<14x14xf32>
    %2006 = arith.addf %1940, %2005 : vector<14x14xf32>
    %c2_i32_822 = arith.constant 2 : i32
    %2007 = arith.addi %0, %c2_i32_822 : i32
    %c36_i32_823 = arith.constant 36 : i32
    %2008 = arith.muli %2007, %c36_i32_823 : i32
    %c30_i32_824 = arith.constant 30 : i32
    %2009 = arith.addi %2008, %c30_i32_824 : i32
    %2010 = arith.index_cast %2009 : i32 to index
    %2011 = memref.load %arg3[%2010] : memref<288xf32, #tpu.memory_space<smem>>
    %2012 = vector.broadcast %2011 : f32 to vector<14x14xf32>
    %2013 = arith.mulf %1990, %2012 : vector<14x14xf32>
    %2014 = arith.addf %1948, %2013 : vector<14x14xf32>
    %c3_i32_825 = arith.constant 3 : i32
    %2015 = arith.addi %0, %c3_i32_825 : i32
    %c36_i32_826 = arith.constant 36 : i32
    %2016 = arith.muli %2015, %c36_i32_826 : i32
    %c30_i32_827 = arith.constant 30 : i32
    %2017 = arith.addi %2016, %c30_i32_827 : i32
    %2018 = arith.index_cast %2017 : i32 to index
    %2019 = memref.load %arg3[%2018] : memref<288xf32, #tpu.memory_space<smem>>
    %2020 = vector.broadcast %2019 : f32 to vector<14x14xf32>
    %2021 = arith.mulf %1990, %2020 : vector<14x14xf32>
    %2022 = arith.addf %1956, %2021 : vector<14x14xf32>
    %c4_i32_828 = arith.constant 4 : i32
    %2023 = arith.addi %0, %c4_i32_828 : i32
    %c36_i32_829 = arith.constant 36 : i32
    %2024 = arith.muli %2023, %c36_i32_829 : i32
    %c30_i32_830 = arith.constant 30 : i32
    %2025 = arith.addi %2024, %c30_i32_830 : i32
    %2026 = arith.index_cast %2025 : i32 to index
    %2027 = memref.load %arg3[%2026] : memref<288xf32, #tpu.memory_space<smem>>
    %2028 = vector.broadcast %2027 : f32 to vector<14x14xf32>
    %2029 = arith.mulf %1990, %2028 : vector<14x14xf32>
    %2030 = arith.addf %1964, %2029 : vector<14x14xf32>
    %c5_i32_831 = arith.constant 5 : i32
    %2031 = arith.addi %0, %c5_i32_831 : i32
    %c36_i32_832 = arith.constant 36 : i32
    %2032 = arith.muli %2031, %c36_i32_832 : i32
    %c30_i32_833 = arith.constant 30 : i32
    %2033 = arith.addi %2032, %c30_i32_833 : i32
    %2034 = arith.index_cast %2033 : i32 to index
    %2035 = memref.load %arg3[%2034] : memref<288xf32, #tpu.memory_space<smem>>
    %2036 = vector.broadcast %2035 : f32 to vector<14x14xf32>
    %2037 = arith.mulf %1990, %2036 : vector<14x14xf32>
    %2038 = arith.addf %1972, %2037 : vector<14x14xf32>
    %c6_i32_834 = arith.constant 6 : i32
    %2039 = arith.addi %0, %c6_i32_834 : i32
    %c36_i32_835 = arith.constant 36 : i32
    %2040 = arith.muli %2039, %c36_i32_835 : i32
    %c30_i32_836 = arith.constant 30 : i32
    %2041 = arith.addi %2040, %c30_i32_836 : i32
    %2042 = arith.index_cast %2041 : i32 to index
    %2043 = memref.load %arg3[%2042] : memref<288xf32, #tpu.memory_space<smem>>
    %2044 = vector.broadcast %2043 : f32 to vector<14x14xf32>
    %2045 = arith.mulf %1990, %2044 : vector<14x14xf32>
    %2046 = arith.addf %1980, %2045 : vector<14x14xf32>
    %c7_i32_837 = arith.constant 7 : i32
    %2047 = arith.addi %0, %c7_i32_837 : i32
    %c36_i32_838 = arith.constant 36 : i32
    %2048 = arith.muli %2047, %c36_i32_838 : i32
    %c30_i32_839 = arith.constant 30 : i32
    %2049 = arith.addi %2048, %c30_i32_839 : i32
    %2050 = arith.index_cast %2049 : i32 to index
    %2051 = memref.load %arg3[%2050] : memref<288xf32, #tpu.memory_space<smem>>
    %2052 = vector.broadcast %2051 : f32 to vector<14x14xf32>
    %2053 = arith.mulf %1990, %2052 : vector<14x14xf32>
    %2054 = arith.addf %1988, %2053 : vector<14x14xf32>
    %c0_840 = arith.constant 0 : index
    %c3_841 = arith.constant 3 : index
    %c1_842 = arith.constant 1 : index
    %c1_843 = arith.constant 1 : index
    %2055 = vector.load %arg2[%c0_840, %c3_841, %c1_842, %c1_843] : memref<1x4x16x16xf32, #tpu.memory_space<vmem>>, vector<1x1x14x14xf32>
    %2056 = vector.shape_cast %2055 : vector<1x1x14x14xf32> to vector<14x14xf32>
    %c0_i32_844 = arith.constant 0 : i32
    %2057 = arith.addi %0, %c0_i32_844 : i32
    %c36_i32_845 = arith.constant 36 : i32
    %2058 = arith.muli %2057, %c36_i32_845 : i32
    %c31_i32 = arith.constant 31 : i32
    %2059 = arith.addi %2058, %c31_i32 : i32
    %2060 = arith.index_cast %2059 : i32 to index
    %2061 = memref.load %arg3[%2060] : memref<288xf32, #tpu.memory_space<smem>>
    %2062 = vector.broadcast %2061 : f32 to vector<14x14xf32>
    %2063 = arith.mulf %2056, %2062 : vector<14x14xf32>
    %2064 = arith.addf %1998, %2063 : vector<14x14xf32>
    %c1_i32_846 = arith.constant 1 : i32
    %2065 = arith.addi %0, %c1_i32_846 : i32
    %c36_i32_847 = arith.constant 36 : i32
    %2066 = arith.muli %2065, %c36_i32_847 : i32
    %c31_i32_848 = arith.constant 31 : i32
    %2067 = arith.addi %2066, %c31_i32_848 : i32
    %2068 = arith.index_cast %2067 : i32 to index
    %2069 = memref.load %arg3[%2068] : memref<288xf32, #tpu.memory_space<smem>>
    %2070 = vector.broadcast %2069 : f32 to vector<14x14xf32>
    %2071 = arith.mulf %2056, %2070 : vector<14x14xf32>
    %2072 = arith.addf %2006, %2071 : vector<14x14xf32>
    %c2_i32_849 = arith.constant 2 : i32
    %2073 = arith.addi %0, %c2_i32_849 : i32
    %c36_i32_850 = arith.constant 36 : i32
    %2074 = arith.muli %2073, %c36_i32_850 : i32
    %c31_i32_851 = arith.constant 31 : i32
    %2075 = arith.addi %2074, %c31_i32_851 : i32
    %2076 = arith.index_cast %2075 : i32 to index
    %2077 = memref.load %arg3[%2076] : memref<288xf32, #tpu.memory_space<smem>>
    %2078 = vector.broadcast %2077 : f32 to vector<14x14xf32>
    %2079 = arith.mulf %2056, %2078 : vector<14x14xf32>
    %2080 = arith.addf %2014, %2079 : vector<14x14xf32>
    %c3_i32_852 = arith.constant 3 : i32
    %2081 = arith.addi %0, %c3_i32_852 : i32
    %c36_i32_853 = arith.constant 36 : i32
    %2082 = arith.muli %2081, %c36_i32_853 : i32
    %c31_i32_854 = arith.constant 31 : i32
    %2083 = arith.addi %2082, %c31_i32_854 : i32
    %2084 = arith.index_cast %2083 : i32 to index
    %2085 = memref.load %arg3[%2084] : memref<288xf32, #tpu.memory_space<smem>>
    %2086 = vector.broadcast %2085 : f32 to vector<14x14xf32>
    %2087 = arith.mulf %2056, %2086 : vector<14x14xf32>
    %2088 = arith.addf %2022, %2087 : vector<14x14xf32>
    %c4_i32_855 = arith.constant 4 : i32
    %2089 = arith.addi %0, %c4_i32_855 : i32
    %c36_i32_856 = arith.constant 36 : i32
    %2090 = arith.muli %2089, %c36_i32_856 : i32
    %c31_i32_857 = arith.constant 31 : i32
    %2091 = arith.addi %2090, %c31_i32_857 : i32
    %2092 = arith.index_cast %2091 : i32 to index
    %2093 = memref.load %arg3[%2092] : memref<288xf32, #tpu.memory_space<smem>>
    %2094 = vector.broadcast %2093 : f32 to vector<14x14xf32>
    %2095 = arith.mulf %2056, %2094 : vector<14x14xf32>
    %2096 = arith.addf %2030, %2095 : vector<14x14xf32>
    %c5_i32_858 = arith.constant 5 : i32
    %2097 = arith.addi %0, %c5_i32_858 : i32
    %c36_i32_859 = arith.constant 36 : i32
    %2098 = arith.muli %2097, %c36_i32_859 : i32
    %c31_i32_860 = arith.constant 31 : i32
    %2099 = arith.addi %2098, %c31_i32_860 : i32
    %2100 = arith.index_cast %2099 : i32 to index
    %2101 = memref.load %arg3[%2100] : memref<288xf32, #tpu.memory_space<smem>>
    %2102 = vector.broadcast %2101 : f32 to vector<14x14xf32>
    %2103 = arith.mulf %2056, %2102 : vector<14x14xf32>
    %2104 = arith.addf %2038, %2103 : vector<14x14xf32>
    %c6_i32_861 = arith.constant 6 : i32
    %2105 = arith.addi %0, %c6_i32_861 : i32
    %c36_i32_862 = arith.constant 36 : i32
    %2106 = arith.muli %2105, %c36_i32_862 : i32
    %c31_i32_863 = arith.constant 31 : i32
    %2107 = arith.addi %2106, %c31_i32_863 : i32
    %2108 = arith.index_cast %2107 : i32 to index
    %2109 = memref.load %arg3[%2108] : memref<288xf32, #tpu.memory_space<smem>>
    %2110 = vector.broadcast %2109 : f32 to vector<14x14xf32>
    %2111 = arith.mulf %2056, %2110 : vector<14x14xf32>
    %2112 = arith.addf %2046, %2111 : vector<14x14xf32>
    %c7_i32_864 = arith.constant 7 : i32
    %2113 = arith.addi %0, %c7_i32_864 : i32
    %c36_i32_865 = arith.constant 36 : i32
    %2114 = arith.muli %2113, %c36_i32_865 : i32
    %c31_i32_866 = arith.constant 31 : i32
    %2115 = arith.addi %2114, %c31_i32_866 : i32
    %2116 = arith.index_cast %2115 : i32 to index
    %2117 = memref.load %arg3[%2116] : memref<288xf32, #tpu.memory_space<smem>>
    %2118 = vector.broadcast %2117 : f32 to vector<14x14xf32>
    %2119 = arith.mulf %2056, %2118 : vector<14x14xf32>
    %2120 = arith.addf %2054, %2119 : vector<14x14xf32>
    %c0_867 = arith.constant 0 : index
    %c3_868 = arith.constant 3 : index
    %c1_869 = arith.constant 1 : index
    %c2_870 = arith.constant 2 : index
    %2121 = vector.load %arg2[%c0_867, %c3_868, %c1_869, %c2_870] : memref<1x4x16x16xf32, #tpu.memory_space<vmem>>, vector<1x1x14x14xf32>
    %2122 = vector.shape_cast %2121 : vector<1x1x14x14xf32> to vector<14x14xf32>
    %c0_i32_871 = arith.constant 0 : i32
    %2123 = arith.addi %0, %c0_i32_871 : i32
    %c36_i32_872 = arith.constant 36 : i32
    %2124 = arith.muli %2123, %c36_i32_872 : i32
    %c32_i32 = arith.constant 32 : i32
    %2125 = arith.addi %2124, %c32_i32 : i32
    %2126 = arith.index_cast %2125 : i32 to index
    %2127 = memref.load %arg3[%2126] : memref<288xf32, #tpu.memory_space<smem>>
    %2128 = vector.broadcast %2127 : f32 to vector<14x14xf32>
    %2129 = arith.mulf %2122, %2128 : vector<14x14xf32>
    %2130 = arith.addf %2064, %2129 : vector<14x14xf32>
    %c1_i32_873 = arith.constant 1 : i32
    %2131 = arith.addi %0, %c1_i32_873 : i32
    %c36_i32_874 = arith.constant 36 : i32
    %2132 = arith.muli %2131, %c36_i32_874 : i32
    %c32_i32_875 = arith.constant 32 : i32
    %2133 = arith.addi %2132, %c32_i32_875 : i32
    %2134 = arith.index_cast %2133 : i32 to index
    %2135 = memref.load %arg3[%2134] : memref<288xf32, #tpu.memory_space<smem>>
    %2136 = vector.broadcast %2135 : f32 to vector<14x14xf32>
    %2137 = arith.mulf %2122, %2136 : vector<14x14xf32>
    %2138 = arith.addf %2072, %2137 : vector<14x14xf32>
    %c2_i32_876 = arith.constant 2 : i32
    %2139 = arith.addi %0, %c2_i32_876 : i32
    %c36_i32_877 = arith.constant 36 : i32
    %2140 = arith.muli %2139, %c36_i32_877 : i32
    %c32_i32_878 = arith.constant 32 : i32
    %2141 = arith.addi %2140, %c32_i32_878 : i32
    %2142 = arith.index_cast %2141 : i32 to index
    %2143 = memref.load %arg3[%2142] : memref<288xf32, #tpu.memory_space<smem>>
    %2144 = vector.broadcast %2143 : f32 to vector<14x14xf32>
    %2145 = arith.mulf %2122, %2144 : vector<14x14xf32>
    %2146 = arith.addf %2080, %2145 : vector<14x14xf32>
    %c3_i32_879 = arith.constant 3 : i32
    %2147 = arith.addi %0, %c3_i32_879 : i32
    %c36_i32_880 = arith.constant 36 : i32
    %2148 = arith.muli %2147, %c36_i32_880 : i32
    %c32_i32_881 = arith.constant 32 : i32
    %2149 = arith.addi %2148, %c32_i32_881 : i32
    %2150 = arith.index_cast %2149 : i32 to index
    %2151 = memref.load %arg3[%2150] : memref<288xf32, #tpu.memory_space<smem>>
    %2152 = vector.broadcast %2151 : f32 to vector<14x14xf32>
    %2153 = arith.mulf %2122, %2152 : vector<14x14xf32>
    %2154 = arith.addf %2088, %2153 : vector<14x14xf32>
    %c4_i32_882 = arith.constant 4 : i32
    %2155 = arith.addi %0, %c4_i32_882 : i32
    %c36_i32_883 = arith.constant 36 : i32
    %2156 = arith.muli %2155, %c36_i32_883 : i32
    %c32_i32_884 = arith.constant 32 : i32
    %2157 = arith.addi %2156, %c32_i32_884 : i32
    %2158 = arith.index_cast %2157 : i32 to index
    %2159 = memref.load %arg3[%2158] : memref<288xf32, #tpu.memory_space<smem>>
    %2160 = vector.broadcast %2159 : f32 to vector<14x14xf32>
    %2161 = arith.mulf %2122, %2160 : vector<14x14xf32>
    %2162 = arith.addf %2096, %2161 : vector<14x14xf32>
    %c5_i32_885 = arith.constant 5 : i32
    %2163 = arith.addi %0, %c5_i32_885 : i32
    %c36_i32_886 = arith.constant 36 : i32
    %2164 = arith.muli %2163, %c36_i32_886 : i32
    %c32_i32_887 = arith.constant 32 : i32
    %2165 = arith.addi %2164, %c32_i32_887 : i32
    %2166 = arith.index_cast %2165 : i32 to index
    %2167 = memref.load %arg3[%2166] : memref<288xf32, #tpu.memory_space<smem>>
    %2168 = vector.broadcast %2167 : f32 to vector<14x14xf32>
    %2169 = arith.mulf %2122, %2168 : vector<14x14xf32>
    %2170 = arith.addf %2104, %2169 : vector<14x14xf32>
    %c6_i32_888 = arith.constant 6 : i32
    %2171 = arith.addi %0, %c6_i32_888 : i32
    %c36_i32_889 = arith.constant 36 : i32
    %2172 = arith.muli %2171, %c36_i32_889 : i32
    %c32_i32_890 = arith.constant 32 : i32
    %2173 = arith.addi %2172, %c32_i32_890 : i32
    %2174 = arith.index_cast %2173 : i32 to index
    %2175 = memref.load %arg3[%2174] : memref<288xf32, #tpu.memory_space<smem>>
    %2176 = vector.broadcast %2175 : f32 to vector<14x14xf32>
    %2177 = arith.mulf %2122, %2176 : vector<14x14xf32>
    %2178 = arith.addf %2112, %2177 : vector<14x14xf32>
    %c7_i32_891 = arith.constant 7 : i32
    %2179 = arith.addi %0, %c7_i32_891 : i32
    %c36_i32_892 = arith.constant 36 : i32
    %2180 = arith.muli %2179, %c36_i32_892 : i32
    %c32_i32_893 = arith.constant 32 : i32
    %2181 = arith.addi %2180, %c32_i32_893 : i32
    %2182 = arith.index_cast %2181 : i32 to index
    %2183 = memref.load %arg3[%2182] : memref<288xf32, #tpu.memory_space<smem>>
    %2184 = vector.broadcast %2183 : f32 to vector<14x14xf32>
    %2185 = arith.mulf %2122, %2184 : vector<14x14xf32>
    %2186 = arith.addf %2120, %2185 : vector<14x14xf32>
    %c0_894 = arith.constant 0 : index
    %c3_895 = arith.constant 3 : index
    %c2_896 = arith.constant 2 : index
    %c0_897 = arith.constant 0 : index
    %2187 = vector.load %arg2[%c0_894, %c3_895, %c2_896, %c0_897] : memref<1x4x16x16xf32, #tpu.memory_space<vmem>>, vector<1x1x14x14xf32>
    %2188 = vector.shape_cast %2187 : vector<1x1x14x14xf32> to vector<14x14xf32>
    %c0_i32_898 = arith.constant 0 : i32
    %2189 = arith.addi %0, %c0_i32_898 : i32
    %c36_i32_899 = arith.constant 36 : i32
    %2190 = arith.muli %2189, %c36_i32_899 : i32
    %c33_i32 = arith.constant 33 : i32
    %2191 = arith.addi %2190, %c33_i32 : i32
    %2192 = arith.index_cast %2191 : i32 to index
    %2193 = memref.load %arg3[%2192] : memref<288xf32, #tpu.memory_space<smem>>
    %2194 = vector.broadcast %2193 : f32 to vector<14x14xf32>
    %2195 = arith.mulf %2188, %2194 : vector<14x14xf32>
    %2196 = arith.addf %2130, %2195 : vector<14x14xf32>
    %c1_i32_900 = arith.constant 1 : i32
    %2197 = arith.addi %0, %c1_i32_900 : i32
    %c36_i32_901 = arith.constant 36 : i32
    %2198 = arith.muli %2197, %c36_i32_901 : i32
    %c33_i32_902 = arith.constant 33 : i32
    %2199 = arith.addi %2198, %c33_i32_902 : i32
    %2200 = arith.index_cast %2199 : i32 to index
    %2201 = memref.load %arg3[%2200] : memref<288xf32, #tpu.memory_space<smem>>
    %2202 = vector.broadcast %2201 : f32 to vector<14x14xf32>
    %2203 = arith.mulf %2188, %2202 : vector<14x14xf32>
    %2204 = arith.addf %2138, %2203 : vector<14x14xf32>
    %c2_i32_903 = arith.constant 2 : i32
    %2205 = arith.addi %0, %c2_i32_903 : i32
    %c36_i32_904 = arith.constant 36 : i32
    %2206 = arith.muli %2205, %c36_i32_904 : i32
    %c33_i32_905 = arith.constant 33 : i32
    %2207 = arith.addi %2206, %c33_i32_905 : i32
    %2208 = arith.index_cast %2207 : i32 to index
    %2209 = memref.load %arg3[%2208] : memref<288xf32, #tpu.memory_space<smem>>
    %2210 = vector.broadcast %2209 : f32 to vector<14x14xf32>
    %2211 = arith.mulf %2188, %2210 : vector<14x14xf32>
    %2212 = arith.addf %2146, %2211 : vector<14x14xf32>
    %c3_i32_906 = arith.constant 3 : i32
    %2213 = arith.addi %0, %c3_i32_906 : i32
    %c36_i32_907 = arith.constant 36 : i32
    %2214 = arith.muli %2213, %c36_i32_907 : i32
    %c33_i32_908 = arith.constant 33 : i32
    %2215 = arith.addi %2214, %c33_i32_908 : i32
    %2216 = arith.index_cast %2215 : i32 to index
    %2217 = memref.load %arg3[%2216] : memref<288xf32, #tpu.memory_space<smem>>
    %2218 = vector.broadcast %2217 : f32 to vector<14x14xf32>
    %2219 = arith.mulf %2188, %2218 : vector<14x14xf32>
    %2220 = arith.addf %2154, %2219 : vector<14x14xf32>
    %c4_i32_909 = arith.constant 4 : i32
    %2221 = arith.addi %0, %c4_i32_909 : i32
    %c36_i32_910 = arith.constant 36 : i32
    %2222 = arith.muli %2221, %c36_i32_910 : i32
    %c33_i32_911 = arith.constant 33 : i32
    %2223 = arith.addi %2222, %c33_i32_911 : i32
    %2224 = arith.index_cast %2223 : i32 to index
    %2225 = memref.load %arg3[%2224] : memref<288xf32, #tpu.memory_space<smem>>
    %2226 = vector.broadcast %2225 : f32 to vector<14x14xf32>
    %2227 = arith.mulf %2188, %2226 : vector<14x14xf32>
    %2228 = arith.addf %2162, %2227 : vector<14x14xf32>
    %c5_i32_912 = arith.constant 5 : i32
    %2229 = arith.addi %0, %c5_i32_912 : i32
    %c36_i32_913 = arith.constant 36 : i32
    %2230 = arith.muli %2229, %c36_i32_913 : i32
    %c33_i32_914 = arith.constant 33 : i32
    %2231 = arith.addi %2230, %c33_i32_914 : i32
    %2232 = arith.index_cast %2231 : i32 to index
    %2233 = memref.load %arg3[%2232] : memref<288xf32, #tpu.memory_space<smem>>
    %2234 = vector.broadcast %2233 : f32 to vector<14x14xf32>
    %2235 = arith.mulf %2188, %2234 : vector<14x14xf32>
    %2236 = arith.addf %2170, %2235 : vector<14x14xf32>
    %c6_i32_915 = arith.constant 6 : i32
    %2237 = arith.addi %0, %c6_i32_915 : i32
    %c36_i32_916 = arith.constant 36 : i32
    %2238 = arith.muli %2237, %c36_i32_916 : i32
    %c33_i32_917 = arith.constant 33 : i32
    %2239 = arith.addi %2238, %c33_i32_917 : i32
    %2240 = arith.index_cast %2239 : i32 to index
    %2241 = memref.load %arg3[%2240] : memref<288xf32, #tpu.memory_space<smem>>
    %2242 = vector.broadcast %2241 : f32 to vector<14x14xf32>
    %2243 = arith.mulf %2188, %2242 : vector<14x14xf32>
    %2244 = arith.addf %2178, %2243 : vector<14x14xf32>
    %c7_i32_918 = arith.constant 7 : i32
    %2245 = arith.addi %0, %c7_i32_918 : i32
    %c36_i32_919 = arith.constant 36 : i32
    %2246 = arith.muli %2245, %c36_i32_919 : i32
    %c33_i32_920 = arith.constant 33 : i32
    %2247 = arith.addi %2246, %c33_i32_920 : i32
    %2248 = arith.index_cast %2247 : i32 to index
    %2249 = memref.load %arg3[%2248] : memref<288xf32, #tpu.memory_space<smem>>
    %2250 = vector.broadcast %2249 : f32 to vector<14x14xf32>
    %2251 = arith.mulf %2188, %2250 : vector<14x14xf32>
    %2252 = arith.addf %2186, %2251 : vector<14x14xf32>
    %c0_921 = arith.constant 0 : index
    %c3_922 = arith.constant 3 : index
    %c2_923 = arith.constant 2 : index
    %c1_924 = arith.constant 1 : index
    %2253 = vector.load %arg2[%c0_921, %c3_922, %c2_923, %c1_924] : memref<1x4x16x16xf32, #tpu.memory_space<vmem>>, vector<1x1x14x14xf32>
    %2254 = vector.shape_cast %2253 : vector<1x1x14x14xf32> to vector<14x14xf32>
    %c0_i32_925 = arith.constant 0 : i32
    %2255 = arith.addi %0, %c0_i32_925 : i32
    %c36_i32_926 = arith.constant 36 : i32
    %2256 = arith.muli %2255, %c36_i32_926 : i32
    %c34_i32 = arith.constant 34 : i32
    %2257 = arith.addi %2256, %c34_i32 : i32
    %2258 = arith.index_cast %2257 : i32 to index
    %2259 = memref.load %arg3[%2258] : memref<288xf32, #tpu.memory_space<smem>>
    %2260 = vector.broadcast %2259 : f32 to vector<14x14xf32>
    %2261 = arith.mulf %2254, %2260 : vector<14x14xf32>
    %2262 = arith.addf %2196, %2261 : vector<14x14xf32>
    %c1_i32_927 = arith.constant 1 : i32
    %2263 = arith.addi %0, %c1_i32_927 : i32
    %c36_i32_928 = arith.constant 36 : i32
    %2264 = arith.muli %2263, %c36_i32_928 : i32
    %c34_i32_929 = arith.constant 34 : i32
    %2265 = arith.addi %2264, %c34_i32_929 : i32
    %2266 = arith.index_cast %2265 : i32 to index
    %2267 = memref.load %arg3[%2266] : memref<288xf32, #tpu.memory_space<smem>>
    %2268 = vector.broadcast %2267 : f32 to vector<14x14xf32>
    %2269 = arith.mulf %2254, %2268 : vector<14x14xf32>
    %2270 = arith.addf %2204, %2269 : vector<14x14xf32>
    %c2_i32_930 = arith.constant 2 : i32
    %2271 = arith.addi %0, %c2_i32_930 : i32
    %c36_i32_931 = arith.constant 36 : i32
    %2272 = arith.muli %2271, %c36_i32_931 : i32
    %c34_i32_932 = arith.constant 34 : i32
    %2273 = arith.addi %2272, %c34_i32_932 : i32
    %2274 = arith.index_cast %2273 : i32 to index
    %2275 = memref.load %arg3[%2274] : memref<288xf32, #tpu.memory_space<smem>>
    %2276 = vector.broadcast %2275 : f32 to vector<14x14xf32>
    %2277 = arith.mulf %2254, %2276 : vector<14x14xf32>
    %2278 = arith.addf %2212, %2277 : vector<14x14xf32>
    %c3_i32_933 = arith.constant 3 : i32
    %2279 = arith.addi %0, %c3_i32_933 : i32
    %c36_i32_934 = arith.constant 36 : i32
    %2280 = arith.muli %2279, %c36_i32_934 : i32
    %c34_i32_935 = arith.constant 34 : i32
    %2281 = arith.addi %2280, %c34_i32_935 : i32
    %2282 = arith.index_cast %2281 : i32 to index
    %2283 = memref.load %arg3[%2282] : memref<288xf32, #tpu.memory_space<smem>>
    %2284 = vector.broadcast %2283 : f32 to vector<14x14xf32>
    %2285 = arith.mulf %2254, %2284 : vector<14x14xf32>
    %2286 = arith.addf %2220, %2285 : vector<14x14xf32>
    %c4_i32_936 = arith.constant 4 : i32
    %2287 = arith.addi %0, %c4_i32_936 : i32
    %c36_i32_937 = arith.constant 36 : i32
    %2288 = arith.muli %2287, %c36_i32_937 : i32
    %c34_i32_938 = arith.constant 34 : i32
    %2289 = arith.addi %2288, %c34_i32_938 : i32
    %2290 = arith.index_cast %2289 : i32 to index
    %2291 = memref.load %arg3[%2290] : memref<288xf32, #tpu.memory_space<smem>>
    %2292 = vector.broadcast %2291 : f32 to vector<14x14xf32>
    %2293 = arith.mulf %2254, %2292 : vector<14x14xf32>
    %2294 = arith.addf %2228, %2293 : vector<14x14xf32>
    %c5_i32_939 = arith.constant 5 : i32
    %2295 = arith.addi %0, %c5_i32_939 : i32
    %c36_i32_940 = arith.constant 36 : i32
    %2296 = arith.muli %2295, %c36_i32_940 : i32
    %c34_i32_941 = arith.constant 34 : i32
    %2297 = arith.addi %2296, %c34_i32_941 : i32
    %2298 = arith.index_cast %2297 : i32 to index
    %2299 = memref.load %arg3[%2298] : memref<288xf32, #tpu.memory_space<smem>>
    %2300 = vector.broadcast %2299 : f32 to vector<14x14xf32>
    %2301 = arith.mulf %2254, %2300 : vector<14x14xf32>
    %2302 = arith.addf %2236, %2301 : vector<14x14xf32>
    %c6_i32_942 = arith.constant 6 : i32
    %2303 = arith.addi %0, %c6_i32_942 : i32
    %c36_i32_943 = arith.constant 36 : i32
    %2304 = arith.muli %2303, %c36_i32_943 : i32
    %c34_i32_944 = arith.constant 34 : i32
    %2305 = arith.addi %2304, %c34_i32_944 : i32
    %2306 = arith.index_cast %2305 : i32 to index
    %2307 = memref.load %arg3[%2306] : memref<288xf32, #tpu.memory_space<smem>>
    %2308 = vector.broadcast %2307 : f32 to vector<14x14xf32>
    %2309 = arith.mulf %2254, %2308 : vector<14x14xf32>
    %2310 = arith.addf %2244, %2309 : vector<14x14xf32>
    %c7_i32_945 = arith.constant 7 : i32
    %2311 = arith.addi %0, %c7_i32_945 : i32
    %c36_i32_946 = arith.constant 36 : i32
    %2312 = arith.muli %2311, %c36_i32_946 : i32
    %c34_i32_947 = arith.constant 34 : i32
    %2313 = arith.addi %2312, %c34_i32_947 : i32
    %2314 = arith.index_cast %2313 : i32 to index
    %2315 = memref.load %arg3[%2314] : memref<288xf32, #tpu.memory_space<smem>>
    %2316 = vector.broadcast %2315 : f32 to vector<14x14xf32>
    %2317 = arith.mulf %2254, %2316 : vector<14x14xf32>
    %2318 = arith.addf %2252, %2317 : vector<14x14xf32>
    %c0_948 = arith.constant 0 : index
    %c3_949 = arith.constant 3 : index
    %c2_950 = arith.constant 2 : index
    %c2_951 = arith.constant 2 : index
    %2319 = vector.load %arg2[%c0_948, %c3_949, %c2_950, %c2_951] : memref<1x4x16x16xf32, #tpu.memory_space<vmem>>, vector<1x1x14x14xf32>
    %2320 = vector.shape_cast %2319 : vector<1x1x14x14xf32> to vector<14x14xf32>
    %c0_i32_952 = arith.constant 0 : i32
    %2321 = arith.addi %0, %c0_i32_952 : i32
    %c36_i32_953 = arith.constant 36 : i32
    %2322 = arith.muli %2321, %c36_i32_953 : i32
    %c35_i32 = arith.constant 35 : i32
    %2323 = arith.addi %2322, %c35_i32 : i32
    %2324 = arith.index_cast %2323 : i32 to index
    %2325 = memref.load %arg3[%2324] : memref<288xf32, #tpu.memory_space<smem>>
    %2326 = vector.broadcast %2325 : f32 to vector<14x14xf32>
    %2327 = arith.mulf %2320, %2326 : vector<14x14xf32>
    %2328 = arith.addf %2262, %2327 : vector<14x14xf32>
    %c1_i32_954 = arith.constant 1 : i32
    %2329 = arith.addi %0, %c1_i32_954 : i32
    %c36_i32_955 = arith.constant 36 : i32
    %2330 = arith.muli %2329, %c36_i32_955 : i32
    %c35_i32_956 = arith.constant 35 : i32
    %2331 = arith.addi %2330, %c35_i32_956 : i32
    %2332 = arith.index_cast %2331 : i32 to index
    %2333 = memref.load %arg3[%2332] : memref<288xf32, #tpu.memory_space<smem>>
    %2334 = vector.broadcast %2333 : f32 to vector<14x14xf32>
    %2335 = arith.mulf %2320, %2334 : vector<14x14xf32>
    %2336 = arith.addf %2270, %2335 : vector<14x14xf32>
    %c2_i32_957 = arith.constant 2 : i32
    %2337 = arith.addi %0, %c2_i32_957 : i32
    %c36_i32_958 = arith.constant 36 : i32
    %2338 = arith.muli %2337, %c36_i32_958 : i32
    %c35_i32_959 = arith.constant 35 : i32
    %2339 = arith.addi %2338, %c35_i32_959 : i32
    %2340 = arith.index_cast %2339 : i32 to index
    %2341 = memref.load %arg3[%2340] : memref<288xf32, #tpu.memory_space<smem>>
    %2342 = vector.broadcast %2341 : f32 to vector<14x14xf32>
    %2343 = arith.mulf %2320, %2342 : vector<14x14xf32>
    %2344 = arith.addf %2278, %2343 : vector<14x14xf32>
    %c3_i32_960 = arith.constant 3 : i32
    %2345 = arith.addi %0, %c3_i32_960 : i32
    %c36_i32_961 = arith.constant 36 : i32
    %2346 = arith.muli %2345, %c36_i32_961 : i32
    %c35_i32_962 = arith.constant 35 : i32
    %2347 = arith.addi %2346, %c35_i32_962 : i32
    %2348 = arith.index_cast %2347 : i32 to index
    %2349 = memref.load %arg3[%2348] : memref<288xf32, #tpu.memory_space<smem>>
    %2350 = vector.broadcast %2349 : f32 to vector<14x14xf32>
    %2351 = arith.mulf %2320, %2350 : vector<14x14xf32>
    %2352 = arith.addf %2286, %2351 : vector<14x14xf32>
    %c4_i32_963 = arith.constant 4 : i32
    %2353 = arith.addi %0, %c4_i32_963 : i32
    %c36_i32_964 = arith.constant 36 : i32
    %2354 = arith.muli %2353, %c36_i32_964 : i32
    %c35_i32_965 = arith.constant 35 : i32
    %2355 = arith.addi %2354, %c35_i32_965 : i32
    %2356 = arith.index_cast %2355 : i32 to index
    %2357 = memref.load %arg3[%2356] : memref<288xf32, #tpu.memory_space<smem>>
    %2358 = vector.broadcast %2357 : f32 to vector<14x14xf32>
    %2359 = arith.mulf %2320, %2358 : vector<14x14xf32>
    %2360 = arith.addf %2294, %2359 : vector<14x14xf32>
    %c5_i32_966 = arith.constant 5 : i32
    %2361 = arith.addi %0, %c5_i32_966 : i32
    %c36_i32_967 = arith.constant 36 : i32
    %2362 = arith.muli %2361, %c36_i32_967 : i32
    %c35_i32_968 = arith.constant 35 : i32
    %2363 = arith.addi %2362, %c35_i32_968 : i32
    %2364 = arith.index_cast %2363 : i32 to index
    %2365 = memref.load %arg3[%2364] : memref<288xf32, #tpu.memory_space<smem>>
    %2366 = vector.broadcast %2365 : f32 to vector<14x14xf32>
    %2367 = arith.mulf %2320, %2366 : vector<14x14xf32>
    %2368 = arith.addf %2302, %2367 : vector<14x14xf32>
    %c6_i32_969 = arith.constant 6 : i32
    %2369 = arith.addi %0, %c6_i32_969 : i32
    %c36_i32_970 = arith.constant 36 : i32
    %2370 = arith.muli %2369, %c36_i32_970 : i32
    %c35_i32_971 = arith.constant 35 : i32
    %2371 = arith.addi %2370, %c35_i32_971 : i32
    %2372 = arith.index_cast %2371 : i32 to index
    %2373 = memref.load %arg3[%2372] : memref<288xf32, #tpu.memory_space<smem>>
    %2374 = vector.broadcast %2373 : f32 to vector<14x14xf32>
    %2375 = arith.mulf %2320, %2374 : vector<14x14xf32>
    %2376 = arith.addf %2310, %2375 : vector<14x14xf32>
    %c7_i32_972 = arith.constant 7 : i32
    %2377 = arith.addi %0, %c7_i32_972 : i32
    %c36_i32_973 = arith.constant 36 : i32
    %2378 = arith.muli %2377, %c36_i32_973 : i32
    %c35_i32_974 = arith.constant 35 : i32
    %2379 = arith.addi %2378, %c35_i32_974 : i32
    %2380 = arith.index_cast %2379 : i32 to index
    %2381 = memref.load %arg3[%2380] : memref<288xf32, #tpu.memory_space<smem>>
    %2382 = vector.broadcast %2381 : f32 to vector<14x14xf32>
    %2383 = arith.mulf %2320, %2382 : vector<14x14xf32>
    %2384 = arith.addf %2318, %2383 : vector<14x14xf32>
    %c0_i32_975 = arith.constant 0 : i32
    %2385 = arith.addi %0, %c0_i32_975 : i32
    %2386 = arith.index_cast %2385 : i32 to index
    %2387 = memref.load %arg4[%2386] : memref<8xf32, #tpu.memory_space<smem>>
    %2388 = vector.broadcast %2387 : f32 to vector<14x14xf32>
    %2389 = arith.addf %2328, %2388 : vector<14x14xf32>
    %c0_976 = arith.constant 0 : index
    %c0_977 = arith.constant 0 : index
    %c0_978 = arith.constant 0 : index
    %c0_979 = arith.constant 0 : index
    %2390 = vector.load %arg5[%c0_976, %c0_977, %c0_978, %c0_979] : memref<1x8x14x14xf32, #tpu.memory_space<vmem>>, vector<1x1x14x14xf32>
    %2391 = vector.shape_cast %2390 : vector<1x1x14x14xf32> to vector<14x14xf32>
    %2392 = vector.shape_cast %2389 : vector<14x14xf32> to vector<1x1x14x14xf32>
    tpu.vector_store %arg5[%c0_976, %c0_977, %c0_978, %c0_979], %2392 {strides = array<i32>} : memref<1x8x14x14xf32, #tpu.memory_space<vmem>>, vector<1x1x14x14xf32>,
    %c1_i32_980 = arith.constant 1 : i32
    %2393 = arith.addi %0, %c1_i32_980 : i32
    %2394 = arith.index_cast %2393 : i32 to index
    %2395 = memref.load %arg4[%2394] : memref<8xf32, #tpu.memory_space<smem>>
    %2396 = vector.broadcast %2395 : f32 to vector<14x14xf32>
    %2397 = arith.addf %2336, %2396 : vector<14x14xf32>
    %c0_981 = arith.constant 0 : index
    %c1_982 = arith.constant 1 : index
    %c0_983 = arith.constant 0 : index
    %c0_984 = arith.constant 0 : index
    %2398 = vector.load %arg5[%c0_981, %c1_982, %c0_983, %c0_984] : memref<1x8x14x14xf32, #tpu.memory_space<vmem>>, vector<1x1x14x14xf32>
    %2399 = vector.shape_cast %2398 : vector<1x1x14x14xf32> to vector<14x14xf32>
    %2400 = vector.shape_cast %2397 : vector<14x14xf32> to vector<1x1x14x14xf32>
    tpu.vector_store %arg5[%c0_981, %c1_982, %c0_983, %c0_984], %2400 {strides = array<i32>} : memref<1x8x14x14xf32, #tpu.memory_space<vmem>>, vector<1x1x14x14xf32>,
    %c2_i32_985 = arith.constant 2 : i32
    %2401 = arith.addi %0, %c2_i32_985 : i32
    %2402 = arith.index_cast %2401 : i32 to index
    %2403 = memref.load %arg4[%2402] : memref<8xf32, #tpu.memory_space<smem>>
    %2404 = vector.broadcast %2403 : f32 to vector<14x14xf32>
    %2405 = arith.addf %2344, %2404 : vector<14x14xf32>
    %c0_986 = arith.constant 0 : index
    %c2_987 = arith.constant 2 : index
    %c0_988 = arith.constant 0 : index
    %c0_989 = arith.constant 0 : index
    %2406 = vector.load %arg5[%c0_986, %c2_987, %c0_988, %c0_989] : memref<1x8x14x14xf32, #tpu.memory_space<vmem>>, vector<1x1x14x14xf32>
    %2407 = vector.shape_cast %2406 : vector<1x1x14x14xf32> to vector<14x14xf32>
    %2408 = vector.shape_cast %2405 : vector<14x14xf32> to vector<1x1x14x14xf32>
    tpu.vector_store %arg5[%c0_986, %c2_987, %c0_988, %c0_989], %2408 {strides = array<i32>} : memref<1x8x14x14xf32, #tpu.memory_space<vmem>>, vector<1x1x14x14xf32>,
    %c3_i32_990 = arith.constant 3 : i32
    %2409 = arith.addi %0, %c3_i32_990 : i32
    %2410 = arith.index_cast %2409 : i32 to index
    %2411 = memref.load %arg4[%2410] : memref<8xf32, #tpu.memory_space<smem>>
    %2412 = vector.broadcast %2411 : f32 to vector<14x14xf32>
    %2413 = arith.addf %2352, %2412 : vector<14x14xf32>
    %c0_991 = arith.constant 0 : index
    %c3_992 = arith.constant 3 : index
    %c0_993 = arith.constant 0 : index
    %c0_994 = arith.constant 0 : index
    %2414 = vector.load %arg5[%c0_991, %c3_992, %c0_993, %c0_994] : memref<1x8x14x14xf32, #tpu.memory_space<vmem>>, vector<1x1x14x14xf32>
    %2415 = vector.shape_cast %2414 : vector<1x1x14x14xf32> to vector<14x14xf32>
    %2416 = vector.shape_cast %2413 : vector<14x14xf32> to vector<1x1x14x14xf32>
    tpu.vector_store %arg5[%c0_991, %c3_992, %c0_993, %c0_994], %2416 {strides = array<i32>} : memref<1x8x14x14xf32, #tpu.memory_space<vmem>>, vector<1x1x14x14xf32>,
    %c4_i32_995 = arith.constant 4 : i32
    %2417 = arith.addi %0, %c4_i32_995 : i32
    %2418 = arith.index_cast %2417 : i32 to index
    %2419 = memref.load %arg4[%2418] : memref<8xf32, #tpu.memory_space<smem>>
    %2420 = vector.broadcast %2419 : f32 to vector<14x14xf32>
    %2421 = arith.addf %2360, %2420 : vector<14x14xf32>
    %c0_996 = arith.constant 0 : index
    %c4 = arith.constant 4 : index
    %c0_997 = arith.constant 0 : index
    %c0_998 = arith.constant 0 : index
    %2422 = vector.load %arg5[%c0_996, %c4, %c0_997, %c0_998] : memref<1x8x14x14xf32, #tpu.memory_space<vmem>>, vector<1x1x14x14xf32>
    %2423 = vector.shape_cast %2422 : vector<1x1x14x14xf32> to vector<14x14xf32>
    %2424 = vector.shape_cast %2421 : vector<14x14xf32> to vector<1x1x14x14xf32>
    tpu.vector_store %arg5[%c0_996, %c4, %c0_997, %c0_998], %2424 {strides = array<i32>} : memref<1x8x14x14xf32, #tpu.memory_space<vmem>>, vector<1x1x14x14xf32>,
    %c5_i32_999 = arith.constant 5 : i32
    %2425 = arith.addi %0, %c5_i32_999 : i32
    %2426 = arith.index_cast %2425 : i32 to index
    %2427 = memref.load %arg4[%2426] : memref<8xf32, #tpu.memory_space<smem>>
    %2428 = vector.broadcast %2427 : f32 to vector<14x14xf32>
    %2429 = arith.addf %2368, %2428 : vector<14x14xf32>
    %c0_1000 = arith.constant 0 : index
    %c5 = arith.constant 5 : index
    %c0_1001 = arith.constant 0 : index
    %c0_1002 = arith.constant 0 : index
    %2430 = vector.load %arg5[%c0_1000, %c5, %c0_1001, %c0_1002] : memref<1x8x14x14xf32, #tpu.memory_space<vmem>>, vector<1x1x14x14xf32>
    %2431 = vector.shape_cast %2430 : vector<1x1x14x14xf32> to vector<14x14xf32>
    %2432 = vector.shape_cast %2429 : vector<14x14xf32> to vector<1x1x14x14xf32>
    tpu.vector_store %arg5[%c0_1000, %c5, %c0_1001, %c0_1002], %2432 {strides = array<i32>} : memref<1x8x14x14xf32, #tpu.memory_space<vmem>>, vector<1x1x14x14xf32>,
    %c6_i32_1003 = arith.constant 6 : i32
    %2433 = arith.addi %0, %c6_i32_1003 : i32
    %2434 = arith.index_cast %2433 : i32 to index
    %2435 = memref.load %arg4[%2434] : memref<8xf32, #tpu.memory_space<smem>>
    %2436 = vector.broadcast %2435 : f32 to vector<14x14xf32>
    %2437 = arith.addf %2376, %2436 : vector<14x14xf32>
    %c0_1004 = arith.constant 0 : index
    %c6 = arith.constant 6 : index
    %c0_1005 = arith.constant 0 : index
    %c0_1006 = arith.constant 0 : index
    %2438 = vector.load %arg5[%c0_1004, %c6, %c0_1005, %c0_1006] : memref<1x8x14x14xf32, #tpu.memory_space<vmem>>, vector<1x1x14x14xf32>
    %2439 = vector.shape_cast %2438 : vector<1x1x14x14xf32> to vector<14x14xf32>
    %2440 = vector.shape_cast %2437 : vector<14x14xf32> to vector<1x1x14x14xf32>
    tpu.vector_store %arg5[%c0_1004, %c6, %c0_1005, %c0_1006], %2440 {strides = array<i32>} : memref<1x8x14x14xf32, #tpu.memory_space<vmem>>, vector<1x1x14x14xf32>,
    %c7_i32_1007 = arith.constant 7 : i32
    %2441 = arith.addi %0, %c7_i32_1007 : i32
    %2442 = arith.index_cast %2441 : i32 to index
    %2443 = memref.load %arg4[%2442] : memref<8xf32, #tpu.memory_space<smem>>
    %2444 = vector.broadcast %2443 : f32 to vector<14x14xf32>
    %2445 = arith.addf %2384, %2444 : vector<14x14xf32>
    %c0_1008 = arith.constant 0 : index
    %c7 = arith.constant 7 : index
    %c0_1009 = arith.constant 0 : index
    %c0_1010 = arith.constant 0 : index
    %2446 = vector.load %arg5[%c0_1008, %c7, %c0_1009, %c0_1010] : memref<1x8x14x14xf32, #tpu.memory_space<vmem>>, vector<1x1x14x14xf32>
    %2447 = vector.shape_cast %2446 : vector<1x1x14x14xf32> to vector<14x14xf32>
    %2448 = vector.shape_cast %2445 : vector<14x14xf32> to vector<1x1x14x14xf32>
    tpu.vector_store %arg5[%c0_1008, %c7, %c0_1009, %c0_1010], %2448 {strides = array<i32>} : memref<1x8x14x14xf32, #tpu.memory_space<vmem>>, vector<1x1x14x14xf32>,
    return
  }
  func.func @transform_0(%arg0: i32, %arg1: i32) -> (i32, i32, i32, i32) {
    %c0_i32 = arith.constant 0 : i32
    %c0_i32_0 = arith.constant 0 : i32
    %c0_i32_1 = arith.constant 0 : i32
    %c0_i32_2 = arith.constant 0 : i32
    return %arg0, %c0_i32, %c0_i32_0, %c0_i32_1 : i32, i32, i32, i32
  }
  func.func @transform_1(%arg0: i32, %arg1: i32) -> i32 {
    %c0_i32 = arith.constant 0 : i32
    %c0_i32_0 = arith.constant 0 : i32
    return %c0_i32 : i32
  }
  func.func @transform_2(%arg0: i32, %arg1: i32) -> i32 {
    %c0_i32 = arith.constant 0 : i32
    %c0_i32_0 = arith.constant 0 : i32
    return %c0_i32 : i32
  }
  func.func @transform_3(%arg0: i32, %arg1: i32) -> (i32, i32, i32, i32) {
    %c0_i32 = arith.constant 0 : i32
    %c0_i32_0 = arith.constant 0 : i32
    %c0_i32_1 = arith.constant 0 : i32
    return %arg0, %arg1, %c0_i32, %c0_i32_0 : i32, i32, i32, i32
  }
}

</mosaic_0001>

<bundles_post_ra>
// kernel: tpu_custom_call.1
= control target key start
LH: loop header
LB: loop body
LE: loop exit
PB: predicated region body
PF: predicated region fallthrough
CT: control target
= control target key end

     0   :  { %8 = vsyncpa [#allocation3], 0  ;;  %s7753_s0 = inlined_call_operand.hbm [shape: f32[2,4,16,16], index: 0, kind: input, shape index: {}]   ;;  %s7754_s1 = inlined_call_operand.hbm [shape: f32[288], index: 1, kind: input, shape index: {}]   ;;  %s7755_s2 = inlined_call_operand.vmem [shape: f32[8], index: 2, kind: input, shape index: {}]   ;;  %s7756_s3 = inlined_call_operand.vmem [shape: f32[2,8,14,14], index: 3, kind: output, shape index: {}]  }
   0x1   :  { %10 = vsyncpa [#allocation3 + $0x1], 0 }
   0x2   :  { %11 = vsyncpa [#allocation4], 0 }
   0x3   :  { %12 = vsyncpa [#allocation5], 0  ;;  %s4602_s12 = smov 0   ;;  %s4604_s13 = smov 0  }
   0x4   :  { %s4606_s14 = smov 0   ;;  %s4608_s15 = smov 0  }
   0x5   :  { %s4610_s16 = smov 0   ;;  %s4612_s17 = smov 0  }
   0x6 LB: > { %s4011_s18 = sadd.s32 4294967295, %s4574_s17   ;;  %s37_s19 = sadd.s32 1, %s4562_s14  ;;  %s4574_s17 = sphi %s4612_s17, %s18_s17   ;;  %s4570_s16 = sphi %s4610_s16, %s8211_s16   ;;  %s4566_s15 = sphi %s4608_s15, %s8210_s15   ;;  %s4562_s14 = sphi %s4606_s14, %s8209_s14   ;;  %s4558_s13 = sphi %s4604_s13, %s8208_s13   ;;  %s4554_s12 = sphi %s4602_s12, %s8207_s12  }
   0x7   : > { %p44_p0 = scmp.ne.s32.totalorder %s4562_s14, %s4558_s13  ;;  %p45_p1 = scmp.eq.s32.totalorder %s4574_s17, 0 }
   0x8   : > { %p50_p2 = scmp.ne.s32.totalorder %s4558_s13, %s4554_s12  ;;  %p4636_p3 = scmp.eq.s32.totalorder %s4011_s18, 0 }
   0x9   : > { %p46_p4 = por %p45_p1, %p44_p0  ;;  %p4013_p5 = scmp.ge.s32.totalorder %s4574_s17, 1 }
   0xa   : > { %p4643_p6 = por %p4636_p3, %p50_p2  ;;  %p131_p7 = scmp.lt.s32.totalorder %s4574_s17, 3 }
   0xb   : > { %s143_s24 = sshll.u32 %s7754_s1, 4  ;;  %p4379_p10 = scmp.lt.s32.totalorder %s4574_s17, 2  ;;  %s144_s24 = int_to_ptr.hbm [resolvable:$true] %s143_s24 }
   0xc   : > { %p4651_p8 = pnand %p4013_p5, %p131_p7  ;;  %s153_s28 = sshll.u32 %s7755_s2, 4  ;;  %s154_s28 = int_to_ptr.vmem [resolvable:$true] %s153_s28 }
   0xd   : > { %p4663_p12 = pnand %p4379_p10, %p46_p4  ;;  %s4576_s30 = smov [#allocation6]  }
   0xe   : > { %p4366_p9 = pneg %p4651_p8  ;;  %s4577_s4 = smov [#allocation7]  }
   0xf   : > { %s164_s5 = sand.u32 1, %s4562_s14   ;;  %s30_s6 = sadd.s32 1, %s4570_s16 }
  0x10   : > { %p4367_p11 = pnand %p4366_p9, %p4636_p3  ;;  %p32_p13 = scmp.ge.s32.totalorder %s30_s6, 2 }
  0x11   : > { %s4017_s7 = sshll.u32 %s164_s5, 6  ;;  %s4354_s8 = sshll.u32 %s4570_s16, 6 }
  0x12   : > { %4369 = dma.hbm_to_smem (!%p4367_p11), %s144_s24, 48, %s4576_s30, [#allocation4]  }
  0x13   : > { %4372 = dma.vmem_to_smem (!%p4367_p11), %s154_s28, 16, %s4577_s4, [#allocation5]  }
  0x14   : > { %s8213_s6 = smov (%p32_p13, %s30_s6), 0  ;;  %s173_s11 = scalar_lea.hbm %s7753_s0, %s4354_s8 }
  0x15   : > { %s168_s12 = scalar_lea.vmem [#allocation2], %s4017_s7  ;;  %s34_s22 = ssub.s32 %s4570_s16, %s8213_s6 }
  0x16   : > { %s176_s18 = sshll.u32 %s168_s12, 4  ;;  %s174_s23 = sshll.u32 %s173_s11, 4  ;;  %s175_s23 = int_to_ptr.hbm [resolvable:$true] %s174_s23  ;;  %s177_s18 = int_to_ptr.vmem [resolvable:$true] %s176_s18 }
  0x17   : > { %p35_p0 = scmp.eq.s32.totalorder %s34_s22, 0  ;;  %s165_s26 = scalar_lea.sflag [#allocation3], %s164_s5 }
  0x18   : > { %s4578_s27 = smov 128   ;;  %s4579_s28 = smov 8  }
  0x19   : > { %s4680_s24 = scalar_select %p35_p0, %s4562_s14, %s37_s19  }
  0x1a   : > { %4376 = dma.hbm_to_vmem [thread:$0]  (!%p4663_p12), %s175_s23, 1024, %s177_s18, %s165_s26, %s4578_s27, %s4578_s27, %s4579_s28  }
  0x1b   : > { %188 = sbr.rel (%p4651_p8) target bundleno = 1189 (0x4a5), region = 32 }
  0x20   : > { %s190_s30 = sand.u32 1, %s4558_s13  }
  0x21   : > { %s4021_s4 = sshll.u32 %s190_s30, 6  ;;  %s191_s7 = scalar_lea.sflag [#allocation3], %s190_s30 }
  0x22   : > { %s4687_s8 = scalar_lea.vmem [#allocation2], %s4021_s4 }
  0x23   : > { %4541 = dma.done.wait (%p4643_p6), %s191_s7, 1024  }
  0x24   : > { %4543 = vsyncadd (%p4643_p6), %s191_s7, 4294966272 }
  0x25   : > { %4545 = dma.done.wait (%p4636_p3), [#allocation4], 48  }
  0x26   : > { %4547 = vsyncadd (%p4636_p3), [#allocation4], 4294967248 }
  0x27   : > { %4549 = dma.done.wait (%p4636_p3), [#allocation5], 16  }
  0x28   : > { %4551 = vsyncadd (%p4636_p3), [#allocation5], 4294967280 }
  0x29   : > { %210 = sfence }
  0x2a   : > { %s4035_s19 = sld [smem:[#allocation6 + $0x49]]  ;;  %v4702_v0 = vld [vmem:[%s4687_s8] sm:$0xff]  ;;  %s7778_s21 = smov 127   ;;  %v4709_v7 = vld [vmem:[%s4687_s8 + $0x8] sm:$0x3f]  ;;  %vm3836_vm0 = vcmask 113664  }
  0x2b   : > { %s4034_s25 = sld [smem:[#allocation6 + $0x25]]  ;;  %s7771_s23 = smov 126   ;;  %v4767_v47 = vld [vmem:[%s4687_s8 + $0x1] sm:$0xff]  ;;  %v4776_v53 = vld [vmem:[%s4687_s8 + $0x9] sm:$0x3f]  ;;  %vm3838_vm1 = vcmask 111616  }
  0x2c   : > { %s4033_s29 = sld [smem:[#allocation6 + $0x1]]  ;;  %p235_p1 = scmp.lt.s32.totalorder %s4566_s15, 1 }
  0x2d   : > { %s4037_s20 = sld [smem:[#allocation6 + $0x91]] }
  0x2e   : > { %s4036_s5 = sld [smem:[#allocation6 + $0x6d]]  ;;  %s8215_s15 = smov (!%p235_p1, %s4566_s15), 1 }
  0x2f   : > { %s4038_s9 = sld [smem:[#allocation6 + $0xb5]] }
  0x30   : > { %v343_v1 = vstv %s4035_s19  ;;  %s4040_s10 = sld [smem:[#allocation6 + $0xfd]] }
  0x31   : > { %v344_v2 = vmul.f32 %v343_v1, %v4702_v0  ;;  %v328_v3 = vstv %s4034_s25  ;;  %v345_v8 = vmul.f32 %v343_v1, %v4709_v7  ;;  %s4039_s11 = sld [smem:[#allocation6 + $0xd9]] }
  0x32   : > { %v329_v4 = vmul.f32 %v328_v3, %v4702_v0  ;;  %v313_v5 = vstv %s4033_s29  ;;  %v330_v9 = vmul.f32 %v328_v3, %v4709_v7  ;;  %s4041_s12 = sld [smem:[#allocation6 + $0x2]] }
  0x33   : > { %348 = vrot.lane.b32.xlu2 %v344_v2, %s7778_s21  ;;  %v314_v6 = vmul.f32 %v313_v5, %v4702_v0  ;;  %v315_v10 = vmul.f32 %v313_v5, %v4709_v7  ;;  %v373_v11 = vstv %s4037_s20  ;;  %s4043_s18 = sld [smem:[#allocation6 + $0x4a]] }
  0x34   : > { %333 = vrot.lane.b32.xlu1 %v329_v4, %s7778_s21  ;;  %v358_v12 = vstv %s4036_s5  ;;  %v374_v13 = vmul.f32 %v373_v11, %v4702_v0  ;;  %v375_v19 = vmul.f32 %v373_v11, %v4709_v7  ;;  %s4042_s22 = sld [smem:[#allocation6 + $0x26]] }
  0x35   : > { %318 = vrot.lane.b32.xlu0 %v314_v6, %s7778_s21  ;;  %v360_v14 = vmul.f32 %v358_v12, %v4709_v7  ;;  %v359_v15 = vmul.f32 %v358_v12, %v4702_v0  ;;  %v388_v16 = vstv %s4038_s9  ;;  %s4044_s26 = sld [smem:[#allocation6 + $0x6e]] }
  0x36   : > { %v390_v17 = vmul.f32 %v388_v16, %v4709_v7  ;;  %v389_v18 = vmul.f32 %v388_v16, %v4702_v0  ;;  %v418_v20 = vstv %s4040_s10  ;;  %s4046_s27 = sld [smem:[#allocation6 + $0xb6]] }
  0x37   : > { %v403_v21 = vstv %s4039_s11  ;;  %v419_v22 = vmul.f32 %v418_v20, %v4702_v0  ;;  %v420_v28 = vmul.f32 %v418_v20, %v4709_v7  ;;  %s4045_s28 = sld [smem:[#allocation6 + $0x92]] }
  0x38   : > { %v405_v23 = vmul.f32 %v403_v21, %v4709_v7  ;;  %v404_v24 = vmul.f32 %v403_v21, %v4702_v0  ;;  %v433_v25 = vstv %s4041_s12  ;;  %s4047_s30 = sld [smem:[#allocation6 + $0xda]] }
  0x39   : > { %v435_v26 = vmul.f32 %v433_v25, %v4709_v7  ;;  %v434_v27 = vmul.f32 %v433_v25, %v4702_v0  ;;  %v463_v29 = vstv %s4043_s18  ;;  %s4057_s4 = sld [smem:[#allocation6 + $0x4]] }
  0x3a   : > { %v448_v30 = vstv %s4042_s22  ;;  %v464_v31 = vmul.f32 %v463_v29, %v4702_v0  ;;  %v465_v37 = vmul.f32 %v463_v29, %v4709_v7  ;;  %s4048_s7 = sld [smem:[#allocation6 + $0xfe]] }
  0x3b   : > { %350 = vrot.lane.b32.xlu2 %v345_v8, %s7778_s21  ;;  %v450_v32 = vmul.f32 %v448_v30, %v4709_v7  ;;  %v449_v33 = vmul.f32 %v448_v30, %v4702_v0  ;;  %v478_v34 = vstv %s4044_s26  ;;  %s4058_s19 = sld [smem:[#allocation6 + $0x28]] }
  0x3c   : > { %335 = vrot.lane.b32.xlu1 %v330_v9, %s7778_s21  ;;  %v480_v35 = vmul.f32 %v478_v34, %v4709_v7  ;;  %v479_v36 = vmul.f32 %v478_v34, %v4702_v0  ;;  %v508_v38 = vstv %s4046_s27  ;;  %s4060_s25 = sld [smem:[#allocation6 + $0x70]] }
  0x3d   : > { %320 = vrot.lane.b32.xlu0 %v315_v10, %s7778_s21  ;;  %v493_v39 = vstv %s4045_s28  ;;  %v509_v40 = vmul.f32 %v508_v38, %v4702_v0  ;;  %v510_v46 = vmul.f32 %v508_v38, %v4709_v7  ;;  %s4059_s29 = sld [smem:[#allocation6 + $0x4c]] }
  0x3e   : > { %v495_v41 = vmul.f32 %v493_v39, %v4709_v7  ;;  %v494_v42 = vmul.f32 %v493_v39, %v4702_v0  ;;  %v523_v43 = vstv %s4047_s30  ;;  %s4061_s20 = sld [smem:[#allocation6 + $0x94]] }
  0x3f   : > { %v525_v44 = vmul.f32 %v523_v43, %v4709_v7  ;;  %v524_v45 = vmul.f32 %v523_v43, %v4702_v0  ;;  %v611_v48 = vstv %s4057_s4  ;;  %s4063_s5 = sld [smem:[#allocation6 + $0xdc]] }
  0x40   : > { %v538_v49 = vstv %s4048_s7  ;;  %v612_v50 = vmul.f32 %v611_v48, %v4767_v47  ;;  %v613_v57 = vmul.f32 %v611_v48, %v4776_v53  ;;  %s4062_s9 = sld [smem:[#allocation6 + $0xb8]] }
  0x41   : > { %v540_v51 = vmul.f32 %v538_v49, %v4709_v7  ;;  %v539_v52 = vmul.f32 %v538_v49, %v4702_v0  ;;  %v626_v54 = vstv %s4058_s19  ;;  %s4064_s10 = sld [smem:[#allocation6 + $0x100]] }
  0x42   : > { %v628_v55 = vmul.f32 %v626_v54, %v4776_v53  ;;  %v627_v56 = vmul.f32 %v626_v54, %v4767_v47  ;;  %v656_v58 = vstv %s4060_s25  ;;  %s4808_s11 = sld [smem:[#allocation6 + $0x29]] }
  0x43   : > { %378 = vrot.lane.b32.xlu2 %v374_v13, %s7778_s21  ;;  %v641_v60 = vstv %s4059_s29  ;;  %v657_v61 = vmul.f32 %v656_v58, %v4767_v47  ;;  %v658_v4 = vmul.f32 %v656_v58, %v4776_v53  ;;  %s4065_s12 = sld [smem:[#allocation6 + $0x5]]  ;;  %v4890_v58 = vld [vmem:[%s4687_s8 + $0xa] sm:$0x3f] }
  0x44   : > { %365 = vrot.lane.b32.xlu1 %v360_v14, %s7778_s21  ;;  %v643_v62 = vmul.f32 %v641_v60, %v4776_v53  ;;  %v642_v63 = vmul.f32 %v641_v60, %v4767_v47  ;;  %v671_v0 = vstv %s4061_s20  ;;  %s4067_s18 = sld [smem:[#allocation6 + $0x4d]] }
  0x45   : > { %363 = vrot.lane.b32.xlu0 %v359_v15, %s7778_s21  ;;  %v673_v2 = vmul.f32 %v671_v0, %v4776_v53  ;;  %v672_v3 = vmul.f32 %v671_v0, %v4767_v47  ;;  %v701_v5 = vstv %s4063_s5  ;;  %s4835_s22 = sld [smem:[#allocation6 + $0x95]] }
  0x46   : > { %v686_v7 = vstv %s4062_s9  ;;  %v702_v8 = vmul.f32 %v701_v5, %v4767_v47  ;;  %s4068_s26 = sld [smem:[#allocation6 + $0x71]] }
  0x47   : > { %v688_v9 = vmul.f32 %v686_v7, %v4776_v53  ;;  %v687_v10 = vmul.f32 %v686_v7, %v4767_v47  ;;  %v716_v11 = vstv %s4064_s10  ;;  %s4070_s27 = sld [smem:[#allocation6 + $0xb9]] }
  0x48   : > { %v718_v15 = vmul.f32 %v716_v11, %v4776_v53  ;;  %v717_v16 = vmul.f32 %v716_v11, %v4767_v47  ;;  %s4862_s28 = sld [smem:[#allocation6 + $0x101]] }
  0x49   : > { %v731_v20 = vstv %s4065_s12  ;;  %s4071_s30 = sld [smem:[#allocation6 + $0xdd]] }
  0x4a   : > { %v732_v25 = vmul.f32 %v731_v20, %v4767_v47  ;;  %s4081_s4 = sld [smem:[#allocation6 + $0x7]] }
  0x4b   : > { %395 = vrot.lane.b32.xlu2 %v390_v17, %s7778_s21  ;;  %v703_v17 = vmul.f32 %v701_v5, %v4776_v53  ;;  %s4892_s7 = sld [smem:[#allocation6 + $0x4f]] }
  0x4c   : > { %393 = vrot.lane.b32.xlu1 %v389_v18, %s7778_s21  ;;  %v746_v18 = vstv %s4808_s11  ;;  %s4082_s19 = sld [smem:[#allocation6 + $0x2b]] }
  0x4d   : > { %380 = vrot.lane.b32.xlu0 %v375_v19, %s7778_s21  ;;  %s4084_s25 = sld [smem:[#allocation6 + $0x73]] }
  0x4e   : > { %v836_v49 = vstv %s4862_s28  ;;  %s4922_s29 = sld [smem:[#allocation6 + $0xbb]] }
  0x4f   : > { %s4085_s20 = sld [smem:[#allocation6 + $0x97]] }
  0x50   : > { %v909_v60 = vstv %s4081_s4  ;;  %s4087_s5 = sld [smem:[#allocation6 + $0xdf]] }
  0x51   : > { %v911_v0 = vmul.f32 %v909_v60, %v4890_v58  ;;  %s4949_s9 = sld [smem:[#allocation6 + $0x8]] }
  0x52   : > { %v924_v7 = vstv %s4082_s19  ;;  %s4088_s10 = sld [smem:[#allocation6 + $0x103]] }
  0x53   : > { %423 = vrot.lane.b32.xlu2 %v419_v22, %s7778_s21  ;;  %v926_v11 = vmul.f32 %v924_v7, %v4890_v58  ;;  %s4090_s11 = sld [smem:[#allocation6 + $0x2c]] }
  0x54   : > { %410 = vrot.lane.b32.xlu1 %v405_v23, %s7778_s21  ;;  %v747_v23 = vmul.f32 %v746_v18, %v4767_v47  ;;  %s4976_s12 = sld [smem:[#allocation6 + $0x74]] }
  0x55   : > { %408 = vrot.lane.b32.xlu0 %v404_v24, %s7778_s21  ;;  %v733_v24 = vmul.f32 %v731_v20, %v4776_v53  ;;  %s4096_s28 = sld [smem:[#allocation6 + $0x104]] }
  0x56   : > { %s4107_s4 = sld [smem:[#allocation6 + $0xa]] }
  0x57   : > { %s5063_s19 = sld [smem:[#allocation6 + $0x9a]] }
  0x5b   : > { %440 = vrot.lane.b32.xlu2 %v435_v26, %s7771_s23  ;;  %v761_v26 = vstv %s4067_s18  ;;  %s4091_s18 = sld [smem:[#allocation6 + $0x50]] }
  0x5c   : > { %438 = vrot.lane.b32.xlu1 %v434_v27, %s7771_s23  ;;  %v763_v30 = vmul.f32 %v761_v26, %v4776_v53 }
  0x5d   : > { %425 = vrot.lane.b32.xlu0 %v420_v28, %s7778_s21 }
  0x63   : > { %468 = vrot.lane.b32.xlu2 %v464_v31, %s7771_s23  ;;  %v762_v31 = vmul.f32 %v761_v26, %v4767_v47 }
  0x64   : > { %455 = vrot.lane.b32.xlu1 %v450_v32, %s7771_s23  ;;  %v748_v32 = vmul.f32 %v746_v18, %v4776_v53 }
  0x65   : > { %453 = vrot.lane.b32.xlu0 %v449_v33, %s7771_s23  ;;  %v791_v33 = vstv %s4835_s22  ;;  %s4093_s22 = sld [smem:[#allocation6 + $0x98]] }
  0x66   : > { %v792_v38 = vmul.f32 %v791_v33, %v4767_v47  ;;  %v793_v48 = vmul.f32 %v791_v33, %v4776_v53 }
  0x6b   : > { %485 = vrot.lane.b32.xlu2 %v480_v35, %s7771_s23  ;;  %v776_v35 = vstv %s4068_s26  ;;  %s5003_s26 = sld [smem:[#allocation6 + $0xe0]] }
  0x6c   : > { %483 = vrot.lane.b32.xlu1 %v479_v36, %s7771_s23  ;;  %v778_v39 = vmul.f32 %v776_v35, %v4776_v53 }
  0x6d   : > { %470 = vrot.lane.b32.xlu0 %v465_v37, %s7771_s23 }
  0x73   : > { %513 = vrot.lane.b32.xlu2 %v509_v40, %s7771_s23  ;;  %v777_v40 = vmul.f32 %v776_v35, %v4767_v47 }
  0x74   : > { %500 = vrot.lane.b32.xlu1 %v495_v41, %s7771_s23  ;;  %v806_v41 = vstv %s4070_s27  ;;  %s4094_s27 = sld [smem:[#allocation6 + $0xbc]] }
  0x75   : > { %498 = vrot.lane.b32.xlu0 %v494_v42, %s7771_s23 }
  0x7b   : > { %530 = vrot.lane.b32.xlu2 %v525_v44, %s7771_s23 }
  0x7c   : > { %528 = vrot.lane.b32.xlu1 %v524_v45, %s7771_s23  ;;  %v808_v45 = vmul.f32 %v806_v41, %v4776_v53 }
  0x7d   : > { %515 = vrot.lane.b32.xlu0 %v510_v46, %s7771_s23  ;;  %v807_v46 = vmul.f32 %v806_v41, %v4767_v47 }
  0x83   : > { %616 = vrot.lane.b32.xlu2 %v612_v50, %s7778_s21 }
  0x84   : > { %545 = vrot.lane.b32.xlu1 %v540_v51, %s7771_s23  ;;  %v821_v51 = vstv %s4071_s30  ;;  %s5030_s30 = sld [smem:[#allocation6 + $0x2e]] }
  0x85   : > { %543 = vrot.lane.b32.xlu0 %v539_v52, %s7771_s23 }
  0x8b   : > { %633 = vrot.lane.b32.xlu2 %v628_v55, %s7778_s21  ;;  %v837_v55 = vmul.f32 %v836_v49, %v4767_v47 }
  0x8c   : > { %631 = vrot.lane.b32.xlu1 %v627_v56, %s7778_s21  ;;  %v823_v56 = vmul.f32 %v821_v51, %v4776_v53 }
  0x8d   : > { %618 = vrot.lane.b32.xlu0 %v613_v57, %s7778_s21  ;;  %v4785_v59 = vpop.permute.xlu2 %348  ;;  %v822_v57 = vmul.f32 %v821_v51, %v4767_v47  ;;  %v1029_v51 = vstv %s4949_s9  ;;  %s4115_s9 = sld [smem:[#allocation6 + $0xb]] }
  0x93   : > { %661 = vrot.lane.b32.xlu2 %v657_v61, %s7778_s21 }
  0x94   : > { %648 = vrot.lane.b32.xlu1 %v643_v62, %s7778_s21  ;;  %v4898_v62 = vld [vmem:[%s4687_s8 + $0x2] sm:$0xff] }
  0x95   : > { %646 = vrot.lane.b32.xlu0 %v642_v63, %s7778_s21  ;;  %v4793_v1 = vpop.permute.xlu2 %350 }
  0x9b   : > { %678 = vrot.lane.b32.xlu2 %v673_v2, %s7778_s21  ;;  %v910_v2 = vmul.f32 %v909_v60, %v4898_v62 }
  0x9c   : > { %676 = vrot.lane.b32.xlu1 %v672_v3, %s7778_s21  ;;  %v838_v3 = vmul.f32 %v836_v49, %v4776_v53  ;;  %v925_v53 = vmul.f32 %v924_v7, %v4898_v62 }
  0x9d   : > { %663 = vrot.lane.b32.xlu0 %v658_v4, %s7778_s21  ;;  %v4801_v6 = vpop.permute.xlu2 %378  ;;  %v939_v4 = vstv %s4892_s7  ;;  %s4109_s7 = sld [smem:[#allocation6 + $0x52]] }
  0xa3   : > { %706 = vrot.lane.b32.xlu2 %v702_v8, %s7778_s21 }
  0xa4   : > { %693 = vrot.lane.b32.xlu1 %v688_v9, %s7778_s21 }
  0xa5   : > { %691 = vrot.lane.b32.xlu0 %v687_v10, %s7778_s21  ;;  %v4811_v12 = vpop.permute.xlu2 %395  ;;  %v940_v10 = vmul.f32 %v939_v4, %v4898_v62 }
  0xa6   : > { %v4813_v13 = vpop.permute.xlu1 %333 }
  0xa7   : > { %v4815_v14 = vpop.permute.xlu0 %318 }
  0xab   : > { %723 = vrot.lane.b32.xlu2 %v718_v15, %s7778_s21  ;;  %v954_v15 = vstv %s4084_s25  ;;  %s4110_s25 = sld [smem:[#allocation6 + $0x76]] }
  0xac   : > { %721 = vrot.lane.b32.xlu1 %v717_v16, %s7778_s21  ;;  %v956_v20 = vmul.f32 %v954_v15, %v4890_v58 }
  0xad   : > { %708 = vrot.lane.b32.xlu0 %v703_v17, %s7778_s21  ;;  %v4824_v19 = vpop.permute.xlu2 %423 }
  0xae   : > { %v4826_v21 = vpop.permute.xlu1 %335 }
  0xaf   : > { %v4828_v22 = vpop.permute.xlu0 %320 }
  0xb3   : > { %751 = vrot.lane.b32.xlu2 %v747_v23, %s7771_s23  ;;  %v955_v23 = vmul.f32 %v954_v15, %v4898_v62 }
  0xb4   : > { %738 = vrot.lane.b32.xlu1 %v733_v24, %s7771_s23  ;;  %v941_v24 = vmul.f32 %v939_v4, %v4890_v58  ;;  %v1044_v4 = vstv %s4090_s11  ;;  %s4116_s11 = sld [smem:[#allocation6 + $0x2f]] }
  0xb5   : > { %736 = vrot.lane.b32.xlu0 %v732_v25, %s7771_s23  ;;  %v4838_v27 = vpop.permute.xlu2 %440  ;;  %v984_v25 = vstv %s4922_s29  ;;  %v1045_v15 = vmul.f32 %v1044_v4, %v4898_v62  ;;  %s4112_s29 = sld [smem:[#allocation6 + $0xbe]] }
  0xb6   : > { %v4840_v28 = vpop.permute.xlu1 %365  ;;  %v985_v33 = vmul.f32 %v984_v25, %v4898_v62  ;;  %v986_v49 = vmul.f32 %v984_v25, %v4890_v58  ;;  %v1059_v25 = vstv %s4091_s18  ;;  %s5144_s18 = sld [smem:[#allocation6 + $0xbf]] }
  0xb7   : > { %v4842_v29 = vpop.permute.xlu0 %363 }
  0xbb   : > { %768 = vrot.lane.b32.xlu2 %v763_v30, %s7771_s23  ;;  %v969_v30 = vstv %s4085_s20  ;;  %s5090_s20 = sld [smem:[#allocation6 + $0x106]] }
  0xbc   : > { %766 = vrot.lane.b32.xlu1 %v762_v31, %s7771_s23  ;;  %v971_v35 = vmul.f32 %v969_v30, %v4890_v58 }
  0xbd   : > { %753 = vrot.lane.b32.xlu0 %v748_v32, %s7771_s23  ;;  %v4851_v34 = vpop.permute.xlu2 %468 }
  0xbe   : > { %v4853_v36 = vpop.permute.xlu1 %393 }
  0xbf   : > { %v4855_v37 = vpop.permute.xlu0 %380 }
  0xc3   : > { %796 = vrot.lane.b32.xlu2 %v792_v38, %s7771_s23  ;;  %v970_v38 = vmul.f32 %v969_v30, %v4898_v62 }
  0xc4   : > { %783 = vrot.lane.b32.xlu1 %v778_v39, %s7771_s23  ;;  %v999_v39 = vstv %s4087_s5  ;;  %s4113_s5 = sld [smem:[#allocation6 + $0xe2]] }
  0xc5   : > { %781 = vrot.lane.b32.xlu0 %v777_v40, %s7771_s23  ;;  %v4865_v42 = vpop.permute.xlu2 %485 }
  0xc6   : > { %v4867_v43 = vpop.permute.xlu1 %410 }
  0xc7   : > { %v4869_v44 = vpop.permute.xlu0 %408 }
  0xcb   : > { %813 = vrot.lane.b32.xlu2 %v808_v45, %s7771_s23 }
  0xcc   : > { %811 = vrot.lane.b32.xlu1 %v807_v46, %s7771_s23  ;;  %v1001_v46 = vmul.f32 %v999_v39, %v4890_v58 }
  0xcd   : > { %798 = vrot.lane.b32.xlu0 %v793_v48, %s7771_s23  ;;  %v4878_v50 = vpop.permute.xlu2 %513  ;;  %v1000_v48 = vmul.f32 %v999_v39, %v4898_v62  ;;  %v1060_v39 = vmul.f32 %v1059_v25, %v4898_v62 }
  0xce   : > { %v4880_v52 = vpop.permute.xlu1 %438 }
  0xcf   : > { %v4882_v54 = vpop.permute.xlu0 %425 }
  0xd3   : > { %841 = vrot.lane.b32.xlu2 %v837_v55, %s7771_s23 }
  0xd4   : > { %828 = vrot.lane.b32.xlu1 %v823_v56, %s7771_s23  ;;  %v1014_v56 = vstv %s4088_s10  ;;  %s5117_s10 = sld [smem:[#allocation6 + $0x53]] }
  0xd5   : > { %826 = vrot.lane.b32.xlu0 %v822_v57, %s7771_s23  ;;  %v4895_v61 = vpop.permute.xlu2 %530 }
  0xd6   : > { %v4900_v63 = vpop.permute.xlu1 %455 }
  0xd7   : > { %v4902_v47 = vpop.permute.xlu0 %453 }
  0xdb   : > { %916 = vrot.lane.b32.xlu2 %v911_v0, %s7778_s21  ;;  %v1030_v0 = vmul.f32 %v1029_v51, %v4898_v62 }
  0xdc   : > { %914 = vrot.lane.b32.xlu1 %v910_v2, %s7778_s21  ;;  %v1016_v2 = vmul.f32 %v1014_v56, %v4890_v58 }
  0xdd   : > { %843 = vrot.lane.b32.xlu0 %v838_v3, %s7771_s23  ;;  %v4911_v5 = vpop.permute.xlu2 %616  ;;  %v1015_v3 = vmul.f32 %v1014_v56, %v4898_v62 }
  0xde   : > { %v4913_v8 = vpop.permute.xlu1 %483 }
  0xdf   : > { %v4915_v9 = vpop.permute.xlu0 %470 }
  0xe3   : > { %944 = vrot.lane.b32.xlu2 %v940_v10, %s7778_s21 }
  0xe4   : > { %931 = vrot.lane.b32.xlu1 %v926_v11, %s7778_s21 }
  0xe5   : > { %929 = vrot.lane.b32.xlu0 %v925_v53, %s7778_s21  ;;  %v4925_v16 = vpop.permute.xlu2 %633  ;;  %v1046_v53 = vmul.f32 %v1044_v4, %v4890_v58 }
  0xe6   : > { %7786 = vst [vmem:[#allocation11_spill] sm:$0xff] %v4925_v16  ;;  %v4927_v17 = vpop.permute.xlu1 %500 }
  0xe7   : > { %v4929_v18 = vpop.permute.xlu0 %498 }
  0xeb   : > { %961 = vrot.lane.b32.xlu2 %v956_v20, %s7778_s21  ;;  %v1031_v20 = vmul.f32 %v1029_v51, %v4890_v58 }
  0xec   : > { %959 = vrot.lane.b32.xlu1 %v955_v23, %s7778_s21  ;;  %v1074_v23 = vstv %s4976_s12  ;;  %s4118_s12 = sld [smem:[#allocation6 + $0x77]] }
  0xed   : > { %946 = vrot.lane.b32.xlu0 %v941_v24, %s7778_s21  ;;  %v4938_v26 = vpop.permute.xlu2 %661 }
  0xee   : > { %7787 = vst [vmem:[#allocation12_spill] sm:$0xff] %v4938_v26  ;;  %v4940_v31 = vpop.permute.xlu1 %528 }
  0xef   : > { %v4942_v32 = vpop.permute.xlu0 %515 }
  0xf0   : > { %7788 = vst [vmem:[#allocation13_spill] sm:$0xff] %v4942_v32 }
  0xf3   : > { %989 = vrot.lane.b32.xlu2 %v985_v33, %s7778_s21 }
  0xf4   : > { %976 = vrot.lane.b32.xlu1 %v971_v35, %s7778_s21  ;;  %v1075_v35 = vmul.f32 %v1074_v23, %v4898_v62 }
  0xf5   : > { %974 = vrot.lane.b32.xlu0 %v970_v38, %s7778_s21  ;;  %v4952_v40 = vpop.permute.xlu2 %678  ;;  %v1061_v38 = vmul.f32 %v1059_v25, %v4890_v58 }
  0xf6   : > { %7789 = vst [vmem:[#allocation14_spill] sm:$0xff] %v4952_v40  ;;  %v4954_v41 = vpop.permute.xlu1 %545 }
  0xf7   : > { %7790 = vst [vmem:[#allocation15_spill] sm:$0xff] %v4954_v41  ;;  %v4956_v45 = vpop.permute.xlu0 %543 }
  0xf8   : > { %7791 = vst [vmem:[#allocation16_spill] sm:$0xff] %v4956_v45 }
  0xfb   : > { %1006 = vrot.lane.b32.xlu2 %v1001_v46, %s7778_s21  ;;  %v1089_v46 = vstv %s4093_s22  ;;  %s4119_s22 = sld [smem:[#allocation6 + $0x9b]] }
  0xfc   : > { %1004 = vrot.lane.b32.xlu1 %v1000_v48, %s7778_s21  ;;  %v1091_v56 = vmul.f32 %v1089_v46, %v4890_v58 }
  0xfd   : > { %991 = vrot.lane.b32.xlu0 %v986_v49, %s7778_s21  ;;  %v4965_v55 = vpop.permute.xlu2 %706 }
  0xfe   : > { %7792 = vst [vmem:[#allocation17_spill] sm:$0xff] %v4965_v55  ;;  %v4967_v57 = vpop.permute.xlu1 %631 }
  0xff   : > { %7793 = vst [vmem:[#allocation18_spill] sm:$0xff] %v4967_v57  ;;  %v4969_v60 = vpop.permute.xlu0 %618 }
 0x100   : > { %7794 = vst [vmem:[#allocation19_spill] sm:$0xff] %v4969_v60 }
 0x103   : > { %1034 = vrot.lane.b32.xlu2 %v1030_v0, %s7771_s23  ;;  %v1090_v0 = vmul.f32 %v1089_v46, %v4898_v62 }
 0x104   : > { %1021 = vrot.lane.b32.xlu1 %v1016_v2, %s7778_s21  ;;  %v1076_v2 = vmul.f32 %v1074_v23, %v4890_v58 }
 0x105   : > { %1019 = vrot.lane.b32.xlu0 %v1015_v3, %s7778_s21  ;;  %v4979_v7 = vpop.permute.xlu2 %723  ;;  %v1119_v3 = vstv %s5003_s26  ;;  %s4121_s26 = sld [smem:[#allocation6 + $0xe3]] }
 0x106   : > { %7795 = vst [vmem:[#allocation20_spill] sm:$0xff] %v4979_v7  ;;  %v4981_v10 = vpop.permute.xlu1 %648  ;;  %v1120_v25 = vmul.f32 %v1119_v3, %v4898_v62 }
 0x107   : > { %7796 = vst [vmem:[#allocation21_spill] sm:$0xff] %v4981_v10  ;;  %v4983_v11 = vpop.permute.xlu0 %646 }
 0x108   : > { %7797 = vst [vmem:[#allocation22_spill] sm:$0xff] %v4983_v11 }
 0x10b   : > { %1051 = vrot.lane.b32.xlu2 %v1046_v53, %s7771_s23  ;;  %v1104_v53 = vstv %s4094_s27  ;;  %s5171_s27 = sld [smem:[#allocation6 + $0xd]] }
 0x10c   : > { %1049 = vrot.lane.b32.xlu1 %v1045_v15, %s7771_s23  ;;  %v1105_v23 = vmul.f32 %v1104_v53, %v4898_v62 }
 0x10d   : > { %1036 = vrot.lane.b32.xlu0 %v1031_v20, %s7771_s23  ;;  %v4992_v24 = vpop.permute.xlu2 %751 }
 0x10e   : > { %7798 = vst [vmem:[#allocation23_spill] sm:$0xff] %v4992_v24  ;;  %v4994_v30 = vpop.permute.xlu1 %676 }
 0x10f   : > { %7799 = vst [vmem:[#allocation24_spill] sm:$0xff] %v4994_v30  ;;  %v4996_v33 = vpop.permute.xlu0 %663 }
 0x110   : > { %7800 = vst [vmem:[#allocation25_spill] sm:$0xff] %v4996_v33 }
 0x113   : > { %1079 = vrot.lane.b32.xlu2 %v1075_v35, %s7771_s23  ;;  %v1106_v35 = vmul.f32 %v1104_v53, %v4890_v58  ;;  %v1121_v53 = vmul.f32 %v1119_v3, %v4890_v58 }
 0x114   : > { %1066 = vrot.lane.b32.xlu1 %v1061_v38, %s7771_s23  ;;  %v1134_v38 = vstv %s4096_s28  ;;  %s4122_s28 = sld [smem:[#allocation6 + $0x107]] }
 0x115   : > { %1064 = vrot.lane.b32.xlu0 %v1060_v39, %s7771_s23  ;;  %v5006_v48 = vpop.permute.xlu2 %768 }
 0x116   : > { %7801 = vst [vmem:[#allocation26_spill] sm:$0xff] %v5006_v48  ;;  %v5008_v49 = vpop.permute.xlu1 %693 }
 0x117   : > { %7802 = vst [vmem:[#allocation27_spill] sm:$0xff] %v5008_v49  ;;  %v5010_v51 = vpop.permute.xlu0 %691 }
 0x118   : > { %7803 = vst [vmem:[#allocation28_spill] sm:$0xff] %v5010_v51  ;;  %v4437_v51 = vld [vmem:[%s4687_s8 + $0x8] sm:$0x3f] }
 0x11b   : > { %1096 = vrot.lane.b32.xlu2 %v1091_v56, %s7771_s23 }
 0x11c   : > { %1094 = vrot.lane.b32.xlu1 %v1090_v0, %s7771_s23  ;;  %v1136_v0 = vmul.f32 %v1134_v38, %v4890_v58 }
 0x11d   : > { %1081 = vrot.lane.b32.xlu0 %v1076_v2, %s7771_s23  ;;  %v5019_v4 = vpop.permute.xlu2 %796  ;;  %v1135_v2 = vmul.f32 %v1134_v38, %v4898_v62 }
 0x11e   : > { %7804 = vst [vmem:[#allocation29_spill] sm:$0xff] %v5019_v4  ;;  %v5021_v15 = vpop.permute.xlu1 %721 }
 0x11f   : > { %7805 = vst [vmem:[#allocation30_spill] sm:$0xff] %v5021_v15  ;;  %v5023_v20 = vpop.permute.xlu0 %708 }
 0x120   : > { %7806 = vst [vmem:[#allocation31_spill] sm:$0xff] %v5023_v20  ;;  %v5052_v20 = vld [vmem:[%s4687_s8 + $0x18] sm:$0x3f] }
 0x123   : > { %1124 = vrot.lane.b32.xlu2 %v1120_v25, %s7771_s23  ;;  %v5045_v25 = vld [vmem:[%s4687_s8 + $0x10] sm:$0xff] }
 0x124   : > { %1111 = vrot.lane.b32.xlu1 %v1106_v35, %s7771_s23  ;;  %v1223_v35 = vstv %s5030_s30  ;;  %s4134_s30 = sld [smem:[#allocation6 + $0x31]] }
 0x125   : > { %1109 = vrot.lane.b32.xlu0 %v1105_v23, %s7771_s23  ;;  %v5033_v39 = vpop.permute.xlu2 %813  ;;  %v1224_v58 = vmul.f32 %v5045_v25, %v1223_v35 }
 0x126   : > { %7807 = vst [vmem:[#allocation32_spill] sm:$0xff] %v5033_v39  ;;  %v5035_v46 = vpop.permute.xlu1 %738 }
 0x127   : > { %7808 = vst [vmem:[#allocation33_spill] sm:$0xff] %v5035_v46  ;;  %v5037_v56 = vpop.permute.xlu0 %736 }
 0x128   : > { %7809 = vst [vmem:[#allocation34_spill] sm:$0xff] %v5037_v56  ;;  %v1208_v56 = vstv %s4107_s4  ;;  %s5204_s4 = sld [smem:[#allocation6 + $0x79]] }
 0x129   : > { %v1210_v3 = vmul.f32 %v5052_v20, %v1208_v56  ;;  %v1209_v38 = vmul.f32 %v5045_v25, %v1208_v56 }
 0x12b   : > { %1141 = vrot.lane.b32.xlu2 %v1136_v0, %s7771_s23  ;;  %v1238_v0 = vstv %s4109_s7  ;;  %s4135_s7 = sld [smem:[#allocation6 + $0x55]] }
 0x12c   : > { %1139 = vrot.lane.b32.xlu1 %v1135_v2, %s7771_s23  ;;  %v1239_v56 = vmul.f32 %v5045_v25, %v1238_v0 }
 0x12d   : > { %1126 = vrot.lane.b32.xlu0 %v1121_v53, %s7771_s23  ;;  %v5049_v23 = vpop.permute.xlu2 %841 }
 0x12e   : > { %7810 = vst [vmem:[#allocation35_spill] sm:$0xff] %v5049_v23  ;;  %v5054_v15 = vpop.permute.xlu1 %766 }
 0x12f   : > { %7811 = vst [vmem:[#allocation36_spill] sm:$0xff] %v5054_v15  ;;  %v5056_v62 = vpop.permute.xlu0 %753  ;;  %v1240_v15 = vmul.f32 %v5052_v20, %v1238_v0 }
 0x130   : > { %7812 = vst [vmem:[#allocation37_spill] sm:$0xff] %v5056_v62 }
 0x133   : > { %1228 = vrot.lane.b32.xlu2 %v1224_v58, %s7778_s21  ;;  %v1225_v58 = vmul.f32 %v5052_v20, %v1223_v35 }
 0x134   : > { %1215 = vrot.lane.b32.xlu1 %v1210_v3, %s7778_s21  ;;  %v1268_v3 = vstv %s5063_s19  ;;  %s4137_s19 = sld [smem:[#allocation6 + $0x9d]] }
 0x135   : > { %1213 = vrot.lane.b32.xlu0 %v1209_v38, %s7778_s21  ;;  %v5066_v2 = vpop.permute.xlu2 %916  ;;  %v1269_v23 = vmul.f32 %v5045_v25, %v1268_v3 }
 0x136   : > { %7813 = vst [vmem:[#allocation38_spill] sm:$0xff] %v5066_v2  ;;  %v5068_v53 = vpop.permute.xlu1 %783  ;;  %v1253_v2 = vstv %s4110_s25  ;;  %s5231_s25 = sld [smem:[#allocation6 + $0xe5]] }
 0x137   : > { %7814 = vst [vmem:[#allocation39_spill] sm:$0xff] %v5068_v53  ;;  %v5070_v62 = vpop.permute.xlu0 %781  ;;  %v1255_v0 = vmul.f32 %v5052_v20, %v1253_v2  ;;  %v1254_v35 = vmul.f32 %v5045_v25, %v1253_v2 }
 0x138   : > { %7815 = vst [vmem:[#allocation40_spill] sm:$0xff] %v5070_v62 }
 0x13b   : > { %1245 = vrot.lane.b32.xlu2 %v1240_v15, %s7778_s21  ;;  %v1283_v15 = vstv %s4112_s29  ;;  %s4138_s29 = sld [smem:[#allocation6 + $0xc1]] }
 0x13c   : > { %1243 = vrot.lane.b32.xlu1 %v1239_v56, %s7778_s21  ;;  %v1284_v2 = vmul.f32 %v5045_v25, %v1283_v15 }
 0x13d   : > { %1230 = vrot.lane.b32.xlu0 %v1225_v58, %s7778_s21  ;;  %v5079_v38 = vpop.permute.xlu2 %944 }
 0x13e   : > { %7816 = vst [vmem:[#allocation41_spill] sm:$0xff] %v5079_v38  ;;  %v5081_v53 = vpop.permute.xlu1 %811 }
 0x13f   : > { %7817 = vst [vmem:[#allocation42_spill] sm:$0xff] %v5081_v53  ;;  %v5083_v62 = vpop.permute.xlu0 %798 }
 0x140   : > { %7818 = vst [vmem:[#allocation43_spill] sm:$0xff] %v5083_v62  ;;  %v1285_v62 = vmul.f32 %v5052_v20, %v1283_v15 }
 0x143   : > { %1273 = vrot.lane.b32.xlu2 %v1269_v23, %s7778_s21  ;;  %v1270_v23 = vmul.f32 %v5052_v20, %v1268_v3 }
 0x144   : > { %1260 = vrot.lane.b32.xlu1 %v1255_v0, %s7778_s21  ;;  %v1313_v0 = vstv %s5090_s20  ;;  %s4140_s20 = sld [smem:[#allocation6 + $0x109]] }
 0x145   : > { %1258 = vrot.lane.b32.xlu0 %v1254_v35, %s7778_s21  ;;  %v5093_v56 = vpop.permute.xlu2 %961  ;;  %v1314_v53 = vmul.f32 %v5045_v25, %v1313_v0 }
 0x146   : > { %7819 = vst [vmem:[#allocation44_spill] sm:$0xff] %v5093_v56  ;;  %v5095_v58 = vpop.permute.xlu1 %828  ;;  %v1298_v56 = vstv %s4113_s5  ;;  %s5258_s5 = sld [smem:[#allocation6 + $0x32]] }
 0x147   : > { %7820 = vst [vmem:[#allocation45_spill] sm:$0xff] %v5095_v58  ;;  %v5097_v38 = vpop.permute.xlu0 %826  ;;  %v1300_v15 = vmul.f32 %v5052_v20, %v1298_v56  ;;  %v1299_v3 = vmul.f32 %v5045_v25, %v1298_v56 }
 0x148   : > { %7821 = vst [vmem:[#allocation46_spill] sm:$0xff] %v5097_v38 }
 0x14b   : > { %1290 = vrot.lane.b32.xlu2 %v1285_v62, %s7778_s21  ;;  %v1328_v62 = vstv %s4115_s9  ;;  %s4141_s9 = sld [smem:[#allocation6 + $0xe]] }
 0x14c   : > { %1288 = vrot.lane.b32.xlu1 %v1284_v2, %s7778_s21  ;;  %v1329_v56 = vmul.f32 %v5045_v25, %v1328_v62 }
 0x14d   : > { %1275 = vrot.lane.b32.xlu0 %v1270_v23, %s7778_s21  ;;  %v5106_v35 = vpop.permute.xlu2 %989 }
 0x14e   : > { %7822 = vst [vmem:[#allocation47_spill] sm:$0xff] %v5106_v35  ;;  %v5108_v58 = vpop.permute.xlu1 %914 }
 0x14f   : > { %7823 = vst [vmem:[#allocation48_spill] sm:$0xff] %v5108_v58  ;;  %v5110_v38 = vpop.permute.xlu0 %843  ;;  %v1330_v58 = vmul.f32 %v5052_v20, %v1328_v62 }
 0x150   : > { %7824 = vst [vmem:[#allocation49_spill] sm:$0xff] %v5110_v38 }
 0x153   : > { %1318 = vrot.lane.b32.xlu2 %v1314_v53, %s7778_s21  ;;  %v1315_v53 = vmul.f32 %v5052_v20, %v1313_v0 }
 0x154   : > { %1305 = vrot.lane.b32.xlu1 %v1300_v15, %s7778_s21  ;;  %v1358_v15 = vstv %s5117_s10  ;;  %s4143_s10 = sld [smem:[#allocation6 + $0x56]] }
 0x155   : > { %1303 = vrot.lane.b32.xlu0 %v1299_v3, %s7778_s21  ;;  %v5120_v2 = vpop.permute.xlu2 %1006  ;;  %v1359_v38 = vmul.f32 %v5045_v25, %v1358_v15 }
 0x156   : > { %7825 = vst [vmem:[#allocation50_spill] sm:$0xff] %v5120_v2  ;;  %v5122_v23 = vpop.permute.xlu1 %931  ;;  %v1343_v2 = vstv %s4116_s11  ;;  %s5285_s11 = sld [smem:[#allocation6 + $0x9e]] }
 0x157   : > { %7826 = vst [vmem:[#allocation51_spill] sm:$0xff] %v5122_v23  ;;  %v5124_v35 = vpop.permute.xlu0 %929  ;;  %v1345_v62 = vmul.f32 %v5052_v20, %v1343_v2  ;;  %v1344_v0 = vmul.f32 %v5045_v25, %v1343_v2 }
 0x158   : > { %7827 = vst [vmem:[#allocation52_spill] sm:$0xff] %v5124_v35 }
 0x15b   : > { %1335 = vrot.lane.b32.xlu2 %v1330_v58, %s7771_s23  ;;  %v1373_v58 = vstv %s4118_s12  ;;  %s4144_s12 = sld [smem:[#allocation6 + $0x7a]] }
 0x15c   : > { %1333 = vrot.lane.b32.xlu1 %v1329_v56, %s7771_s23  ;;  %v1374_v2 = vmul.f32 %v5045_v25, %v1373_v58 }
 0x15d   : > { %1320 = vrot.lane.b32.xlu0 %v1315_v53, %s7778_s21  ;;  %v5133_v3 = vpop.permute.xlu2 %1034 }
 0x15e   : > { %7828 = vst [vmem:[#allocation53_spill] sm:$0xff] %v5133_v3  ;;  %v5135_v23 = vpop.permute.xlu1 %959 }
 0x15f   : > { %7829 = vst [vmem:[#allocation54_spill] sm:$0xff] %v5135_v23  ;;  %v5137_v35 = vpop.permute.xlu0 %946  ;;  %v1375_v23 = vmul.f32 %v5052_v20, %v1373_v58 }
 0x160   : > { %7830 = vst [vmem:[#allocation55_spill] sm:$0xff] %v5137_v35 }
 0x163   : > { %1363 = vrot.lane.b32.xlu2 %v1359_v38, %s7771_s23  ;;  %v1360_v38 = vmul.f32 %v5052_v20, %v1358_v15  ;;  %v1418_v15 = vstv %s4121_s26  ;;  %s4147_s26 = sld [smem:[#allocation6 + $0xe6]] }
 0x164   : > { %1350 = vrot.lane.b32.xlu1 %v1345_v62, %s7771_s23  ;;  %v1403_v62 = vstv %s5144_s18  ;;  %s4146_s18 = sld [smem:[#allocation6 + $0xc2]] }
 0x165   : > { %1348 = vrot.lane.b32.xlu0 %v1344_v0, %s7771_s23  ;;  %v5147_v56 = vpop.permute.xlu2 %1051  ;;  %v1404_v3 = vmul.f32 %v5045_v25, %v1403_v62 }
 0x166   : > { %7831 = vst [vmem:[#allocation56_spill] sm:$0xff] %v5147_v56  ;;  %v5149_v53 = vpop.permute.xlu1 %976  ;;  %v1388_v56 = vstv %s4119_s22  ;;  %s5312_s22 = sld [smem:[#allocation6 + $0x10a]] }
 0x167   : > { %7832 = vst [vmem:[#allocation57_spill] sm:$0xff] %v5149_v53  ;;  %v5151_v35 = vpop.permute.xlu0 %974  ;;  %v1390_v58 = vmul.f32 %v5052_v20, %v1388_v56 }
 0x168   : > { %7833 = vst [vmem:[#allocation58_spill] sm:$0xff] %v5151_v35 }
 0x16b   : > { %1380 = vrot.lane.b32.xlu2 %v1375_v23, %s7771_s23  ;;  %v1389_v23 = vmul.f32 %v5045_v25, %v1388_v56  ;;  %v1419_v56 = vmul.f32 %v5045_v25, %v1418_v15 }
 0x16c   : > { %1378 = vrot.lane.b32.xlu1 %v1374_v2, %s7771_s23 }
 0x16d   : > { %1365 = vrot.lane.b32.xlu0 %v1360_v38, %s7771_s23  ;;  %v5160_v0 = vpop.permute.xlu2 %1079 }
 0x16e   : > { %7834 = vst [vmem:[#allocation59_spill] sm:$0xff] %v5160_v0  ;;  %v5162_v53 = vpop.permute.xlu1 %1004 }
 0x16f   : > { %7835 = vst [vmem:[#allocation60_spill] sm:$0xff] %v5162_v53  ;;  %v5164_v35 = vpop.permute.xlu0 %991  ;;  %v1420_v53 = vmul.f32 %v5052_v20, %v1418_v15 }
 0x170   : > { %7836 = vst [vmem:[#allocation61_spill] sm:$0xff] %v5164_v35 }
 0x173   : > { %1408 = vrot.lane.b32.xlu2 %v1404_v3, %s7771_s23  ;;  %v1405_v3 = vmul.f32 %v5052_v20, %v1403_v62 }
 0x174   : > { %1395 = vrot.lane.b32.xlu1 %v1390_v58, %s7771_s23  ;;  %v5186_v58 = vld [vmem:[%s4687_s8 + $0x11] sm:$0xff] }
 0x175   : > { %1393 = vrot.lane.b32.xlu0 %v1389_v23, %s7771_s23  ;;  %v5174_v2 = vpop.permute.xlu2 %1096  ;;  %v1506_v23 = vstv %s5171_s27  ;;  %s4159_s27 = sld [smem:[#allocation6 + $0x10]] }
 0x176   : > { %7837 = vst [vmem:[#allocation62_spill] sm:$0xff] %v5174_v2  ;;  %v5176_v38 = vpop.permute.xlu1 %1021  ;;  %v1507_v62 = vmul.f32 %v5186_v58, %v1506_v23 }
 0x177   : > { %7838 = vst [vmem:[#allocation63_spill] sm:$0xff] %v5176_v38  ;;  %v5178_v35 = vpop.permute.xlu0 %1019 }
 0x178   : > { %7839 = vst [vmem:[#allocation64_spill] sm:$0xff] %v5178_v35  ;;  %v1433_v35 = vstv %s4122_s28  ;;  %s5342_s28 = sld [smem:[#allocation6 + $0x58]] }
 0x179   : > { %v1435_v15 = vmul.f32 %v5052_v20, %v1433_v35 }
 0x17b   : > { %1425 = vrot.lane.b32.xlu2 %v1420_v53, %s7771_s23  ;;  %v1434_v53 = vmul.f32 %v5045_v25, %v1433_v35 }
 0x17c   : > { %1423 = vrot.lane.b32.xlu1 %v1419_v56, %s7771_s23  ;;  %v5202_v56 = vld [vmem:[%s4687_s8 + $0x19] sm:$0x3f] }
 0x17d   : > { %1410 = vrot.lane.b32.xlu0 %v1405_v3, %s7771_s23  ;;  %v5190_v38 = vpop.permute.xlu2 %1124  ;;  %v1521_v3 = vstv %s4134_s30  ;;  %s4160_s30 = sld [smem:[#allocation6 + $0x34]] }
 0x17e   : > { %7840 = vst [vmem:[#allocation65_spill] sm:$0xff] %v5190_v38  ;;  %v5192_v2 = vpop.permute.xlu1 %1049  ;;  %v1523_v25 = vmul.f32 %v5202_v56, %v1521_v3  ;;  %v1522_v35 = vmul.f32 %v5186_v58, %v1521_v3 }
 0x17f   : > { %7841 = vst [vmem:[#allocation66_spill] sm:$0xff] %v5192_v2  ;;  %v5194_v0 = vpop.permute.xlu0 %1036 }
 0x180   : > { %7842 = vst [vmem:[#allocation67_spill] sm:$0xff] %v5194_v0 }
 0x183   : > { %1511 = vrot.lane.b32.xlu2 %v1507_v62, %s7778_s21  ;;  %v1508_v62 = vmul.f32 %v5202_v56, %v1506_v23 }
 0x184   : > { %1440 = vrot.lane.b32.xlu1 %v1435_v15, %s7771_s23  ;;  %v1551_v15 = vstv %s5204_s4  ;;  %s4162_s4 = sld [smem:[#allocation6 + $0x7c]] }
 0x185   : > { %1438 = vrot.lane.b32.xlu0 %v1434_v53, %s7771_s23  ;;  %v5207_v2 = vpop.permute.xlu2 %1141  ;;  %v1552_v38 = vmul.f32 %v5186_v58, %v1551_v15 }
 0x186   : > { %7843 = vst [vmem:[#allocation68_spill] sm:$0xff] %v5207_v2  ;;  %v5209_v0 = vpop.permute.xlu1 %1066  ;;  %v1536_v2 = vstv %s4135_s7  ;;  %s5372_s7 = sld [smem:[#allocation6 + $0xc4]] }
 0x187   : > { %7844 = vst [vmem:[#allocation69_spill] sm:$0xff] %v5209_v0  ;;  %v5211_v20 = vpop.permute.xlu0 %1064  ;;  %v1538_v3 = vmul.f32 %v5202_v56, %v1536_v2  ;;  %v1537_v23 = vmul.f32 %v5186_v58, %v1536_v2 }
 0x188   : > { %7845 = vst [vmem:[#allocation70_spill] sm:$0xff] %v5211_v20 }
 0x18b   : > { %1528 = vrot.lane.b32.xlu2 %v1523_v25, %s7778_s21  ;;  %v1566_v25 = vstv %s4137_s19  ;;  %s4163_s19 = sld [smem:[#allocation6 + $0xa0]] }
 0x18c   : > { %1526 = vrot.lane.b32.xlu1 %v1522_v35, %s7778_s21  ;;  %v1567_v2 = vmul.f32 %v5186_v58, %v1566_v25 }
 0x18d   : > { %1513 = vrot.lane.b32.xlu0 %v1508_v62, %s7778_s21  ;;  %v5220_v53 = vpop.permute.xlu2 %1228 }
 0x18e   : > { %7846 = vst [vmem:[#allocation71_spill] sm:$0xff] %v5220_v53  ;;  %v5222_v0 = vpop.permute.xlu1 %1094 }
 0x18f   : > { %7847 = vst [vmem:[#allocation72_spill] sm:$0xff] %v5222_v0  ;;  %v5224_v20 = vpop.permute.xlu0 %1081 }
 0x190   : > { %7848 = vst [vmem:[#allocation73_spill] sm:$0xff] %v5224_v20  ;;  %v1568_v20 = vmul.f32 %v5202_v56, %v1566_v25 }
 0x193   : > { %1556 = vrot.lane.b32.xlu2 %v1552_v38, %s7778_s21  ;;  %v1553_v38 = vmul.f32 %v5202_v56, %v1551_v15 }
 0x194   : > { %1543 = vrot.lane.b32.xlu1 %v1538_v3, %s7778_s21  ;;  %v1596_v3 = vstv %s5231_s25  ;;  %s4165_s25 = sld [smem:[#allocation6 + $0xe8]] }
 0x195   : > { %1541 = vrot.lane.b32.xlu0 %v1537_v23, %s7778_s21  ;;  %v5234_v35 = vpop.permute.xlu2 %1245  ;;  %v1597_v0 = vmul.f32 %v5186_v58, %v1596_v3 }
 0x196   : > { %7849 = vst [vmem:[#allocation74_spill] sm:$0xff] %v5234_v35  ;;  %v5236_v62 = vpop.permute.xlu1 %1111  ;;  %v1581_v35 = vstv %s4138_s29  ;;  %s5399_s29 = sld [smem:[#allocation6 + $0x11]] }
 0x197   : > { %7850 = vst [vmem:[#allocation75_spill] sm:$0xff] %v5236_v62  ;;  %v5238_v53 = vpop.permute.xlu0 %1109  ;;  %v1583_v25 = vmul.f32 %v5202_v56, %v1581_v35  ;;  %v1582_v15 = vmul.f32 %v5186_v58, %v1581_v35 }
 0x198   : > { %7851 = vst [vmem:[#allocation76_spill] sm:$0xff] %v5238_v53 }
 0x19b   : > { %1573 = vrot.lane.b32.xlu2 %v1568_v20, %s7778_s21  ;;  %v1611_v20 = vstv %s4140_s20  ;;  %s4166_s20 = sld [smem:[#allocation6 + $0x10c]] }
 0x19c   : > { %1571 = vrot.lane.b32.xlu1 %v1567_v2, %s7778_s21  ;;  %v1612_v35 = vmul.f32 %v5186_v58, %v1611_v20 }
 0x19d   : > { %1558 = vrot.lane.b32.xlu0 %v1553_v38, %s7778_s21  ;;  %v5247_v23 = vpop.permute.xlu2 %1273 }
 0x19e   : > { %7852 = vst [vmem:[#allocation77_spill] sm:$0xff] %v5247_v23  ;;  %v5249_v62 = vpop.permute.xlu1 %1139 }
 0x19f   : > { %7853 = vst [vmem:[#allocation78_spill] sm:$0xff] %v5249_v62  ;;  %v5251_v53 = vpop.permute.xlu0 %1126 }
 0x1a0   : > { %7854 = vst [vmem:[#allocation79_spill] sm:$0xff] %v5251_v53  ;;  %v1613_v53 = vmul.f32 %v5202_v56, %v1611_v20 }
 0x1a3   : > { %1601 = vrot.lane.b32.xlu2 %v1597_v0, %s7778_s21  ;;  %v1598_v0 = vmul.f32 %v5202_v56, %v1596_v3 }
 0x1a4   : > { %1588 = vrot.lane.b32.xlu1 %v1583_v25, %s7778_s21  ;;  %v1641_v25 = vstv %s5258_s5  ;;  %s4168_s5 = sld [smem:[#allocation6 + $0x35]] }
 0x1a5   : > { %1586 = vrot.lane.b32.xlu0 %v1582_v15, %s7778_s21  ;;  %v5261_v2 = vpop.permute.xlu2 %1290  ;;  %v1642_v62 = vmul.f32 %v5186_v58, %v1641_v25 }
 0x1a6   : > { %7855 = vst [vmem:[#allocation80_spill] sm:$0xff] %v5261_v2  ;;  %v5263_v38 = vpop.permute.xlu1 %1215  ;;  %v1626_v2 = vstv %s4141_s9  ;;  %s5426_s9 = sld [smem:[#allocation6 + $0x7d]] }
 0x1a7   : > { %7856 = vst [vmem:[#allocation81_spill] sm:$0xff] %v5263_v38  ;;  %v5265_v23 = vpop.permute.xlu0 %1213  ;;  %v1628_v20 = vmul.f32 %v5202_v56, %v1626_v2  ;;  %v1627_v3 = vmul.f32 %v5186_v58, %v1626_v2 }
 0x1a8   : > { %7857 = vst [vmem:[#allocation82_spill] sm:$0xff] %v5265_v23 }
 0x1ab   : > { %1618 = vrot.lane.b32.xlu2 %v1613_v53, %s7778_s21  ;;  %v1656_v53 = vstv %s4143_s10  ;;  %s4169_s10 = sld [smem:[#allocation6 + $0x59]] }
 0x1ac   : > { %1616 = vrot.lane.b32.xlu1 %v1612_v35, %s7778_s21  ;;  %v1657_v2 = vmul.f32 %v5186_v58, %v1656_v53 }
 0x1ad   : > { %1603 = vrot.lane.b32.xlu0 %v1598_v0, %s7778_s21  ;;  %v5274_v15 = vpop.permute.xlu2 %1318 }
 0x1ae   : > { %7858 = vst [vmem:[#allocation83_spill] sm:$0xff] %v5274_v15  ;;  %v5276_v38 = vpop.permute.xlu1 %1243  ;;  %v1658_v15 = vmul.f32 %v5202_v56, %v1656_v53 }
 0x1af   : > { %7859 = vst [vmem:[#allocation84_spill] sm:$0xff] %v5276_v38  ;;  %v5278_v23 = vpop.permute.xlu0 %1230 }
 0x1b0   : > { %7860 = vst [vmem:[#allocation85_spill] sm:$0xff] %v5278_v23 }
 0x1b3   : > { %1646 = vrot.lane.b32.xlu2 %v1642_v62, %s7771_s23  ;;  %v1643_v62 = vmul.f32 %v5202_v56, %v1641_v25 }
 0x1b4   : > { %1633 = vrot.lane.b32.xlu1 %v1628_v20, %s7771_s23  ;;  %v1686_v20 = vstv %s5285_s11  ;;  %s4171_s11 = sld [smem:[#allocation6 + $0xa1]] }
 0x1b5   : > { %1631 = vrot.lane.b32.xlu0 %v1627_v3, %s7771_s23  ;;  %v5288_v35 = vpop.permute.xlu2 %1335  ;;  %v1687_v38 = vmul.f32 %v5186_v58, %v1686_v20 }
 0x1b6   : > { %7861 = vst [vmem:[#allocation86_spill] sm:$0xff] %v5288_v35  ;;  %v5290_v0 = vpop.permute.xlu1 %1260  ;;  %v1671_v35 = vstv %s4144_s12  ;;  %s5453_s12 = sld [smem:[#allocation6 + $0xe9]] }
 0x1b7   : > { %7862 = vst [vmem:[#allocation87_spill] sm:$0xff] %v5290_v0  ;;  %v5292_v23 = vpop.permute.xlu0 %1258  ;;  %v1673_v53 = vmul.f32 %v5202_v56, %v1671_v35  ;;  %v1672_v25 = vmul.f32 %v5186_v58, %v1671_v35 }
 0x1b8   : > { %7863 = vst [vmem:[#allocation88_spill] sm:$0xff] %v5292_v23 }
 0x1bb   : > { %1663 = vrot.lane.b32.xlu2 %v1658_v15, %s7771_s23  ;;  %v1701_v15 = vstv %s4146_s18  ;;  %s4172_s18 = sld [smem:[#allocation6 + $0xc5]] }
 0x1bc   : > { %1661 = vrot.lane.b32.xlu1 %v1657_v2, %s7771_s23  ;;  %v1702_v35 = vmul.f32 %v5186_v58, %v1701_v15 }
 0x1bd   : > { %1648 = vrot.lane.b32.xlu0 %v1643_v62, %s7771_s23  ;;  %v5301_v3 = vpop.permute.xlu2 %1363 }
 0x1be   : > { %7864 = vst [vmem:[#allocation89_spill] sm:$0xff] %v5301_v3  ;;  %v5303_v0 = vpop.permute.xlu1 %1288  ;;  %v1819_v3 = vstv %s4160_s30  ;;  %s5513_s30 = sld [smem:[#allocation6 + $0xa3]] }
 0x1bf   : > { %7865 = vst [vmem:[#allocation90_spill] sm:$0xff] %v5303_v0  ;;  %v5305_v23 = vpop.permute.xlu0 %1275  ;;  %v1703_v0 = vmul.f32 %v5202_v56, %v1701_v15 }
 0x1c0   : > { %7866 = vst [vmem:[#allocation91_spill] sm:$0xff] %v5305_v23 }
 0x1c3   : > { %1691 = vrot.lane.b32.xlu2 %v1687_v38, %s7771_s23  ;;  %v1688_v38 = vmul.f32 %v5202_v56, %v1686_v20 }
 0x1c4   : > { %1678 = vrot.lane.b32.xlu1 %v1673_v53, %s7771_s23  ;;  %v1731_v53 = vstv %s5312_s22  ;;  %s4174_s22 = sld [smem:[#allocation6 + $0x10d]] }
 0x1c5   : > { %1676 = vrot.lane.b32.xlu0 %v1672_v25, %s7771_s23  ;;  %v5315_v2 = vpop.permute.xlu2 %1380  ;;  %v1732_v15 = vmul.f32 %v5186_v58, %v1731_v53 }
 0x1c6   : > { %7867 = vst [vmem:[#allocation92_spill] sm:$0xff] %v5315_v2  ;;  %v5317_v62 = vpop.permute.xlu1 %1305 }
 0x1c7   : > { %7868 = vst [vmem:[#allocation93_spill] sm:$0xff] %v5317_v62  ;;  %v5319_v23 = vpop.permute.xlu0 %1303  ;;  %v1716_v62 = vstv %s4147_s26  ;;  %s5480_s26 = sld [smem:[#allocation6 + $0x37]] }
 0x1c8   : > { %7869 = vst [vmem:[#allocation94_spill] sm:$0xff] %v5319_v23  ;;  %v1718_v20 = vmul.f32 %v5202_v56, %v1716_v62 }
 0x1cb   : > { %1708 = vrot.lane.b32.xlu2 %v1703_v0, %s7771_s23  ;;  %v1717_v0 = vmul.f32 %v5186_v58, %v1716_v62 }
 0x1cc   : > { %1706 = vrot.lane.b32.xlu1 %v1702_v35, %s7771_s23  ;;  %v5340_v35 = vld [vmem:[%s4687_s8 + $0x1a] sm:$0x3f] }
 0x1cd   : > { %1693 = vrot.lane.b32.xlu0 %v1688_v38, %s7771_s23  ;;  %v5328_v25 = vpop.permute.xlu2 %1408  ;;  %v1804_v38 = vstv %s4159_s27  ;;  %s4185_s27 = sld [smem:[#allocation6 + $0x13]] }
 0x1ce   : > { %7870 = vst [vmem:[#allocation95_spill] sm:$0xff] %v5328_v25  ;;  %v5330_v23 = vpop.permute.xlu1 %1333  ;;  %v1806_v62 = vmul.f32 %v5340_v35, %v1804_v38 }
 0x1cf   : > { %7871 = vst [vmem:[#allocation96_spill] sm:$0xff] %v5330_v23  ;;  %v5332_v2 = vpop.permute.xlu0 %1320 }
 0x1d0   : > { %7872 = vst [vmem:[#allocation97_spill] sm:$0xff] %v5332_v2  ;;  %v5348_v2 = vld [vmem:[%s4687_s8 + $0x12] sm:$0xff] }
 0x1d3   : > { %1736 = vrot.lane.b32.xlu2 %v1732_v15, %s7771_s23  ;;  %v1805_v15 = vmul.f32 %v5348_v2, %v1804_v38  ;;  %v1821_v38 = vmul.f32 %v5340_v35, %v1819_v3 }
 0x1d4   : > { %1723 = vrot.lane.b32.xlu1 %v1718_v20, %s7771_s23  ;;  %v1733_v20 = vmul.f32 %v5202_v56, %v1731_v53  ;;  %v1820_v56 = vmul.f32 %v5348_v2, %v1819_v3  ;;  %v1849_v53 = vstv %s4162_s4  ;;  %s4188_s4 = sld [smem:[#allocation6 + $0x7f]] }
 0x1d5   : > { %1721 = vrot.lane.b32.xlu0 %v1717_v0, %s7771_s23  ;;  %v5345_v25 = vpop.permute.xlu2 %1425  ;;  %v1834_v0 = vstv %s5342_s28  ;;  %v1850_v3 = vmul.f32 %v5348_v2, %v1849_v53  ;;  %s4187_s28 = sld [smem:[#allocation6 + $0x5b]] }
 0x1d6   : > { %7873 = vst [vmem:[#allocation98_spill] sm:$0xff] %v5345_v25  ;;  %v5350_v23 = vpop.permute.xlu1 %1350  ;;  %v1835_v46 = vmul.f32 %v5348_v2, %v1834_v0 }
 0x1d7   : > { %7874 = vst [vmem:[#allocation99_spill] sm:$0xff] %v5350_v23  ;;  %v5352_v58 = vpop.permute.xlu0 %1348 }
 0x1d8   : > { %7875 = vst [vmem:[#allocation100_spill] sm:$0xff] %v5352_v58 }
 0x1db   : > { %1811 = vrot.lane.b32.xlu2 %v1806_v62, %s7778_s21 }
 0x1dc   : > { %1809 = vrot.lane.b32.xlu1 %v1805_v15, %s7778_s21 }
 0x1dd   : > { %1738 = vrot.lane.b32.xlu0 %v1733_v20, %s7771_s23  ;;  %v5361_v25 = vpop.permute.xlu2 %1511 }
 0x1de   : > { %7876 = vst [vmem:[#allocation101_spill] sm:$0xff] %v5361_v25  ;;  %v5363_v23 = vpop.permute.xlu1 %1378  ;;  %v1851_v25 = vmul.f32 %v5340_v35, %v1849_v53 }
 0x1df   : > { %7877 = vst [vmem:[#allocation102_spill] sm:$0xff] %v5363_v23  ;;  %v5365_v58 = vpop.permute.xlu0 %1365 }
 0x1e0   : > { %7878 = vst [vmem:[#allocation103_spill] sm:$0xff] %v5365_v58 }
 0x1e3   : > { %1839 = vrot.lane.b32.xlu2 %v1835_v46, %s7778_s21  ;;  %v1836_v46 = vmul.f32 %v5340_v35, %v1834_v0 }
 0x1e4   : > { %1826 = vrot.lane.b32.xlu1 %v1821_v38, %s7778_s21  ;;  %v1879_v38 = vstv %s5372_s7  ;;  %s4190_s7 = sld [smem:[#allocation6 + $0xc7]] }
 0x1e5   : > { %1824 = vrot.lane.b32.xlu0 %v1820_v56, %s7778_s21  ;;  %v5375_v62 = vpop.permute.xlu2 %1528  ;;  %v1880_v58 = vmul.f32 %v5348_v2, %v1879_v38 }
 0x1e6   : > { %7879 = vst [vmem:[#allocation104_spill] sm:$0xff] %v5375_v62  ;;  %v5377_v15 = vpop.permute.xlu1 %1395  ;;  %v1864_v62 = vstv %s4163_s19  ;;  %s5540_s19 = sld [smem:[#allocation6 + $0x10f]] }
 0x1e7   : > { %7880 = vst [vmem:[#allocation105_spill] sm:$0xff] %v5377_v15  ;;  %v5379_v20 = vpop.permute.xlu0 %1393  ;;  %v1866_v53 = vmul.f32 %v5340_v35, %v1864_v62  ;;  %v1865_v0 = vmul.f32 %v5348_v2, %v1864_v62 }
 0x1e8   : > { %7881 = vst [vmem:[#allocation106_spill] sm:$0xff] %v5379_v20 }
 0x1eb   : > { %1856 = vrot.lane.b32.xlu2 %v1851_v25, %s7778_s21  ;;  %v1894_v25 = vstv %s4165_s25  ;;  %s4191_s25 = sld [smem:[#allocation6 + $0xeb]] }
 0x1ec   : > { %1854 = vrot.lane.b32.xlu1 %v1850_v3, %s7778_s21  ;;  %v1895_v62 = vmul.f32 %v5348_v2, %v1894_v25 }
 0x1ed   : > { %1841 = vrot.lane.b32.xlu0 %v1836_v46, %s7778_s21  ;;  %v5388_v56 = vpop.permute.xlu2 %1556 }
 0x1ee   : > { %7882 = vst [vmem:[#allocation107_spill] sm:$0xff] %v5388_v56  ;;  %v5390_v15 = vpop.permute.xlu1 %1423 }
 0x1ef   : > { %7883 = vst [vmem:[#allocation108_spill] sm:$0xff] %v5390_v15  ;;  %v5392_v20 = vpop.permute.xlu0 %1410 }
 0x1f0   : > { %7884 = vst [vmem:[#allocation109_spill] sm:$0xff] %v5392_v20  ;;  %v1896_v20 = vmul.f32 %v5340_v35, %v1894_v25 }
 0x1f3   : > { %1884 = vrot.lane.b32.xlu2 %v1880_v58, %s7778_s21  ;;  %v1881_v58 = vmul.f32 %v5340_v35, %v1879_v38 }
 0x1f4   : > { %1871 = vrot.lane.b32.xlu1 %v1866_v53, %s7778_s21  ;;  %v1924_v53 = vstv %s5399_s29  ;;  %s4193_s29 = sld [smem:[#allocation6 + $0x14]] }
 0x1f5   : > { %1869 = vrot.lane.b32.xlu0 %v1865_v0, %s7778_s21  ;;  %v5402_v3 = vpop.permute.xlu2 %1573  ;;  %v1925_v15 = vmul.f32 %v5348_v2, %v1924_v53 }
 0x1f6   : > { %7885 = vst [vmem:[#allocation110_spill] sm:$0xff] %v5402_v3  ;;  %v5404_v46 = vpop.permute.xlu1 %1440  ;;  %v1909_v3 = vstv %s4166_s20  ;;  %s5567_s20 = sld [smem:[#allocation6 + $0x5c]] }
 0x1f7   : > { %7886 = vst [vmem:[#allocation111_spill] sm:$0xff] %v5404_v46  ;;  %v5406_v56 = vpop.permute.xlu0 %1438  ;;  %v1911_v25 = vmul.f32 %v5340_v35, %v1909_v3  ;;  %v1910_v38 = vmul.f32 %v5348_v2, %v1909_v3 }
 0x1f8   : > { %7887 = vst [vmem:[#allocation112_spill] sm:$0xff] %v5406_v56 }
 0x1fb   : > { %1901 = vrot.lane.b32.xlu2 %v1896_v20, %s7778_s21  ;;  %v1939_v20 = vstv %s4168_s5  ;;  %s4194_s5 = sld [smem:[#allocation6 + $0x38]] }
 0x1fc   : > { %1899 = vrot.lane.b32.xlu1 %v1895_v62, %s7778_s21  ;;  %v1940_v3 = vmul.f32 %v5348_v2, %v1939_v20 }
 0x1fd   : > { %1886 = vrot.lane.b32.xlu0 %v1881_v58, %s7778_s21  ;;  %v5415_v0 = vpop.permute.xlu2 %1601 }
 0x1fe   : > { %7888 = vst [vmem:[#allocation113_spill] sm:$0xff] %v5415_v0  ;;  %v5417_v46 = vpop.permute.xlu1 %1526 }
 0x1ff   : > { %7889 = vst [vmem:[#allocation114_spill] sm:$0xff] %v5417_v46  ;;  %v5419_v56 = vpop.permute.xlu0 %1513  ;;  %v1941_v46 = vmul.f32 %v5340_v35, %v1939_v20 }
 0x200   : > { %7890 = vst [vmem:[#allocation115_spill] sm:$0xff] %v5419_v56 }
 0x203   : > { %1929 = vrot.lane.b32.xlu2 %v1925_v15, %s7771_s23  ;;  %v1926_v15 = vmul.f32 %v5340_v35, %v1924_v53 }
 0x204   : > { %1916 = vrot.lane.b32.xlu1 %v1911_v25, %s7778_s21  ;;  %v1969_v25 = vstv %s5426_s9  ;;  %s4196_s9 = sld [smem:[#allocation6 + $0x80]] }
 0x205   : > { %1914 = vrot.lane.b32.xlu0 %v1910_v38, %s7778_s21  ;;  %v5429_v62 = vpop.permute.xlu2 %1618  ;;  %v1970_v0 = vmul.f32 %v5348_v2, %v1969_v25 }
 0x206   : > { %7891 = vst [vmem:[#allocation116_spill] sm:$0xff] %v5429_v62  ;;  %v5431_v58 = vpop.permute.xlu1 %1543  ;;  %v1954_v62 = vstv %s4169_s10  ;;  %s5594_s10 = sld [smem:[#allocation6 + $0xc8]] }
 0x207   : > { %7892 = vst [vmem:[#allocation117_spill] sm:$0xff] %v5431_v58  ;;  %v5433_v56 = vpop.permute.xlu0 %1541  ;;  %v1956_v20 = vmul.f32 %v5340_v35, %v1954_v62  ;;  %v1955_v53 = vmul.f32 %v5348_v2, %v1954_v62 }
 0x208   : > { %7893 = vst [vmem:[#allocation118_spill] sm:$0xff] %v5433_v56 }
 0x20b   : > { %1946 = vrot.lane.b32.xlu2 %v1941_v46, %s7771_s23  ;;  %v1984_v46 = vstv %s4171_s11  ;;  %s4197_s11 = sld [smem:[#allocation6 + $0xa4]] }
 0x20c   : > { %1944 = vrot.lane.b32.xlu1 %v1940_v3, %s7771_s23  ;;  %v1985_v62 = vmul.f32 %v5348_v2, %v1984_v46 }
 0x20d   : > { %1931 = vrot.lane.b32.xlu0 %v1926_v15, %s7771_s23  ;;  %v5442_v38 = vpop.permute.xlu2 %1646 }
 0x20e   : > { %7894 = vst [vmem:[#allocation119_spill] sm:$0xff] %v5442_v38  ;;  %v5444_v58 = vpop.permute.xlu1 %1571 }
 0x20f   : > { %7895 = vst [vmem:[#allocation120_spill] sm:$0xff] %v5444_v58  ;;  %v5446_v56 = vpop.permute.xlu0 %1558  ;;  %v1986_v58 = vmul.f32 %v5340_v35, %v1984_v46 }
 0x210   : > { %7896 = vst [vmem:[#allocation121_spill] sm:$0xff] %v5446_v56 }
 0x213   : > { %1974 = vrot.lane.b32.xlu2 %v1970_v0, %s7771_s23  ;;  %v1971_v0 = vmul.f32 %v5340_v35, %v1969_v25  ;;  %v2029_v25 = vstv %s4174_s22  ;;  %s4200_s22 = sld [smem:[#allocation6 + $0x110]] }
 0x214   : > { %1961 = vrot.lane.b32.xlu1 %v1956_v20, %s7771_s23  ;;  %v2014_v20 = vstv %s5453_s12  ;;  %s4199_s12 = sld [smem:[#allocation6 + $0xec]] }
 0x215   : > { %1959 = vrot.lane.b32.xlu0 %v1955_v53, %s7771_s23  ;;  %v5456_v3 = vpop.permute.xlu2 %1663  ;;  %v2015_v38 = vmul.f32 %v5348_v2, %v2014_v20 }
 0x216   : > { %7897 = vst [vmem:[#allocation122_spill] sm:$0xff] %v5456_v3  ;;  %v5458_v15 = vpop.permute.xlu1 %1588  ;;  %v1999_v3 = vstv %s4172_s18  ;;  %s5621_s18 = sld [smem:[#allocation6 + $0x16]] }
 0x217   : > { %7898 = vst [vmem:[#allocation123_spill] sm:$0xff] %v5458_v15  ;;  %v5460_v56 = vpop.permute.xlu0 %1586  ;;  %v2001_v46 = vmul.f32 %v5340_v35, %v1999_v3 }
 0x218   : > { %7899 = vst [vmem:[#allocation124_spill] sm:$0xff] %v5460_v56 }
 0x21b   : > { %1991 = vrot.lane.b32.xlu2 %v1986_v58, %s7771_s23  ;;  %v2000_v58 = vmul.f32 %v5348_v2, %v1999_v3  ;;  %v2031_v3 = vmul.f32 %v5340_v35, %v2029_v25 }
 0x21c   : > { %1989 = vrot.lane.b32.xlu1 %v1985_v62, %s7771_s23 }
 0x21d   : > { %1976 = vrot.lane.b32.xlu0 %v1971_v0, %s7771_s23  ;;  %v5469_v53 = vpop.permute.xlu2 %1691 }
 0x21e   : > { %7900 = vst [vmem:[#allocation125_spill] sm:$0xff] %v5469_v53  ;;  %v5471_v15 = vpop.permute.xlu1 %1616  ;;  %v5495_v53 = vld [vmem:[%s4687_s8 + $0x20] sm:$0xff] }
 0x21f   : > { %7901 = vst [vmem:[#allocation126_spill] sm:$0xff] %v5471_v15  ;;  %v5473_v56 = vpop.permute.xlu0 %1603 }
 0x220   : > { %7902 = vst [vmem:[#allocation127_spill] sm:$0xff] %v5473_v56 }
 0x223   : > { %2019 = vrot.lane.b32.xlu2 %v2015_v38, %s7771_s23  ;;  %v2030_v38 = vmul.f32 %v5348_v2, %v2029_v25 }
 0x224   : > { %2006 = vrot.lane.b32.xlu1 %v2001_v46, %s7771_s23  ;;  %v2016_v46 = vmul.f32 %v5340_v35, %v2014_v20 }
 0x225   : > { %2004 = vrot.lane.b32.xlu0 %v2000_v58, %s7771_s23  ;;  %v5483_v62 = vpop.permute.xlu2 %1708  ;;  %v2118_v58 = vstv %s5480_s26  ;;  %s4212_s26 = sld [smem:[#allocation6 + $0x3a]] }
 0x226   : > { %7903 = vst [vmem:[#allocation128_spill] sm:$0xff] %v5483_v62  ;;  %v5485_v0 = vpop.permute.xlu1 %1633  ;;  %v2119_v35 = vmul.f32 %v5495_v53, %v2118_v58 }
 0x227   : > { %7904 = vst [vmem:[#allocation129_spill] sm:$0xff] %v5485_v0  ;;  %v5487_v56 = vpop.permute.xlu0 %1631  ;;  %v5502_v0 = vld [vmem:[%s4687_s8 + $0x28] sm:$0x3f] }
 0x228   : > { %7905 = vst [vmem:[#allocation130_spill] sm:$0xff] %v5487_v56  ;;  %v2103_v56 = vstv %s4185_s27  ;;  %s5654_s27 = sld [smem:[#allocation6 + $0x82]] }
 0x229   : > { %v2105_v20 = vmul.f32 %v5502_v0, %v2103_v56  ;;  %v2104_v25 = vmul.f32 %v5495_v53, %v2103_v56 }
 0x22b   : > { %2036 = vrot.lane.b32.xlu2 %v2031_v3, %s7771_s23  ;;  %v2133_v3 = vstv %s4187_s28  ;;  %s4213_s28 = sld [smem:[#allocation6 + $0x5e]] }
 0x22c   : > { %2034 = vrot.lane.b32.xlu1 %v2030_v38, %s7771_s23  ;;  %v2134_v56 = vmul.f32 %v5495_v53, %v2133_v3 }
 0x22d   : > { %2021 = vrot.lane.b32.xlu0 %v2016_v46, %s7771_s23  ;;  %v5499_v62 = vpop.permute.xlu2 %1736 }
 0x22e   : > { %7906 = vst [vmem:[#allocation131_spill] sm:$0xff] %v5499_v62  ;;  %v5504_v15 = vpop.permute.xlu1 %1661 }
 0x22f   : > { %7907 = vst [vmem:[#allocation132_spill] sm:$0xff] %v5504_v15  ;;  %v5506_v2 = vpop.permute.xlu0 %1648  ;;  %v2135_v15 = vmul.f32 %v5502_v0, %v2133_v3 }
 0x230   : > { %7908 = vst [vmem:[#allocation133_spill] sm:$0xff] %v5506_v2 }
 0x233   : > { %2123 = vrot.lane.b32.xlu2 %v2119_v35, %s7778_s21  ;;  %v2120_v35 = vmul.f32 %v5502_v0, %v2118_v58 }
 0x234   : > { %2110 = vrot.lane.b32.xlu1 %v2105_v20, %s7778_s21  ;;  %v2163_v20 = vstv %s5513_s30  ;;  %s4215_s30 = sld [smem:[#allocation6 + $0xa6]] }
 0x235   : > { %2108 = vrot.lane.b32.xlu0 %v2104_v25, %s7778_s21  ;;  %v5516_v38 = vpop.permute.xlu2 %1811  ;;  %v2164_v62 = vmul.f32 %v5495_v53, %v2163_v20 }
 0x236   : > { %7909 = vst [vmem:[#allocation134_spill] sm:$0xff] %v5516_v38  ;;  %v5518_v46 = vpop.permute.xlu1 %1678  ;;  %v2148_v38 = vstv %s4188_s4  ;;  %s5681_s4 = sld [smem:[#allocation6 + $0xee]] }
 0x237   : > { %7910 = vst [vmem:[#allocation135_spill] sm:$0xff] %v5518_v46  ;;  %v5520_v2 = vpop.permute.xlu0 %1676  ;;  %v2150_v3 = vmul.f32 %v5502_v0, %v2148_v38  ;;  %v2149_v58 = vmul.f32 %v5495_v53, %v2148_v38 }
 0x238   : > { %7911 = vst [vmem:[#allocation136_spill] sm:$0xff] %v5520_v2 }
 0x23b   : > { %2140 = vrot.lane.b32.xlu2 %v2135_v15, %s7778_s21  ;;  %v2178_v15 = vstv %s4190_s7  ;;  %s4216_s7 = sld [smem:[#allocation6 + $0xca]] }
 0x23c   : > { %2138 = vrot.lane.b32.xlu1 %v2134_v56, %s7778_s21  ;;  %v2179_v38 = vmul.f32 %v5495_v53, %v2178_v15 }
 0x23d   : > { %2125 = vrot.lane.b32.xlu0 %v2120_v35, %s7778_s21  ;;  %v5529_v25 = vpop.permute.xlu2 %1839 }
 0x23e   : > { %7912 = vst [vmem:[#allocation137_spill] sm:$0xff] %v5529_v25  ;;  %v5531_v46 = vpop.permute.xlu1 %1706 }
 0x23f   : > { %7913 = vst [vmem:[#allocation138_spill] sm:$0xff] %v5531_v46  ;;  %v5533_v2 = vpop.permute.xlu0 %1693  ;;  %v2180_v46 = vmul.f32 %v5502_v0, %v2178_v15 }
 0x240   : > { %7914 = vst [vmem:[#allocation139_spill] sm:$0xff] %v5533_v2 }
 0x243   : > { %2168 = vrot.lane.b32.xlu2 %v2164_v62, %s7778_s21  ;;  %v2165_v62 = vmul.f32 %v5502_v0, %v2163_v20 }
 0x244   : > { %2155 = vrot.lane.b32.xlu1 %v2150_v3, %s7778_s21  ;;  %v2208_v3 = vstv %s5540_s19  ;;  %s4218_s19 = sld [smem:[#allocation6 + $0x112]] }
 0x245   : > { %2153 = vrot.lane.b32.xlu0 %v2149_v58, %s7778_s21  ;;  %v5543_v56 = vpop.permute.xlu2 %1856  ;;  %v2209_v25 = vmul.f32 %v5495_v53, %v2208_v3 }
 0x246   : > { %7915 = vst [vmem:[#allocation140_spill] sm:$0xff] %v5543_v56  ;;  %v5545_v35 = vpop.permute.xlu1 %1723  ;;  %v2193_v56 = vstv %s4191_s25  ;;  %s5708_s25 = sld [smem:[#allocation6 + $0x3b]] }
 0x247   : > { %7916 = vst [vmem:[#allocation141_spill] sm:$0xff] %v5545_v35  ;;  %v5547_v2 = vpop.permute.xlu0 %1721  ;;  %v2195_v15 = vmul.f32 %v5502_v0, %v2193_v56  ;;  %v2194_v20 = vmul.f32 %v5495_v53, %v2193_v56 }
 0x248   : > { %7917 = vst [vmem:[#allocation142_spill] sm:$0xff] %v5547_v2 }
 0x24b   : > { %2185 = vrot.lane.b32.xlu2 %v2180_v46, %s7778_s21  ;;  %v2223_v46 = vstv %s4193_s29  ;;  %s4219_s29 = sld [smem:[#allocation6 + $0x17]] }
 0x24c   : > { %2183 = vrot.lane.b32.xlu1 %v2179_v38, %s7778_s21  ;;  %v2224_v56 = vmul.f32 %v5495_v53, %v2223_v46 }
 0x24d   : > { %2170 = vrot.lane.b32.xlu0 %v2165_v62, %s7778_s21  ;;  %v5556_v58 = vpop.permute.xlu2 %1884 }
 0x24e   : > { %7918 = vst [vmem:[#allocation143_spill] sm:$0xff] %v5556_v58  ;;  %v5558_v35 = vpop.permute.xlu1 %1809 }
 0x24f   : > { %7919 = vst [vmem:[#allocation144_spill] sm:$0xff] %v5558_v35  ;;  %v5560_v2 = vpop.permute.xlu0 %1738 }
 0x250   : > { %7920 = vst [vmem:[#allocation145_spill] sm:$0xff] %v5560_v2  ;;  %v2225_v2 = vmul.f32 %v5502_v0, %v2223_v46 }
 0x253   : > { %2213 = vrot.lane.b32.xlu2 %v2209_v25, %s7778_s21  ;;  %v2210_v25 = vmul.f32 %v5502_v0, %v2208_v3 }
 0x254   : > { %2200 = vrot.lane.b32.xlu1 %v2195_v15, %s7778_s21  ;;  %v2253_v15 = vstv %s5567_s20  ;;  %s5718_s20 = sld [smem:[#allocation6 + $0x48]] }
 0x255   : > { %2198 = vrot.lane.b32.xlu0 %v2194_v20, %s7778_s21  ;;  %v5570_v38 = vpop.permute.xlu2 %1901  ;;  %v2254_v58 = vmul.f32 %v5495_v53, %v2253_v15 }
 0x256   : > { %7921 = vst [vmem:[#allocation146_spill] sm:$0xff] %v5570_v38  ;;  %v5572_v62 = vpop.permute.xlu1 %1826  ;;  %v2238_v38 = vstv %s4194_s5  ;;  %s5721_s5 = sld [smem:[#allocation6 + $0x90]] }
 0x257   : > { %7922 = vst [vmem:[#allocation147_spill] sm:$0xff] %v5572_v62  ;;  %v5574_v35 = vpop.permute.xlu0 %1824  ;;  %v2240_v46 = vmul.f32 %v5502_v0, %v2238_v38  ;;  %v2239_v3 = vmul.f32 %v5495_v53, %v2238_v38 }
 0x258   : > { %7923 = vst [vmem:[#allocation148_spill] sm:$0xff] %v5574_v35 }
 0x25b   : > { %2230 = vrot.lane.b32.xlu2 %v2225_v2, %s7771_s23  ;;  %v2268_v2 = vstv %s4196_s9  ;;  %s5724_s9 = sld [smem:[#allocation6 + $0xb4]] }
 0x25c   : > { %2228 = vrot.lane.b32.xlu1 %v2224_v56, %s7771_s23  ;;  %v2269_v38 = vmul.f32 %v5495_v53, %v2268_v2 }
 0x25d   : > { %2215 = vrot.lane.b32.xlu0 %v2210_v25, %s7778_s21  ;;  %v5583_v20 = vpop.permute.xlu2 %1929 }
 0x25e   : > { %7924 = vst [vmem:[#allocation149_spill] sm:$0xff] %v5583_v20  ;;  %v5585_v62 = vpop.permute.xlu1 %1854 }
 0x25f   : > { %7925 = vst [vmem:[#allocation150_spill] sm:$0xff] %v5585_v62  ;;  %v5587_v35 = vpop.permute.xlu0 %1841  ;;  %v2270_v62 = vmul.f32 %v5502_v0, %v2268_v2 }
 0x260   : > { %7926 = vst [vmem:[#allocation151_spill] sm:$0xff] %v5587_v35 }
 0x263   : > { %2258 = vrot.lane.b32.xlu2 %v2254_v58, %s7771_s23  ;;  %v2255_v58 = vmul.f32 %v5502_v0, %v2253_v15  ;;  %v2313_v15 = vstv %s4199_s12  ;;  %s5733_s12 = sld [smem:[#allocation6]] }
 0x264   : > { %2245 = vrot.lane.b32.xlu1 %v2240_v46, %s7771_s23  ;;  %v2298_v46 = vstv %s5594_s10  ;;  %s5726_s10 = sld [smem:[#allocation6 + $0x24]] }
 0x265   : > { %2243 = vrot.lane.b32.xlu0 %v2239_v3, %s7771_s23  ;;  %v5597_v56 = vpop.permute.xlu2 %1946  ;;  %v2299_v20 = vmul.f32 %v5495_v53, %v2298_v46 }
 0x266   : > { %7927 = vst [vmem:[#allocation152_spill] sm:$0xff] %v5597_v56  ;;  %v5599_v25 = vpop.permute.xlu1 %1871  ;;  %v2283_v56 = vstv %s4197_s11  ;;  %s5731_s11 = sld [smem:[#allocation6 + $0x5f]] }
 0x267   : > { %7928 = vst [vmem:[#allocation153_spill] sm:$0xff] %v5599_v25  ;;  %v5601_v35 = vpop.permute.xlu0 %1869  ;;  %v2285_v2 = vmul.f32 %v5502_v0, %v2283_v56 }
 0x268   : > { %7929 = vst [vmem:[#allocation154_spill] sm:$0xff] %v5601_v35 }
 0x26b   : > { %2275 = vrot.lane.b32.xlu2 %v2270_v62, %s7771_s23  ;;  %v2284_v62 = vmul.f32 %v5495_v53, %v2283_v56  ;;  %v2314_v56 = vmul.f32 %v5495_v53, %v2313_v15 }
 0x26c   : > { %2273 = vrot.lane.b32.xlu1 %v2269_v38, %s7771_s23  ;;  %v2551_v23 = vstv %s5731_s11  ;;  %s5872_s11 = sld [smem:[#allocation6 + $0xef]] }
 0x26d   : > { %2260 = vrot.lane.b32.xlu0 %v2255_v58, %s7771_s23  ;;  %v5610_v3 = vpop.permute.xlu2 %1974 }
 0x26e   : > { %7930 = vst [vmem:[#allocation155_spill] sm:$0xff] %v5610_v3  ;;  %v5612_v25 = vpop.permute.xlu1 %1899  ;;  %v2328_v3 = vstv %s4200_s22  ;;  %s5742_s22 = sld [smem:[#allocation6 + $0x6c]] }
 0x26f   : > { %7931 = vst [vmem:[#allocation156_spill] sm:$0xff] %v5612_v25  ;;  %v5614_v35 = vpop.permute.xlu0 %1886  ;;  %v2315_v25 = vmul.f32 %v5502_v0, %v2313_v15  ;;  %v2330_v15 = vmul.f32 %v5502_v0, %v2328_v3 }
 0x270   : > { %7932 = vst [vmem:[#allocation157_spill] sm:$0xff] %v5614_v35 }
 0x273   : > { %2303 = vrot.lane.b32.xlu2 %v2299_v20, %s7771_s23  ;;  %v2300_v20 = vmul.f32 %v5502_v0, %v2298_v46 }
 0x274   : > { %2290 = vrot.lane.b32.xlu1 %v2285_v2, %s7771_s23  ;;  %v5636_v2 = vld [vmem:[%s4687_s8 + $0x21] sm:$0xff]  ;;  %v274_v30 = vstv %s5742_s22  ;;  %s5898_s22 = sld [smem:[#allocation6 + $0x96]] }
 0x275   : > { %2288 = vrot.lane.b32.xlu0 %v2284_v62, %s7771_s23  ;;  %v5624_v38 = vpop.permute.xlu2 %1991  ;;  %v2401_v62 = vstv %s5621_s18  ;;  %s5738_s18 = sld [smem:[#allocation6 + $0xfc]]  ;;  %v276_v40 = vmul.f32 %v4437_v51, %v274_v30 }
 0x276   : > { %7933 = vst [vmem:[#allocation158_spill] sm:$0xff] %v5624_v38  ;;  %v5626_v58 = vpop.permute.xlu1 %1916  ;;  %v2402_v46 = vmul.f32 %v5636_v2, %v2401_v62 }
 0x277   : > { %7934 = vst [vmem:[#allocation159_spill] sm:$0xff] %v5626_v58  ;;  %v5628_v35 = vpop.permute.xlu0 %1914 }
 0x278   : > { %7935 = vst [vmem:[#allocation160_spill] sm:$0xff] %v5628_v35 }
 0x27b   : > { %2320 = vrot.lane.b32.xlu2 %v2315_v25, %s7771_s23  ;;  %v2329_v25 = vmul.f32 %v5495_v53, %v2328_v3  ;;  %v306_v49 = vstv %s5738_s18  ;;  %s5885_s18 = sld [smem:[#allocation6 + $0x4e]] }
 0x27c   : > { %2318 = vrot.lane.b32.xlu1 %v2314_v56, %s7771_s23  ;;  %v5652_v56 = vld [vmem:[%s4687_s8 + $0x29] sm:$0x3f] }
 0x27d   : > { %2305 = vrot.lane.b32.xlu0 %v2300_v20, %s7771_s23  ;;  %v5640_v38 = vpop.permute.xlu2 %2019  ;;  %v2416_v20 = vstv %s4212_s26  ;;  %s5747_s26 = sld [smem:[#allocation6 + $0x3]] }
 0x27e   : > { %7936 = vst [vmem:[#allocation161_spill] sm:$0xff] %v5640_v38  ;;  %v5642_v58 = vpop.permute.xlu1 %1944  ;;  %v2418_v53 = vmul.f32 %v5652_v56, %v2416_v20  ;;  %v2417_v3 = vmul.f32 %v5636_v2, %v2416_v20 }
 0x27f   : > { %7937 = vst [vmem:[#allocation162_spill] sm:$0xff] %v5642_v58  ;;  %v5644_v35 = vpop.permute.xlu0 %1931 }
 0x280   : > { %7938 = vst [vmem:[#allocation163_spill] sm:$0xff] %v5644_v35 }
 0x283   : > { %2406 = vrot.lane.b32.xlu2 %v2402_v46, %s7778_s21  ;;  %v2403_v46 = vmul.f32 %v5652_v56, %v2401_v62  ;;  %v555_v11 = vstv %s5747_s26  ;;  %s5908_s26 = sld [smem:[#allocation6 + $0x6]] }
 0x284   : > { %2335 = vrot.lane.b32.xlu1 %v2330_v15, %s7771_s23  ;;  %v2446_v15 = vstv %s5654_s27  ;;  %s5751_s27 = sld [smem:[#allocation6 + $0x4b]] }
 0x285   : > { %2333 = vrot.lane.b32.xlu0 %v2329_v25, %s7771_s23  ;;  %v5657_v38 = vpop.permute.xlu2 %2036  ;;  %v2447_v35 = vmul.f32 %v5636_v2, %v2446_v15 }
 0x286   : > { %7939 = vst [vmem:[#allocation164_spill] sm:$0xff] %v5657_v38  ;;  %v5659_v58 = vpop.permute.xlu1 %1961  ;;  %v2431_v38 = vstv %s4213_s28  ;;  %s5754_s28 = sld [smem:[#allocation6 + $0xd8]] }
 0x287   : > { %7940 = vst [vmem:[#allocation165_spill] sm:$0xff] %v5659_v58  ;;  %v5661_v0 = vpop.permute.xlu0 %1959  ;;  %v2433_v20 = vmul.f32 %v5652_v56, %v2431_v38  ;;  %v2432_v62 = vmul.f32 %v5636_v2, %v2431_v38 }
 0x288   : > { %7941 = vst [vmem:[#allocation166_spill] sm:$0xff] %v5661_v0 }
 0x28a   : > { %v569_v60 = vstv %s5751_s27  ;;  %s5914_s27 = sld [smem:[#allocation6 + $0xba]] }
 0x28b   : > { %2423 = vrot.lane.b32.xlu2 %v2418_v53, %s7778_s21  ;;  %v2461_v53 = vstv %s4215_s30  ;;  %s5757_s30 = sld [smem:[#allocation6 + $0x6f]] }
 0x28c   : > { %2421 = vrot.lane.b32.xlu1 %v2417_v3, %s7778_s21  ;;  %v2462_v38 = vmul.f32 %v5636_v2, %v2461_v53 }
 0x28d   : > { %2408 = vrot.lane.b32.xlu0 %v2403_v46, %s7778_s21  ;;  %v5670_v25 = vpop.permute.xlu2 %2123 }
 0x28e   : > { %7942 = vst [vmem:[#allocation167_spill] sm:$0xff] %v5670_v25  ;;  %v5672_v58 = vpop.permute.xlu1 %1989  ;;  %v2463_v25 = vmul.f32 %v5652_v56, %v2461_v53 }
 0x28f   : > { %7943 = vst [vmem:[#allocation168_spill] sm:$0xff] %v5672_v58  ;;  %v5674_v0 = vpop.permute.xlu0 %1976 }
 0x290   : > { %7944 = vst [vmem:[#allocation169_spill] sm:$0xff] %v5674_v0 }
 0x291   : > { %v576_v45 = vstv %s5757_s30  ;;  %s5936_s30 = sld [smem:[#allocation6 + $0x102]] }
 0x293   : > { %2451 = vrot.lane.b32.xlu2 %v2447_v35, %s7778_s21  ;;  %v2448_v35 = vmul.f32 %v5652_v56, %v2446_v15 }
 0x294   : > { %2438 = vrot.lane.b32.xlu1 %v2433_v20, %s7778_s21  ;;  %v2491_v20 = vstv %s5681_s4  ;;  %s5765_s4 = sld [smem:[#allocation6 + $0xa7]] }
 0x295   : > { %2436 = vrot.lane.b32.xlu0 %v2432_v62, %s7778_s21  ;;  %v5684_v3 = vpop.permute.xlu2 %2140  ;;  %v2492_v0 = vmul.f32 %v5636_v2, %v2491_v20 }
 0x296   : > { %7945 = vst [vmem:[#allocation170_spill] sm:$0xff] %v5684_v3  ;;  %v5686_v46 = vpop.permute.xlu1 %2006  ;;  %v2476_v3 = vstv %s4216_s7  ;;  %s5771_s7 = sld [smem:[#allocation6 + $0x83]] }
 0x297   : > { %7946 = vst [vmem:[#allocation171_spill] sm:$0xff] %v5686_v46  ;;  %v5688_v58 = vpop.permute.xlu0 %2004  ;;  %v2478_v53 = vmul.f32 %v5652_v56, %v2476_v3  ;;  %v2477_v15 = vmul.f32 %v5636_v2, %v2476_v3  ;;  %v2493_v3 = vmul.f32 %v5652_v56, %v2491_v20  ;;  %v2521_v20 = vstv %s4219_s29  ;;  %s5787_s29 = sld [smem:[#allocation6 + $0xdb]] }
 0x298   : > { %7947 = vst [vmem:[#allocation172_spill] sm:$0xff] %v5688_v58 }
 0x29b   : > { %2468 = vrot.lane.b32.xlu2 %v2463_v25, %s7778_s21  ;;  %v2506_v25 = vstv %s4218_s19  ;;  %s5775_s19 = sld [smem:[#allocation6 + $0x27]] }
 0x29c   : > { %2466 = vrot.lane.b32.xlu1 %v2462_v38, %s7778_s21 }
 0x29d   : > { %2453 = vrot.lane.b32.xlu0 %v2448_v35, %s7778_s21  ;;  %v5697_v62 = vpop.permute.xlu2 %2168 }
 0x29e   : > { %7948 = vst [vmem:[#allocation173_spill] sm:$0xff] %v5697_v62  ;;  %v5699_v46 = vpop.permute.xlu1 %2034 }
 0x29f   : > { %7949 = vst [vmem:[#allocation174_spill] sm:$0xff] %v5699_v46  ;;  %v5701_v58 = vpop.permute.xlu0 %2021  ;;  %v258_v46 = vstv %s5726_s10  ;;  %s5862_s10 = sld [smem:[#allocation6 + $0x113]] }
 0x2a0   : > { %7950 = vst [vmem:[#allocation175_spill] sm:$0xff] %v5701_v58  ;;  %v2508_v58 = vmul.f32 %v5652_v56, %v2506_v25  ;;  %v260_v57 = vmul.f32 %v4437_v51, %v258_v46 }
 0x2a3   : > { %2496 = vrot.lane.b32.xlu2 %v2492_v0, %s7778_s21  ;;  %v2507_v0 = vmul.f32 %v5636_v2, %v2506_v25 }
 0x2a4   : > { %2483 = vrot.lane.b32.xlu1 %v2478_v53, %s7778_s21  ;;  %v2536_v53 = vstv %s5708_s25  ;;  %s5780_s25 = sld [smem:[#allocation6 + $0xb7]] }
 0x2a5   : > { %2481 = vrot.lane.b32.xlu0 %v2477_v15, %s7778_s21  ;;  %v5711_v38 = vpop.permute.xlu2 %2185  ;;  %v2538_v55 = vmul.f32 %v5652_v56, %v2536_v53 }
 0x2a6   : > { %7951 = vst [vmem:[#allocation176_spill] sm:$0xff] %v5711_v38  ;;  %v5713_v35 = vpop.permute.xlu1 %2110  ;;  %v266_v38 = vstv %s5718_s20  ;;  %s5800_s20 = sld [smem:[#allocation6 + $0x93]] }
 0x2a7   : > { %7952 = vst [vmem:[#allocation177_spill] sm:$0xff] %v5713_v35  ;;  %v5715_v62 = vpop.permute.xlu0 %2108 }
 0x2a8   : > { %7953 = vst [vmem:[#allocation178_spill] sm:$0xff] %v5715_v62  ;;  %v2522_v62 = vmul.f32 %v5636_v2, %v2521_v20 }
 0x2ab   : > { %2513 = vrot.lane.b32.xlu2 %v2508_v58, %s7778_s21 }
 0x2ac   : > { %2511 = vrot.lane.b32.xlu1 %v2507_v0, %s7778_s21  ;;  %v2537_v0 = vmul.f32 %v5636_v2, %v2536_v53 }
 0x2ad   : > { %2498 = vrot.lane.b32.xlu0 %v2493_v3, %s7778_s21  ;;  %v5736_v15 = vpop.permute.xlu2 %2213  ;;  %v2523_v3 = vmul.f32 %v5652_v56, %v2521_v20  ;;  %v250_v20 = vstv %s5733_s12  ;;  %s5878_s12 = sld [smem:[#allocation6 + $0x2a]] }
 0x2ae   : > { %7954 = vst [vmem:[#allocation179_spill] sm:$0xff] %v5736_v15  ;;  %v5740_v25 = vpop.permute.xlu1 %2138  ;;  %v290_v15 = vstv %s5724_s9  ;;  %v252_v7 = vmul.f32 %v4437_v51, %v250_v20  ;;  %s5840_s9 = sld [smem:[#allocation6 + $0xff]] }
 0x2af   : > { %7955 = vst [vmem:[#allocation180_spill] sm:$0xff] %v5740_v25  ;;  %v5744_v58 = vpop.permute.xlu0 %2125  ;;  %v282_v25 = vstv %s5721_s5  ;;  %s5813_s5 = sld [smem:[#allocation6 + $0xcb]] }
 0x2b0   : > { %7956 = vst [vmem:[#allocation181_spill] sm:$0xff] %v5744_v58  ;;  %v4436_v58 = vld [vmem:[%s4687_s8] sm:$0xff]  ;;  %v284_v53 = vmul.f32 %v4437_v51, %v282_v25 }
 0x2b1   : > { %v267_v35 = vmul.f32 %v4436_v58, %v266_v38  ;;  %v283_v4 = vmul.f32 %v4436_v58, %v282_v25  ;;  %v259_v48 = vmul.f32 %v4436_v58, %v258_v46  ;;  %v251_v24 = vmul.f32 %v4436_v58, %v250_v20 }
 0x2b2   : > { %v307_v10 = vmul.f32 %v4436_v58, %v306_v49  ;;  %v275_v26 = vmul.f32 %v4436_v58, %v274_v30  ;;  %v2566_v25 = vstv %s5771_s7  ;;  %s5973_s7 = sld [smem:[#allocation6 + $0xde]] }
 0x2b3   : > { %2541 = vrot.lane.b32.xlu2 %v2537_v0, %s7771_s23  ;;  %v268_v0 = vmul.f32 %v4437_v51, %v266_v38  ;;  %v354_v38 = vadd.f32 %v4785_v59, %v267_v35  ;;  %v298_v59 = vstv %s5754_s28  ;;  %v5797_v35 = vadd.f32 %v4801_v6, %v283_v4  ;;  %s5922_s28 = sld [smem:[#allocation6 + $0x19]] }
 0x2b4   : > { %2528 = vrot.lane.b32.xlu1 %v2523_v3, %s7771_s23  ;;  %v292_v3 = vmul.f32 %v4437_v51, %v290_v15  ;;  %v325_v4 = vadd.f32 %v4828_v22, %v252_v7  ;;  %v339_v16 = vadd.f32 %v4813_v13, %v259_v48  ;;  %v299_v6 = vmul.f32 %v4436_v58, %v298_v59 }
 0x2b5   : > { %2526 = vrot.lane.b32.xlu0 %v2522_v62, %s7771_s23  ;;  %v5769_v39 = vpop.permute.xlu2 %2230  ;;  %v590_v22 = vstv %s5780_s25  ;;  %v308_v13 = vmul.f32 %v4437_v51, %v306_v49  ;;  %v340_v48 = vadd.f32 %v4826_v21, %v260_v57  ;;  %v385_v57 = vadd.f32 %v4855_v37, %v284_v53  ;;  %s6004_s25 = sld [smem:[#allocation6 + $0x3d]] }
 0x2b6   : > { %7957 = vst [vmem:[#allocation182_spill] sm:$0xff] %v5769_v39  ;;  %v5777_v33 = vpop.permute.xlu1 %2155  ;;  %v2553_v39 = vmul.f32 %v5652_v56, %v2551_v23  ;;  %v5816_v30 = vadd.f32 %v4811_v12, %v292_v3  ;;  %v445_v12 = vadd.f32 %v4838_v27, %v325_v4  ;;  %v562_v3 = vstv %s5775_s19  ;;  %s5989_s19 = sld [smem:[#allocation6 + $0x61]] }
 0x2b7   : > { %7958 = vst [vmem:[#allocation183_spill] sm:$0xff] %v5777_v33  ;;  %v5782_v62 = vpop.permute.xlu0 %2153  ;;  %v2552_v33 = vmul.f32 %v5636_v2, %v2551_v23  ;;  %v5803_v23 = vld [vmem:[%s4687_s8 + $0x9] sm:$0x3f]  ;;  %v474_v27 = vadd.f32 %v4851_v34, %v354_v38  ;;  %v370_v4 = vadd.f32 %v4840_v28, %v276_v40  ;;  %v414_v37 = vadd.f32 %v4869_v44, %v299_v6 }
 0x2b8   : > { %7959 = vst [vmem:[#allocation184_spill] sm:$0xff] %v5782_v62  ;;  %v5793_v62 = vadd.f32 %v4793_v1, %v268_v0  ;;  %v557_v20 = vmul.f32 %v5803_v23, %v555_v11  ;;  %v291_v1 = vmul.f32 %v4436_v58, %v290_v15  ;;  %v5808_v0 = vld [vmem:[%s4687_s8 + $0x1] sm:$0xff]  ;;  %v578_v41 = vmul.f32 %v5803_v23, %v576_v45 }
 0x2b9   : > { %v570_v46 = vmul.f32 %v5808_v0, %v569_v60  ;;  %7960 = vst [vmem:[#allocation185_spill] sm:$0xff] %v5816_v30  ;;  %v5837_v30 = vadd.f32 %v4824_v19, %v307_v10  ;;  %v556_v58 = vmul.f32 %v5808_v0, %v555_v11  ;;  %v369_v19 = vadd.f32 %v4842_v29, %v275_v26 }
 0x2ba   : > { %v564_v10 = vmul.f32 %v5803_v23, %v562_v3  ;;  %v591_v49 = vmul.f32 %v5808_v0, %v590_v22  ;;  %v399_v34 = vadd.f32 %v4853_v36, %v291_v1  ;;  %v490_v28 = vadd.f32 %v4865_v42, %v370_v4 }
 0x2bb   : > { %2558 = vrot.lane.b32.xlu2 %v2553_v39, %s7771_s23  ;;  %v300_v39 = vmul.f32 %v4437_v51, %v298_v59  ;;  %v2567_v59 = vmul.f32 %v5636_v2, %v2566_v25  ;;  %v583_v51 = vstv %s5800_s20  ;;  %v2596_v29 = vstv %s5813_s5  ;;  %s6042_s20 = sld [smem:[#allocation6 + $0x2d]] }
 0x2bc   : > { %2556 = vrot.lane.b32.xlu1 %v2552_v33, %s7771_s23  ;;  %v324_v33 = vadd.f32 %v4815_v14, %v251_v24  ;;  %v597_v14 = vstv %s5787_s29  ;;  %v2568_v24 = vmul.f32 %v5652_v56, %v2566_v25  ;;  %v577_v40 = vmul.f32 %v5808_v0, %v576_v45  ;;  %s6035_s29 = sld [smem:[#allocation6 + $0x9]] }
 0x2bd   : > { %2543 = vrot.lane.b32.xlu0 %v2538_v55, %s7771_s23  ;;  %v5820_v15 = vpop.permute.xlu2 %2258  ;;  %v7963_v55 = vstv %s5765_s4  ;;  %v599_v21 = vmul.f32 %v5803_v23, %v597_v14  ;;  %v415_v26 = vadd.f32 %v4867_v43, %v300_v39  ;;  %v571_v11 = vmul.f32 %v5803_v23, %v569_v60  ;;  %s6052_s5 = sld [smem:[#allocation6 + $0x85]] }
 0x2be   : > { %7961 = vst [vmem:[#allocation186_spill] sm:$0xff] %v5820_v15  ;;  %v5826_v32 = vpop.permute.xlu1 %2183  ;;  %v2582_v15 = vmul.f32 %v5636_v2, %v7963_v55  ;;  %v563_v55 = vmul.f32 %v5808_v0, %v562_v3  ;;  %v5867_v38 = vadd.f32 %v570_v46, %v474_v27  ;;  %v519_v42 = vadd.f32 %v4878_v50, %v399_v34 }
 0x2bf   : > { %v5831_v7 = vpop.permute.xlu0 %2170  ;;  %v585_v43 = vmul.f32 %v5803_v23, %v583_v51  ;;  %v535_v60 = vadd.f32 %v4895_v61, %v415_v26  ;;  %v460_v1 = vadd.f32 %v4900_v63, %v340_v48  ;;  %v584_v53 = vmul.f32 %v5808_v0, %v583_v51 }
 0x2c0   : > { %7962 = vst [vmem:[#allocation187_spill] sm:$0xff] %v5831_v7  ;;  %v5853_v7 = vadd.f32 %v557_v20, %v445_v12  ;;  %v444_v20 = vadd.f32 %v4880_v52, %v324_v33  ;;  %v2598_v50 = vmul.f32 %v5652_v56, %v2596_v29  ;;  %v459_v52 = vadd.f32 %v4902_v47, %v339_v16 }
 0x2c1   : > { %v604_v46 = vstv %s5840_s9  ;;  %v5892_v6 = vadd.f32 %v578_v41, %v490_v28  ;;  %v2597_v39 = vmul.f32 %v5636_v2, %v2596_v29  ;;  %v489_v61 = vadd.f32 %v4913_v8, %v369_v19  ;;  %s6069_s9 = sld [smem:[#allocation6 + $0x75]] }
 0x2c2   : > { %v598_v63 = vmul.f32 %v5808_v0, %v597_v14  ;;  %v7965_v25 = vstv %s5765_s4  ;;  %v558_v12 = vadd.f32 %v556_v58, %v444_v20  ;;  %v475_v47 = vadd.f32 %v4915_v9, %v5793_v62  ;;  %v7968_v58 = vld [vmem:[#allocation15_spill] sm:$0xff]  ;;  %s5946_s4 = sld [smem:[#allocation6 + $0x72]] }
 0x2c3   : > { %2586 = vrot.lane.b32.xlu2 %v2582_v15, %s7771_s23  ;;  %v430_v15 = vadd.f32 %v4882_v54, %v308_v13  ;;  %v2583_v33 = vmul.f32 %v5652_v56, %v7965_v25  ;;  %v592_v16 = vmul.f32 %v5803_v23, %v590_v22  ;;  %v5906_v41 = vadd.f32 %v591_v49, %v519_v42  ;;  %v7970_v49 = vld [vmem:[#allocation16_spill] sm:$0xff] }
 0x2c4   : > { %2573 = vrot.lane.b32.xlu1 %v2568_v24, %s7771_s23  ;;  %v566_v54 = vadd.f32 %v564_v10, %v460_v1  ;;  %v606_v8 = vmul.f32 %v5803_v23, %v604_v46  ;;  %v605_v3 = vmul.f32 %v5808_v0, %v604_v46  ;;  %v5912_v13 = vadd.f32 %v599_v21, %v535_v60  ;;  %v7969_v10 = vld [vmem:[#allocation11_spill] sm:$0xff]  ;;  %v7972_v60 = vld [vmem:[#allocation14_spill] sm:$0xff] }
 0x2c5   : > { %2571 = vrot.lane.b32.xlu0 %v2567_v59, %s7771_s23  ;;  %v5870_v36 = vpop.permute.xlu2 %2275  ;;  %v505_v9 = vadd.f32 %v4927_v17, %v385_v57  ;;  %v504_v62 = vadd.f32 %v4929_v18, %v5797_v35  ;;  %v565_v22 = vadd.f32 %v563_v55, %v459_v52  ;;  %v2626_v14 = vstv %s5862_s10  ;;  %v7966_v18 = vld [vmem:[#allocation185_spill] sm:$0xff]  ;;  %v7971_v57 = vld [vmem:[#allocation12_spill] sm:$0xff]  ;;  %v7973_v46 = vld [vmem:[#allocation18_spill] sm:$0xff]  ;;  %s6076_s10 = sld [smem:[#allocation6 + $0x99]] }
 0x2c6   : > { %v5880_v45 = vpop.permute.xlu1 %2200  ;;  %v5925_v23 = vadd.f32 %v4911_v5, %v558_v12  ;;  %v579_v0 = vadd.f32 %v577_v40, %v489_v61  ;;  %v534_v24 = vadd.f32 %v4940_v31, %v414_v37  ;;  %v2611_v48 = vstv %s5872_s11  ;;  %v7967_v35 = vld [vmem:[#allocation13_spill] sm:$0xff]  ;;  %v5967_v52 = vld [vmem:[%s4687_s8 + $0xa] sm:$0x3f]  ;;  %s6091_s11 = sld [smem:[#allocation6 + $0xe1]] }
 0x2c7   : > { %v5887_v44 = vpop.permute.xlu0 %2198  ;;  %v520_v27 = vadd.f32 %v7967_v35, %v7966_v18  ;;  %v550_v59 = vadd.f32 %v7968_v58, %v430_v15  ;;  %v573_v4 = vadd.f32 %v571_v11, %v475_v47  ;;  %v860_v19 = vstv %s5878_s12  ;;  %v6002_v18 = vld [vmem:[%s4687_s8 + $0x22] sm:$0xff]  ;;  %s6096_s12 = sld [smem:[#allocation6 + $0x51]] }
 0x2c8   : > { %7964 = vst [vmem:[#allocation188_spill] sm:$0xff] %v5887_v44  ;;  %v5941_v31 = vadd.f32 %v7969_v10, %v566_v54  ;;  %v549_v51 = vadd.f32 %v7970_v49, %v5837_v30  ;;  %v867_v55 = vstv %s5885_s18  ;;  %v2627_v34 = vmul.f32 %v5636_v2, %v2626_v14  ;;  %v5958_v30 = vld [vmem:[%s4687_s8 + $0x2] sm:$0xff]  ;;  %v7981_v10 = vld [vmem:[#allocation26_spill] sm:$0xff]  ;;  %s6106_s18 = sld [smem:[#allocation6 + $0x105]] }
 0x2c9   : > { %v5954_v28 = vadd.f32 %v7971_v57, %v579_v0  ;;  %v587_v29 = vadd.f32 %v585_v43, %v505_v9  ;;  %v586_v26 = vadd.f32 %v584_v53, %v504_v62  ;;  %v2613_v40 = vmul.f32 %v5652_v56, %v2611_v48  ;;  %v7977_v9 = vld [vmem:[#allocation21_spill] sm:$0xff]  ;;  %v7979_v0 = vld [vmem:[#allocation23_spill] sm:$0xff]  ;;  %v7980_v35 = vld [vmem:[#allocation24_spill] sm:$0xff] }
 0x2ca   : > { %v600_v11 = vadd.f32 %v598_v63, %v534_v24  ;;  %v861_v37 = vmul.f32 %v5958_v30, %v860_v19  ;;  %v881_v42 = vstv %s5898_s22  ;;  %v2612_v20 = vmul.f32 %v5636_v2, %v2611_v48  ;;  %v7974_v2 = vld [vmem:[#allocation17_spill] sm:$0xff]  ;;  %s6114_s22 = sld [smem:[#allocation6 + $0xcd]] }
 0x2cb   : > { %2603 = vrot.lane.b32.xlu2 %v2598_v50, %s7771_s23  ;;  %v5964_v1 = vadd.f32 %v7972_v60, %v587_v29  ;;  %v608_v50 = vadd.f32 %v606_v8, %v550_v59  ;;  %v594_v43 = vadd.f32 %v592_v16, %v520_v27  ;;  %v869_v53 = vmul.f32 %v5967_v52, %v867_v55  ;;  %v5986_v16 = vld [vmem:[%s4687_s8 + $0x2a] sm:$0x3f] }
 0x2cc   : > { %2601 = vrot.lane.b32.xlu1 %v2597_v39, %s7771_s23  ;;  %v637_v39 = vadd.f32 %v7973_v46, %v565_v22  ;;  %v607_v15 = vadd.f32 %v605_v3, %v549_v51  ;;  %v853_v61 = vstv %s5908_s26  ;;  %v888_v63 = vstv %s5914_s27  ;;  %v7976_v8 = vld [vmem:[#allocation20_spill] sm:$0xff]  ;;  %v7978_v22 = vld [vmem:[#allocation22_spill] sm:$0xff]  ;;  %s6125_s26 = sld [smem:[#allocation6 + $0xa9]] }
 0x2cd   : > { %2588 = vrot.lane.b32.xlu0 %v2583_v33, %s7771_s23  ;;  %v5929_v17 = vpop.permute.xlu2 %2303  ;;  %v5977_v25 = vadd.f32 %v7974_v2, %v600_v11  ;;  %v7975_v33 = vld [vmem:[#allocation19_spill] sm:$0xff]  ;;  %v882_v47 = vmul.f32 %v5958_v30, %v881_v42  ;;  %v2699_v54 = vstv %s5922_s28  ;;  %v5992_v3 = vadd.f32 %v7976_v8, %v608_v50  ;;  %v7985_v8 = vld [vmem:[#allocation28_spill] sm:$0xff]  ;;  %s6147_s27 = sld [smem:[#allocation6 + $0xbd]] }
 0x2ce   : > { %v5938_v5 = vpop.permute.xlu1 %2228  ;;  %v623_v12 = vadd.f32 %v7975_v33, %v5853_v7  ;;  %v653_v62 = vadd.f32 %v7977_v9, %v573_v4  ;;  %v652_v7 = vadd.f32 %v7978_v22, %v5867_v38  ;;  %v757_v24 = vadd.f32 %v7979_v0, %v637_v39  ;;  %v7983_v50 = vld [vmem:[#allocation27_spill] sm:$0xff]  ;;  %v7984_v39 = vld [vmem:[#allocation29_spill] sm:$0xff]  ;;  %s6174_s28 = sld [smem:[#allocation6 + $0xf1]] }
 0x2cf   : > { %v5948_v21 = vpop.permute.xlu0 %2215  ;;  %v682_v27 = vadd.f32 %v7980_v35, %v586_v26  ;;  %v855_v58 = vmul.f32 %v5967_v52, %v853_v61  ;;  %v854_v59 = vmul.f32 %v5958_v30, %v853_v61  ;;  %v890_v4 = vmul.f32 %v5967_v52, %v888_v63  ;;  %v7989_v0 = vld [vmem:[#allocation31_spill] sm:$0xff]  ;;  %v7990_v35 = vld [vmem:[#allocation34_spill] sm:$0xff] }
 0x2d0   : > { %v773_v49 = vadd.f32 %v7981_v10, %v653_v62  ;;  %v874_v51 = vstv %s5946_s4  ;;  %v2701_v29 = vmul.f32 %v5986_v16, %v2699_v54  ;;  %v868_v11 = vmul.f32 %v5958_v30, %v867_v55  ;;  %s6205_s4 = sld [smem:[#allocation6 + $0x54]] }
 0x2d1   : > { %v2700_v60 = vmul.f32 %v6002_v18, %v2699_v54  ;;  %v698_v46 = vadd.f32 %v7983_v50, %v594_v43  ;;  %v802_v61 = vadd.f32 %v7984_v39, %v682_v27  ;;  %v6025_v2 = vadd.f32 %v861_v37, %v757_v24  ;;  %v7986_v43 = vld [vmem:[#allocation32_spill] sm:$0xff]  ;;  %v7987_v37 = vld [vmem:[#allocation33_spill] sm:$0xff] }
 0x2d2   : > { %v2628_v33 = vmul.f32 %v5652_v56, %v2626_v14  ;;  %v697_v9 = vadd.f32 %v7985_v8, %v5906_v41  ;;  %v875_v55 = vmul.f32 %v5958_v30, %v874_v51  ;;  %v743_v62 = vadd.f32 %v7987_v37, %v623_v12  ;;  %v7988_v41 = vld [vmem:[#allocation30_spill] sm:$0xff]  ;;  %v7997_v8 = vld [vmem:[#allocation40_spill] sm:$0xff] }
 0x2d3   : > { %2631 = vrot.lane.b32.xlu2 %v2627_v34, %s7771_s23  ;;  %v902_v34 = vstv %s5936_s30  ;;  %v818_v54 = vadd.f32 %v7986_v43, %v698_v46  ;;  %v895_v22 = vstv %s5973_s7  ;;  %v6040_v56 = vadd.f32 %v869_v53, %v773_v49  ;;  %s6195_s30 = sld [smem:[#allocation6 + $0xc]] }
 0x2d4   : > { %2618 = vrot.lane.b32.xlu1 %v2613_v40, %s7771_s23  ;;  %v7982_v40 = vld [vmem:[#allocation25_spill] sm:$0xff]  ;;  %v727_v14 = vadd.f32 %v7988_v41, %v607_v15  ;;  %v713_v24 = vadd.f32 %v7989_v0, %v5912_v13  ;;  %v742_v27 = vadd.f32 %v7990_v35, %v5925_v23  ;;  %v2729_v10 = vstv %s5989_s19  ;;  %s6217_s7 = sld [smem:[#allocation6 + $0x78]] }
 0x2d5   : > { %2616 = vrot.lane.b32.xlu0 %v2612_v20, %s7771_s23  ;;  %v5999_v48 = vpop.permute.xlu2 %2320  ;;  %v668_v26 = vadd.f32 %v7982_v40, %v5892_v6  ;;  %v862_v20 = vmul.f32 %v5967_v52, %v860_v19  ;;  %v876_v6 = vmul.f32 %v5967_v52, %v874_v51  ;;  %v903_v19 = vmul.f32 %v5958_v30, %v902_v34  ;;  %v7991_v51 = vld [vmem:[#allocation35_spill] sm:$0xff]  ;;  %v8001_v35 = vld [vmem:[#allocation45_spill] sm:$0xff]  ;;  %s6225_s19 = sld [smem:[#allocation6 + $0xc0]] }
 0x2d6   : > { %v6010_v38 = vpop.permute.xlu1 %2245  ;;  %v889_v53 = vmul.f32 %v5958_v30, %v888_v63  ;;  %v883_v12 = vmul.f32 %v5967_v52, %v881_v42  ;;  %v6058_v49 = vadd.f32 %v882_v47, %v802_v61  ;;  %v2714_v13 = vstv %s6004_s25  ;;  %s6234_s25 = sld [smem:[#allocation6 + $0x1a]] }
 0x2d7   : > { %v6015_v57 = vpop.permute.xlu0 %2243  ;;  %v847_v23 = vadd.f32 %v7991_v51, %v727_v14  ;;  %v897_v63 = vmul.f32 %v5967_v52, %v895_v22  ;;  %v857_v47 = vadd.f32 %v855_v58, %v743_v62  ;;  %v896_v46 = vmul.f32 %v5958_v30, %v895_v22  ;;  %v7998_v30 = vld [vmem:[#allocation42_spill] sm:$0xff] }
 0x2d8   : > { %v6074_v39 = vadd.f32 %v890_v4, %v818_v54  ;;  %v787_v43 = vadd.f32 %v7997_v8, %v5954_v28  ;;  %v856_v37 = vadd.f32 %v854_v59, %v742_v27  ;;  %v2716_v58 = vmul.f32 %v5986_v16, %v2714_v13  ;;  %v7999_v54 = vld [vmem:[#allocation43_spill] sm:$0xff]  ;;  %v8000_v59 = vld [vmem:[#allocation38_spill] sm:$0xff] }
 0x2d9   : > { %v817_v4 = vadd.f32 %v7998_v30, %v697_v9  ;;  %v803_v62 = vadd.f32 %v7999_v54, %v5964_v1  ;;  %v904_v22 = vmul.f32 %v5967_v52, %v902_v34  ;;  %v2715_v41 = vmul.f32 %v6002_v18, %v2714_v13  ;;  %v8002_v52 = vld [vmem:[#allocation46_spill] sm:$0xff] }
 0x2da   : > { %v6094_v0 = vadd.f32 %v903_v19, %v847_v23  ;;  %v1152_v28 = vstv %s6035_s29  ;;  %v6100_v9 = vadd.f32 %v8000_v59, %v857_v47  ;;  %v833_v1 = vadd.f32 %v8001_v35, %v713_v24  ;;  %v8007_v47 = vld [vmem:[#allocation48_spill] sm:$0xff]  ;;  %s6244_s29 = sld [smem:[#allocation6 + $0x115]] }
 0x2db   : > { %2706 = vrot.lane.b32.xlu2 %v2701_v29, %s7778_s21  ;;  %v7992_v29 = vld [vmem:[#allocation36_spill] sm:$0xff]  ;;  %v832_v34 = vadd.f32 %v8002_v52, %v5977_v25  ;;  %v1159_v27 = vstv %s6042_s20  ;;  %v877_v13 = vadd.f32 %v875_v55, %v787_v43  ;;  %v2744_v51 = vstv %s6052_s5  ;;  %v8004_v25 = vld [vmem:[#allocation49_spill] sm:$0xff]  ;;  %s6250_s20 = sld [smem:[#allocation6 + $0x30]] }
 0x2dc   : > { %2704 = vrot.lane.b32.xlu1 %v2700_v60, %s7778_s21  ;;  %v772_v40 = vadd.f32 %v7992_v29, %v652_v7  ;;  %v7993_v60 = vld [vmem:[#allocation37_spill] sm:$0xff]  ;;  %v2730_v7 = vmul.f32 %v6002_v18, %v2729_v10  ;;  %v891_v24 = vadd.f32 %v889_v53, %v817_v4  ;;  %v848_v23 = vadd.f32 %v8004_v25, %v5992_v3  ;;  %v8006_v55 = vld [vmem:[#allocation44_spill] sm:$0xff]  ;;  %v8010_v4 = vld [vmem:[#allocation47_spill] sm:$0xff]  ;;  %s6264_s5 = sld [smem:[#allocation6 + $0xe4]] }
 0x2dd   : > { %2633 = vrot.lane.b32.xlu0 %v2628_v33, %s7771_s23  ;;  %v6061_v15 = vpop.permute.xlu2 %2406  ;;  %v758_v50 = vadd.f32 %v7993_v60, %v5941_v31  ;;  %v7996_v31 = vld [vmem:[#allocation39_spill] sm:$0xff]  ;;  %v885_v29 = vadd.f32 %v883_v12, %v803_v62  ;;  %v920_v53 = vadd.f32 %v8007_v47, %v856_v37  ;;  %v1173_v12 = vstv %s6069_s9  ;;  %s6278_s9 = sld [smem:[#allocation6 + $0x9c]] }
 0x2de   : > { %v6071_v42 = vpop.permute.xlu1 %2273  ;;  %v788_v33 = vadd.f32 %v7996_v31, %v668_v26  ;;  %v870_v26 = vadd.f32 %v868_v11, %v772_v40  ;;  %v8003_v11 = vld [vmem:[#allocation41_spill] sm:$0xff]  ;;  %v898_v8 = vadd.f32 %v896_v46, %v832_v34  ;;  %v1180_v43 = vstv %s6076_s10  ;;  %v8011_v37 = vld [vmem:[#allocation51_spill] sm:$0xff]  ;;  %v8013_v46 = vld [vmem:[#allocation50_spill] sm:$0xff]  ;;  %s6295_s10 = sld [smem:[#allocation6 + $0x3e]] }
 0x2df   : > { %7994 = vst [vmem:[#allocation185_spill] sm:$0xff] %v6071_v42  ;;  %v6078_v61 = vpop.permute.xlu0 %2260  ;;  %v864_v14 = vadd.f32 %v862_v20, %v758_v50  ;;  %v6119_v40 = vld [vmem:[%s4687_s8 + $0x10] sm:$0xff]  ;;  %v2746_v30 = vmul.f32 %v5986_v16, %v2744_v51  ;;  %v6143_v54 = vadd.f32 %v8010_v4, %v891_v24  ;;  %v906_v35 = vadd.f32 %v904_v22, %v848_v23  ;;  %v8014_v34 = vld [vmem:[#allocation52_spill] sm:$0xff]  ;;  %v8017_v47 = vld [vmem:[#allocation55_spill] sm:$0xff] }
 0x2e0   : > { %7995 = vst [vmem:[#allocation13_spill] sm:$0xff] %v6078_v61  ;;  %v6110_v20 = vadd.f32 %v8003_v11, %v870_v26  ;;  %v878_v19 = vadd.f32 %v876_v6, %v788_v33  ;;  %v1153_v60 = vmul.f32 %v6119_v40, %v1152_v28  ;;  %v899_v33 = vadd.f32 %v897_v63, %v833_v1 }
 0x2e1   : > { %v936_v62 = vadd.f32 %v8011_v37, %v864_v14  ;;  %v2745_v63 = vmul.f32 %v6002_v18, %v2744_v51  ;;  %v1174_v1 = vmul.f32 %v6119_v40, %v1173_v12  ;;  %v2731_v52 = vmul.f32 %v5986_v16, %v2729_v10  ;;  %v8015_v14 = vld [vmem:[#allocation56_spill] sm:$0xff] }
 0x2e2   : > { %v6128_v50 = vadd.f32 %v8006_v55, %v878_v19  ;;  %v6151_v59 = vadd.f32 %v8013_v46, %v899_v33  ;;  %v935_v11 = vadd.f32 %v8014_v34, %v6025_v2  ;;  %v1194_v25 = vstv %s6091_s11  ;;  %v8016_v55 = vld [vmem:[#allocation54_spill] sm:$0xff]  ;;  %v8022_v46 = vld [vmem:[#allocation59_spill] sm:$0xff]  ;;  %v8023_v34 = vld [vmem:[#allocation60_spill] sm:$0xff]  ;;  %s6319_s11 = sld [smem:[#allocation6 + $0x108]] }
 0x2e3   : > { %2734 = vrot.lane.b32.xlu2 %v2730_v7, %s7778_s21  ;;  %v6132_v7 = vld [vmem:[%s4687_s8 + $0x18] sm:$0x3f]  ;;  %v1056_v19 = vadd.f32 %v8015_v14, %v936_v62  ;;  %v965_v51 = vadd.f32 %v8016_v55, %v877_v13  ;;  %v951_v22 = vadd.f32 %v8017_v47, %v6040_v56  ;;  %v1166_v23 = vstv %s6096_s12  ;;  %v8018_v13 = vld [vmem:[#allocation57_spill] sm:$0xff]  ;;  %s6345_s12 = sld [smem:[#allocation6 + $0x33]] }
 0x2e4   : > { %2721 = vrot.lane.b32.xlu1 %v2716_v58, %s7778_s21  ;;  %v1161_v3 = vmul.f32 %v6132_v7, %v1159_v27  ;;  %v1182_v24 = vmul.f32 %v6132_v7, %v1180_v43  ;;  %v1160_v10 = vmul.f32 %v6119_v40, %v1159_v27  ;;  %v1154_v33 = vmul.f32 %v6132_v7, %v1152_v28  ;;  %v8019_v62 = vld [vmem:[#allocation58_spill] sm:$0xff] }
 0x2e5   : > { %2719 = vrot.lane.b32.xlu0 %v2715_v41, %s7778_s21  ;;  %v6123_v6 = vpop.permute.xlu2 %2423  ;;  %v8012_v41 = vld [vmem:[#allocation53_spill] sm:$0xff]  ;;  %v7757_v4 = vstv %s6114_s22  ;;  %v981_v37 = vadd.f32 %v8018_v13, %v885_v29  ;;  %v980_v56 = vadd.f32 %v8019_v62, %v6058_v49  ;;  %v2759_v28 = vstv %s6125_s26  ;;  %v8027_v13 = vld [vmem:[#allocation63_spill] sm:$0xff]  ;;  %s6372_s26 = sld [smem:[#allocation6 + $0x57]] }
 0x2e6   : > { %8005 = vst [vmem:[#allocation15_spill] sm:$0xff] %v6123_v6  ;;  %v6136_v31 = vpop.permute.xlu1 %2290  ;;  %v1040_v26 = vadd.f32 %v8012_v41, %v920_v53  ;;  %v1201_v53 = vstv %s6106_s18  ;;  %v1195_v41 = vmul.f32 %v6119_v40, %v1194_v25  ;;  %v1085_v49 = vadd.f32 %v8022_v46, %v965_v51  ;;  %s6354_s18 = sld [smem:[#allocation6 + $0x86]] }
 0x2e7   : > { %8008 = vst [vmem:[#allocation11_spill] sm:$0xff] %v6136_v31  ;;  %v6139_v58 = vpop.permute.xlu0 %2288  ;;  %v1203_v29 = vmul.f32 %v6132_v7, %v1201_v53  ;;  %v1010_v14 = vadd.f32 %v8023_v34, %v898_v8  ;;  %v1026_v62 = vadd.f32 %v8027_v13, %v906_v35  ;;  %v1187_v44 = vstv %s6147_s27  ;;  %v8028_v8 = vld [vmem:[#allocation65_spill] sm:$0xff]  ;;  %v8029_v34 = vld [vmem:[#allocation66_spill] sm:$0xff]  ;;  %s6385_s27 = sld [smem:[#allocation6 + $0x9f]] }
 0x2e8   : > { %8009 = vst [vmem:[#allocation16_spill] sm:$0xff] %v6139_v58  ;;  %v6170_v2 = vadd.f32 %v1153_v60, %v1040_v26  ;;  %v1168_v60 = vmul.f32 %v6132_v7, %v1166_v23  ;;  %v6186_v26 = vadd.f32 %v1161_v3, %v1056_v19  ;;  %v8026_v3 = vld [vmem:[#allocation62_spill] sm:$0xff]  ;;  %v2761_v51 = vmul.f32 %v5986_v16, %v2759_v28  ;;  %v8032_v35 = vld [vmem:[#allocation69_spill] sm:$0xff] }
 0x2e9   : > { %v1101_v19 = vadd.f32 %v8026_v3, %v981_v37  ;;  %v1130_v46 = vadd.f32 %v8028_v8, %v1010_v14  ;;  %v8031_v37 = vld [vmem:[#allocation68_spill] sm:$0xff]  ;;  %v1071_v13 = vadd.f32 %v8032_v35, %v951_v22  ;;  %v1175_v58 = vmul.f32 %v6132_v7, %v1173_v12 }
 0x2ea   : > { %v1146_v3 = vadd.f32 %v8031_v37, %v1026_v62  ;;  %v8033_v14 = vld [vmem:[#allocation64_spill] sm:$0xff]  ;;  %v1196_v12 = vmul.f32 %v6132_v7, %v1194_v25  ;;  %v8043_v35 = vstv %s6114_s22  ;;  %s6364_s22 = sld [smem:[#allocation6 + $0x62]] }
 0x2eb   : > { %2751 = vrot.lane.b32.xlu2 %v2746_v30, %s7778_s21  ;;  %v1167_v30 = vmul.f32 %v6119_v40, %v1166_v23  ;;  %v2775_v23 = vmul.f32 %v6002_v18, %v7757_v4  ;;  %v1025_v8 = vadd.f32 %v8033_v14, %v6094_v0  ;;  %v6229_v22 = vadd.f32 %v1182_v24, %v1101_v19  ;;  %v8034_v0 = vld [vmem:[#allocation70_spill] sm:$0xff] }
 0x2ec   : > { %2749 = vrot.lane.b32.xlu1 %v2745_v63, %s7778_s21  ;;  %v1170_v25 = vadd.f32 %v1168_v60, %v1071_v13  ;;  %v1450_v19 = vstv %s6195_s30  ;;  %v8041_v60 = vld [vmem:[#allocation79_spill] sm:$0xff]  ;;  %v2776_v13 = vmul.f32 %v5986_v16, %v8043_v35  ;;  %v8044_v14 = vld [vmem:[#allocation74_spill] sm:$0xff]  ;;  %s6401_s30 = sld [smem:[#allocation6 + $0xc3]]  ;;  %v8104_v61 = vstv %s6354_s18 }
 0x2ed   : > { %2736 = vrot.lane.b32.xlu0 %v2731_v52, %s7778_s21  ;;  %v6181_v27 = vpop.permute.xlu2 %2451  ;;  %v8024_v52 = vld [vmem:[#allocation61_spill] sm:$0xff]  ;;  %v2866_v42 = vmul.f32 %v5986_v16, %v8104_v61 }
 0x2ee   : > { %8020 = vst [vmem:[#allocation12_spill] sm:$0xff] %v6181_v27  ;;  %v6189_v63 = vpop.permute.xlu1 %2318  ;;  %v996_v55 = vadd.f32 %v8024_v52, %v6074_v39  ;;  %v1055_v39 = vadd.f32 %v8029_v34, %v935_v11  ;;  %v1181_v52 = vmul.f32 %v6119_v40, %v1180_v43  ;;  %v1189_v11 = vmul.f32 %v6132_v7, %v1187_v44  ;;  %v8037_v7 = vld [vmem:[#allocation73_spill] sm:$0xff] }
 0x2ef   : > { %8021 = vst [vmem:[#allocation14_spill] sm:$0xff] %v6189_v63  ;;  %v6197_v47 = vpop.permute.xlu0 %2305  ;;  %v8030_v63 = vld [vmem:[#allocation67_spill] sm:$0xff]  ;;  %v6222_v43 = vadd.f32 %v1174_v1, %v1085_v49  ;;  %v1070_v1 = vadd.f32 %v8034_v0, %v6110_v20  ;;  %v8035_v49 = vld [vmem:[#allocation72_spill] sm:$0xff]  ;;  %v6239_v34 = vadd.f32 %v1195_v41, %v1130_v46  ;;  %v1086_v24 = vadd.f32 %v8037_v7, %v6128_v50  ;;  %v8045_v7 = vld [vmem:[#allocation77_spill] sm:$0xff] }
 0x2f0   : > { %8025 = vst [vmem:[#allocation18_spill] sm:$0xff] %v6197_v47  ;;  %v2760_v47 = vmul.f32 %v6002_v18, %v2759_v28  ;;  %v1041_v4 = vadd.f32 %v8030_v63, %v6100_v9  ;;  %v1188_v28 = vmul.f32 %v6119_v40, %v1187_v44  ;;  %v1202_v9 = vmul.f32 %v6119_v40, %v1201_v53  ;;  %v8039_v41 = vld [vmem:[#allocation76_spill] sm:$0xff] }
 0x2f1   : > { %v2789_v63 = vstv %s6174_s28  ;;  %v1162_v44 = vadd.f32 %v1160_v10, %v1055_v39  ;;  %v1100_v62 = vadd.f32 %v8035_v49, %v980_v56  ;;  %v8038_v10 = vld [vmem:[#allocation75_spill] sm:$0xff]  ;;  %v1464_v46 = vstv %s6205_s4  ;;  %v6281_v49 = vld [vmem:[%s4687_s8 + $0x19] sm:$0x3f]  ;;  %s6393_s28 = sld [smem:[#allocation6 + $0xf]] }
 0x2f2   : > { %v1156_v53 = vadd.f32 %v1154_v33, %v1041_v4  ;;  %v1116_v56 = vadd.f32 %v8038_v10, %v996_v55  ;;  %v2791_v50 = vmul.f32 %v5986_v16, %v2789_v63  ;;  %v8040_v33 = vld [vmem:[#allocation78_spill] sm:$0xff]  ;;  %v2790_v55 = vmul.f32 %v6002_v18, %v2789_v63  ;;  %v8042_v39 = vld [vmem:[#allocation71_spill] sm:$0xff]  ;;  %s6410_s4 = sld [smem:[#allocation6 + $0x10b]] }
 0x2f3   : > { %2779 = vrot.lane.b32.xlu2 %v2775_v23, %s7778_s21  ;;  %v6248_v23 = vadd.f32 %v1203_v29, %v1146_v3  ;;  %v1145_v4 = vadd.f32 %v8040_v33, %v1025_v8  ;;  %v1131_v29 = vadd.f32 %v8041_v60, %v6151_v59  ;;  %v6269_v37 = vadd.f32 %v8042_v39, %v1162_v44 }
 0x2f4   : > { %2766 = vrot.lane.b32.xlu1 %v2761_v51, %s7778_s21  ;;  %v1169_v3 = vadd.f32 %v1167_v30, %v1070_v1  ;;  %v6275_v0 = vadd.f32 %v8044_v14, %v1170_v25  ;;  %v1177_v8 = vadd.f32 %v1175_v58, %v1086_v24  ;;  %v1471_v59 = vstv %s6217_s7  ;;  %v6288_v1 = vld [vmem:[%s4687_s8 + $0x11] sm:$0xff]  ;;  %s6419_s7 = sld [smem:[#allocation6 + $0xaa]] }
 0x2f5   : > { %2764 = vrot.lane.b32.xlu0 %v2760_v47, %s7778_s21  ;;  %v6242_v40 = vpop.permute.xlu2 %2468  ;;  %v1115_v47 = vadd.f32 %v8039_v41, %v6143_v54  ;;  %v1183_v54 = vadd.f32 %v1181_v52, %v1100_v62  ;;  %v1452_v63 = vmul.f32 %v6281_v49, %v1450_v19  ;;  %v1191_v52 = vadd.f32 %v1189_v11, %v1116_v56  ;;  %v8046_v58 = vld [vmem:[#allocation81_spill] sm:$0xff]  ;;  %v8047_v11 = vld [vmem:[#allocation80_spill] sm:$0xff] }
 0x2f6   : > { %8036 = vst [vmem:[#allocation17_spill] sm:$0xff] %v6242_v40  ;;  %v6252_v20 = vpop.permute.xlu1 %2335  ;;  %v1465_v62 = vmul.f32 %v6288_v1, %v1464_v46  ;;  %v1220_v24 = vadd.f32 %v8046_v58, %v1156_v53  ;;  %v1204_v25 = vadd.f32 %v1202_v9, %v1145_v4  ;;  %v1198_v10 = vadd.f32 %v1196_v12, %v1131_v29  ;;  %v8050_v12 = vld [vmem:[#allocation84_spill] sm:$0xff]  ;;  %v8051_v4 = vld [vmem:[#allocation86_spill] sm:$0xff]  ;;  %v8060_v40 = vld [vmem:[#allocation91_spill] sm:$0xff] }
 0x2f7   : > { %v6258_v51 = vpop.permute.xlu0 %2333  ;;  %v6285_v44 = vadd.f32 %v8045_v7, %v1183_v54  ;;  %v1190_v30 = vadd.f32 %v1188_v28, %v1115_v47  ;;  %v7758_v41 = vstv %s6234_s25  ;;  %v6298_v56 = vadd.f32 %v8047_v11, %v1191_v52  ;;  %v8048_v28 = vld [vmem:[#allocation82_spill] sm:$0xff]  ;;  %v8053_v54 = vld [vmem:[#allocation83_spill] sm:$0xff] }
 0x2f8   : > { %v1219_v47 = vadd.f32 %v8048_v28, %v6170_v2  ;;  %v1473_v33 = vmul.f32 %v6281_v49, %v1471_v59  ;;  %v2804_v9 = vstv %s6244_s29  ;;  %v1340_v60 = vadd.f32 %v8051_v4, %v1220_v24  ;;  %v8054_v2 = vld [vmem:[#allocation85_spill] sm:$0xff]  ;;  %v8055_v52 = vld [vmem:[#allocation87_spill] sm:$0xff]  ;;  %s6476_s29 = sld [smem:[#allocation6 + $0x10e]] }
 0x2f9   : > { %v1457_v29 = vstv %s6250_s20  ;;  %v6314_v35 = vadd.f32 %v8053_v54, %v1204_v25  ;;  %v1235_v14 = vadd.f32 %v8054_v2, %v6186_v26  ;;  %v1265_v58 = vadd.f32 %v8055_v52, %v1177_v8  ;;  %v8056_v24 = vld [vmem:[#allocation89_spill] sm:$0xff]  ;;  %v8058_v2 = vld [vmem:[#allocation92_spill] sm:$0xff]  ;;  %s6486_s20 = sld [smem:[#allocation6 + $0xf2]] }
 0x2fa   : > { %v1492_v28 = vstv %s6264_s5  ;;  %v2806_v25 = vmul.f32 %v5986_v16, %v2804_v9  ;;  %v1459_v26 = vmul.f32 %v6281_v49, %v1457_v29  ;;  %v2805_v54 = vmul.f32 %v6002_v18, %v2804_v9  ;;  %v8061_v9 = vld [vmem:[#allocation96_spill] sm:$0xff]  ;;  %s6498_s5 = sld [smem:[#allocation6 + $0xce]] }
 0x2fb   : > { %2796 = vrot.lane.b32.xlu2 %v2791_v50, %s7778_s21  ;;  %v1249_v50 = vadd.f32 %v8050_v12, %v1169_v3  ;;  %v2820_v3 = vmul.f32 %v6002_v18, %v7758_v41  ;;  %v8057_v12 = vld [vmem:[#allocation88_spill] sm:$0xff]  ;;  %v1478_v41 = vstv %s6278_s9  ;;  %v1458_v8 = vmul.f32 %v6288_v1, %v1457_v29  ;;  %s6514_s9 = sld [smem:[#allocation6 + $0x12]] }
 0x2fc   : > { %2794 = vrot.lane.b32.xlu1 %v2790_v55, %s7778_s21  ;;  %v1485_v55 = vstv %s6225_s19  ;;  %v1264_v4 = vadd.f32 %v8057_v12, %v6222_v43  ;;  %v6338_v52 = vadd.f32 %v1452_v63, %v1340_v60  ;;  %v1280_v31 = vadd.f32 %v8060_v40, %v6229_v22  ;;  %v8062_v22 = vld [vmem:[#allocation93_spill] sm:$0xff]  ;;  %v8064_v60 = vld [vmem:[#allocation95_spill] sm:$0xff]  ;;  %s6437_s19 = sld [smem:[#allocation6 + $0x7b]] }
 0x2fd   : > { %2781 = vrot.lane.b32.xlu0 %v2776_v13, %s7778_s21  ;;  %v6304_v53 = vpop.permute.xlu2 %2496  ;;  %v1451_v13 = vmul.f32 %v6288_v1, %v1450_v19  ;;  %v1369_v11 = vadd.f32 %v8056_v24, %v1249_v50  ;;  %v1486_v19 = vmul.f32 %v6288_v1, %v1485_v55  ;;  %v8059_v50 = vld [vmem:[#allocation90_spill] sm:$0xff]  ;;  %v1472_v43 = vmul.f32 %v6288_v1, %v1471_v59 }
 0x2fe   : > { %8049 = vst [vmem:[#allocation19_spill] sm:$0xff] %v6304_v53  ;;  %v6311_v39 = vpop.permute.xlu1 %2421  ;;  %v1385_v53 = vadd.f32 %v8058_v2, %v1265_v58  ;;  %v1294_v24 = vadd.f32 %v8059_v50, %v1190_v30  ;;  %v1494_v12 = vmul.f32 %v6281_v49, %v1492_v28  ;;  %v1339_v58 = vadd.f32 %v8061_v9, %v1219_v47  ;;  %v8063_v59 = vld [vmem:[#allocation94_spill] sm:$0xff] }
 0x2ff   : > { %8052 = vst [vmem:[#allocation20_spill] sm:$0xff] %v6311_v39  ;;  %v6321_v7 = vpop.permute.xlu0 %2408  ;;  %v1466_v2 = vmul.f32 %v6281_v49, %v1464_v46  ;;  %v6350_v29 = vadd.f32 %v1465_v62, %v1369_v11  ;;  %v2834_v63 = vstv %s6295_s10  ;;  %v1310_v40 = vadd.f32 %v8062_v22, %v1198_v10  ;;  %v8066_v62 = vld [vmem:[#allocation97_spill] sm:$0xff]  ;;  %v8067_v11 = vld [vmem:[#allocation99_spill] sm:$0xff]  ;;  %v8070_v22 = vld [vmem:[#allocation100_spill] sm:$0xff]  ;;  %s6543_s10 = sld [smem:[#allocation6 + $0x5a]] }
 0x300   : > { %v1309_v30 = vadd.f32 %v8063_v59, %v6239_v34  ;;  %v1414_v50 = vadd.f32 %v8064_v60, %v1294_v24  ;;  %v1325_v47 = vadd.f32 %v8066_v62, %v6248_v23  ;;  %v1479_v10 = vmul.f32 %v6288_v1, %v1478_v41  ;;  %v8069_v24 = vld [vmem:[#allocation98_spill] sm:$0xff] }
 0x301   : > { %v6370_v9 = vadd.f32 %v1473_v33, %v1385_v53  ;;  %v1354_v59 = vadd.f32 %v8070_v22, %v6269_v37  ;;  %v1499_v60 = vstv %s6319_s11  ;;  %v2836_v23 = vmul.f32 %v5986_v16, %v2834_v63  ;;  %v8071_v62 = vld [vmem:[#allocation102_spill] sm:$0xff]  ;;  %s6552_s11 = sld [smem:[#allocation6 + $0x111]] }
 0x302   : > { %v1487_v33 = vmul.f32 %v6281_v49, %v1485_v55  ;;  %v2835_v53 = vmul.f32 %v6002_v18, %v2834_v63  ;;  %v6391_v37 = vadd.f32 %v1486_v19, %v1414_v50  ;;  %v8073_v22 = vstv %s6234_s25  ;;  %v8074_v55 = vld [vmem:[#allocation105_spill] sm:$0xff]  ;;  %v8076_v19 = vld [vmem:[#allocation106_spill] sm:$0xff]  ;;  %s6465_s25 = sld [smem:[#allocation6 + $0xe7]] }
 0x303   : > { %2824 = vrot.lane.b32.xlu2 %v2820_v3, %s7771_s23  ;;  %v1480_v3 = vmul.f32 %v6281_v49, %v1478_v41  ;;  %v1493_v41 = vmul.f32 %v6288_v1, %v1492_v28  ;;  %v1500_v63 = vmul.f32 %v6288_v1, %v1499_v60  ;;  %v1399_v50 = vadd.f32 %v8076_v19, %v6285_v44  ;;  %v8078_v1 = vld [vmem:[#allocation109_spill] sm:$0xff]  ;;  %v8085_v19 = vld [vmem:[#allocation110_spill] sm:$0xff] }
 0x304   : > { %2811 = vrot.lane.b32.xlu1 %v2806_v25, %s7778_s21  ;;  %v1355_v25 = vadd.f32 %v8067_v11, %v1235_v14  ;;  %v1453_v14 = vadd.f32 %v1451_v13, %v1339_v58  ;;  %v1384_v11 = vadd.f32 %v8071_v62, %v1264_v4  ;;  %v2821_v13 = vmul.f32 %v5986_v16, %v8073_v22  ;;  %v8075_v4 = vld [vmem:[#allocation101_spill] sm:$0xff] }
 0x305   : > { %2809 = vrot.lane.b32.xlu0 %v2805_v54, %s7778_s21  ;;  %v6362_v46 = vpop.permute.xlu2 %2513  ;;  %v1430_v54 = vadd.f32 %v8069_v24, %v1310_v40  ;;  %v8072_v40 = vld [vmem:[#allocation103_spill] sm:$0xff]  ;;  %v1400_v58 = vadd.f32 %v8074_v55, %v1280_v31  ;;  %v1460_v62 = vadd.f32 %v1458_v8, %v1354_v59  ;;  %v8077_v31 = vld [vmem:[#allocation108_spill] sm:$0xff]  ;;  %v1762_v55 = vstv %s6372_s26  ;;  %s6607_s26 = sld [smem:[#allocation6 + $0x7e]] }
 0x306   : > { %8065 = vst [vmem:[#allocation21_spill] sm:$0xff] %v6362_v46  ;;  %v6374_v34 = vpop.permute.xlu1 %2438  ;;  %v1370_v24 = vadd.f32 %v8072_v40, %v6275_v0  ;;  %v1461_v28 = vadd.f32 %v1459_v26, %v1355_v25  ;;  %v6404_v0 = vadd.f32 %v8075_v4, %v1453_v14  ;;  %v1415_v26 = vadd.f32 %v8078_v1, %v6298_v56  ;;  %v8079_v8 = vld [vmem:[#allocation111_spill] sm:$0xff]  ;;  %v8081_v56 = vld [vmem:[#allocation104_spill] sm:$0xff]  ;;  %v6456_v1 = vld [vmem:[%s4687_s8 + $0x1a] sm:$0x3f] }
 0x307   : > { %8068 = vst [vmem:[#allocation22_spill] sm:$0xff] %v6374_v34  ;;  %v6380_v27 = vpop.permute.xlu0 %2436  ;;  %v1501_v34 = vmul.f32 %v6281_v49, %v1499_v60  ;;  %v6408_v40 = vadd.f32 %v1494_v12, %v1430_v54  ;;  %v1429_v49 = vadd.f32 %v8077_v31, %v1309_v30  ;;  %v7761_v25 = vstv %s6345_s12 }
 0x308   : > { %v7760_v60 = vstv %s6354_s18  ;;  %v1474_v44 = vadd.f32 %v1472_v43, %v1384_v11  ;;  %v1445_v12 = vadd.f32 %v8079_v8, %v1325_v47  ;;  %v1468_v54 = vadd.f32 %v1466_v2, %v1370_v24  ;;  %v8084_v47 = vld [vmem:[#allocation107_spill] sm:$0xff]  ;;  %v6440_v24 = vld [vmem:[%s4687_s8 + $0x12] sm:$0xff]  ;;  %s6565_s18 = sld [smem:[#allocation6 + $0x15]] }
 0x309   : > { %v2849_v30 = vstv %s6364_s22  ;;  %v1482_v14 = vadd.f32 %v1480_v3, %v1400_v58  ;;  %v1481_v2 = vadd.f32 %v1479_v10, %v1399_v50  ;;  %v1489_v58 = vadd.f32 %v1487_v33, %v1415_v26  ;;  %s6574_s22 = sld [smem:[#allocation6 + $0x36]] }
 0x30a   : > { %v6435_v11 = vadd.f32 %v8084_v47, %v1474_v44  ;;  %v7759_v4 = vstv %s6385_s27  ;;  %v2851_v10 = vmul.f32 %v5986_v16, %v2849_v30  ;;  %v1503_v31 = vadd.f32 %v1501_v34, %v1445_v12 }
 0x30b   : > { %2841 = vrot.lane.b32.xlu2 %v2836_v23, %s7771_s23  ;;  %v6427_v23 = vadd.f32 %v8081_v56, %v1461_v28  ;;  %v1495_v28 = vadd.f32 %v1493_v41, %v1429_v49  ;;  %v6453_v50 = vadd.f32 %v8085_v19, %v1482_v14  ;;  %v1764_v44 = vmul.f32 %v6456_v1, %v1762_v55  ;;  %v8086_v56 = vld [vmem:[#allocation113_spill] sm:$0xff]  ;;  %v8087_v41 = vld [vmem:[#allocation114_spill] sm:$0xff]  ;;  %v8088_v14 = vld [vmem:[#allocation115_spill] sm:$0xff] }
 0x30c   : > { %2839 = vrot.lane.b32.xlu1 %v2835_v53, %s7771_s23  ;;  %v8082_v53 = vld [vmem:[#allocation112_spill] sm:$0xff]  ;;  %v2850_v8 = vmul.f32 %v6002_v18, %v2849_v30  ;;  %v1532_v33 = vadd.f32 %v8087_v41, %v1460_v62  ;;  %v1748_v26 = vstv %s6393_s28  ;;  %v1518_v47 = vadd.f32 %v8088_v14, %v6338_v52  ;;  %v8092_v41 = vld [vmem:[#allocation118_spill] sm:$0xff]  ;;  %s6629_s28 = sld [smem:[#allocation6 + $0x18]] }
 0x30d   : > { %2826 = vrot.lane.b32.xlu0 %v2821_v13, %s7771_s23  ;;  %v6423_v59 = vpop.permute.xlu2 %2541  ;;  %v1444_v22 = vadd.f32 %v8082_v53, %v6314_v35  ;;  %v1756_v13 = vmul.f32 %v6440_v24, %v7761_v25  ;;  %v2865_v35 = vmul.f32 %v6002_v18, %v7760_v60  ;;  %v6461_v53 = vadd.f32 %v8086_v56, %v1495_v28  ;;  %v8089_v30 = vld [vmem:[#allocation116_spill] sm:$0xff] }
 0x30e   : > { %8080 = vst [vmem:[#allocation23_spill] sm:$0xff] %v6423_v59  ;;  %v6432_v43 = vpop.permute.xlu1 %2466  ;;  %v1783_v34 = vstv %s6401_s30  ;;  %v6473_v12 = vmul.f32 %v6440_v24, %v7759_v4  ;;  %v7762_v19 = vstv %s6410_s4  ;;  %v6480_v28 = vadd.f32 %v8089_v30, %v1503_v31  ;;  %v8093_v4 = vld [vmem:[#allocation119_spill] sm:$0xff]  ;;  %s6635_s30 = sld [smem:[#allocation6 + $0x40]] }
 0x30f   : > { %8083 = vst [vmem:[#allocation24_spill] sm:$0xff] %v6432_v43  ;;  %v6445_v3 = vpop.permute.xlu0 %2453  ;;  %v1502_v49 = vadd.f32 %v1500_v63, %v1444_v22  ;;  %v8090_v63 = vld [vmem:[#allocation117_spill] sm:$0xff]  ;;  %v8091_v22 = vld [vmem:[#allocation126_spill] sm:$0xff]  ;;  %v2879_v52 = vstv %s6419_s7  ;;  %v1547_v14 = vadd.f32 %v8092_v41, %v6350_v29  ;;  %v1652_v60 = vadd.f32 %v8093_v4, %v1532_v33  ;;  %v8096_v30 = vld [vmem:[#allocation131_spill] sm:$0xff]  ;;  %s6649_s7 = sld [smem:[#allocation6 + $0xa2]] }
 0x310   : > { %v1548_v62 = vadd.f32 %v8090_v63, %v1468_v54  ;;  %v6493_v31 = vmul.f32 %v6440_v24, %v1748_v26  ;;  %v1785_v29 = vmul.f32 %v6456_v1, %v1783_v34  ;;  %v1798_v4 = vmul.f32 %v6440_v24, %v7762_v19 }
 0x311   : > { %v1622_v56 = vadd.f32 %v8091_v22, %v1502_v49  ;;  %v1769_v25 = vstv %s6437_s19  ;;  %v1763_v43 = vmul.f32 %v6440_v24, %v1762_v55  ;;  %v8101_v19 = vstv %s6345_s12  ;;  %s6559_s12 = sld [smem:[#allocation6 + $0x116]] }
 0x312   : > { %v6530_v59 = vadd.f32 %v1756_v13, %v1652_v60  ;;  %v6536_v55 = vmul.f32 %v6456_v1, %v1769_v25  ;;  %v8106_v60 = vld [vmem:[#allocation127_spill] sm:$0xff]  ;;  %v8117_v6 = vstv %s6410_s4  ;;  %s6646_s4 = sld [smem:[#allocation6 + $0x1c]] }
 0x313   : > { %2869 = vrot.lane.b32.xlu2 %v2865_v35, %s7771_s23  ;;  %v1750_v35 = vmul.f32 %v6456_v1, %v1748_v26  ;;  %v1742_v63 = vadd.f32 %v8096_v30, %v1622_v56  ;;  %v8098_v26 = vld [vmem:[#allocation120_spill] sm:$0xff]  ;;  %v2881_v56 = vmul.f32 %v5986_v16, %v2879_v52  ;;  %v1608_v13 = vadd.f32 %v8106_v60, %v6408_v40  ;;  %v8109_v40 = vld [vmem:[#allocation130_spill] sm:$0xff]  ;;  %s6684_s19 = sld [smem:[#allocation6 + $0xea]] }
 0x314   : > { %2856 = vrot.lane.b32.xlu1 %v2851_v10, %s7771_s23  ;;  %v8095_v10 = vld [vmem:[#allocation122_spill] sm:$0xff]  ;;  %v1577_v22 = vadd.f32 %v8098_v26, %v1481_v2  ;;  %v2880_v2 = vmul.f32 %v6002_v18, %v2879_v52  ;;  %v8102_v26 = vld [vmem:[#allocation123_spill] sm:$0xff]  ;;  %v6618_v46 = vmul.f32 %v6456_v1, %v8117_v6  ;;  %v7766_v6 = vstv %s6543_s10 }
 0x315   : > { %2854 = vrot.lane.b32.xlu0 %v2850_v8, %s7771_s23  ;;  %v6496_v54 = vpop.permute.xlu2 %2558  ;;  %v1668_v49 = vadd.f32 %v8095_v10, %v1548_v62  ;;  %v8099_v8 = vld [vmem:[#allocation121_spill] sm:$0xff] }
 0x316   : > { %8094 = vst [vmem:[#allocation26_spill] sm:$0xff] %v6496_v54  ;;  %v6506_v33 = vpop.permute.xlu1 %2483  ;;  %v6511_v41 = vadd.f32 %v8099_v8, %v6370_v9  ;;  %v8100_v10 = vld [vmem:[#allocation129_spill] sm:$0xff]  ;;  %v1593_v54 = vadd.f32 %v8102_v26, %v1489_v58  ;;  %v8103_v9 = vld [vmem:[#allocation124_spill] sm:$0xff]  ;;  %v1800_v58 = vadd.f32 %v1798_v4, %v1742_v63  ;;  %v6550_v26 = vmul.f32 %v6440_v24, %v1783_v34 }
 0x317   : > { %8097 = vst [vmem:[#allocation25_spill] sm:$0xff] %v6506_v33  ;;  %v6516_v62 = vpop.permute.xlu0 %2481  ;;  %v1638_v30 = vadd.f32 %v8100_v10, %v1518_v47  ;;  %v1757_v33 = vmul.f32 %v6456_v1, %v8101_v19  ;;  %v6528_v8 = vadd.f32 %v8103_v9, %v6391_v37  ;;  %v6539_v47 = vmul.f32 %v6440_v24, %v1769_v25  ;;  %v8105_v37 = vld [vmem:[#allocation125_spill] sm:$0xff]  ;;  %v8107_v10 = vld [vmem:[#allocation128_spill] sm:$0xff] }
 0x318   : > { %v6541_v19 = vadd.f32 %v1764_v44, %v1668_v49  ;;  %v1697_v52 = vadd.f32 %v8105_v37, %v1577_v22  ;;  %v1713_v61 = vadd.f32 %v8107_v10, %v1593_v54  ;;  %v1790_v44 = vstv %s6465_s25  ;;  %v8108_v49 = vld [vmem:[#allocation160_spill] sm:$0xff]  ;;  %s6692_s25 = sld [smem:[#allocation6 + $0xc6]] }
 0x319   : > { %v1752_v25 = vadd.f32 %v1750_v35, %v1638_v30  ;;  %v1920_v63 = vadd.f32 %v8108_v49, %v1800_v58  ;;  %v7764_v4 = vstv %s6486_s20  ;;  %v1637_v34 = vadd.f32 %v8109_v40, %v6404_v0  ;;  %v8110_v54 = vld [vmem:[#allocation132_spill] sm:$0xff]  ;;  %v8112_v30 = vld [vmem:[#allocation133_spill] sm:$0xff]  ;;  %v8113_v58 = vld [vmem:[#allocation134_spill] sm:$0xff] }
 0x31a   : > { %v1667_v22 = vadd.f32 %v8110_v54, %v1547_v14  ;;  %v7763_v9 = vstv %s6476_s29  ;;  %v8114_v0 = vld [vmem:[#allocation174_spill] sm:$0xff]  ;;  %v6578_v14 = vld [vmem:[%s4687_s8 + $0x20] sm:$0xff]  ;;  %v6589_v54 = vadd.f32 %v6473_v12, %v1697_v52  ;;  %v1791_v52 = vmul.f32 %v6440_v24, %v1790_v44 }
 0x31b   : > { %2886 = vrot.lane.b32.xlu2 %v2881_v56, %s7771_s23  ;;  %v2894_v56 = vstv %s6498_s5  ;;  %v1816_v37 = vadd.f32 %v8113_v58, %v1752_v25  ;;  %v2040_v60 = vadd.f32 %v8114_v0, %v1920_v63  ;;  %v2097_v10 = vmul.f32 %v6578_v14, %v7763_v9  ;;  %v8116_v58 = vld [vmem:[#allocation163_spill] sm:$0xff]  ;;  %v6600_v9 = vld [vmem:[%s4687_s8 + $0x28] sm:$0x3f]  ;;  %s6712_s5 = sld [smem:[#allocation6 + $0x64]] }
 0x31c   : > { %2884 = vrot.lane.b32.xlu1 %v2880_v2, %s7771_s23  ;;  %v1653_v2 = vadd.f32 %v8112_v30, %v6427_v23  ;;  %v2047_v23 = vstv %s6514_s9  ;;  %v2910_v63 = vmul.f32 %v6002_v18, %v7764_v4  ;;  %v1792_v30 = vmul.f32 %v6456_v1, %v1790_v44  ;;  %v8118_v24 = vld [vmem:[#allocation135_spill] sm:$0xff]  ;;  %s6738_s9 = sld [smem:[#allocation6 + $0x60]] }
 0x31d   : > { %2871 = vrot.lane.b32.xlu0 %v2866_v42, %s7771_s23  ;;  %v6568_v35 = vpop.permute.xlu2 %2586  ;;  %v8115_v42 = vstv %s6385_s27  ;;  %v1936_v0 = vadd.f32 %v8116_v58, %v1816_v37  ;;  %v1765_v12 = vadd.f32 %v1763_v43, %v1667_v22  ;;  %v6605_v39 = vadd.f32 %v1785_v29, %v1713_v61  ;;  %s6620_s27 = sld [smem:[#allocation6 + $0x5d]]  ;;  %v8119_v61 = vld [vmem:[#allocation136_spill] sm:$0xff]  ;;  %v8120_v22 = vld [vmem:[#allocation137_spill] sm:$0xff] }
 0x31e   : > { %8111 = vst [vmem:[#allocation27_spill] sm:$0xff] %v6568_v35  ;;  %v6583_v49 = vpop.permute.xlu1 %2511  ;;  %v1778_v40 = vmul.f32 %v6456_v1, %v8115_v42  ;;  %v2049_v35 = vmul.f32 %v6600_v9, %v2047_v23  ;;  %v2896_v42 = vmul.f32 %v5986_v16, %v2894_v56  ;;  %v2895_v4 = vmul.f32 %v6002_v18, %v2894_v56 }
 0x31f   : > { %v6592_v25 = vpop.permute.xlu0 %2498  ;;  %v6611_v37 = vadd.f32 %v6493_v31, %v1637_v34  ;;  %v6613_v58 = vadd.f32 %v1757_v33, %v1653_v2  ;;  %v2099_v43 = vadd.f32 %v2097_v10, %v2040_v60  ;;  %v1683_v29 = vadd.f32 %v8118_v24, %v6511_v41  ;;  %v8121_v33 = vld [vmem:[#allocation179_spill] sm:$0xff] }
 0x320   : > { %v1682_v44 = vadd.f32 %v8119_v61, %v6435_v11  ;;  %v1845_v56 = vadd.f32 %v8120_v22, %v1765_v12  ;;  %v7765_v31 = vstv %s6552_s11  ;;  %v2051_v1 = vadd.f32 %v2049_v35, %v1936_v0  ;;  %v8122_v11 = vld [vmem:[#allocation138_spill] sm:$0xff]  ;;  %v8123_v60 = vld [vmem:[#allocation139_spill] sm:$0xff] }
 0x321   : > { %v2219_v34 = vadd.f32 %v8121_v33, %v2099_v43  ;;  %v2924_v41 = vstv %s6559_s12  ;;  %v1712_v2 = vadd.f32 %v8122_v11, %v6528_v8  ;;  %v1698_v10 = vadd.f32 %v8123_v60, %v6453_v50  ;;  %v6654_v61 = vld [vmem:[%s4687_s8 + $0x21] sm:$0xff]  ;;  %v8127_v33 = vld [vmem:[#allocation166_spill] sm:$0xff]  ;;  %s6751_s12 = sld [smem:[#allocation6 + $0xc9]] }
 0x322   : > { %v7767_v24 = vstv %s6565_s18  ;;  %v2054_v0 = vstv %s6574_s22  ;;  %v2395_v50 = vmul.f32 %v6654_v61, %v7765_v31  ;;  %v1965_v11 = vadd.f32 %v8127_v33, %v1845_v56  ;;  %v6671_v31 = vld [vmem:[%s4687_s8 + $0x29] sm:$0x3f]  ;;  %s8155_s22 = smov 127  }
 0x323   : > { %2914 = vrot.lane.b32.xlu2 %v2910_v63, %s7771_s23  ;;  %v8124_v63 = vld [vmem:[#allocation141_spill] sm:$0xff]  ;;  %v2339_v43 = vadd.f32 %v6258_v51, %v2219_v34  ;;  %v2062_v60 = vmul.f32 %v6578_v14, %v7766_v6  ;;  %v2926_v51 = vmul.f32 %v5986_v16, %v2924_v41  ;;  %v8128_v34 = vld [vmem:[#allocation182_spill] sm:$0xff]  ;;  %v2925_v56 = vmul.f32 %v6002_v18, %v2924_v41 }
 0x324   : > { %2901 = vrot.lane.b32.xlu1 %v2896_v42, %s7771_s23  ;;  %v1728_v12 = vadd.f32 %v8124_v63, %v1608_v13  ;;  %v8125_v42 = vld [vmem:[#allocation177_spill] sm:$0xff]  ;;  %v6679_v33 = vadd.f32 %v6539_v47, %v1682_v44  ;;  %v6682_v6 = vmul.f32 %v6578_v14, %v2047_v23  ;;  %v6697_v18 = vmul.f32 %v6600_v9, %v2054_v0 }
 0x325   : > { %2899 = vrot.lane.b32.xlu0 %v2895_v4, %s7771_s23  ;;  %v6644_v35 = vpop.permute.xlu2 %2603  ;;  %v2115_v8 = vadd.f32 %v8125_v42, %v2051_v1  ;;  %v8126_v4 = vld [vmem:[#allocation142_spill] sm:$0xff]  ;;  %v1773_v1 = vadd.f32 %v6536_v55, %v1683_v29  ;;  %v8129_v55 = vstv %s6486_s20  ;;  %v2397_v47 = vadd.f32 %v2395_v50, %v2339_v43  ;;  %s6702_s20 = sld [smem:[#allocation6 + $0x81]]  ;;  %v6709_v43 = vld [vmem:[%s4687_s8 + $0x30] sm:$0xff] }
 0x326   : > { %v2529_v13 = vpop.permute.xlu1 %2528  ;;  %v1727_v22 = vadd.f32 %v8126_v4, %v6461_v53  ;;  %v2347_v53 = vmul.f32 %v6671_v31, %v7767_v24  ;;  %v1786_v4 = vadd.f32 %v6550_v26, %v1712_v2  ;;  %v2911_v29 = vmul.f32 %v5986_v16, %v8129_v55  ;;  %v8132_v50 = vld [vmem:[#allocation145_spill] sm:$0xff] }
 0x327   : > { %v6665_v63 = vpop.permute.xlu0 %2526  ;;  %v2235_v42 = vadd.f32 %v8128_v34, %v2115_v8  ;;  %v8130_v8 = vld [vmem:[#allocation140_spill] sm:$0xff]  ;;  %v6690_v24 = vadd.f32 %v1778_v40, %v1698_v10  ;;  %v1794_v26 = vadd.f32 %v1792_v30, %v1728_v12  ;;  %v2064_v44 = vadd.f32 %v2062_v60, %v1965_v11  ;;  %v6719_v60 = vld [vmem:[%s4687_s8 + $0x38] sm:$0x3f] }
 0x328   : > { %v1861_v34 = vadd.f32 %v8130_v8, %v1773_v1  ;;  %v6699_v23 = vadd.f32 %v1791_v52, %v1727_v22  ;;  %v2068_v41 = vstv %s6607_s26  ;;  %v7768_v2 = vstv %s6620_s27  ;;  %v8131_v52 = vld [vmem:[#allocation143_spill] sm:$0xff]  ;;  %v8135_v8 = vld [vmem:[#allocation169_spill] sm:$0xff]  ;;  %s6760_s26 = sld [smem:[#allocation6 + $0xed]] }
 0x329   : > { %v2349_v40 = vadd.f32 %v2347_v53, %v2235_v42  ;;  %v2517_v10 = vadd.f32 %v6583_v49, %v2397_v47  ;;  %v7769_v30 = vstv %s6635_s30  ;;  %v1890_v12 = vadd.f32 %v8131_v52, %v1786_v4  ;;  %v8133_v42 = vld [vmem:[#allocation180_spill] sm:$0xff] }
 0x32a   : > { %v1743_v22 = vadd.f32 %v8132_v50, %v6480_v28  ;;  %v2998_v49 = vstv %s6646_s4  ;;  %v7776_v1 = vstv %s6649_s7  ;;  %v2144_v53 = vadd.f32 %v8133_v42, %v2064_v44  ;;  %v8136_v44 = vld [vmem:[#allocation186_spill] sm:$0xff]  ;;  %s6770_s4 = sld [smem:[#allocation6 + $0x84]] }
 0x32b   : > { %2931 = vrot.lane.b32.xlu2 %v2926_v51, %s7771_s23  ;;  %v7770_v51 = vstv %s6629_s28  ;;  %v1981_v47 = vadd.f32 %v8135_v8, %v1861_v34  ;;  %v2070_v28 = vmul.f32 %v6600_v9, %v2068_v41  ;;  %v3014_v50 = vmul.f32 %v6709_v43, %v7769_v30 }
 0x32c   : > { %2929 = vrot.lane.b32.xlu1 %v2925_v56, %s7771_s23  ;;  %v2413_v56 = vadd.f32 %v6321_v7, %v2349_v40  ;;  %v2264_v7 = vadd.f32 %v8136_v44, %v2144_v53  ;;  %v3000_v34 = vmul.f32 %v6719_v60, %v2998_v49  ;;  %v1801_v8 = vadd.f32 %v6618_v46, %v1743_v22  ;;  %v8139_v44 = vld [vmem:[#allocation147_spill] sm:$0xff]  ;;  %v8141_v46 = vld [vmem:[#allocation149_spill] sm:$0xff] }
 0x32d   : > { %2916 = vrot.lane.b32.xlu0 %v2911_v29, %s7771_s23  ;;  %v2632_v11 = vpop.permute.xlu2 %2631  ;;  %v2360_v29 = vmul.f32 %v6654_v61, %v7768_v2  ;;  %v6749_v2 = vmul.f32 %v6578_v14, %v2068_v41  ;;  %v2999_v53 = vmul.f32 %v6709_v43, %v2998_v49  ;;  %v1831_v30 = vadd.f32 %v8139_v44, %v6613_v58  ;;  %s6775_s23 = sld [smem:[#allocation6 + $0xac]] }
 0x32e   : > { %v6726_v55 = vadd.f32 %v2632_v11, %v2517_v10  ;;  %v2557_v4 = vpop.permute.xlu1 %2556  ;;  %v2533_v40 = vadd.f32 %v2529_v13, %v2413_v56  ;;  %v2645_v10 = vmul.f32 %v5986_v16, %v7770_v51  ;;  %v8137_v11 = vld [vmem:[#allocation144_spill] sm:$0xff]  ;;  %v8138_v13 = vld [vmem:[#allocation146_spill] sm:$0xff]  ;;  %v2072_v22 = vadd.f32 %v2070_v28, %v1981_v47 }
 0x32f   : > { %v6733_v52 = vpop.permute.xlu0 %2543  ;;  %v1815_v42 = vadd.f32 %v8137_v11, %v6611_v37  ;;  %v1906_v56 = vadd.f32 %v8138_v13, %v1794_v26  ;;  %v8140_v16 = vld [vmem:[#allocation148_spill] sm:$0xff]  ;;  %v7774_v37 = vstv %s6692_s25  ;;  %v6766_v49 = vmul.f32 %v6600_v9, %v7776_v1  ;;  %v8142_v47 = vld [vmem:[#allocation150_spill] sm:$0xff] }
 0x330   : > { %8134 = vst [vmem:[#allocation29_spill] sm:$0xff] %v6726_v55  ;;  %v1830_v51 = vadd.f32 %v8140_v16, %v6530_v59  ;;  %v7773_v11 = vstv %s6684_s19  ;;  %v7775_v58 = vstv %s6702_s20  ;;  %v2362_v26 = vadd.f32 %v2360_v29, %v2264_v7 }
 0x331   : > { %v1935_v41 = vadd.f32 %v8141_v46, %v1815_v42  ;;  %v2647_v59 = vadd.f32 %v2645_v10, %v2533_v40  ;;  %v3028_v13 = vstv %s6712_s5  ;;  %v6779_v28 = vadd.f32 %v8142_v47, %v6679_v33  ;;  %v8143_v42 = vld [vmem:[#allocation151_spill] sm:$0xff]  ;;  %s6790_s5 = sld [smem:[#allocation6 + $0x88]]  ;;  %v8144_v40 = vld [vmem:[#allocation172_spill] sm:$0xff] }
 0x332   : > { %v1846_v44 = vadd.f32 %v8143_v42, %v6541_v19  ;;  %v2091_v29 = vmul.f32 %v6600_v9, %v7773_v11  ;;  %v2010_v33 = vadd.f32 %v8144_v40, %v1890_v12  ;;  %v2442_v19 = vadd.f32 %v6380_v27, %v2362_v26  ;;  %v8147_v47 = vld [vmem:[#allocation175_spill] sm:$0xff] }
 0x333   : > { %3018 = vrot.lane.b32.xlu2 %v3014_v50, %s7778_s21  ;;  %v2083_v50 = vmul.f32 %v6578_v14, %v7774_v37  ;;  %v2026_v42 = vadd.f32 %v8147_v47, %v1906_v56  ;;  %v3030_v12 = vmul.f32 %v6719_v60, %v3028_v13  ;;  %v7777_v40 = vstv %s6738_s9  ;;  %v6808_v26 = vld [vmem:[%s4687_s8 + $0x22] sm:$0xff] }
 0x334   : > { %3005 = vrot.lane.b32.xlu1 %v3000_v34, %s7778_s21  ;;  %v8145_v34 = vld [vmem:[#allocation183_spill] sm:$0xff]  ;;  %v3029_v27 = vmul.f32 %v6709_v43, %v3028_v13  ;;  %v2658_v56 = vmul.f32 %v6808_v26, %v7777_v40  ;;  %v2055_v47 = vmul.f32 %v6578_v14, %v2054_v0  ;;  %v2050_v37 = vadd.f32 %v6682_v6, %v1935_v41  ;;  %v8151_v13 = vld [vmem:[#allocation162_spill] sm:$0xff] }
 0x335   : > { %3003 = vrot.lane.b32.xlu0 %v2999_v53, %s7778_s21  ;;  %v2707_v7 = vpop.permute.xlu2 %2706  ;;  %v2160_v10 = vadd.f32 %v8145_v34, %v2072_v22  ;;  %v2368_v53 = vmul.f32 %v6671_v31, %v7775_v58  ;;  %v2562_v34 = vadd.f32 %v2557_v4, %v2442_v19  ;;  %v8149_v58 = vstv %s6635_s30  ;;  %v8150_v4 = vld [vmem:[#allocation152_spill] sm:$0xff]  ;;  %s6829_s21 = sld [smem:[#allocation6 + $0x39]] }
 0x336   : > { %v6795_v16 = vadd.f32 %v2707_v7, %v2647_v59  ;;  %v2574_v46 = vpop.permute.xlu1 %2573  ;;  %v8148_v59 = vld [vmem:[#allocation159_spill] sm:$0xff]  ;;  %v1950_v19 = vadd.f32 %v8151_v13, %v1830_v51  ;;  %v8152_v1 = vstv %s6543_s10  ;;  %v8153_v55 = vstv %s6476_s29  ;;  %s6837_s29 = sld [smem:[#allocation6 + $0xd0]] }
 0x337   : > { %v6801_v11 = vpop.permute.xlu0 %2571  ;;  %v2280_v22 = vadd.f32 %v5870_v36, %v2160_v10  ;;  %v1921_v7 = vadd.f32 %v8148_v59, %v1801_v8  ;;  %v3015_v36 = vmul.f32 %v6719_v60, %v8149_v58  ;;  %v1951_v10 = vadd.f32 %v8150_v4, %v1831_v30  ;;  %v8154_v8 = vld [vmem:[#allocation164_spill] sm:$0xff]  ;;  %s6861_s10 = sld [smem:[#allocation6 + $0xcc]] }
 0x338   : > { %8146 = vst [vmem:[#allocation28_spill] sm:$0xff] %v6795_v16  ;;  %v2063_v16 = vmul.f32 %v6600_v9, %v8152_v1  ;;  %v2098_v40 = vmul.f32 %v6600_v9, %v8153_v55  ;;  %v2085_v6 = vadd.f32 %v2083_v50, %v2010_v33  ;;  %v2093_v41 = vadd.f32 %v2091_v29, %v2026_v42  ;;  %v8156_v55 = vld [vmem:[#allocation165_spill] sm:$0xff]  ;;  %v8157_v42 = vld [vmem:[#allocation178_spill] sm:$0xff]  ;;  %s6890_s30 = sld [smem:[#allocation6 + $0x118]] }
 0x339   : > { %v2041_v0 = vadd.f32 %v8154_v8, %v1921_v7  ;;  %v7780_v59 = vstv %s6751_s12  ;;  %v7781_v30 = vstv %s6760_s26  ;;  %v2370_v58 = vadd.f32 %v2368_v53, %v2280_v22 }
 0x33a   : > { %v2660_v51 = vadd.f32 %v2658_v56, %v2562_v34  ;;  %v3058_v1 = vstv %s6775_s23  ;;  %v1966_v4 = vadd.f32 %v8156_v55, %v1846_v44  ;;  %v2205_v7 = vadd.f32 %v5880_v45, %v2093_v41  ;;  %s6942_s23 = sld [smem:[#allocation6 + $0x1d]] }
 0x33b   : > { %3035 = vrot.lane.b32.xlu2 %v3030_v12, %s8155_s22  ;;  %v3043_v29 = vstv %s6790_s5  ;;  %v2664_v33 = vstv %s6770_s4  ;;  %v2114_v53 = vadd.f32 %v8157_v42, %v2050_v37  ;;  %v2189_v12 = vadd.f32 %v5826_v32, %v2085_v6  ;;  %v8158_v6 = vld [vmem:[#allocation153_spill] sm:$0xff]  ;;  %s6912_s5 = sld [smem:[#allocation6 + $0x3c]] }
 0x33c   : > { %3033 = vrot.lane.b32.xlu1 %v3029_v27, %s8155_s22  ;;  %v2458_v22 = vadd.f32 %v6445_v3, %v2370_v58  ;;  %v2325_v44 = vadd.f32 %v5999_v48, %v2205_v7  ;;  %v2381_v45 = vmul.f32 %v6654_v61, %v7780_v59  ;;  %v2389_v56 = vmul.f32 %v6671_v31, %v7781_v30  ;;  %v6866_v48 = vld [vmem:[%s4687_s8 + $0x2a] sm:$0x3f]  ;;  %s7103_s4 = sld [smem:[#allocation6 + $0x1f]] }
 0x33d   : > { %3020 = vrot.lane.b32.xlu0 %v3015_v36, %s8155_s22  ;;  %v2735_v50 = vpop.permute.xlu2 %2734  ;;  %v3059_v32 = vmul.f32 %v6709_v43, %v3058_v1  ;;  %v2309_v3 = vadd.f32 %v5929_v17, %v2189_v12  ;;  %v3045_v13 = vmul.f32 %v6719_v60, %v3043_v29  ;;  %v2666_v8 = vmul.f32 %v6866_v48, %v2664_v33  ;;  %v8160_v17 = vld [vmem:[#allocation154_spill] sm:$0xff] }
 0x33e   : > { %v6847_v34 = vadd.f32 %v2735_v50, %v2660_v51  ;;  %v2602_v27 = vpop.permute.xlu1 %2601  ;;  %v2578_v37 = vadd.f32 %v2574_v46, %v2458_v22  ;;  %v1876_v41 = vadd.f32 %v8158_v6, %v6690_v24  ;;  %v2234_v58 = vadd.f32 %v5938_v5, %v2114_v53  ;;  %v8161_v22 = vld [vmem:[#allocation155_spill] sm:$0xff] }
 0x33f   : > { %v6856_v36 = vpop.permute.xlu0 %2588  ;;  %v8159_v51 = vstv %s6565_s18  ;;  %v3044_v7 = vmul.f32 %v6709_v43, %v3043_v29  ;;  %v1875_v46 = vadd.f32 %v8160_v17, %v6589_v54  ;;  %v2057_v50 = vadd.f32 %v2055_v47, %v1950_v19  ;;  %s6885_s18 = sld [smem:[#allocation6 + $0xf0]]  ;;  %v8162_v5 = vld [vmem:[#allocation167_spill] sm:$0xff] }
 0x340   : > { %v2346_v55 = vmul.f32 %v6654_v61, %v8159_v51  ;;  %v2058_v42 = vadd.f32 %v6697_v18, %v1951_v10  ;;  %v2352_v12 = vstv %s6829_s21  ;;  %v1980_v59 = vadd.f32 %v8161_v22, %v6779_v28  ;;  %v8163_v18 = vld [vmem:[#allocation181_spill] sm:$0xff]  ;;  %s6896_s21 = sld [smem:[#allocation6 + $0xf4]] }
 0x341   : > { %v2065_v30 = vadd.f32 %v2063_v16, %v1966_v4  ;;  %v2100_v24 = vadd.f32 %v2098_v40, %v2041_v0  ;;  %v2391_v6 = vadd.f32 %v2389_v56, %v2325_v44  ;;  %v2129_v29 = vadd.f32 %v8162_v5, %v2057_v50  ;;  %v8168_v5 = vld [vmem:[#allocation168_spill] sm:$0xff] }
 0x342   : > { %v2383_v53 = vadd.f32 %v2381_v45, %v2309_v3  ;;  %v2668_v54 = vadd.f32 %v2666_v8, %v2578_v37  ;;  %v3073_v47 = vstv %s6837_s29  ;;  %v2130_v10 = vadd.f32 %v8163_v18, %v2058_v42  ;;  %v8166_v42 = vld [vmem:[#allocation156_spill] sm:$0xff]  ;;  %s4278_s29 = sld [smem:[#allocation6 + $0x119]] }
 0x343   : > { %3063 = vrot.lane.b32.xlu2 %v3059_v32, %s8155_s22  ;;  %v2348_v28 = vadd.f32 %v2346_v55, %v2234_v58  ;;  %v2354_v16 = vmul.f32 %v6671_v31, %v2352_v12  ;;  %v2503_v40 = vadd.f32 %v6592_v25, %v2391_v6  ;;  %v2220_v0 = vadd.f32 %v5948_v21, %v2100_v24  ;;  %v8167_v6 = vld [vmem:[#allocation158_spill] sm:$0xff] }
 0x344   : > { %3050 = vrot.lane.b32.xlu1 %v3045_v13, %s8155_s22  ;;  %v8164_v4 = vstv %s6552_s11  ;;  %v2487_v45 = vadd.f32 %v6516_v62, %v2383_v53  ;;  %v3075_v13 = vmul.f32 %v6719_v60, %v3073_v47  ;;  %v2678_v8 = vstv %s6861_s10  ;;  %v8169_v53 = vld [vmem:[#allocation170_spill] sm:$0xff]  ;;  %s6944_s11 = sld [smem:[#allocation6 + $0xa5]] }
 0x345   : > { %3048 = vrot.lane.b32.xlu0 %v3044_v7, %s8155_s22  ;;  %v2752_v19 = vpop.permute.xlu2 %2751  ;;  %v2396_v44 = vmul.f32 %v6671_v31, %v8164_v4  ;;  %v2412_v25 = vadd.f32 %v6061_v15, %v2348_v28  ;;  %v2340_v21 = vadd.f32 %v6252_v20, %v2220_v0  ;;  %v3074_v62 = vmul.f32 %v6709_v43, %v3073_v47  ;;  %s4290_s10 = sld [smem:[#allocation6 + $0x43]] }
 0x346   : > { %v6903_v56 = vadd.f32 %v2752_v19, %v2668_v54  ;;  %v2619_v32 = vpop.permute.xlu1 %2618  ;;  %v2607_v58 = vadd.f32 %v2602_v27, %v2487_v45  ;;  %v2679_v51 = vmul.f32 %v6808_v26, %v2678_v8  ;;  %v2250_v15 = vadd.f32 %v6010_v38, %v2130_v10  ;;  %v8173_v19 = vld [vmem:[#allocation21_spill] sm:$0xff] }
 0x347   : > { %v6906_v3 = vadd.f32 %v2619_v32, %v2503_v40  ;;  %v6908_v37 = vpop.permute.xlu0 %2616  ;;  %v2532_v55 = vadd.f32 %v6665_v63, %v2412_v25  ;;  %v3060_v7 = vmul.f32 %v6719_v60, %v3058_v1  ;;  %v8165_v17 = vstv %s6629_s28  ;;  %s6998_s28 = sld [smem:[#allocation6 + $0x41]] }
 0x348   : > { %v2644_v50 = vmul.f32 %v6808_v26, %v8165_v17  ;;  %v1905_v20 = vadd.f32 %v8166_v42, %v6699_v23  ;;  %v2071_v27 = vadd.f32 %v6749_v2, %v1980_v59  ;;  %v2249_v22 = vadd.f32 %v6015_v57, %v2129_v29  ;;  %v8171_v23 = vld [vmem:[#allocation184_spill] sm:$0xff] }
 0x349   : > { %v2353_v24 = vmul.f32 %v6654_v61, %v2352_v12  ;;  %v1996_v38 = vadd.f32 %v8167_v6, %v1876_v41  ;;  %v1995_v63 = vadd.f32 %v8168_v5, %v1875_v46  ;;  %v2145_v1 = vadd.f32 %v8169_v53, %v2065_v30  ;;  %v8179_v53 = vld [vmem:[#allocation23_spill] sm:$0xff] }
 0x34a   : > { %v8170_v54 = vstv %s6649_s7  ;;  %v2159_v2 = vadd.f32 %v8171_v23, %v2071_v27  ;;  %v2398_v59 = vadd.f32 %v2396_v44, %v2340_v21  ;;  %v2681_v57 = vadd.f32 %v2679_v51, %v2607_v58  ;;  %v8174_v44 = vld [vmem:[#allocation15_spill] sm:$0xff]  ;;  %v8175_v58 = vld [vmem:[#allocation20_spill] sm:$0xff]  ;;  %s7006_s7 = sld [smem:[#allocation6 + $0xa8]] }
 0x34b   : > { %v2076_v47 = vmul.f32 %v6578_v14, %v8170_v54  ;;  %3080 = vrot.lane.b32.xlu2 %v3075_v13, %s8155_s22  ;;  %v3103_v12 = vstv %s6890_s30  ;;  %v2356_v41 = vadd.f32 %v2354_v16, %v2250_v15  ;;  %v2646_v46 = vadd.f32 %v2644_v50, %v2532_v55  ;;  %s7134_s30 = sld [smem:[#allocation6 + $0x63]] }
 0x34c   : > { %3078 = vrot.lane.b32.xlu1 %v3074_v62, %s8155_s22  ;;  %v3088_v29 = vstv %s6896_s21  ;;  %v2685_v18 = vstv %s6885_s18  ;;  %v8172_v10 = vstv %s6702_s20  ;;  %v2355_v40 = vadd.f32 %v2353_v24, %v2249_v22  ;;  %v8177_v22 = vld [vmem:[#allocation13_spill] sm:$0xff]  ;;  %s7062_s20 = sld [smem:[#allocation6 + $0xd1]] }
 0x34d   : > { %3065 = vrot.lane.b32.xlu0 %v3060_v7, %s8155_s22  ;;  %v2780_v30 = vpop.permute.xlu2 %2779  ;;  %v2367_v28 = vmul.f32 %v6654_v61, %v8172_v10  ;;  %v2518_v0 = vadd.f32 %v8173_v19, %v2398_v59  ;;  %v2428_v45 = vadd.f32 %v8174_v44, %v2356_v41  ;;  %v3104_v13 = vmul.f32 %v6709_v43, %v3103_v12  ;;  %v8176_v7 = vld [vmem:[#allocation185_spill] sm:$0xff]  ;;  %s7126_s18 = sld [smem:[#allocation6 + $0x3f]] }
 0x34e   : > { %v6953_v4 = vadd.f32 %v2780_v30, %v2681_v57  ;;  %v2705_v16 = vpop.permute.xlu1 %2704  ;;  %v2650_v21 = vstv %s6912_s5  ;;  %v2427_v62 = vadd.f32 %v8175_v58, %v2355_v40  ;;  %v3090_v15 = vmul.f32 %v6719_v60, %v3088_v29  ;;  %v8180_v59 = vld [vmem:[#allocation157_spill] sm:$0xff]  ;;  %s7140_s21 = sld [smem:[#allocation6 + $0x8b]] }
 0x34f   : > { %v6956_v32 = vadd.f32 %v2705_v16, %v2646_v46  ;;  %v2634_v25 = vpop.permute.xlu0 %2633  ;;  %v2687_v55 = vmul.f32 %v6866_v48, %v2685_v18  ;;  %v2279_v17 = vadd.f32 %v8176_v7, %v2159_v2  ;;  %v2548_v50 = vadd.f32 %v6733_v52, %v2428_v45  ;;  %v8186_v45 = vld [vmem:[#allocation187_spill] sm:$0xff]  ;;  %s4291_s5 = sld [smem:[#allocation6 + $0x67]] }
 0x350   : > { %v6963_v51 = vadd.f32 %v2634_v25, %v2518_v0  ;;  %v3089_v42 = vmul.f32 %v6709_v43, %v3088_v29  ;;  %v2652_v27 = vmul.f32 %v6866_v48, %v2650_v21  ;;  %v2265_v24 = vadd.f32 %v8177_v22, %v2145_v1  ;;  %v8183_v1 = vld [vmem:[#allocation161_spill] sm:$0xff] }
 0x351   : > { %v8178_v6 = vstv %s6620_s27  ;;  %v2547_v54 = vadd.f32 %v8179_v53, %v2427_v62  ;;  %v2651_v23 = vmul.f32 %v6808_v26, %v2650_v21  ;;  %v1891_v2 = vadd.f32 %v8180_v59, %v6605_v39  ;;  %s6993_s27 = sld [smem:[#allocation6 + $0x65]]  ;;  %v8184_v39 = vld [vmem:[#allocation171_spill] sm:$0xff] }
 0x352   : > { %v2361_v5 = vmul.f32 %v6671_v31, %v8178_v6  ;;  %v8181_v57 = vstv %s6692_s25  ;;  %v2079_v41 = vadd.f32 %v6766_v49, %v1996_v38  ;;  %v8182_v30 = vstv %s6684_s19  ;;  %v8185_v38 = vld [vmem:[#allocation173_spill] sm:$0xff]  ;;  %s8193_s19 = smov 126   ;;  %s7030_s25 = sld [smem:[#allocation6 + $0x89]] }
 0x353   : > { %v2084_v52 = vmul.f32 %v6600_v9, %v8181_v57  ;;  %v2090_v46 = vmul.f32 %v6578_v14, %v8182_v30  ;;  %3108 = vrot.lane.b32.xlu2 %v3104_v13, %s8155_s22  ;;  %v2025_v29 = vadd.f32 %v8183_v1, %v1905_v20  ;;  %v2078_v10 = vadd.f32 %v2076_v47, %v1995_v63  ;;  %v8187_v13 = vld [vmem:[#allocation12_spill] sm:$0xff] }
 0x354   : > { %3095 = vrot.lane.b32.xlu1 %v3090_v15, %s8155_s22  ;;  %v2689_v40 = vadd.f32 %v2687_v55, %v6906_v3  ;;  %v3118_v19 = vstv %s6942_s23  ;;  %v2011_v0 = vadd.f32 %v8184_v39, %v1891_v2  ;;  %v2369_v9 = vadd.f32 %v2367_v28, %v2279_v17  ;;  %v8188_v55 = vld [vmem:[#allocation22_spill] sm:$0xff]  ;;  %v8195_v39 = vld [vmem:[#allocation188_spill] sm:$0xff]  ;;  %s7159_s23 = sld [smem:[#allocation6 + $0xaf]] }
 0x355   : > { %v2373_v16 = vstv %s6944_s11  ;;  %3093 = vrot.lane.b32.xlu0 %v3089_v42, %s8155_s22  ;;  %v2797_v49 = vpop.permute.xlu2 %2796  ;;  %v2654_v14 = vadd.f32 %v2652_v27, %v2548_v50  ;;  %v2174_v20 = vadd.f32 %v8185_v38, %v2078_v10  ;;  %v2363_v63 = vadd.f32 %v2361_v5, %v2265_v24  ;;  %v8189_v42 = vld [vmem:[#allocation11_spill] sm:$0xff]  ;;  %v8190_v5 = vld [vmem:[#allocation16_spill] sm:$0xff]  ;;  %s7167_s11 = sld [smem:[#allocation6 + $0xab]] }
 0x356   : > { %v7001_v47 = vadd.f32 %v2797_v49, %v2689_v40  ;;  %v2722_v3 = vpop.permute.xlu1 %2721  ;;  %v2653_v44 = vadd.f32 %v2651_v23, %v2547_v54  ;;  %v2175_v25 = vadd.f32 %v8186_v45, %v2079_v41  ;;  %v2457_v28 = vadd.f32 %v8187_v13, %v2369_v9  ;;  %v8191_v23 = vld [vmem:[#allocation26_spill] sm:$0xff]  ;;  %v8198_v45 = vld [vmem:[#allocation24_spill] sm:$0xff] }
 0x357   : > { %v2726_v21 = vadd.f32 %v2722_v3, %v2654_v14  ;;  %v2720_v58 = vpop.permute.xlu0 %2719  ;;  %v3120_v62 = vmul.f32 %v6719_v60, %v3118_v19  ;;  %v2375_v15 = vmul.f32 %v6671_v31, %v2373_v16  ;;  %v2443_v7 = vadd.f32 %v8188_v55, %v2363_v63 }
 0x358   : > { %v7010_v17 = vadd.f32 %v2720_v58, %v2653_v44  ;;  %v3119_v50 = vmul.f32 %v6709_v43, %v3118_v19  ;;  %v2295_v27 = vadd.f32 %v8189_v42, %v2175_v25  ;;  %v2577_v22 = vadd.f32 %v6801_v11, %v2457_v28  ;;  %v8199_v28 = vld [vmem:[#allocation14_spill] sm:$0xff] }
 0x359   : > { %v3105_v24 = vmul.f32 %v6719_v60, %v3103_v12  ;;  %v2665_v6 = vmul.f32 %v6808_v26, %v2664_v33  ;;  %v2294_v53 = vadd.f32 %v8190_v5, %v2174_v20  ;;  %v2374_v54 = vmul.f32 %v6654_v61, %v2373_v16  ;;  %v8194_v33 = vld [vmem:[#allocation176_spill] sm:$0xff]  ;;  %v8196_v16 = vld [vmem:[#allocation17_spill] sm:$0xff] }
 0x35a   : > { %v2563_v59 = vadd.f32 %v8191_v23, %v2443_v7  ;;  %v8192_v2 = vstv %s6738_s9  ;;  %v2086_v41 = vadd.f32 %v2084_v52, %v2011_v0  ;;  %v2092_v11 = vadd.f32 %v2090_v46, %v2025_v29  ;;  %v8200_v7 = vld [vmem:[#allocation18_spill] sm:$0xff]  ;;  %s7065_s9 = sld [smem:[#allocation6 + $0xad]] }
 0x35b   : > { %v2659_v57 = vmul.f32 %v6866_v48, %v8192_v2  ;;  %3125 = vrot.lane.b32.xlu2 %v3120_v62, %s8193_s19  ;;  %v3148_v12 = vstv %s6993_s27  ;;  %v2377_v1 = vadd.f32 %v2375_v15, %v2295_v27  ;;  %v2667_v40 = vadd.f32 %v2665_v6, %v2577_v22  ;;  %v8203_v2 = vld [vmem:[#allocation19_spill] sm:$0xff]  ;;  %s7178_s27 = sld [smem:[#allocation6 + $0xcf]] }
 0x35c   : > { %3123 = vrot.lane.b32.xlu1 %v3119_v50, %s8193_s19  ;;  %v2190_v30 = vadd.f32 %v8194_v33, %v2086_v41  ;;  %v3133_v19 = vstv %s6998_s28  ;;  %v2204_v52 = vadd.f32 %v8195_v39, %v2092_v11  ;;  %v2376_v0 = vadd.f32 %v2374_v54, %v2294_v53  ;;  %s7182_s28 = sld [smem:[#allocation6 + $0xf7]] }
 0x35d   : > { %3110 = vrot.lane.b32.xlu0 %v3105_v24, %s8155_s22  ;;  %v2825_v10 = vpop.permute.xlu2 %2824  ;;  %v2661_v9 = vadd.f32 %v2659_v57, %v2563_v59  ;;  %v2473_v49 = vadd.f32 %v8196_v16, %v2377_v1  ;;  %v3149_v20 = vmul.f32 %v6709_v43, %v3148_v12  ;;  %v2671_v63 = vstv %s7006_s7  ;;  %s7185_s7 = sld [smem:[#allocation6 + $0xd3]] }
 0x35e   : > { %v7037_v46 = vadd.f32 %v2825_v10, %v6956_v32  ;;  %v2750_v29 = vpop.permute.xlu1 %2749  ;;  %v8197_v3 = vstv %s6760_s26  ;;  %v2472_v25 = vadd.f32 %v8198_v45, %v2376_v0  ;;  %v3135_v32 = vmul.f32 %v6719_v60, %v3133_v19  ;;  %s7087_s26 = sld [smem:[#allocation6 + $0xf5]] }
 0x35f   : > { %v2755_v14 = vadd.f32 %v2750_v29, %v2667_v40  ;;  %v2737_v38 = vpop.permute.xlu0 %2736  ;;  %v2388_v44 = vmul.f32 %v6654_v61, %v8197_v3  ;;  %v2324_v58 = vadd.f32 %v8199_v28, %v2204_v52  ;;  %v2593_v62 = vadd.f32 %v6856_v36, %v2473_v49  ;;  %v8202_v61 = vld [vmem:[#allocation27_spill] sm:$0xff] }
 0x360   : > { %v7046_v13 = vadd.f32 %v2737_v38, %v2661_v9  ;;  %v3134_v15 = vmul.f32 %v6709_v43, %v3133_v19  ;;  %v2673_v55 = vmul.f32 %v6866_v48, %v2671_v63  ;;  %v2310_v50 = vadd.f32 %v8200_v7, %v2190_v30  ;;  %v8204_v30 = vld [vmem:[#allocation25_spill] sm:$0xff] }
 0x361   : > { %v8201_v42 = vstv %s6751_s12  ;;  %v2592_v22 = vadd.f32 %v8202_v61, %v2472_v25  ;;  %v2672_v24 = vmul.f32 %v6808_v26, %v2671_v63  ;;  %v3163_v6 = vstv %s7030_s25  ;;  %s4236_s12 = sld [smem:[#allocation6 + $0x114]] }
 0x362   : > { %v2382_v27 = vmul.f32 %v6671_v31, %v8201_v42  ;;  %v2390_v36 = vadd.f32 %v2388_v44, %v2324_v58  ;;  %v2675_v53 = vadd.f32 %v2673_v55, %v2593_v62  ;;  %v3165_v33 = vmul.f32 %v6719_v60, %v3163_v6  ;;  %v8205_v62 = vld [vmem:[#allocation29_spill] sm:$0xff]  ;;  %s4255_s25 = sld [smem:[#allocation6 + $0x1b]] }
 0x363   : > { %3153 = vrot.lane.b32.xlu2 %v3149_v20, %s8193_s19  ;;  %v2674_v59 = vadd.f32 %v2672_v24, %v2592_v22  ;;  %v3164_v40 = vmul.f32 %v6709_v43, %v3163_v6  ;;  %v3150_v19 = vmul.f32 %v6719_v60, %v3148_v12  ;;  %v2686_v39 = vmul.f32 %v6808_v26, %v2685_v18 }
 0x364   : > { %3140 = vrot.lane.b32.xlu1 %v3135_v32, %s8193_s19  ;;  %v2384_v31 = vadd.f32 %v2382_v27, %v2310_v50  ;;  %v2502_v57 = vadd.f32 %v8203_v2, %v2390_v36  ;;  %v2680_v0 = vmul.f32 %v6866_v48, %v2678_v8  ;;  %v3193_v29 = vstv %s7062_s20  ;;  %s7203_s20 = sld [smem:[#allocation6 + $0x11b]] }
 0x365   : > { %3138 = vrot.lane.b32.xlu0 %v3134_v15, %s8193_s19  ;;  %v2842_v5 = vpop.permute.xlu2 %2841  ;;  %v3178_v12 = vstv %s7065_s9  ;;  %v3194_v8 = vmul.f32 %v6709_v43, %v3193_v29  ;;  %v3195_v27 = vmul.f32 %v6719_v60, %v3193_v29  ;;  %v3296_v61 = vstv %s7103_s4  ;;  %s7212_s9 = sld [smem:[#allocation6 + $0x117]] }
 0x366   : > { %v7067_v54 = vadd.f32 %v2842_v5, %v2726_v21  ;;  %v2767_v23 = vpop.permute.xlu1 %2766  ;;  %v2488_v1 = vadd.f32 %v8204_v30, %v2384_v31  ;;  %v2622_v21 = vadd.f32 %v6908_v37, %v2502_v57  ;;  %v3180_v3 = vmul.f32 %v6719_v60, %v3178_v12  ;;  %s4258_s4 = sld [smem:[#allocation6 + $0x87]] }
 0x367   : > { %v2771_v41 = vadd.f32 %v2767_v23, %v2675_v53  ;;  %v2765_v11 = vpop.permute.xlu0 %2764  ;;  %v2692_v20 = vstv %s4236_s12  ;;  %v3179_v44 = vmul.f32 %v6709_v43, %v3178_v12  ;;  %v3223_v24 = vstv %s4278_s29  ;;  %v8206_v23 = vld [vmem:[#allocation28_spill] sm:$0xff]  ;;  %s7227_s12 = sld [smem:[#allocation6 + $0x44]] }
 0x368   : > { %v7072_v10 = vadd.f32 %v2765_v11, %v2674_v59  ;;  %v2608_v52 = vadd.f32 %v6644_v35, %v2488_v1  ;;  %v2688_v9 = vadd.f32 %v2686_v39, %v2622_v21  ;;  %v2694_v45 = vmul.f32 %v6866_v48, %v2692_v20  ;;  %s7254_s29 = sld [smem:[#allocation6 + $0x68]] }
 0x369   : > { %v2693_v25 = vmul.f32 %v6808_v26, %v2692_v20  ;;  %v3225_v2 = vmul.f32 %v6719_v60, %v3223_v24  ;;  %v3224_v57 = vmul.f32 %v6709_v43, %v3223_v24  ;;  %v2956_v12 = vstv %s7134_s30  ;;  %s4261_s30 = sld [smem:[#allocation6 + $0xf3]] }
 0x36a   : > { %v2682_v35 = vadd.f32 %v2680_v0, %v2608_v52  ;;  %v2696_v28 = vadd.f32 %v2694_v45, %v6963_v51  ;;  %v7118_v51 = vld [vmem:[%s4687_s8 + $0x31] sm:$0xff] }
 0x36b   : > { %3170 = vrot.lane.b32.xlu2 %v3165_v33, %s8193_s19  ;;  %v2695_v26 = vadd.f32 %v2693_v25, %v8205_v62  ;;  %v3297_v31 = vmul.f32 %v7118_v51, %v3296_v61  ;;  %v3356_v25 = vstv %s7159_s23  ;;  %s4303_s23 = sld [smem:[#allocation6 + $0xf8]] }
 0x36c   : > { %3168 = vrot.lane.b32.xlu1 %v3164_v40, %s8193_s19 }
 0x36d   : > { %3155 = vrot.lane.b32.xlu0 %v3150_v19, %s8193_s19  ;;  %v2870_v37 = vpop.permute.xlu2 %2869  ;;  %v2949_v19 = vstv %s7126_s18  ;;  %s4300_s18 = sld [smem:[#allocation6 + $0x8c]] }
 0x36e   : > { %v7091_v16 = vadd.f32 %v2870_v37, %v2755_v14  ;;  %v2795_v18 = vpop.permute.xlu1 %2794  ;;  %v3208_v14 = vstv %s7087_s26  ;;  %v2950_v0 = vmul.f32 %v6709_v43, %v2949_v19  ;;  %v3341_v37 = vstv %s7140_s21  ;;  %s7231_s26 = sld [smem:[#allocation6 + $0x20]] }
 0x36f   : > { %v2800_v49 = vadd.f32 %v2795_v18, %v2688_v9  ;;  %v2782_v38 = vpop.permute.xlu0 %2781  ;;  %v3210_v7 = vmul.f32 %v6719_v60, %v3208_v14  ;;  %v3209_v42 = vmul.f32 %v6709_v43, %v3208_v14  ;;  %v3326_v9 = vstv %s4291_s5  ;;  %s7293_s21 = sld [smem:[#allocation6 + $0xd4]] }
 0x370   : > { %v7094_v63 = vadd.f32 %v2782_v38, %v2682_v35  ;;  %v3327_v45 = vmul.f32 %v7118_v51, %v3326_v9  ;;  %s7310_s5 = sld [smem:[#allocation6 + $0x11c]] }
 0x373   : > { %3198 = vrot.lane.b32.xlu2 %v3194_v8, %s8193_s19  ;;  %v3342_v8 = vmul.f32 %v7118_v51, %v3341_v37 }
 0x374   : > { %3185 = vrot.lane.b32.xlu1 %v3180_v3, %s8193_s19 }
 0x375   : > { %3183 = vrot.lane.b32.xlu0 %v3179_v44, %s8193_s19  ;;  %v2887_v32 = vpop.permute.xlu2 %2886  ;;  %v2958_v44 = vmul.f32 %v6719_v60, %v2956_v12 }
 0x376   : > { %v7107_v58 = vadd.f32 %v2887_v32, %v2771_v41  ;;  %v2812_v48 = vpop.permute.xlu1 %2811  ;;  %v3311_v41 = vstv %s4290_s10  ;;  %s7272_s10 = sld [smem:[#allocation6 + $0xb0]] }
 0x377   : > { %v2816_v15 = vadd.f32 %v2812_v48, %v2696_v28  ;;  %v2810_v55 = vpop.permute.xlu0 %2809  ;;  %v3312_v52 = vmul.f32 %v7118_v51, %v3311_v41 }
 0x378   : > { %v7111_v50 = vadd.f32 %v2810_v55, %v2695_v26  ;;  %v2970_v26 = vstv %s7167_s11  ;;  %v3357_v55 = vmul.f32 %v7118_v51, %v3356_v25  ;;  %s7328_s11 = sld [smem:[#allocation6 + $0x22]] }
 0x37b   : > { %3215 = vrot.lane.b32.xlu2 %v3210_v7, %s8193_s19  ;;  %v2971_v7 = vmul.f32 %v6709_v43, %v2970_v26 }
 0x37c   : > { %3213 = vrot.lane.b32.xlu1 %v3209_v42, %s8193_s19 }
 0x37d   : > { %3200 = vrot.lane.b32.xlu0 %v3195_v27, %s8193_s19  ;;  %v2915_v22 = vpop.permute.xlu2 %2914  ;;  %v3386_v27 = vstv %s7182_s28  ;;  %s7343_s28 = sld [smem:[#allocation6 + $0x42]] }
 0x37e   : > { %v7122_v6 = vadd.f32 %v2915_v22, %v2800_v49  ;;  %v2840_v36 = vpop.permute.xlu1 %2839  ;;  %v2977_v22 = vstv %s7178_s27  ;;  %s7336_s27 = sld [smem:[#allocation6 + $0x1e]] }
 0x37f   : > { %v2845_v5 = vadd.f32 %v2840_v36, %v7010_v17  ;;  %v2827_v53 = vpop.permute.xlu0 %2826  ;;  %v7138_v17 = vld [vmem:[%s4687_s8 + $0x39] sm:$0x3f] }
 0x380   : > { %v7129_v59 = vadd.f32 %v2827_v53, %v8206_v23  ;;  %v3313_v21 = vmul.f32 %v7138_v17, %v3311_v41  ;;  %v3298_v29 = vmul.f32 %v7138_v17, %v3296_v61  ;;  %v3328_v3 = vmul.f32 %v7138_v17, %v3326_v9 }
 0x381   : > { %v3358_v62 = vmul.f32 %v7138_v17, %v3356_v25  ;;  %v3343_v42 = vmul.f32 %v7138_v17, %v3341_v37  ;;  %v3371_v61 = vstv %s7185_s7  ;;  %v2942_v23 = vstv %s4255_s25  ;;  %s7350_s7 = sld [smem:[#allocation6 + $0x6a]] }
 0x382   : > { %v2979_v41 = vmul.f32 %v6719_v60, %v2977_v22  ;;  %v2991_v9 = vstv %s7212_s9  ;;  %v3416_v25 = vstv %s7231_s26  ;;  %s4316_s25 = sld [smem:[#allocation6 + $0x46]] }
 0x383   : > { %3301 = vrot.lane.b32.xlu2 %v3297_v31, %s8155_s22  ;;  %v3387_v31 = vmul.f32 %v7118_v51, %v3386_v27  ;;  %s7391_s9 = sld [smem:[#allocation6 + $0xae]] }
 0x384   : > { %3230 = vrot.lane.b32.xlu1 %v3225_v2, %s8193_s19  ;;  %s4319_s26 = sld [smem:[#allocation6 + $0xb2]] }
 0x385   : > { %3228 = vrot.lane.b32.xlu0 %v3224_v57, %s8193_s19  ;;  %v2932_v11 = vpop.permute.xlu2 %2931  ;;  %v3373_v57 = vmul.f32 %v7138_v17, %v3371_v61 }
 0x386   : > { %v7143_v33 = vadd.f32 %v2932_v11, %v2816_v15  ;;  %v2857_v30 = vpop.permute.xlu1 %2856  ;;  %v3372_v11 = vmul.f32 %v7118_v51, %v3371_v61 }
 0x387   : > { %v2861_v1 = vadd.f32 %v2857_v30, %v7046_v13  ;;  %v2855_v40 = vpop.permute.xlu0 %2854  ;;  %v2952_v13 = vadd.f32 %v2950_v0, %v2845_v5  ;;  %v2944_v30 = vmul.f32 %v6719_v60, %v2942_v23 }
 0x388   : > { %v7149_v39 = vadd.f32 %v2855_v40, %v6847_v34  ;;  %v3401_v40 = vstv %s7203_s20  ;;  %s7380_s20 = sld [smem:[#allocation6 + $0x8a]] }
 0x38b   : > { %3318 = vrot.lane.b32.xlu2 %v3313_v21, %s8155_s22  ;;  %v2946_v21 = vadd.f32 %v2944_v30, %v7129_v59  ;;  %v2992_v59 = vmul.f32 %v6709_v43, %v2991_v9  ;;  %v2972_v30 = vmul.f32 %v6719_v60, %v2970_v26 }
 0x38c   : > { %3316 = vrot.lane.b32.xlu1 %v3312_v52, %s8155_s22 }
 0x38d   : > { %3303 = vrot.lane.b32.xlu0 %v3298_v29, %s8155_s22  ;;  %v3019_v34 = vpop.permute.xlu2 %3018  ;;  %v2974_v26 = vadd.f32 %v2972_v30, %v7107_v58  ;;  %v3491_v58 = vstv %s7293_s21  ;;  %s4283_s21 = sld [smem:[#allocation6 + $0x66]] }
 0x38e   : > { %v7163_v18 = vadd.f32 %v3019_v34, %v2952_v13  ;;  %v2885_v35 = vpop.permute.xlu1 %2884  ;;  %v3403_v34 = vmul.f32 %v7138_v17, %v3401_v40 }
 0x38f   : > { %v2890_v49 = vadd.f32 %v2885_v35, %v7072_v10  ;;  %v2872_v38 = vpop.permute.xlu0 %2871  ;;  %v2960_v10 = vadd.f32 %v2958_v44, %v2861_v1  ;;  %v3431_v44 = vstv %s7227_s12  ;;  %s7395_s12 = sld [smem:[#allocation6 + $0xd6]] }
 0x390   : > { %v7170_v20 = vadd.f32 %v2872_v38, %v6903_v56  ;;  %v3388_v38 = vmul.f32 %v7138_v17, %v3386_v27 }
 0x393   : > { %3346 = vrot.lane.b32.xlu2 %v3342_v8, %s8155_s22  ;;  %v2957_v8 = vmul.f32 %v6709_v43, %v2956_v12 }
 0x394   : > { %3333 = vrot.lane.b32.xlu1 %v3328_v3, %s8155_s22 }
 0x395   : > { %3331 = vrot.lane.b32.xlu0 %v3327_v45, %s8155_s22  ;;  %v3036_v56 = vpop.permute.xlu2 %3035 }
 0x396   : > { %v7187_v14 = vadd.f32 %v3036_v56, %v2960_v10  ;;  %v2902_v32 = vpop.permute.xlu1 %2901  ;;  %v2959_v10 = vadd.f32 %v2957_v8, %v7149_v39 }
 0x397   : > { %v2906_v28 = vadd.f32 %v2902_v32, %v7094_v63  ;;  %v2900_v48 = vpop.permute.xlu0 %2899  ;;  %v2973_v63 = vadd.f32 %v2971_v7, %v2890_v49  ;;  %v3402_v49 = vmul.f32 %v7118_v51, %v3401_v40  ;;  %v3418_v7 = vmul.f32 %v7138_v17, %v3416_v25 }
 0x398   : > { %v7193_v15 = vadd.f32 %v2900_v48, %v6953_v4  ;;  %v3432_v48 = vmul.f32 %v7118_v51, %v3431_v44  ;;  %v3461_v40 = vstv %s4300_s18  ;;  %s7437_s18 = sld [smem:[#allocation6 + $0x23]] }
 0x399   : > { %v2981_v1 = vadd.f32 %v2979_v41, %v2906_v28 }
 0x39b   : > { %3363 = vrot.lane.b32.xlu2 %v3358_v62, %s8155_s22  ;;  %v2963_v62 = vstv %s4258_s4  ;;  %s7414_s4 = sld [smem:[#allocation6 + $0xfa]] }
 0x39c   : > { %3361 = vrot.lane.b32.xlu1 %v3357_v55, %s8155_s22  ;;  %v2965_v39 = vmul.f32 %v6719_v60, %v2963_v62 }
 0x39d   : > { %3348 = vrot.lane.b32.xlu0 %v3343_v42, %s8155_s22  ;;  %v3064_v4 = vpop.permute.xlu2 %3063  ;;  %v3417_v42 = vmul.f32 %v7118_v51, %v3416_v25 }
 0x39e   : > { %v7208_v24 = vadd.f32 %v3064_v4, %v2973_v63  ;;  %v2930_v36 = vpop.permute.xlu1 %2929  ;;  %v2964_v63 = vmul.f32 %v6709_v43, %v2963_v62  ;;  %v2967_v4 = vadd.f32 %v2965_v39, %v7170_v20  ;;  %v2978_v20 = vmul.f32 %v6709_v43, %v2977_v22 }
 0x39f   : > { %v2935_v5 = vadd.f32 %v2930_v36, %v7111_v50  ;;  %v2917_v53 = vpop.permute.xlu0 %2916  ;;  %v2943_v50 = vmul.f32 %v6709_v43, %v2942_v23 }
 0x3a0   : > { %v7215_v2 = vadd.f32 %v2917_v53, %v7001_v47 }
 0x3a1   : > { %v2945_v29 = vadd.f32 %v2943_v50, %v7037_v46  ;;  %v2951_v46 = vmul.f32 %v6719_v60, %v2949_v19  ;;  %v2994_v3 = vadd.f32 %v2992_v59, %v2935_v5  ;;  %v2966_v5 = vadd.f32 %v2964_v63, %v7091_v16 }
 0x3a2   : > { %v3476_v16 = vstv %s7272_s10  ;;  %s7433_s10 = sld [smem:[#allocation6 + $0x11a]] }
 0x3a3   : > { %3391 = vrot.lane.b32.xlu2 %v3387_v31, %s8155_s22  ;;  %v2953_v19 = vadd.f32 %v2951_v46, %v7067_v54  ;;  %v3446_v54 = vstv %s7254_s29  ;;  %s7422_s29 = sld [smem:[#allocation6 + $0xf6]] }
 0x3a4   : > { %3378 = vrot.lane.b32.xlu1 %v3373_v57, %s8155_s22  ;;  %v3448_v23 = vmul.f32 %v7138_v17, %v3446_v54  ;;  %v3447_v41 = vmul.f32 %v7118_v51, %v3446_v54 }
 0x3a5   : > { %3376 = vrot.lane.b32.xlu0 %v3372_v11, %s8155_s22  ;;  %v3081_v47 = vpop.permute.xlu2 %3080  ;;  %v3433_v11 = vmul.f32 %v7138_v17, %v3431_v44 }
 0x3a6   : > { %v7233_v52 = vadd.f32 %v3081_v47, %v2981_v1  ;;  %v3006_v0 = vpop.permute.xlu1 %3005  ;;  %v2980_v1 = vadd.f32 %v2978_v20, %v7193_v15  ;;  %v3240_v20 = vstv %s7336_s27  ;;  %s4286_s27 = sld [smem:[#allocation6 + $0xd2]] }
 0x3a7   : > { %v3010_v13 = vadd.f32 %v3006_v0, %v2946_v21  ;;  %v3004_v37 = vpop.permute.xlu0 %3003  ;;  %v3477_v0 = vmul.f32 %v7118_v51, %v3476_v16 }
 0x3a8   : > { %v7238_v35 = vadd.f32 %v3004_v37, %v2945_v29  ;;  %v2984_v29 = vstv %s4261_s30  ;;  %v3463_v37 = vmul.f32 %v7138_v17, %v3461_v40  ;;  %s7440_s30 = sld [smem:[#allocation6 + $0x11e]] }
 0x3a9   : > { %v2986_v15 = vmul.f32 %v6719_v60, %v2984_v29 }
 0x3ab   : > { %3408 = vrot.lane.b32.xlu2 %v3403_v34, %s8155_s22  ;;  %v3462_v34 = vmul.f32 %v7118_v51, %v3461_v40  ;;  %v2988_v8 = vadd.f32 %v2986_v15, %v7215_v2  ;;  %v3521_v2 = vstv %s7310_s5  ;;  %v3624_v40 = vstv %s7350_s7  ;;  %s7464_s5 = sld [smem:[#allocation6 + $0x47]] }
 0x3ac   : > { %3406 = vrot.lane.b32.xlu1 %v3402_v49, %s8155_s22  ;;  %v4454_v49 = vld [vmem:[%s4687_s8 + $0x30] sm:$0xff]  ;;  %v3522_v63 = vmul.f32 %v7118_v51, %v3521_v2  ;;  %s4328_s7 = sld [smem:[#allocation6 + $0xd7]] }
 0x3ad   : > { %3393 = vrot.lane.b32.xlu0 %v3388_v38, %s8155_s22  ;;  %v3109_v45 = vpop.permute.xlu2 %3108  ;;  %v2985_v59 = vmul.f32 %v4454_v49, %v2984_v29 }
 0x3ae   : > { %v7259_v56 = vadd.f32 %v3109_v45, %v2994_v3  ;;  %v3034_v12 = vpop.permute.xlu1 %3033 }
 0x3af   : > { %v3039_v32 = vadd.f32 %v3034_v12, %v2959_v10  ;;  %v3021_v28 = vpop.permute.xlu0 %3020  ;;  %v2987_v3 = vadd.f32 %v2985_v59, %v7122_v6  ;;  %v3493_v10 = vmul.f32 %v7138_v17, %v3491_v58  ;;  %v3492_v12 = vmul.f32 %v7118_v51, %v3491_v58 }
 0x3b0   : > { %v7263_v55 = vadd.f32 %v3021_v28, %v2953_v19  ;;  %v3478_v19 = vmul.f32 %v7138_v17, %v3476_v16 }
 0x3b3   : > { %3436 = vrot.lane.b32.xlu2 %v3432_v48, %s8193_s19  ;;  %v3506_v48 = vstv %s4303_s23  ;;  %s7486_s23 = sld [smem:[#allocation6 + $0x8f]] }
 0x3b4   : > { %3423 = vrot.lane.b32.xlu1 %v3418_v7, %s8193_s19 }
 0x3b5   : > { %3421 = vrot.lane.b32.xlu0 %v3417_v42, %s8193_s19  ;;  %v3126_v27 = vpop.permute.xlu2 %3125 }
 0x3b6   : > { %v7276_v61 = vadd.f32 %v3126_v27, %v3010_v13  ;;  %v3051_v36 = vpop.permute.xlu1 %3050  ;;  %v3508_v27 = vmul.f32 %v7138_v17, %v3506_v48 }
 0x3b7   : > { %v3055_v53 = vadd.f32 %v3051_v36, %v2967_v4  ;;  %v3049_v31 = vpop.permute.xlu0 %3048  ;;  %v3507_v4 = vmul.f32 %v7118_v51, %v3506_v48 }
 0x3b8   : > { %v7280_v57 = vadd.f32 %v3049_v31, %v2966_v5  ;;  %v7354_v5 = vld [vmem:[%s4687_s8 + $0x32] sm:$0xff] }
 0x3bb   : > { %3453 = vrot.lane.b32.xlu2 %v3448_v23, %s8193_s19 }
 0x3bc   : > { %3451 = vrot.lane.b32.xlu1 %v3447_v41, %s8193_s19 }
 0x3bd   : > { %3438 = vrot.lane.b32.xlu0 %v3433_v11, %s8193_s19  ;;  %v3154_v50 = vpop.permute.xlu2 %3153 }
 0x3be   : > { %v7297_v47 = vadd.f32 %v3154_v50, %v3039_v32  ;;  %v3079_v43 = vpop.permute.xlu1 %3078  ;;  %v4455_v32 = vld [vmem:[%s4687_s8 + $0x38] sm:$0x3f]  ;;  %v3241_v50 = vmul.f32 %v7118_v51, %v3240_v20 }
 0x3bf   : > { %v3084_v22 = vadd.f32 %v3079_v43, %v2980_v1  ;;  %v3066_v21 = vpop.permute.xlu0 %3065  ;;  %v2993_v28 = vmul.f32 %v4455_v32, %v2991_v9  ;;  %v3523_v1 = vmul.f32 %v7138_v17, %v3521_v2  ;;  %v3609_v43 = vstv %s4316_s25  ;;  %s4330_s25 = sld [smem:[#allocation6 + $0x11f]] }
 0x3c0   : > { %v7301_v13 = vadd.f32 %v3066_v21, %v2974_v26  ;;  %v3247_v26 = vstv %s7343_s28  ;;  %v3610_v59 = vmul.f32 %v7354_v5, %v3609_v43  ;;  %v3654_v2 = vstv %s4319_s26  ;;  %s7524_s28 = sld [smem:[#allocation6 + $0xfb]] }
 0x3c1   : > { %v2995_v42 = vadd.f32 %v2993_v28, %v7143_v33  ;;  %v7347_v33 = vld [vmem:[%s4687_s8 + $0x3a] sm:$0x3f]  ;;  %s7372_s8 = sld [smem:[#allocation6 + $0x8e]]  ;;  %v3249_v49 = vmul.f32 %v7138_v17, %v3247_v26  ;;  %v3669_v28 = vstv %s7395_s12 }
 0x3c2   : > { %v3611_v15 = vmul.f32 %v7347_v33, %v3609_v43  ;;  %v3626_v32 = vmul.f32 %v7347_v33, %v3624_v40  ;;  %v3242_v43 = vmul.f32 %v7138_v17, %v3240_v20  ;;  %s7589_s12 = sld [smem:[#allocation6 + $0xf9]] }
 0x3c3   : > { %3481 = vrot.lane.b32.xlu2 %v3477_v0, %s8193_s19  ;;  %s7607_s26 = sld [smem:[#allocation6 + $0x45]] }
 0x3c4   : > { %3468 = vrot.lane.b32.xlu1 %v3463_v37, %s8193_s19  ;;  %v3625_v37 = vmul.f32 %v7354_v5, %v3624_v40 }
 0x3c5   : > { %3466 = vrot.lane.b32.xlu0 %v3462_v34, %s8193_s19  ;;  %v3171_v38 = vpop.permute.xlu2 %3170 }
 0x3c6   : > { %v7314_v46 = vadd.f32 %v3171_v38, %v3055_v53  ;;  %v3096_v60 = vpop.permute.xlu1 %3095 }
 0x3c7   : > { %v3100_v44 = vadd.f32 %v3096_v60, %v2988_v8  ;;  %v3094_v45 = vpop.permute.xlu0 %3093  ;;  %v3639_v58 = vstv %s7372_s8  ;;  %s7554_s8 = sld [smem:[#allocation6 + $0x21]] }
 0x3c8   : > { %v7318_v25 = vadd.f32 %v3094_v45, %v2987_v3  ;;  %v3261_v45 = vstv %s7380_s20  ;;  %s7569_s20 = sld [smem:[#allocation6 + $0x69]] }
 0x3cb   : > { %3498 = vrot.lane.b32.xlu2 %v3493_v10, %s8193_s19 }
 0x3cc   : > { %3496 = vrot.lane.b32.xlu1 %v3492_v12, %s8193_s19  ;;  %v3640_v12 = vmul.f32 %v7354_v5, %v3639_v58 }
 0x3cd   : > { %3483 = vrot.lane.b32.xlu0 %v3478_v19, %s8193_s19  ;;  %v3199_v6 = vpop.permute.xlu2 %3198  ;;  %v3262_v19 = vmul.f32 %v7118_v51, %v3261_v45 }
 0x3ce   : > { %v7331_v62 = vadd.f32 %v3199_v6, %v3084_v22  ;;  %v3124_v7 = vpop.permute.xlu1 %3123  ;;  %v3268_v6 = vstv %s7391_s9  ;;  %s7572_s9 = sld [smem:[#allocation6 + $0x8d]] }
 0x3cf   : > { %v3129_v9 = vadd.f32 %v3124_v7, %v7238_v35  ;;  %v3111_v39 = vpop.permute.xlu0 %3110  ;;  %v3594_v35 = vstv %s7328_s11  ;;  %s4325_s11 = sld [smem:[#allocation6 + $0x6b]] }
 0x3d0   : > { %v7338_v54 = vadd.f32 %v3111_v39, %v2995_v42  ;;  %v3596_v11 = vmul.f32 %v7347_v33, %v3594_v35  ;;  %v3595_v16 = vmul.f32 %v7354_v5, %v3594_v35  ;;  %v3670_v39 = vmul.f32 %v7354_v5, %v3669_v28 }
 0x3d1   : > { %v3655_v35 = vmul.f32 %v7354_v5, %v3654_v2 }
 0x3d3   : > { %3526 = vrot.lane.b32.xlu2 %v3522_v63, %s8193_s19 }
 0x3d4   : > { %3513 = vrot.lane.b32.xlu1 %v3508_v27, %s8193_s19  ;;  %v3656_v27 = vmul.f32 %v7347_v33, %v3654_v2 }
 0x3d5   : > { %3511 = vrot.lane.b32.xlu0 %v3507_v4, %s8193_s19  ;;  %v3216_v36 = vpop.permute.xlu2 %3215  ;;  %v3270_v4 = vmul.f32 %v7138_v17, %v3268_v6 }
 0x3d6   : > { %v7356_v53 = vadd.f32 %v3216_v36, %v3100_v44  ;;  %v3141_v31 = vpop.permute.xlu1 %3140  ;;  %v3641_v44 = vmul.f32 %v7347_v33, %v3639_v58  ;;  %v3684_v36 = vstv %s7414_s4  ;;  %s7610_s4 = sld [smem:[#allocation7]] }
 0x3d7   : > { %v3145_v23 = vadd.f32 %v3141_v31, %v7263_v55  ;;  %v3139_v41 = vpop.permute.xlu0 %3138  ;;  %v3243_v55 = vadd.f32 %v3241_v50, %v3129_v9  ;;  %v3282_v50 = vstv %s7422_s29  ;;  %s4355_s29 = sshll.u32 %s8215_s15, 7  ;;  %s7634_s15 = sld [smem:[#allocation6 + $0xb1]] }
 0x3d8   : > { %v7362_v30 = vadd.f32 %v3139_v41, %v7163_v18  ;;  %v3283_v40 = vmul.f32 %v7118_v51, %v3282_v50 }
 0x3db   : > { %3601 = vrot.lane.b32.xlu2 %v3596_v11, %s8155_s22 }
 0x3dc   : > { %3599 = vrot.lane.b32.xlu1 %v3595_v16, %s8155_s22  ;;  %v3686_v16 = vmul.f32 %v7347_v33, %v3684_v36 }
 0x3dd   : > { %3528 = vrot.lane.b32.xlu0 %v3523_v1, %s8193_s19  ;;  %v3302_v18 = vpop.permute.xlu2 %3301 }
 0x3de   : > { %v7376_v22 = vadd.f32 %v3302_v18, %v3243_v55  ;;  %v3169_v21 = vpop.permute.xlu1 %3168  ;;  %v3685_v55 = vmul.f32 %v7354_v5, %v3684_v36  ;;  %v3671_v18 = vmul.f32 %v7347_v33, %v3669_v28 }
 0x3df   : > { %v3174_v0 = vadd.f32 %v3169_v21, %v7280_v57  ;;  %v3156_v29 = vpop.permute.xlu0 %3155  ;;  %v3251_v57 = vadd.f32 %v3249_v49, %v3145_v23  ;;  %v3244_v49 = vadd.f32 %v3242_v43, %v7276_v61 }
 0x3e0   : > { %v7383_v34 = vadd.f32 %v3156_v29, %v7187_v14 }
 0x3e3   : > { %3629 = vrot.lane.b32.xlu2 %v3625_v37, %s8155_s22  ;;  %v3699_v37 = vstv %s7440_s30 }
 0x3e4   : > { %3616 = vrot.lane.b32.xlu1 %v3611_v15, %s8155_s22  ;;  %v3289_v15 = vstv %s7433_s10  ;;  %s7619_s10 = sld [smem:[#allocation7 + $0x1]] }
 0x3e5   : > { %3614 = vrot.lane.b32.xlu0 %v3610_v59, %s8155_s22  ;;  %v3319_v14 = vpop.permute.xlu2 %3318 }
 0x3e6   : > { %v7398_v38 = vadd.f32 %v3319_v14, %v3251_v57  ;;  %v3186_v8 = vpop.permute.xlu1 %3185  ;;  %v3254_v14 = vstv %s4283_s21  ;;  %s7626_s21 = scalar_lea.vmem %s7756_s3, %s4355_s29 }
 0x3e7   : > { %v3190_v60 = vadd.f32 %v3186_v8, %v7301_v13  ;;  %v3184_v3 = vpop.permute.xlu0 %3183  ;;  %v3264_v13 = vadd.f32 %v3262_v19, %v3174_v0  ;;  %v3729_v19 = vstv %s7464_s5  ;;  %s7637_s5 = sld [smem:[#allocation7 + $0x3]] }
 0x3e8   : > { %v7404_v10 = vadd.f32 %v3184_v3, %v7208_v24  ;;  %v3700_v3 = vmul.f32 %v7354_v5, %v3699_v37 }
 0x3eb   : > { %3646 = vrot.lane.b32.xlu2 %v3641_v44, %s8155_s22  ;;  %v3256_v44 = vmul.f32 %v7138_v17, %v3254_v14 }
 0x3ec   : > { %3644 = vrot.lane.b32.xlu1 %v3640_v12, %s8155_s22  ;;  %v3255_v12 = vmul.f32 %v7118_v51, %v3254_v14 }
 0x3ed   : > { %3631 = vrot.lane.b32.xlu0 %v3626_v32, %s8155_s22  ;;  %v3347_v24 = vpop.permute.xlu2 %3346 }
 0x3ee   : > { %v7418_v48 = vadd.f32 %v3347_v24, %v3264_v13  ;;  %v3214_v7 = vpop.permute.xlu1 %3213  ;;  %v3258_v13 = vadd.f32 %v3256_v44, %v7383_v34  ;;  %v3257_v2 = vadd.f32 %v3255_v12, %v7297_v47  ;;  %v3269_v34 = vmul.f32 %v7118_v51, %v3268_v6 }
 0x3ef   : > { %v3219_v42 = vadd.f32 %v3214_v7, %v7318_v25  ;;  %v3201_v9 = vpop.permute.xlu0 %3200  ;;  %v3272_v25 = vadd.f32 %v3270_v4, %v3190_v60  ;;  %v3701_v60 = vmul.f32 %v7347_v33, %v3699_v37  ;;  %v3759_v47 = vstv %s7486_s23  ;;  %s7647_s23 = sld [smem:[#allocation7 + $0x4]] }
 0x3f0   : > { %v7425_v63 = vadd.f32 %v3201_v9, %v7233_v52  ;;  %v3731_v9 = vmul.f32 %v7347_v33, %v3729_v19  ;;  %v3271_v36 = vadd.f32 %v3269_v34, %v7404_v10  ;;  %v3761_v14 = vmul.f32 %v7347_v33, %v3759_v47 }
 0x3f1   : > { %v3285_v21 = vadd.f32 %v3283_v40, %v3219_v42  ;;  %v3789_v44 = vstv %s4328_s7  ;;  %s4343_s7 = sld [smem:[#allocation7 + $0x5]] }
 0x3f3   : > { %3674 = vrot.lane.b32.xlu2 %v3670_v39, %s8155_s22 }
 0x3f4   : > { %3661 = vrot.lane.b32.xlu1 %v3656_v27, %s8155_s22  ;;  %v3730_v27 = vmul.f32 %v7354_v5, %v3729_v19 }
 0x3f5   : > { %3659 = vrot.lane.b32.xlu0 %v3655_v35, %s8155_s22  ;;  %v3364_v52 = vpop.permute.xlu2 %3363  ;;  %v3263_v35 = vmul.f32 %v7138_v17, %v3261_v45 }
 0x3f6   : > { %v7442_v31 = vadd.f32 %v3364_v52, %v3272_v25  ;;  %v3231_v23 = vpop.permute.xlu1 %3230  ;;  %v3744_v52 = vstv %s4325_s11  ;;  %s7658_s11 = sld [smem:[#allocation6 + $0x11d]] }
 0x3f7   : > { %v3235_v41 = vadd.f32 %v3231_v23, %v7338_v54  ;;  %v3229_v11 = vpop.permute.xlu0 %3228  ;;  %v3248_v54 = vmul.f32 %v7118_v51, %v3247_v26 }
 0x3f8   : > { %v7448_v1 = vadd.f32 %v3229_v11, %v7259_v56  ;;  %v3714_v56 = vstv %s7437_s18 }
 0x3f9   : > { %v3250_v29 = vadd.f32 %v3248_v54, %v7362_v30  ;;  %v3715_v58 = vmul.f32 %v7354_v5, %v3714_v56  ;;  %v3291_v30 = vmul.f32 %v7138_v17, %v3289_v15  ;;  %v3716_v4 = vmul.f32 %v7347_v33, %v3714_v56 }
 0x3fa   : > { %v3745_v54 = vmul.f32 %v7354_v5, %v3744_v52 }
 0x3fb   : > { %3691 = vrot.lane.b32.xlu2 %v3686_v16, %s8155_s22  ;;  %v3293_v61 = vadd.f32 %v3291_v30, %v3235_v41  ;;  %v3265_v41 = vadd.f32 %v3263_v35, %v7314_v46  ;;  %v3760_v16 = vmul.f32 %v7354_v5, %v3759_v47  ;;  %v3538_v35 = vstv %s7554_s8 }
 0x3fc   : > { %3689 = vrot.lane.b32.xlu1 %v3685_v55, %s8155_s22  ;;  %v3275_v55 = vstv %s4286_s27  ;;  %s7661_s27 = sld [smem:[#allocation7 + $0x6]] }
 0x3fd   : > { %3676 = vrot.lane.b32.xlu0 %v3671_v18, %s8155_s22  ;;  %v3392_v0 = vpop.permute.xlu2 %3391  ;;  %v3746_v18 = vmul.f32 %v7347_v33, %v3744_v52  ;;  %v3277_v10 = vmul.f32 %v7138_v17, %v3275_v55  ;;  %v3276_v43 = vmul.f32 %v7118_v51, %v3275_v55  ;;  %v3540_v52 = vmul.f32 %v7347_v33, %v3538_v35 }
 0x3fe   : > { %v7470_v26 = vadd.f32 %v3392_v0, %v3285_v21  ;;  %v3317_v20 = vpop.permute.xlu1 %3316 }
 0x3ff   : > { %v3322_v59 = vadd.f32 %v3317_v20, %v3250_v29  ;;  %v3304_v57 = vpop.permute.xlu0 %3303  ;;  %v3279_v56 = vadd.f32 %v3277_v10, %v7425_v63  ;;  %v3278_v37 = vadd.f32 %v3276_v43, %v7331_v62  ;;  %v3284_v63 = vmul.f32 %v7138_v17, %v3282_v50 }
 0x400   : > { %v7474_v8 = vadd.f32 %v3304_v57, %v3244_v49  ;;  %v3804_v62 = vstv %s7524_s28  ;;  %v3559_v43 = vstv %s7572_s9  ;;  %s4334_s28 = sld [smem:[#allocation7 + $0x2]] }
 0x401   : > { %v3805_v17 = vmul.f32 %v7354_v5, %v3804_v62 }
 0x403   : > { %3719 = vrot.lane.b32.xlu2 %v3715_v58, %s8193_s19 }
 0x404   : > { %3706 = vrot.lane.b32.xlu1 %v3701_v60, %s8155_s22  ;;  %v3290_v60 = vmul.f32 %v7118_v51, %v3289_v15  ;;  %v3286_v51 = vadd.f32 %v3284_v63, %v7356_v53 }
 0x405   : > { %3704 = vrot.lane.b32.xlu0 %v3700_v3, %s8155_s22  ;;  %v3409_v32 = vpop.permute.xlu2 %3408  ;;  %s7507_s22 = sld [smem:[#allocation6 + $0xb3]] }
 0x406   : > { %v7490_v28 = vadd.f32 %v3409_v32, %v3293_v61  ;;  %v3334_v24 = vpop.permute.xlu1 %3333  ;;  %v3292_v3 = vadd.f32 %v3290_v60, %v7448_v1  ;;  %v3791_v32 = vmul.f32 %v7347_v33, %v3789_v44  ;;  %v3819_v1 = vstv %s4330_s25 }
 0x407   : > { %v3338_v7 = vadd.f32 %v3334_v24, %v3258_v13  ;;  %v3332_v42 = vpop.permute.xlu0 %3331  ;;  %v3790_v13 = vmul.f32 %v7354_v5, %v3789_v44 }
 0x408   : > { %v7494_v39 = vadd.f32 %v3332_v42, %v3257_v2 }
 0x40b   : > { %3736 = vrot.lane.b32.xlu2 %v3731_v9, %s8193_s19  ;;  %v3774_v46 = vstv %s7507_s22  ;;  %v3821_v9 = vmul.f32 %v7347_v33, %v3819_v1  ;;  %s7676_s22 = sld [smem:[#allocation7 + $0x7]] }
 0x40c   : > { %3734 = vrot.lane.b32.xlu1 %v3730_v27, %s8193_s19  ;;  %v3775_v58 = vmul.f32 %v7354_v5, %v3774_v46  ;;  %v3820_v27 = vmul.f32 %v7354_v5, %v3819_v1 }
 0x40d   : > { %3721 = vrot.lane.b32.xlu0 %v3716_v4, %s8193_s19  ;;  %v3437_v25 = vpop.permute.xlu2 %3436  ;;  %v3806_v4 = vmul.f32 %v7347_v33, %v3804_v62 }
 0x40e   : > { %v7511_v23 = vadd.f32 %v3437_v25, %v3322_v59  ;;  %v3362_v6 = vpop.permute.xlu1 %3361  ;;  %v3776_v59 = vmul.f32 %v7347_v33, %v3774_v46 }
 0x40f   : > { %v3367_v45 = vadd.f32 %v3362_v6, %v3271_v36  ;;  %v3349_v11 = vpop.permute.xlu0 %3348 }
 0x410   : > { %v7515_v40 = vadd.f32 %v3349_v11, %v3265_v41 }
 0x413   : > { %3764 = vrot.lane.b32.xlu2 %v3760_v16, %s8193_s19 }
 0x414   : > { %3751 = vrot.lane.b32.xlu1 %v3746_v18, %s8193_s19  ;;  %v3552_v18 = vstv %s7569_s20 }
 0x415   : > { %3749 = vrot.lane.b32.xlu0 %v3745_v54, %s8193_s19  ;;  %v3454_v21 = vpop.permute.xlu2 %3453 }
 0x416   : > { %v7528_v0 = vadd.f32 %v3454_v21, %v3338_v7  ;;  %v3379_v29 = vpop.permute.xlu1 %3378 }
 0x417   : > { %v3383_v20 = vadd.f32 %v3379_v29, %v3279_v56  ;;  %v3377_v49 = vpop.permute.xlu0 %3376 }
 0x418   : > { %v3382_v57 = vadd.f32 %v3377_v49, %v3278_v37 }
 0x41b   : > { %3781 = vrot.lane.b32.xlu2 %v3776_v59, %s8193_s19 }
 0x41c   : > { %3779 = vrot.lane.b32.xlu1 %v3775_v58, %s8193_s19 }
 0x41d   : > { %3766 = vrot.lane.b32.xlu0 %v3761_v14, %s8193_s19  ;;  %v3482_v30 = vpop.permute.xlu2 %3481 }
 0x41e   : > { %v7545_v12 = vadd.f32 %v3482_v30, %v3367_v45  ;;  %v3407_v61 = vpop.permute.xlu1 %3406  ;;  %v3580_v30 = vstv %s7589_s12 }
 0x41f   : > { %v3412_v15 = vadd.f32 %v3407_v61, %v3292_v3  ;;  %v3394_v19 = vpop.permute.xlu0 %3393 }
 0x420   : > { %v3398_v50 = vadd.f32 %v3394_v19, %v3286_v51  ;;  %v3582_v51 = vmul.f32 %v7347_v33, %v3580_v30 }
 0x423   : > { %3809 = vrot.lane.b32.xlu2 %v3805_v17, %s8193_s19 }
 0x424   : > { %3796 = vrot.lane.b32.xlu1 %v3791_v32, %s8193_s19 }
 0x425   : > { %3794 = vrot.lane.b32.xlu0 %v3790_v13, %s8193_s19  ;;  %v3499_v24 = vpop.permute.xlu2 %3498 }
 0x426   : > { %v7556_v53 = vadd.f32 %v3499_v24, %v3383_v20  ;;  %v3424_v2 = vpop.permute.xlu1 %3423 }
 0x427   : > { %v3428_v7 = vadd.f32 %v3424_v2, %v7474_v8  ;;  %v3422_v42 = vpop.permute.xlu0 %3421 }
 0x428   : > { %v3427_v17 = vadd.f32 %v3422_v42, %v7376_v22 }
 0x429   : > { %v3542_v6 = vadd.f32 %v3540_v52, %v3428_v7  ;;  %v3545_v7 = vstv %s7607_s26 }
 0x42a   : > { %v3547_v22 = vmul.f32 %v7347_v33, %v3545_v7 }
 0x42b   : > { %3826 = vrot.lane.b32.xlu2 %v3821_v9, %s8193_s19  ;;  %v3833_v9 = vstv %s7610_s4 }
 0x42c   : > { %3824 = vrot.lane.b32.xlu1 %v3820_v27, %s8193_s19 }
 0x42d   : > { %3811 = vrot.lane.b32.xlu0 %v3806_v4, %s8193_s19  ;;  %v3527_v34 = vpop.permute.xlu2 %3526  ;;  %s7586_s19 = sld [smem:[#allocation6 + $0xd5]] }
 0x42e   : > { %v7566_v47 = vadd.f32 %v3527_v34, %v3412_v15  ;;  %v3452_v25 = vpop.permute.xlu1 %3451 }
 0x42f   : > { %v3457_v8 = vadd.f32 %v3452_v25, %v7494_v39  ;;  %v3439_v36 = vpop.permute.xlu0 %3438  ;;  %v3553_v39 = vmul.f32 %v7354_v5, %v3552_v18 }
 0x430   : > { %v3443_v4 = vadd.f32 %v3439_v36, %v7398_v38  ;;  %v3841_v36 = vstv %s7619_s10 }
 0x431   : > { %v3555_v54 = vadd.f32 %v3553_v39, %v3457_v8 }
 0x432   : > { %v3549_v8 = vadd.f32 %v3547_v22, %v3443_v4 }
 0x433   : > { %v3573_v14 = vstv %s7586_s19 }
 0x434   : > { %v3574_v60 = vmul.f32 %v7354_v5, %v3573_v14 }
 0x435   : > { %v3602_v41 = vpop.permute.xlu2 %3601 }
 0x436   : > { %v7574_v45 = vadd.f32 %v3602_v41, %v3542_v6  ;;  %v3469_v11 = vpop.permute.xlu1 %3468  ;;  %v3560_v41 = vmul.f32 %v7354_v5, %v3559_v43 }
 0x437   : > { %v3473_v16 = vadd.f32 %v3469_v11, %v7515_v40  ;;  %v3467_v55 = vpop.permute.xlu0 %3466  ;;  %v3561_v40 = vmul.f32 %v7347_v33, %v3559_v43 }
 0x438   : > { %v3472_v6 = vadd.f32 %v3467_v55, %v7418_v48 }
 0x439   : > { %v3563_v37 = vadd.f32 %v3561_v40, %v3473_v16  ;;  %v3855_v40 = vstv %s7637_s5 }
 0x43d   : > { %v3630_v10 = vpop.permute.xlu2 %3629 }
 0x43e   : > { %v7582_v46 = vadd.f32 %v3630_v10, %v3555_v54  ;;  %v3497_v21 = vpop.permute.xlu1 %3496  ;;  %v3562_v10 = vadd.f32 %v3560_v41, %v3472_v6  ;;  %v3883_v41 = vstv %s7676_s22 }
 0x43f   : > { %v3502_v56 = vadd.f32 %v3497_v21, %v3382_v57  ;;  %v7584_v29 = vpop.permute.xlu0 %3483 }
 0x440   : > { %v3488_v48 = vadd.f32 %v7584_v29, %v7442_v31  ;;  %v3581_v29 = vmul.f32 %v7354_v5, %v3580_v30 }
 0x441   : > { %v3576_v63 = vadd.f32 %v3574_v60, %v3502_v56  ;;  %v3566_v56 = vstv %s7634_s15 }
 0x442   : > { %v3568_v55 = vmul.f32 %v7347_v33, %v3566_v56 }
 0x444   : > { %v3570_v60 = vadd.f32 %v3568_v55, %v3488_v48 }
 0x445   : > { %v3647_v20 = vpop.permute.xlu2 %3646 }
 0x446   : > { %v7591_v49 = vadd.f32 %v3647_v20, %v3563_v37  ;;  %v3514_v59 = vpop.permute.xlu1 %3513 }
 0x447   : > { %v3518_v58 = vadd.f32 %v3514_v59, %v3398_v50  ;;  %v7593_v57 = vpop.permute.xlu0 %3511  ;;  %v3539_v50 = vmul.f32 %v7354_v5, %v3538_v35 }
 0x448   : > { %v3517_v31 = vadd.f32 %v7593_v57, %v7470_v26  ;;  %v3587_v26 = vstv %s7658_s11  ;;  %v3876_v57 = vstv %s7661_s27 }
 0x449   : > { %v3584_v15 = vadd.f32 %v3582_v51, %v3518_v58  ;;  %v3541_v24 = vadd.f32 %v3539_v50, %v3427_v17  ;;  %v3589_v4 = vmul.f32 %v7347_v33, %v3587_v26 }
 0x44d   : > { %v3675_v62 = vpop.permute.xlu2 %3674 }
 0x44e   : > { %v7600_v3 = vadd.f32 %v3675_v62, %v3576_v63  ;;  %v3600_v44 = vpop.permute.xlu1 %3599  ;;  %v3862_v62 = vstv %s7647_s23 }
 0x44f   : > { %v7602_v61 = vpop.permute.xlu0 %3528  ;;  %v3605_v2 = vadd.f32 %v3600_v44, %v3541_v24 }
 0x455   : > { %v3692_v19 = vpop.permute.xlu2 %3691 }
 0x456   : > { %v7614_v32 = vadd.f32 %v3692_v19, %v3584_v15  ;;  %v3617_v13 = vpop.permute.xlu1 %3616  ;;  %v3546_v19 = vmul.f32 %v7354_v5, %v3545_v7  ;;  %v3533_v7 = vadd.f32 %v7602_v61, %v7490_v28 }
 0x457   : > { %v3615_v1 = vpop.permute.xlu0 %3614  ;;  %v3621_v38 = vadd.f32 %v3617_v13, %v3549_v8  ;;  %v3583_v13 = vadd.f32 %v3581_v29, %v3517_v31 }
 0x458   : > { %v3548_v24 = vadd.f32 %v3546_v19, %v7511_v23  ;;  %v3554_v23 = vmul.f32 %v7347_v33, %v3552_v18 }
 0x45a   : > { %v3556_v61 = vadd.f32 %v3554_v23, %v7528_v0 }
 0x45d   : > { %v3720_v27 = vpop.permute.xlu2 %3719 }
 0x45e   : > { %v3725_v42 = vadd.f32 %v3720_v27, %v3605_v2  ;;  %v3645_v34 = vpop.permute.xlu1 %3644  ;;  %v3620_v27 = vadd.f32 %v3615_v1, %v3548_v24 }
 0x45f   : > { %v7628_v35 = vpop.permute.xlu0 %3631  ;;  %v3650_v21 = vadd.f32 %v3645_v34, %v3562_v10 }
 0x460   : > { %v3834_v25 = vadd.f32 %v3833_v9, %v3725_v42  ;;  %v3636_v18 = vadd.f32 %v7628_v35, %v3556_v61 }
 0x462   : > { %3837 = vst.msk [vmem:[%s7626_s21] sm:$0xff] %vm3836_vm0, %v3834_v25 }
 0x465   : > { %v3737_v52 = vpop.permute.xlu2 %3736 }
 0x466   : > { %v3741_v11 = vadd.f32 %v3737_v52, %v3621_v38  ;;  %v3662_v16 = vpop.permute.xlu1 %3661  ;;  %v3591_v52 = vadd.f32 %v3589_v4, %v3533_v7 }
 0x467   : > { %v7641_v39 = vpop.permute.xlu0 %3659  ;;  %v3666_v63 = vadd.f32 %v3662_v16, %v3570_v60 }
 0x468   : > { %v3843_v54 = vadd.f32 %v3841_v36, %v3741_v11  ;;  %v3848_v11 = vstv %s4334_s28 }
 0x46a   : > { %4333 = vst.msk [vmem:[%s7626_s21 + $0x18] sm:$0x3f] %vm3838_vm1, %v3843_v54 }
 0x46d   : > { %v3765_v37 = vpop.permute.xlu2 %3764 }
 0x46e   : > { %v3770_v43 = vadd.f32 %v3765_v37, %v3650_v21  ;;  %v3690_v20 = vpop.permute.xlu1 %3689 }
 0x46f   : > { %v7652_v59 = vpop.permute.xlu0 %3676  ;;  %v3695_v2 = vadd.f32 %v3690_v20, %v3583_v13 }
 0x470   : > { %v3856_v58 = vadd.f32 %v3855_v40, %v3770_v43  ;;  %v3575_v43 = vmul.f32 %v7347_v33, %v3573_v14  ;;  %v3588_v33 = vmul.f32 %v7354_v5, %v3587_v26 }
 0x472   : > { %4338 = vst.msk [vmem:[%s7626_s21 + $0x30] sm:$0xff] %vm3836_vm0, %v3856_v58 }
 0x475   : > { %v3782_v44 = vpop.permute.xlu2 %3781 }
 0x476   : > { %v3786_v51 = vadd.f32 %v3782_v44, %v3666_v63  ;;  %v3707_v15 = vpop.permute.xlu1 %3706  ;;  %v3577_v63 = vadd.f32 %v3575_v43, %v7556_v53  ;;  %v3869_v44 = vstv %s4343_s7  ;;  %v3590_v53 = vadd.f32 %v3588_v33, %v7566_v47 }
 0x477   : > { %v7669_v17 = vpop.permute.xlu0 %3704  ;;  %v3711_v6 = vadd.f32 %v3707_v15, %v3591_v52 }
 0x478   : > { %v3864_v50 = vadd.f32 %v3862_v62, %v3786_v51 }
 0x47a   : > { %4342 = vst.msk [vmem:[%s7626_s21 + $0x48] sm:$0x3f] %vm3838_vm1, %v3864_v50 }
 0x47d   : > { %v3810_v30 = vpop.permute.xlu2 %3809 }
 0x47e   : > { %v3815_v22 = vadd.f32 %v3810_v30, %v3695_v2  ;;  %v3735_v42 = vpop.permute.xlu1 %3734 }
 0x47f   : > { %v3740_v1 = vadd.f32 %v3735_v42, %v3620_v27  ;;  %v3722_v34 = vpop.permute.xlu0 %3721 }
 0x480   : > { %v3877_v25 = vadd.f32 %v3876_v57, %v3815_v22  ;;  %v3726_v8 = vadd.f32 %v3722_v34, %v7574_v45 }
 0x481   : > { %v3842_v38 = vadd.f32 %v3841_v36, %v3740_v1 }
 0x482   : > { %4347 = vst.msk [vmem:[%s7626_s21 + $0x60] sm:$0xff] %vm3836_vm0, %v3877_v25  ;;  %v3835_v28 = vadd.f32 %v3833_v9, %v3726_v8  ;;  %v3567_v9 = vmul.f32 %v7354_v5, %v3566_v56 }
 0x483   : > { %4332 = vst.msk [vmem:[%s7626_s21 + $0x10] sm:$0xff] %vm3836_vm0, %v3842_v38 }
 0x484   : > { %3839 = vst.msk [vmem:[%s7626_s21 + $0x8] sm:$0x3f] %vm3838_vm1, %v3835_v28  ;;  %v3569_v48 = vadd.f32 %v3567_v9, %v7545_v12 }
 0x485   : > { %v3827_v45 = vpop.permute.xlu2 %3826 }
 0x486   : > { %v3831_v36 = vadd.f32 %v3827_v45, %v3711_v6  ;;  %v3752_v16 = vpop.permute.xlu1 %3751  ;;  %v3665_v56 = vadd.f32 %v7641_v39, %v3569_v48  ;;  %v3681_v39 = vadd.f32 %v7652_v59, %v3577_v63  ;;  %v3710_v59 = vadd.f32 %v7669_v17, %v3590_v53 }
 0x487   : > { %v3756_v54 = vadd.f32 %v3752_v16, %v3636_v18  ;;  %v3750_v0 = vpop.permute.xlu0 %3749 }
 0x488   : > { %v3885_v10 = vadd.f32 %v3883_v41, %v3831_v36  ;;  %v3755_v21 = vadd.f32 %v3750_v0, %v7582_v46 }
 0x489   : > { %v3850_v37 = vadd.f32 %v3848_v11, %v3756_v54 }
 0x48a   : > { %4351 = vst.msk [vmem:[%s7626_s21 + $0x78] sm:$0x3f] %vm3838_vm1, %v3885_v10  ;;  %v3849_v35 = vadd.f32 %v3848_v11, %v3755_v21 }
 0x48b   : > { %4336 = vst.msk [vmem:[%s7626_s21 + $0x28] sm:$0x3f] %vm3838_vm1, %v3850_v37 }
 0x48c   : > { %4335 = vst.msk [vmem:[%s7626_s21 + $0x20] sm:$0xff] %vm3836_vm0, %v3849_v35 }
 0x48e   : > { %v3780_v55 = vpop.permute.xlu1 %3779 }
 0x48f   : > { %v3785_v46 = vadd.f32 %v3780_v55, %v3665_v56  ;;  %v3767_v20 = vpop.permute.xlu0 %3766 }
 0x490   : > { %v3771_v58 = vadd.f32 %v3767_v20, %v7591_v49 }
 0x491   : > { %v3863_v60 = vadd.f32 %v3862_v62, %v3785_v46 }
 0x492   : > { %v3857_v12 = vadd.f32 %v3855_v40, %v3771_v58 }
 0x493   : > { %4341 = vst.msk [vmem:[%s7626_s21 + $0x40] sm:$0xff] %vm3836_vm0, %v3863_v60 }
 0x494   : > { %4339 = vst.msk [vmem:[%s7626_s21 + $0x38] sm:$0x3f] %vm3838_vm1, %v3857_v12 }
 0x496   : > { %v3797_v31 = vpop.permute.xlu1 %3796 }
 0x497   : > { %v3801_v49 = vadd.f32 %v3797_v31, %v3681_v39  ;;  %v3795_v14 = vpop.permute.xlu0 %3794 }
 0x498   : > { %v3800_v62 = vadd.f32 %v3795_v14, %v7600_v3 }
 0x499   : > { %v3871_v40 = vadd.f32 %v3869_v44, %v3801_v49 }
 0x49a   : > { %v3870_v29 = vadd.f32 %v3869_v44, %v3800_v62 }
 0x49b   : > { %4345 = vst.msk [vmem:[%s7626_s21 + $0x58] sm:$0x3f] %vm3838_vm1, %v3871_v40 }
 0x49c   : > { %4344 = vst.msk [vmem:[%s7626_s21 + $0x50] sm:$0xff] %vm3836_vm0, %v3870_v29 }
 0x49e   : > { %v3825_v51 = vpop.permute.xlu1 %3824 }
 0x49f   : > { %v3830_v15 = vadd.f32 %v3825_v51, %v3710_v59  ;;  %v3812_v19 = vpop.permute.xlu0 %3811 }
 0x4a0   : > { %v3816_v5 = vadd.f32 %v3812_v19, %v7614_v32 }
 0x4a1   : > { %v3884_v50 = vadd.f32 %v3883_v41, %v3830_v15 }
 0x4a2   : > { %v3878_v13 = vadd.f32 %v3876_v57, %v3816_v5 }
 0x4a3   : > { %4350 = vst.msk [vmem:[%s7626_s21 + $0x70] sm:$0xff] %vm3836_vm0, %v3884_v50 }
 0x4a4   : > { %4348 = vst.msk [vmem:[%s7626_s21 + $0x68] sm:$0x3f] %vm3838_vm1, %v3878_v13 }
 0x4a5 PF: > { %s18_s17 = sadd.s32 1, %s4574_s17   ;;  %s8207_s12 = smov %s4558_s13 }
 0x4a6   : > { %p15_p2 = scmp.ge.s32.totalorder %s18_s17, 4   ;;  %s8208_s13 = smov %s4562_s14 }
 0x4a7   : > { %s8209_s14 = smov %s4680_s24  ;;  %s8210_s15 = smov %s4570_s16 }
 0x4a8   : > { %s8211_s16 = smov %s8213_s6  ;;  %17 = sbr.rel (!%p15_p2) target bundleno = 6 (0x6), region = 92 }
 0x4ad   :  { %3921 = vsyncpa [#allocation3], 1 }
 0x4ae   :  { %3923 = vsyncpa [#allocation3 + $0x1], 1 }
 0x4af   :  { %3924 = vsyncpa [#allocation4], 1 }
 0x4b0   :  { %3926 = vsyncpa [#allocation4 + $0x1], 1 }
 0x4b1   :  { %3927 = vsyncpa [#allocation5], 1 }
 0x4b2   :  { %3929 = vsyncpa [#allocation5 + $0x1], 1 }

</bundles_post_ra>
